<compile_context>
chip_gen: v7x
topology: tpu7x:2x2x1
jax: 0.10.0
libtpu: 0.0.40
codegen_flags: <defaults>
</compile_context>

<pallas_src>
import functools

import jax
import jax.numpy as jnp
from jax.experimental import pallas as pl
from jax.experimental.pallas import tpu as pltpu

EPS = 1e-5  # PyTorch LayerNorm default eps


def _round_up(n, m):
    return ((n + m - 1) // m) * m


def _layer_norm(x, w, b):
    # f32 math, biased variance + eps, matching torch.nn.LayerNorm
    mu = jnp.mean(x, axis=-1, keepdims=True)
    var = jnp.mean((x - mu) ** 2, axis=-1, keepdims=True)
    return (x - mu) * jax.lax.rsqrt(var + EPS) * w + b


def _device_tuning():
    """(max rows per batch tile, vmem_limit_bytes) per TPU generation."""
    try:
        kind = jax.devices()[0].device_kind.lower()
    except Exception:
        kind = ""
    if "v6" in kind:          # v6e: 128 MiB VMEM, 1 TC -> big tiles amortize step overhead
        return 1024, 64 << 20
    if "v5" in kind:          # v5e: 4x128x128 MXU saturates earlier; 16 MiB default scoped VMEM
        return 512, 32 << 20
    # v7x / unknown: only 64 MiB VMEM per TensorCore -> stay conservative
    return 512, 40 << 20


def transformer_cluster_kernel(num_layers, hidden_dim, dff, *refs):
    """refs = [x(bf16), packed_small(f32), w_emb(bf16),
               per layer: (w_attn, w_ff1, w_ff2) bf16, out].

    packed_small (f32, shape (1, K)) layout:
      [ b_emb(H) | per layer: b_attn(H) n1_w(H) n1_b(H) n2_w(H) n2_b(H)
                              b_ff2(H) b_ff1(dff) ]
    All segment offsets are multiples of 128 because H and dff are.
    """
    x_ref, pk_ref, w_emb = refs[0], refs[1], refs[2]
    out_ref = refs[-1]
    wrefs = refs[3:-1]  # 3 bf16 weight matrices per layer
    H, F = hidden_dim, dff

    def seg(off, n):  # static slice of the packed small-param vector -> (1, n) f32
        return pk_ref[:, off:off + n]

    # embedding: nn.Linear(input_dim, hidden_dim); bf16 dot inputs, f32 accumulate
    h = jnp.dot(x_ref[...], w_emb[...], preferred_element_type=jnp.float32) + seg(0, H)

    for l in range(num_layers):
        w_attn, w_ff1, w_ff2 = wrefs[3 * l:3 * l + 3]
        base = H + l * (6 * H + F)
        b_attn = seg(base + 0 * H, H)
        n1_w   = seg(base + 1 * H, H)
        n1_b   = seg(base + 2 * H, H)
        n2_w   = seg(base + 3 * H, H)
        n2_b   = seg(base + 4 * H, H)
        b_ff2  = seg(base + 5 * H, H)
        b_ff1  = seg(base + 6 * H, F)

        # --- self-attention block (exact: seq_len == 1 => softmax == 1.0) ---
        # attn = out_proj(v_proj(h)) = h @ (w_v @ w_out) + (b_v @ w_out + b_out)
        attn = jnp.dot(h.astype(jnp.bfloat16), w_attn[...],
                       preferred_element_type=jnp.float32) + b_attn
        # post-norm (norm_first=False): x = norm1(x + sa(x))
        h = _layer_norm(h + attn, n1_w, n1_b)

        # --- feed-forward block: linear2(relu(linear1(x))) ---
        ff = jnp.dot(h.astype(jnp.bfloat16), w_ff1[...],
                     preferred_element_type=jnp.float32) + b_ff1
        ff = jnp.maximum(ff, 0.0)  # default activation = relu
        ff = jnp.dot(ff.astype(jnp.bfloat16), w_ff2[...],
                     preferred_element_type=jnp.float32) + b_ff2
        h = _layer_norm(h + ff, n2_w, n2_b)

    out_ref[...] = h.astype(out_ref.dtype)


def _make_in_specs(block_b, din, packed_shape, w_emb_shape, big_shapes, single_buffer):
    def invariant(shape):
        # Grid-invariant: block index never changes, so the second pipeline
        # buffer is pure VMEM waste -> single-buffer when supported.
        if single_buffer:
            return pl.BlockSpec(shape, lambda i: (0, 0), pipeline_mode=pl.Buffered(1))
        return pl.BlockSpec(shape, lambda i: (0, 0))

    in_specs = [
        pl.BlockSpec((block_b, din), lambda i: (i, 0)),  # x: batch-tiled (streams)
        invariant(packed_shape),                         # packed biases / LN params
        invariant(w_emb_shape),                          # embedding weight
    ]
    in_specs += [invariant(s) for s in big_shapes]       # per-layer weights
    return in_specs


def transformer_clusterer_forward(x, params, *, hidden_dim, dff, num_layers):
    B, Din = x.shape
    H, F = hidden_dim, dff

    # --- batch tiling: equalized tiles to minimize padded-row waste; aim for
    # >= 2 tiles (both v7x TensorCores) whenever the batch is big enough ---
    max_b, vmem_limit = _device_tuning()
    n_tiles = max(2, -(-B // max_b)) if B > 8 else 1
    block_b = _round_up(-(-B // n_tiles), 8)
    B_pad = _round_up(B, block_b)
    # NOTE: zero-padded rows go through LayerNorm with var=0; the result is
    # finite only because of +EPS, and those rows are sliced off before return.
    # Do not remove the pad-then-slice.
    if B_pad != B:
        x = jnp.pad(x, ((0, B_pad - B), (0, 0)))
    x = x.astype(jnp.bfloat16)  # MXU consumes bf16; halves x DMA bytes

    # --- host-side parameter prep: fuse attention, bf16 weights, pack smalls ---
    w_emb = params["w_emb"].astype(jnp.bfloat16)
    small = [params["b_emb"].reshape(1, H)]
    big = []
    for lp in params["layers"]:
        w_v = lp["w_in"][:, 2 * H:3 * H]          # V columns of in_proj only
        b_v = lp["b_in"][:, 2 * H:3 * H]
        # Compose the collapsed attention in f32, THEN cast to bf16.
        w_attn = (w_v @ lp["w_out"]).astype(jnp.bfloat16)
        b_attn = b_v @ lp["w_out"] + lp["b_out"]
        big.extend([w_attn,
                    lp["w_ff1"].astype(jnp.bfloat16),
                    lp["w_ff2"].astype(jnp.bfloat16)])
        small.extend([b_attn, lp["n1_w"], lp["n1_b"],
                      lp["n2_w"], lp["n2_b"], lp["b_ff2"], lp["b_ff1"]])
    packed = jnp.concatenate(
        [p.reshape(1, -1).astype(jnp.float32) for p in small], axis=1)

    kernel = functools.partial(transformer_cluster_kernel, num_layers, H, F)
    out_spec = pl.BlockSpec((block_b, H), lambda i: (i, 0))
    out_shape = jax.ShapeDtypeStruct((B_pad, H), jnp.float32)
    cparams = pltpu.CompilerParams(
        dimension_semantics=("parallel",),
        vmem_limit_bytes=vmem_limit,
    )

    def run(single_buffer):
        in_specs = _make_in_specs(block_b, Din, packed.shape, w_emb.shape,
                                  [a.shape for a in big], single_buffer)
        return pl.pallas_call(
            kernel,
            out_shape=out_shape,
            grid=(B_pad // block_b,),
            in_specs=in_specs,
            out_specs=out_spec,
            compiler_params=cparams,
        )(x, packed, w_emb, *big)

    try:
        out = run(True)    # preferred: grid-invariant weights single-buffered
    except Exception:
        out = run(False)   # fallback: default double-buffering
    return out[:B]


# --------------------------------------------------------------------------
# deterministic parameter construction (synthetic weights, matches shapes of
# nn.Linear / nn.TransformerEncoderLayer(d_model=H, nhead=4) with defaults)
# --------------------------------------------------------------------------
def init_params(key, input_dim, hidden_dim, dff, num_layers):
    def nrm(k, shape, scale=0.05):
        return scale * jax.random.normal(k, shape, dtype=jnp.float32)

    keys = iter(jax.random.split(key, 4 + num_layers * 16))
    H = hidden_dim
    params = {
        "w_emb": nrm(next(keys), (input_dim, H)),
        "b_emb": nrm(next(keys), (1, H)),
        "layers": [],
    }
    for _ in range(num_layers):
        lp = {
            "w_in": nrm(next(keys), (H, 3 * H)),     # in_proj_weight (transposed)
            "b_in": nrm(next(keys), (1, 3 * H)),
            "w_out": nrm(next(keys), (H, H)),        # out_proj (transposed)
            "b_out": nrm(next(keys), (1, H)),
            "w_ff1": nrm(next(keys), (H, dff)),      # linear1 (transposed)
            "b_ff1": nrm(next(keys), (1, dff)),
            "w_ff2": nrm(next(keys), (dff, H)),      # linear2 (transposed)
            "b_ff2": nrm(next(keys), (1, H)),
            "n1_w": jnp.ones((1, H), jnp.float32),
            "n1_b": jnp.zeros((1, H), jnp.float32),
            "n2_w": jnp.ones((1, H), jnp.float32),
            "n2_b": jnp.zeros((1, H), jnp.float32),
        }
        params["layers"].append(lp)
    return params


# --------------------------------------------------------------------------
# pure-JAX f32 reference (full multi-head attention, incl. softmax over seq=1),
# used to verify the kernel's fused/collapsed-attention math
# --------------------------------------------------------------------------
def reference_forward(x, params, *, hidden_dim, nhead, num_layers):
    H = hidden_dim
    dh = H // nhead
    h = x @ params["w_emb"] + params["b_emb"]      # embedding
    h = h[:, None, :]                              # unsqueeze(1) -> (B, 1, H)
    B = h.shape[0]

    def ln(t, w, b):
        mu = jnp.mean(t, axis=-1, keepdims=True)
        var = jnp.mean((t - mu) ** 2, axis=-1, keepdims=True)
        return (t - mu) * jax.lax.rsqrt(var + EPS) * w + b

    for lp in params["layers"]:
        qkv = h @ lp["w_in"] + lp["b_in"]
        q, k, v = jnp.split(qkv, 3, axis=-1)
        to_heads = lambda t: t.reshape(B, 1, nhead, dh).transpose(0, 2, 1, 3)
        qh, kh, vh = to_heads(q), to_heads(k), to_heads(v)
        scores = (qh @ kh.transpose(0, 1, 3, 2)) / jnp.sqrt(jnp.float32(dh))
        attnw = jax.nn.softmax(scores, axis=-1)    # (B, nhead, 1, 1) == 1.0
        ctx = (attnw @ vh).transpose(0, 2, 1, 3).reshape(B, 1, H)
        attn = ctx @ lp["w_out"] + lp["b_out"]
        h = ln(h + attn, lp["n1_w"], lp["n1_b"])
        ff = jax.nn.relu(h @ lp["w_ff1"] + lp["b_ff1"]) @ lp["w_ff2"] + lp["b_ff2"]
        h = ln(h + ff, lp["n2_w"], lp["n2_b"])
    return h.reshape(-1, H)                        # encoded.view(-1, H)


if __name__ == "__main__":
    # small shapes consistent with the module (defaults: hidden_dim=128, nhead=4,
    # num_layers=2, dim_feedforward=2048)
    B, INPUT_DIM = 8, 16
    HIDDEN, NHEAD, NUM_LAYERS, DFF = 128, 4, 2, 2048

    key = jax.random.PRNGKey(0)
    kx, kp = jax.random.split(key)
    x = jax.random.normal(kx, (B, INPUT_DIM), dtype=jnp.float32)
    params = init_params(kp, INPUT_DIM, HIDDEN, DFF, NUM_LAYERS)

    out = transformer_clusterer_forward(x, params, hidden_dim=HIDDEN, dff=DFF,
                                        num_layers=NUM_LAYERS)
    out = jax.block_until_ready(out)

    ref = reference_forward(x, params, hidden_dim=HIDDEN, nhead=NHEAD,
                            num_layers=NUM_LAYERS)
    assert out.shape == (B, HIDDEN)
    # Tolerance loosened vs f32 reference because x / weights / dot inputs are bf16.
    assert jnp.allclose(out, ref, rtol=5e-2, atol=1e-1), "mismatch vs reference"
    print("KERNEL_OK")
</pallas_src>

<mosaic_0001>
module attributes {stable_mosaic.version = 11 : i64} {
  func.func @transformer_cluster_kernel(%arg0: i32, %arg1: memref<8x16xbf16, #tpu.memory_space<vmem>>, %arg2: memref<1x5760xf32, #tpu.memory_space<vmem>>, %arg3: memref<16x128xbf16, #tpu.memory_space<vmem>>, %arg4: memref<128x128xbf16, #tpu.memory_space<vmem>>, %arg5: memref<128x2048xbf16, #tpu.memory_space<vmem>>, %arg6: memref<2048x128xbf16, #tpu.memory_space<vmem>>, %arg7: memref<128x128xbf16, #tpu.memory_space<vmem>>, %arg8: memref<128x2048xbf16, #tpu.memory_space<vmem>>, %arg9: memref<2048x128xbf16, #tpu.memory_space<vmem>>, %arg10: memref<8x128xf32, #tpu.memory_space<vmem>>) attributes {dimension_semantics = [#tpu.dimension_semantics<parallel>], iteration_bounds = array<i64: 1>, scalar_prefetch = 0 : i64, scratch_operands = 0 : i64, tpu.core_type = #tpu.core_type<tc>, window_params = [{transform_indices = @transform_0, window_bounds = array<i64: 8, 16>}, {pipeline_mode = #tpu.pipeline_mode<synchronous>, transform_indices = @transform_1, window_bounds = array<i64: 1, 5760>}, {pipeline_mode = #tpu.pipeline_mode<synchronous>, transform_indices = @transform_2, window_bounds = array<i64: 16, 128>}, {pipeline_mode = #tpu.pipeline_mode<synchronous>, transform_indices = @transform_3, window_bounds = array<i64: 128, 128>}, {pipeline_mode = #tpu.pipeline_mode<synchronous>, transform_indices = @transform_4, window_bounds = array<i64: 128, 2048>}, {pipeline_mode = #tpu.pipeline_mode<synchronous>, transform_indices = @transform_5, window_bounds = array<i64: 2048, 128>}, {pipeline_mode = #tpu.pipeline_mode<synchronous>, transform_indices = @transform_6, window_bounds = array<i64: 128, 128>}, {pipeline_mode = #tpu.pipeline_mode<synchronous>, transform_indices = @transform_7, window_bounds = array<i64: 128, 2048>}, {pipeline_mode = #tpu.pipeline_mode<synchronous>, transform_indices = @transform_8, window_bounds = array<i64: 2048, 128>}, {transform_indices = @transform_9, window_bounds = array<i64: 8, 128>}]} {
    %c0 = arith.constant 0 : index
    %c0_0 = arith.constant 0 : index
    %0 = vector.load %arg1[%c0, %c0_0] : memref<8x16xbf16, #tpu.memory_space<vmem>>, vector<8x16xbf16>
    %c0_1 = arith.constant 0 : index
    %c0_2 = arith.constant 0 : index
    %1 = vector.load %arg3[%c0_1, %c0_2] : memref<16x128xbf16, #tpu.memory_space<vmem>>, vector<16x128xbf16>
    %cst = arith.constant dense<0.000000e+00> : vector<8x128xf32>
    %2 = tpu.matmul %0, %1, %cst {dimension_numbers = #tpu.dot_dimension_numbers<[1], [0], [0], [1], [0, 0, 1, 1], [], []>} : vector<8x16xbf16>, vector<16x128xbf16>, vector<8x128xf32> -> vector<8x128xf32>
    %c0_3 = arith.constant 0 : index
    %c0_4 = arith.constant 0 : index
    %3 = vector.load %arg2[%c0_3, %c0_4] : memref<1x5760xf32, #tpu.memory_space<vmem>>, vector<1x128xf32>
    %4 = vector.broadcast %3 : vector<1x128xf32> to vector<8x128xf32>
    %5 = arith.addf %2, %4 : vector<8x128xf32>
    %c0_5 = arith.constant 0 : index
    %c128 = arith.constant 128 : index
    %6 = vector.load %arg2[%c0_5, %c128] : memref<1x5760xf32, #tpu.memory_space<vmem>>, vector<1x128xf32>
    %c0_6 = arith.constant 0 : index
    %c256 = arith.constant 256 : index
    %7 = vector.load %arg2[%c0_6, %c256] : memref<1x5760xf32, #tpu.memory_space<vmem>>, vector<1x128xf32>
    %c0_7 = arith.constant 0 : index
    %c384 = arith.constant 384 : index
    %8 = vector.load %arg2[%c0_7, %c384] : memref<1x5760xf32, #tpu.memory_space<vmem>>, vector<1x128xf32>
    %c0_8 = arith.constant 0 : index
    %c512 = arith.constant 512 : index
    %9 = vector.load %arg2[%c0_8, %c512] : memref<1x5760xf32, #tpu.memory_space<vmem>>, vector<1x128xf32>
    %c0_9 = arith.constant 0 : index
    %c640 = arith.constant 640 : index
    %10 = vector.load %arg2[%c0_9, %c640] : memref<1x5760xf32, #tpu.memory_space<vmem>>, vector<1x128xf32>
    %c0_10 = arith.constant 0 : index
    %c768 = arith.constant 768 : index
    %11 = vector.load %arg2[%c0_10, %c768] : memref<1x5760xf32, #tpu.memory_space<vmem>>, vector<1x128xf32>
    %c0_11 = arith.constant 0 : index
    %c896 = arith.constant 896 : index
    %12 = vector.load %arg2[%c0_11, %c896] : memref<1x5760xf32, #tpu.memory_space<vmem>>, vector<1x2048xf32>
    %13 = arith.truncf %5 : vector<8x128xf32> to vector<8x128xbf16>
    %c0_12 = arith.constant 0 : index
    %c0_13 = arith.constant 0 : index
    %14 = vector.load %arg4[%c0_12, %c0_13] : memref<128x128xbf16, #tpu.memory_space<vmem>>, vector<128x128xbf16>
    %cst_14 = arith.constant dense<0.000000e+00> : vector<8x128xf32>
    %15 = tpu.matmul %13, %14, %cst_14 {dimension_numbers = #tpu.dot_dimension_numbers<[1], [0], [0], [1], [0, 0, 1, 1], [], []>} : vector<8x128xbf16>, vector<128x128xbf16>, vector<8x128xf32> -> vector<8x128xf32>
    %16 = vector.broadcast %6 : vector<1x128xf32> to vector<8x128xf32>
    %17 = arith.addf %15, %16 : vector<8x128xf32>
    %18 = arith.addf %5, %17 : vector<8x128xf32>
    %cst_15 = arith.constant dense<0.000000e+00> : vector<8xf32>
    %19 = vector.multi_reduction <add>, %18, %cst_15 [1] : vector<8x128xf32> to vector<8xf32>
    %20 = vector.shape_cast %19 : vector<8xf32> to vector<8x1xf32>
    %cst_16 = arith.constant 1.280000e+02 : f32
    %21 = vector.broadcast %cst_16 : f32 to vector<8x1xf32>
    %22 = arith.divf %20, %21 : vector<8x1xf32>
    %23 = vector.broadcast %22 : vector<8x1xf32> to vector<8x128xf32>
    %24 = arith.subf %18, %23 : vector<8x128xf32>
    %25 = arith.mulf %24, %24 : vector<8x128xf32>
    %cst_17 = arith.constant dense<0.000000e+00> : vector<8xf32>
    %26 = vector.multi_reduction <add>, %25, %cst_17 [1] : vector<8x128xf32> to vector<8xf32>
    %27 = vector.shape_cast %26 : vector<8xf32> to vector<8x1xf32>
    %cst_18 = arith.constant 1.280000e+02 : f32
    %28 = vector.broadcast %cst_18 : f32 to vector<8x1xf32>
    %29 = arith.divf %27, %28 : vector<8x1xf32>
    %30 = vector.broadcast %22 : vector<8x1xf32> to vector<8x128xf32>
    %31 = arith.subf %18, %30 : vector<8x128xf32>
    %cst_19 = arith.constant 9.99999974E-6 : f32
    %32 = vector.broadcast %cst_19 : f32 to vector<8x1xf32>
    %33 = arith.addf %29, %32 : vector<8x1xf32>
    %34 = math.rsqrt %33 : vector<8x1xf32>
    %35 = vector.broadcast %34 : vector<8x1xf32> to vector<8x128xf32>
    %36 = arith.mulf %31, %35 : vector<8x128xf32>
    %37 = vector.broadcast %7 : vector<1x128xf32> to vector<8x128xf32>
    %38 = arith.mulf %36, %37 : vector<8x128xf32>
    %39 = vector.broadcast %8 : vector<1x128xf32> to vector<8x128xf32>
    %40 = arith.addf %38, %39 : vector<8x128xf32>
    %41 = arith.truncf %40 : vector<8x128xf32> to vector<8x128xbf16>
    %c0_20 = arith.constant 0 : index
    %c0_21 = arith.constant 0 : index
    %42 = vector.load %arg5[%c0_20, %c0_21] : memref<128x2048xbf16, #tpu.memory_space<vmem>>, vector<128x2048xbf16>
    %cst_22 = arith.constant dense<0.000000e+00> : vector<8x2048xf32>
    %43 = tpu.matmul %41, %42, %cst_22 {dimension_numbers = #tpu.dot_dimension_numbers<[1], [0], [0], [1], [0, 0, 1, 1], [], []>} : vector<8x128xbf16>, vector<128x2048xbf16>, vector<8x2048xf32> -> vector<8x2048xf32>
    %44 = vector.broadcast %12 : vector<1x2048xf32> to vector<8x2048xf32>
    %45 = arith.addf %43, %44 : vector<8x2048xf32>
    %cst_23 = arith.constant 0.000000e+00 : f32
    %46 = vector.broadcast %cst_23 : f32 to vector<8x2048xf32>
    %47 = arith.maximumf %45, %46 : vector<8x2048xf32>
    %48 = arith.truncf %47 : vector<8x2048xf32> to vector<8x2048xbf16>
    %c0_24 = arith.constant 0 : index
    %c0_25 = arith.constant 0 : index
    %49 = vector.load %arg6[%c0_24, %c0_25] : memref<2048x128xbf16, #tpu.memory_space<vmem>>, vector<2048x128xbf16>
    %cst_26 = arith.constant dense<0.000000e+00> : vector<8x128xf32>
    %50 = tpu.matmul %48, %49, %cst_26 {dimension_numbers = #tpu.dot_dimension_numbers<[1], [0], [0], [1], [0, 0, 1, 1], [], []>} : vector<8x2048xbf16>, vector<2048x128xbf16>, vector<8x128xf32> -> vector<8x128xf32>
    %51 = vector.broadcast %11 : vector<1x128xf32> to vector<8x128xf32>
    %52 = arith.addf %50, %51 : vector<8x128xf32>
    %53 = arith.addf %40, %52 : vector<8x128xf32>
    %cst_27 = arith.constant dense<0.000000e+00> : vector<8xf32>
    %54 = vector.multi_reduction <add>, %53, %cst_27 [1] : vector<8x128xf32> to vector<8xf32>
    %55 = vector.shape_cast %54 : vector<8xf32> to vector<8x1xf32>
    %cst_28 = arith.constant 1.280000e+02 : f32
    %56 = vector.broadcast %cst_28 : f32 to vector<8x1xf32>
    %57 = arith.divf %55, %56 : vector<8x1xf32>
    %58 = vector.broadcast %57 : vector<8x1xf32> to vector<8x128xf32>
    %59 = arith.subf %53, %58 : vector<8x128xf32>
    %60 = arith.mulf %59, %59 : vector<8x128xf32>
    %cst_29 = arith.constant dense<0.000000e+00> : vector<8xf32>
    %61 = vector.multi_reduction <add>, %60, %cst_29 [1] : vector<8x128xf32> to vector<8xf32>
    %62 = vector.shape_cast %61 : vector<8xf32> to vector<8x1xf32>
    %cst_30 = arith.constant 1.280000e+02 : f32
    %63 = vector.broadcast %cst_30 : f32 to vector<8x1xf32>
    %64 = arith.divf %62, %63 : vector<8x1xf32>
    %65 = vector.broadcast %57 : vector<8x1xf32> to vector<8x128xf32>
    %66 = arith.subf %53, %65 : vector<8x128xf32>
    %cst_31 = arith.constant 9.99999974E-6 : f32
    %67 = vector.broadcast %cst_31 : f32 to vector<8x1xf32>
    %68 = arith.addf %64, %67 : vector<8x1xf32>
    %69 = math.rsqrt %68 : vector<8x1xf32>
    %70 = vector.broadcast %69 : vector<8x1xf32> to vector<8x128xf32>
    %71 = arith.mulf %66, %70 : vector<8x128xf32>
    %72 = vector.broadcast %9 : vector<1x128xf32> to vector<8x128xf32>
    %73 = arith.mulf %71, %72 : vector<8x128xf32>
    %74 = vector.broadcast %10 : vector<1x128xf32> to vector<8x128xf32>
    %75 = arith.addf %73, %74 : vector<8x128xf32>
    %c0_32 = arith.constant 0 : index
    %c2944 = arith.constant 2944 : index
    %76 = vector.load %arg2[%c0_32, %c2944] : memref<1x5760xf32, #tpu.memory_space<vmem>>, vector<1x128xf32>
    %c0_33 = arith.constant 0 : index
    %c3072 = arith.constant 3072 : index
    %77 = vector.load %arg2[%c0_33, %c3072] : memref<1x5760xf32, #tpu.memory_space<vmem>>, vector<1x128xf32>
    %c0_34 = arith.constant 0 : index
    %c3200 = arith.constant 3200 : index
    %78 = vector.load %arg2[%c0_34, %c3200] : memref<1x5760xf32, #tpu.memory_space<vmem>>, vector<1x128xf32>
    %c0_35 = arith.constant 0 : index
    %c3328 = arith.constant 3328 : index
    %79 = vector.load %arg2[%c0_35, %c3328] : memref<1x5760xf32, #tpu.memory_space<vmem>>, vector<1x128xf32>
    %c0_36 = arith.constant 0 : index
    %c3456 = arith.constant 3456 : index
    %80 = vector.load %arg2[%c0_36, %c3456] : memref<1x5760xf32, #tpu.memory_space<vmem>>, vector<1x128xf32>
    %c0_37 = arith.constant 0 : index
    %c3584 = arith.constant 3584 : index
    %81 = vector.load %arg2[%c0_37, %c3584] : memref<1x5760xf32, #tpu.memory_space<vmem>>, vector<1x128xf32>
    %c0_38 = arith.constant 0 : index
    %c3712 = arith.constant 3712 : index
    %82 = vector.load %arg2[%c0_38, %c3712] : memref<1x5760xf32, #tpu.memory_space<vmem>>, vector<1x2048xf32>
    %83 = arith.truncf %75 : vector<8x128xf32> to vector<8x128xbf16>
    %c0_39 = arith.constant 0 : index
    %c0_40 = arith.constant 0 : index
    %84 = vector.load %arg7[%c0_39, %c0_40] : memref<128x128xbf16, #tpu.memory_space<vmem>>, vector<128x128xbf16>
    %cst_41 = arith.constant dense<0.000000e+00> : vector<8x128xf32>
    %85 = tpu.matmul %83, %84, %cst_41 {dimension_numbers = #tpu.dot_dimension_numbers<[1], [0], [0], [1], [0, 0, 1, 1], [], []>} : vector<8x128xbf16>, vector<128x128xbf16>, vector<8x128xf32> -> vector<8x128xf32>
    %86 = vector.broadcast %76 : vector<1x128xf32> to vector<8x128xf32>
    %87 = arith.addf %85, %86 : vector<8x128xf32>
    %88 = arith.addf %75, %87 : vector<8x128xf32>
    %cst_42 = arith.constant dense<0.000000e+00> : vector<8xf32>
    %89 = vector.multi_reduction <add>, %88, %cst_42 [1] : vector<8x128xf32> to vector<8xf32>
    %90 = vector.shape_cast %89 : vector<8xf32> to vector<8x1xf32>
    %cst_43 = arith.constant 1.280000e+02 : f32
    %91 = vector.broadcast %cst_43 : f32 to vector<8x1xf32>
    %92 = arith.divf %90, %91 : vector<8x1xf32>
    %93 = vector.broadcast %92 : vector<8x1xf32> to vector<8x128xf32>
    %94 = arith.subf %88, %93 : vector<8x128xf32>
    %95 = arith.mulf %94, %94 : vector<8x128xf32>
    %cst_44 = arith.constant dense<0.000000e+00> : vector<8xf32>
    %96 = vector.multi_reduction <add>, %95, %cst_44 [1] : vector<8x128xf32> to vector<8xf32>
    %97 = vector.shape_cast %96 : vector<8xf32> to vector<8x1xf32>
    %cst_45 = arith.constant 1.280000e+02 : f32
    %98 = vector.broadcast %cst_45 : f32 to vector<8x1xf32>
    %99 = arith.divf %97, %98 : vector<8x1xf32>
    %100 = vector.broadcast %92 : vector<8x1xf32> to vector<8x128xf32>
    %101 = arith.subf %88, %100 : vector<8x128xf32>
    %cst_46 = arith.constant 9.99999974E-6 : f32
    %102 = vector.broadcast %cst_46 : f32 to vector<8x1xf32>
    %103 = arith.addf %99, %102 : vector<8x1xf32>
    %104 = math.rsqrt %103 : vector<8x1xf32>
    %105 = vector.broadcast %104 : vector<8x1xf32> to vector<8x128xf32>
    %106 = arith.mulf %101, %105 : vector<8x128xf32>
    %107 = vector.broadcast %77 : vector<1x128xf32> to vector<8x128xf32>
    %108 = arith.mulf %106, %107 : vector<8x128xf32>
    %109 = vector.broadcast %78 : vector<1x128xf32> to vector<8x128xf32>
    %110 = arith.addf %108, %109 : vector<8x128xf32>
    %111 = arith.truncf %110 : vector<8x128xf32> to vector<8x128xbf16>
    %c0_47 = arith.constant 0 : index
    %c0_48 = arith.constant 0 : index
    %112 = vector.load %arg8[%c0_47, %c0_48] : memref<128x2048xbf16, #tpu.memory_space<vmem>>, vector<128x2048xbf16>
    %cst_49 = arith.constant dense<0.000000e+00> : vector<8x2048xf32>
    %113 = tpu.matmul %111, %112, %cst_49 {dimension_numbers = #tpu.dot_dimension_numbers<[1], [0], [0], [1], [0, 0, 1, 1], [], []>} : vector<8x128xbf16>, vector<128x2048xbf16>, vector<8x2048xf32> -> vector<8x2048xf32>
    %114 = vector.broadcast %82 : vector<1x2048xf32> to vector<8x2048xf32>
    %115 = arith.addf %113, %114 : vector<8x2048xf32>
    %cst_50 = arith.constant 0.000000e+00 : f32
    %116 = vector.broadcast %cst_50 : f32 to vector<8x2048xf32>
    %117 = arith.maximumf %115, %116 : vector<8x2048xf32>
    %118 = arith.truncf %117 : vector<8x2048xf32> to vector<8x2048xbf16>
    %c0_51 = arith.constant 0 : index
    %c0_52 = arith.constant 0 : index
    %119 = vector.load %arg9[%c0_51, %c0_52] : memref<2048x128xbf16, #tpu.memory_space<vmem>>, vector<2048x128xbf16>
    %cst_53 = arith.constant dense<0.000000e+00> : vector<8x128xf32>
    %120 = tpu.matmul %118, %119, %cst_53 {dimension_numbers = #tpu.dot_dimension_numbers<[1], [0], [0], [1], [0, 0, 1, 1], [], []>} : vector<8x2048xbf16>, vector<2048x128xbf16>, vector<8x128xf32> -> vector<8x128xf32>
    %121 = vector.broadcast %81 : vector<1x128xf32> to vector<8x128xf32>
    %122 = arith.addf %120, %121 : vector<8x128xf32>
    %123 = arith.addf %110, %122 : vector<8x128xf32>
    %cst_54 = arith.constant dense<0.000000e+00> : vector<8xf32>
    %124 = vector.multi_reduction <add>, %123, %cst_54 [1] : vector<8x128xf32> to vector<8xf32>
    %125 = vector.shape_cast %124 : vector<8xf32> to vector<8x1xf32>
    %cst_55 = arith.constant 1.280000e+02 : f32
    %126 = vector.broadcast %cst_55 : f32 to vector<8x1xf32>
    %127 = arith.divf %125, %126 : vector<8x1xf32>
    %128 = vector.broadcast %127 : vector<8x1xf32> to vector<8x128xf32>
    %129 = arith.subf %123, %128 : vector<8x128xf32>
    %130 = arith.mulf %129, %129 : vector<8x128xf32>
    %cst_56 = arith.constant dense<0.000000e+00> : vector<8xf32>
    %131 = vector.multi_reduction <add>, %130, %cst_56 [1] : vector<8x128xf32> to vector<8xf32>
    %132 = vector.shape_cast %131 : vector<8xf32> to vector<8x1xf32>
    %cst_57 = arith.constant 1.280000e+02 : f32
    %133 = vector.broadcast %cst_57 : f32 to vector<8x1xf32>
    %134 = arith.divf %132, %133 : vector<8x1xf32>
    %135 = vector.broadcast %127 : vector<8x1xf32> to vector<8x128xf32>
    %136 = arith.subf %123, %135 : vector<8x128xf32>
    %cst_58 = arith.constant 9.99999974E-6 : f32
    %137 = vector.broadcast %cst_58 : f32 to vector<8x1xf32>
    %138 = arith.addf %134, %137 : vector<8x1xf32>
    %139 = math.rsqrt %138 : vector<8x1xf32>
    %140 = vector.broadcast %139 : vector<8x1xf32> to vector<8x128xf32>
    %141 = arith.mulf %136, %140 : vector<8x128xf32>
    %142 = vector.broadcast %79 : vector<1x128xf32> to vector<8x128xf32>
    %143 = arith.mulf %141, %142 : vector<8x128xf32>
    %144 = vector.broadcast %80 : vector<1x128xf32> to vector<8x128xf32>
    %145 = arith.addf %143, %144 : vector<8x128xf32>
    %c0_59 = arith.constant 0 : index
    %c0_60 = arith.constant 0 : index
    %146 = vector.load %arg10[%c0_59, %c0_60] : memref<8x128xf32, #tpu.memory_space<vmem>>, vector<8x128xf32>
    tpu.vector_store %arg10[%c0_59, %c0_60], %145 {strides = array<i32>} : memref<8x128xf32, #tpu.memory_space<vmem>>, vector<8x128xf32>,
    return
  }
  func.func @transform_0(%arg0: i32) -> (i32, i32) {
    %c0_i32 = arith.constant 0 : i32
    %c0_i32_0 = arith.constant 0 : i32
    return %arg0, %c0_i32 : i32, i32
  }
  func.func @transform_1(%arg0: i32) -> (i32, i32) {
    %c0_i32 = arith.constant 0 : i32
    %c0_i32_0 = arith.constant 0 : i32
    %c0_i32_1 = arith.constant 0 : i32
    return %c0_i32, %c0_i32_0 : i32, i32
  }
  func.func @transform_2(%arg0: i32) -> (i32, i32) {
    %c0_i32 = arith.constant 0 : i32
    %c0_i32_0 = arith.constant 0 : i32
    %c0_i32_1 = arith.constant 0 : i32
    return %c0_i32, %c0_i32_0 : i32, i32
  }
  func.func @transform_3(%arg0: i32) -> (i32, i32) {
    %c0_i32 = arith.constant 0 : i32
    %c0_i32_0 = arith.constant 0 : i32
    %c0_i32_1 = arith.constant 0 : i32
    return %c0_i32, %c0_i32_0 : i32, i32
  }
  func.func @transform_4(%arg0: i32) -> (i32, i32) {
    %c0_i32 = arith.constant 0 : i32
    %c0_i32_0 = arith.constant 0 : i32
    %c0_i32_1 = arith.constant 0 : i32
    return %c0_i32, %c0_i32_0 : i32, i32
  }
  func.func @transform_5(%arg0: i32) -> (i32, i32) {
    %c0_i32 = arith.constant 0 : i32
    %c0_i32_0 = arith.constant 0 : i32
    %c0_i32_1 = arith.constant 0 : i32
    return %c0_i32, %c0_i32_0 : i32, i32
  }
  func.func @transform_6(%arg0: i32) -> (i32, i32) {
    %c0_i32 = arith.constant 0 : i32
    %c0_i32_0 = arith.constant 0 : i32
    %c0_i32_1 = arith.constant 0 : i32
    return %c0_i32, %c0_i32_0 : i32, i32
  }
  func.func @transform_7(%arg0: i32) -> (i32, i32) {
    %c0_i32 = arith.constant 0 : i32
    %c0_i32_0 = arith.constant 0 : i32
    %c0_i32_1 = arith.constant 0 : i32
    return %c0_i32, %c0_i32_0 : i32, i32
  }
  func.func @transform_8(%arg0: i32) -> (i32, i32) {
    %c0_i32 = arith.constant 0 : i32
    %c0_i32_0 = arith.constant 0 : i32
    %c0_i32_1 = arith.constant 0 : i32
    return %c0_i32, %c0_i32_0 : i32, i32
  }
  func.func @transform_9(%arg0: i32) -> (i32, i32) {
    %c0_i32 = arith.constant 0 : i32
    %c0_i32_0 = arith.constant 0 : i32
    return %arg0, %c0_i32 : i32, i32
  }
}

module attributes {stable_mosaic.version = 11 : i64} {
  func.func @transformer_cluster_kernel(%arg0: i32, %arg1: memref<8x16xbf16, #tpu.memory_space<vmem>>, %arg2: memref<1x5760xf32, #tpu.memory_space<vmem>>, %arg3: memref<16x128xbf16, #tpu.memory_space<vmem>>, %arg4: memref<128x128xbf16, #tpu.memory_space<vmem>>, %arg5: memref<128x2048xbf16, #tpu.memory_space<vmem>>, %arg6: memref<2048x128xbf16, #tpu.memory_space<vmem>>, %arg7: memref<128x128xbf16, #tpu.memory_space<vmem>>, %arg8: memref<128x2048xbf16, #tpu.memory_space<vmem>>, %arg9: memref<2048x128xbf16, #tpu.memory_space<vmem>>, %arg10: memref<8x128xf32, #tpu.memory_space<vmem>>) attributes {dimension_semantics = [#tpu.dimension_semantics<parallel>], iteration_bounds = array<i64: 1>, scalar_prefetch = 0 : i64, scratch_operands = 0 : i64, tpu.core_type = #tpu.core_type<tc>, window_params = [{transform_indices = @transform_0, window_bounds = array<i64: 8, 16>}, {pipeline_mode = #tpu.pipeline_mode<synchronous>, transform_indices = @transform_1, window_bounds = array<i64: 1, 5760>}, {pipeline_mode = #tpu.pipeline_mode<synchronous>, transform_indices = @transform_2, window_bounds = array<i64: 16, 128>}, {pipeline_mode = #tpu.pipeline_mode<synchronous>, transform_indices = @transform_3, window_bounds = array<i64: 128, 128>}, {pipeline_mode = #tpu.pipeline_mode<synchronous>, transform_indices = @transform_4, window_bounds = array<i64: 128, 2048>}, {pipeline_mode = #tpu.pipeline_mode<synchronous>, transform_indices = @transform_5, window_bounds = array<i64: 2048, 128>}, {pipeline_mode = #tpu.pipeline_mode<synchronous>, transform_indices = @transform_6, window_bounds = array<i64: 128, 128>}, {pipeline_mode = #tpu.pipeline_mode<synchronous>, transform_indices = @transform_7, window_bounds = array<i64: 128, 2048>}, {pipeline_mode = #tpu.pipeline_mode<synchronous>, transform_indices = @transform_8, window_bounds = array<i64: 2048, 128>}, {transform_indices = @transform_9, window_bounds = array<i64: 8, 128>}]} {
    %c0 = arith.constant 0 : index
    %c0_0 = arith.constant 0 : index
    %0 = vector.load %arg1[%c0, %c0_0] : memref<8x16xbf16, #tpu.memory_space<vmem>>, vector<8x16xbf16>
    %c0_1 = arith.constant 0 : index
    %c0_2 = arith.constant 0 : index
    %1 = vector.load %arg3[%c0_1, %c0_2] : memref<16x128xbf16, #tpu.memory_space<vmem>>, vector<16x128xbf16>
    %cst = arith.constant dense<0.000000e+00> : vector<8x128xf32>
    %2 = tpu.matmul %0, %1, %cst {dimension_numbers = #tpu.dot_dimension_numbers<[1], [0], [0], [1], [0, 0, 1, 1], [], []>} : vector<8x16xbf16>, vector<16x128xbf16>, vector<8x128xf32> -> vector<8x128xf32>
    %c0_3 = arith.constant 0 : index
    %c0_4 = arith.constant 0 : index
    %3 = vector.load %arg2[%c0_3, %c0_4] : memref<1x5760xf32, #tpu.memory_space<vmem>>, vector<1x128xf32>
    %4 = vector.broadcast %3 : vector<1x128xf32> to vector<8x128xf32>
    %5 = arith.addf %2, %4 : vector<8x128xf32>
    %c0_5 = arith.constant 0 : index
    %c128 = arith.constant 128 : index
    %6 = vector.load %arg2[%c0_5, %c128] : memref<1x5760xf32, #tpu.memory_space<vmem>>, vector<1x128xf32>
    %c0_6 = arith.constant 0 : index
    %c256 = arith.constant 256 : index
    %7 = vector.load %arg2[%c0_6, %c256] : memref<1x5760xf32, #tpu.memory_space<vmem>>, vector<1x128xf32>
    %c0_7 = arith.constant 0 : index
    %c384 = arith.constant 384 : index
    %8 = vector.load %arg2[%c0_7, %c384] : memref<1x5760xf32, #tpu.memory_space<vmem>>, vector<1x128xf32>
    %c0_8 = arith.constant 0 : index
    %c512 = arith.constant 512 : index
    %9 = vector.load %arg2[%c0_8, %c512] : memref<1x5760xf32, #tpu.memory_space<vmem>>, vector<1x128xf32>
    %c0_9 = arith.constant 0 : index
    %c640 = arith.constant 640 : index
    %10 = vector.load %arg2[%c0_9, %c640] : memref<1x5760xf32, #tpu.memory_space<vmem>>, vector<1x128xf32>
    %c0_10 = arith.constant 0 : index
    %c768 = arith.constant 768 : index
    %11 = vector.load %arg2[%c0_10, %c768] : memref<1x5760xf32, #tpu.memory_space<vmem>>, vector<1x128xf32>
    %c0_11 = arith.constant 0 : index
    %c896 = arith.constant 896 : index
    %12 = vector.load %arg2[%c0_11, %c896] : memref<1x5760xf32, #tpu.memory_space<vmem>>, vector<1x2048xf32>
    %13 = arith.truncf %5 : vector<8x128xf32> to vector<8x128xbf16>
    %c0_12 = arith.constant 0 : index
    %c0_13 = arith.constant 0 : index
    %14 = vector.load %arg4[%c0_12, %c0_13] : memref<128x128xbf16, #tpu.memory_space<vmem>>, vector<128x128xbf16>
    %cst_14 = arith.constant dense<0.000000e+00> : vector<8x128xf32>
    %15 = tpu.matmul %13, %14, %cst_14 {dimension_numbers = #tpu.dot_dimension_numbers<[1], [0], [0], [1], [0, 0, 1, 1], [], []>} : vector<8x128xbf16>, vector<128x128xbf16>, vector<8x128xf32> -> vector<8x128xf32>
    %16 = vector.broadcast %6 : vector<1x128xf32> to vector<8x128xf32>
    %17 = arith.addf %15, %16 : vector<8x128xf32>
    %18 = arith.addf %5, %17 : vector<8x128xf32>
    %cst_15 = arith.constant dense<0.000000e+00> : vector<8xf32>
    %19 = vector.multi_reduction <add>, %18, %cst_15 [1] : vector<8x128xf32> to vector<8xf32>
    %20 = vector.shape_cast %19 : vector<8xf32> to vector<8x1xf32>
    %cst_16 = arith.constant 1.280000e+02 : f32
    %21 = vector.broadcast %cst_16 : f32 to vector<8x1xf32>
    %22 = arith.divf %20, %21 : vector<8x1xf32>
    %23 = vector.broadcast %22 : vector<8x1xf32> to vector<8x128xf32>
    %24 = arith.subf %18, %23 : vector<8x128xf32>
    %25 = arith.mulf %24, %24 : vector<8x128xf32>
    %cst_17 = arith.constant dense<0.000000e+00> : vector<8xf32>
    %26 = vector.multi_reduction <add>, %25, %cst_17 [1] : vector<8x128xf32> to vector<8xf32>
    %27 = vector.shape_cast %26 : vector<8xf32> to vector<8x1xf32>
    %cst_18 = arith.constant 1.280000e+02 : f32
    %28 = vector.broadcast %cst_18 : f32 to vector<8x1xf32>
    %29 = arith.divf %27, %28 : vector<8x1xf32>
    %30 = vector.broadcast %22 : vector<8x1xf32> to vector<8x128xf32>
    %31 = arith.subf %18, %30 : vector<8x128xf32>
    %cst_19 = arith.constant 9.99999974E-6 : f32
    %32 = vector.broadcast %cst_19 : f32 to vector<8x1xf32>
    %33 = arith.addf %29, %32 : vector<8x1xf32>
    %34 = math.rsqrt %33 : vector<8x1xf32>
    %35 = vector.broadcast %34 : vector<8x1xf32> to vector<8x128xf32>
    %36 = arith.mulf %31, %35 : vector<8x128xf32>
    %37 = vector.broadcast %7 : vector<1x128xf32> to vector<8x128xf32>
    %38 = arith.mulf %36, %37 : vector<8x128xf32>
    %39 = vector.broadcast %8 : vector<1x128xf32> to vector<8x128xf32>
    %40 = arith.addf %38, %39 : vector<8x128xf32>
    %41 = arith.truncf %40 : vector<8x128xf32> to vector<8x128xbf16>
    %c0_20 = arith.constant 0 : index
    %c0_21 = arith.constant 0 : index
    %42 = vector.load %arg5[%c0_20, %c0_21] : memref<128x2048xbf16, #tpu.memory_space<vmem>>, vector<128x2048xbf16>
    %cst_22 = arith.constant dense<0.000000e+00> : vector<8x2048xf32>
    %43 = tpu.matmul %41, %42, %cst_22 {dimension_numbers = #tpu.dot_dimension_numbers<[1], [0], [0], [1], [0, 0, 1, 1], [], []>} : vector<8x128xbf16>, vector<128x2048xbf16>, vector<8x2048xf32> -> vector<8x2048xf32>
    %44 = vector.broadcast %12 : vector<1x2048xf32> to vector<8x2048xf32>
    %45 = arith.addf %43, %44 : vector<8x2048xf32>
    %cst_23 = arith.constant 0.000000e+00 : f32
    %46 = vector.broadcast %cst_23 : f32 to vector<8x2048xf32>
    %47 = arith.maximumf %45, %46 : vector<8x2048xf32>
    %48 = arith.truncf %47 : vector<8x2048xf32> to vector<8x2048xbf16>
    %c0_24 = arith.constant 0 : index
    %c0_25 = arith.constant 0 : index
    %49 = vector.load %arg6[%c0_24, %c0_25] : memref<2048x128xbf16, #tpu.memory_space<vmem>>, vector<2048x128xbf16>
    %cst_26 = arith.constant dense<0.000000e+00> : vector<8x128xf32>
    %50 = tpu.matmul %48, %49, %cst_26 {dimension_numbers = #tpu.dot_dimension_numbers<[1], [0], [0], [1], [0, 0, 1, 1], [], []>} : vector<8x2048xbf16>, vector<2048x128xbf16>, vector<8x128xf32> -> vector<8x128xf32>
    %51 = vector.broadcast %11 : vector<1x128xf32> to vector<8x128xf32>
    %52 = arith.addf %50, %51 : vector<8x128xf32>
    %53 = arith.addf %40, %52 : vector<8x128xf32>
    %cst_27 = arith.constant dense<0.000000e+00> : vector<8xf32>
    %54 = vector.multi_reduction <add>, %53, %cst_27 [1] : vector<8x128xf32> to vector<8xf32>
    %55 = vector.shape_cast %54 : vector<8xf32> to vector<8x1xf32>
    %cst_28 = arith.constant 1.280000e+02 : f32
    %56 = vector.broadcast %cst_28 : f32 to vector<8x1xf32>
    %57 = arith.divf %55, %56 : vector<8x1xf32>
    %58 = vector.broadcast %57 : vector<8x1xf32> to vector<8x128xf32>
    %59 = arith.subf %53, %58 : vector<8x128xf32>
    %60 = arith.mulf %59, %59 : vector<8x128xf32>
    %cst_29 = arith.constant dense<0.000000e+00> : vector<8xf32>
    %61 = vector.multi_reduction <add>, %60, %cst_29 [1] : vector<8x128xf32> to vector<8xf32>
    %62 = vector.shape_cast %61 : vector<8xf32> to vector<8x1xf32>
    %cst_30 = arith.constant 1.280000e+02 : f32
    %63 = vector.broadcast %cst_30 : f32 to vector<8x1xf32>
    %64 = arith.divf %62, %63 : vector<8x1xf32>
    %65 = vector.broadcast %57 : vector<8x1xf32> to vector<8x128xf32>
    %66 = arith.subf %53, %65 : vector<8x128xf32>
    %cst_31 = arith.constant 9.99999974E-6 : f32
    %67 = vector.broadcast %cst_31 : f32 to vector<8x1xf32>
    %68 = arith.addf %64, %67 : vector<8x1xf32>
    %69 = math.rsqrt %68 : vector<8x1xf32>
    %70 = vector.broadcast %69 : vector<8x1xf32> to vector<8x128xf32>
    %71 = arith.mulf %66, %70 : vector<8x128xf32>
    %72 = vector.broadcast %9 : vector<1x128xf32> to vector<8x128xf32>
    %73 = arith.mulf %71, %72 : vector<8x128xf32>
    %74 = vector.broadcast %10 : vector<1x128xf32> to vector<8x128xf32>
    %75 = arith.addf %73, %74 : vector<8x128xf32>
    %c0_32 = arith.constant 0 : index
    %c2944 = arith.constant 2944 : index
    %76 = vector.load %arg2[%c0_32, %c2944] : memref<1x5760xf32, #tpu.memory_space<vmem>>, vector<1x128xf32>
    %c0_33 = arith.constant 0 : index
    %c3072 = arith.constant 3072 : index
    %77 = vector.load %arg2[%c0_33, %c3072] : memref<1x5760xf32, #tpu.memory_space<vmem>>, vector<1x128xf32>
    %c0_34 = arith.constant 0 : index
    %c3200 = arith.constant 3200 : index
    %78 = vector.load %arg2[%c0_34, %c3200] : memref<1x5760xf32, #tpu.memory_space<vmem>>, vector<1x128xf32>
    %c0_35 = arith.constant 0 : index
    %c3328 = arith.constant 3328 : index
    %79 = vector.load %arg2[%c0_35, %c3328] : memref<1x5760xf32, #tpu.memory_space<vmem>>, vector<1x128xf32>
    %c0_36 = arith.constant 0 : index
    %c3456 = arith.constant 3456 : index
    %80 = vector.load %arg2[%c0_36, %c3456] : memref<1x5760xf32, #tpu.memory_space<vmem>>, vector<1x128xf32>
    %c0_37 = arith.constant 0 : index
    %c3584 = arith.constant 3584 : index
    %81 = vector.load %arg2[%c0_37, %c3584] : memref<1x5760xf32, #tpu.memory_space<vmem>>, vector<1x128xf32>
    %c0_38 = arith.constant 0 : index
    %c3712 = arith.constant 3712 : index
    %82 = vector.load %arg2[%c0_38, %c3712] : memref<1x5760xf32, #tpu.memory_space<vmem>>, vector<1x2048xf32>
    %83 = arith.truncf %75 : vector<8x128xf32> to vector<8x128xbf16>
    %c0_39 = arith.constant 0 : index
    %c0_40 = arith.constant 0 : index
    %84 = vector.load %arg7[%c0_39, %c0_40] : memref<128x128xbf16, #tpu.memory_space<vmem>>, vector<128x128xbf16>
    %cst_41 = arith.constant dense<0.000000e+00> : vector<8x128xf32>
    %85 = tpu.matmul %83, %84, %cst_41 {dimension_numbers = #tpu.dot_dimension_numbers<[1], [0], [0], [1], [0, 0, 1, 1], [], []>} : vector<8x128xbf16>, vector<128x128xbf16>, vector<8x128xf32> -> vector<8x128xf32>
    %86 = vector.broadcast %76 : vector<1x128xf32> to vector<8x128xf32>
    %87 = arith.addf %85, %86 : vector<8x128xf32>
    %88 = arith.addf %75, %87 : vector<8x128xf32>
    %cst_42 = arith.constant dense<0.000000e+00> : vector<8xf32>
    %89 = vector.multi_reduction <add>, %88, %cst_42 [1] : vector<8x128xf32> to vector<8xf32>
    %90 = vector.shape_cast %89 : vector<8xf32> to vector<8x1xf32>
    %cst_43 = arith.constant 1.280000e+02 : f32
    %91 = vector.broadcast %cst_43 : f32 to vector<8x1xf32>
    %92 = arith.divf %90, %91 : vector<8x1xf32>
    %93 = vector.broadcast %92 : vector<8x1xf32> to vector<8x128xf32>
    %94 = arith.subf %88, %93 : vector<8x128xf32>
    %95 = arith.mulf %94, %94 : vector<8x128xf32>
    %cst_44 = arith.constant dense<0.000000e+00> : vector<8xf32>
    %96 = vector.multi_reduction <add>, %95, %cst_44 [1] : vector<8x128xf32> to vector<8xf32>
    %97 = vector.shape_cast %96 : vector<8xf32> to vector<8x1xf32>
    %cst_45 = arith.constant 1.280000e+02 : f32
    %98 = vector.broadcast %cst_45 : f32 to vector<8x1xf32>
    %99 = arith.divf %97, %98 : vector<8x1xf32>
    %100 = vector.broadcast %92 : vector<8x1xf32> to vector<8x128xf32>
    %101 = arith.subf %88, %100 : vector<8x128xf32>
    %cst_46 = arith.constant 9.99999974E-6 : f32
    %102 = vector.broadcast %cst_46 : f32 to vector<8x1xf32>
    %103 = arith.addf %99, %102 : vector<8x1xf32>
    %104 = math.rsqrt %103 : vector<8x1xf32>
    %105 = vector.broadcast %104 : vector<8x1xf32> to vector<8x128xf32>
    %106 = arith.mulf %101, %105 : vector<8x128xf32>
    %107 = vector.broadcast %77 : vector<1x128xf32> to vector<8x128xf32>
    %108 = arith.mulf %106, %107 : vector<8x128xf32>
    %109 = vector.broadcast %78 : vector<1x128xf32> to vector<8x128xf32>
    %110 = arith.addf %108, %109 : vector<8x128xf32>
    %111 = arith.truncf %110 : vector<8x128xf32> to vector<8x128xbf16>
    %c0_47 = arith.constant 0 : index
    %c0_48 = arith.constant 0 : index
    %112 = vector.load %arg8[%c0_47, %c0_48] : memref<128x2048xbf16, #tpu.memory_space<vmem>>, vector<128x2048xbf16>
    %cst_49 = arith.constant dense<0.000000e+00> : vector<8x2048xf32>
    %113 = tpu.matmul %111, %112, %cst_49 {dimension_numbers = #tpu.dot_dimension_numbers<[1], [0], [0], [1], [0, 0, 1, 1], [], []>} : vector<8x128xbf16>, vector<128x2048xbf16>, vector<8x2048xf32> -> vector<8x2048xf32>
    %114 = vector.broadcast %82 : vector<1x2048xf32> to vector<8x2048xf32>
    %115 = arith.addf %113, %114 : vector<8x2048xf32>
    %cst_50 = arith.constant 0.000000e+00 : f32
    %116 = vector.broadcast %cst_50 : f32 to vector<8x2048xf32>
    %117 = arith.maximumf %115, %116 : vector<8x2048xf32>
    %118 = arith.truncf %117 : vector<8x2048xf32> to vector<8x2048xbf16>
    %c0_51 = arith.constant 0 : index
    %c0_52 = arith.constant 0 : index
    %119 = vector.load %arg9[%c0_51, %c0_52] : memref<2048x128xbf16, #tpu.memory_space<vmem>>, vector<2048x128xbf16>
    %cst_53 = arith.constant dense<0.000000e+00> : vector<8x128xf32>
    %120 = tpu.matmul %118, %119, %cst_53 {dimension_numbers = #tpu.dot_dimension_numbers<[1], [0], [0], [1], [0, 0, 1, 1], [], []>} : vector<8x2048xbf16>, vector<2048x128xbf16>, vector<8x128xf32> -> vector<8x128xf32>
    %121 = vector.broadcast %81 : vector<1x128xf32> to vector<8x128xf32>
    %122 = arith.addf %120, %121 : vector<8x128xf32>
    %123 = arith.addf %110, %122 : vector<8x128xf32>
    %cst_54 = arith.constant dense<0.000000e+00> : vector<8xf32>
    %124 = vector.multi_reduction <add>, %123, %cst_54 [1] : vector<8x128xf32> to vector<8xf32>
    %125 = vector.shape_cast %124 : vector<8xf32> to vector<8x1xf32>
    %cst_55 = arith.constant 1.280000e+02 : f32
    %126 = vector.broadcast %cst_55 : f32 to vector<8x1xf32>
    %127 = arith.divf %125, %126 : vector<8x1xf32>
    %128 = vector.broadcast %127 : vector<8x1xf32> to vector<8x128xf32>
    %129 = arith.subf %123, %128 : vector<8x128xf32>
    %130 = arith.mulf %129, %129 : vector<8x128xf32>
    %cst_56 = arith.constant dense<0.000000e+00> : vector<8xf32>
    %131 = vector.multi_reduction <add>, %130, %cst_56 [1] : vector<8x128xf32> to vector<8xf32>
    %132 = vector.shape_cast %131 : vector<8xf32> to vector<8x1xf32>
    %cst_57 = arith.constant 1.280000e+02 : f32
    %133 = vector.broadcast %cst_57 : f32 to vector<8x1xf32>
    %134 = arith.divf %132, %133 : vector<8x1xf32>
    %135 = vector.broadcast %127 : vector<8x1xf32> to vector<8x128xf32>
    %136 = arith.subf %123, %135 : vector<8x128xf32>
    %cst_58 = arith.constant 9.99999974E-6 : f32
    %137 = vector.broadcast %cst_58 : f32 to vector<8x1xf32>
    %138 = arith.addf %134, %137 : vector<8x1xf32>
    %139 = math.rsqrt %138 : vector<8x1xf32>
    %140 = vector.broadcast %139 : vector<8x1xf32> to vector<8x128xf32>
    %141 = arith.mulf %136, %140 : vector<8x128xf32>
    %142 = vector.broadcast %79 : vector<1x128xf32> to vector<8x128xf32>
    %143 = arith.mulf %141, %142 : vector<8x128xf32>
    %144 = vector.broadcast %80 : vector<1x128xf32> to vector<8x128xf32>
    %145 = arith.addf %143, %144 : vector<8x128xf32>
    %c0_59 = arith.constant 0 : index
    %c0_60 = arith.constant 0 : index
    %146 = vector.load %arg10[%c0_59, %c0_60] : memref<8x128xf32, #tpu.memory_space<vmem>>, vector<8x128xf32>
    tpu.vector_store %arg10[%c0_59, %c0_60], %145 {strides = array<i32>} : memref<8x128xf32, #tpu.memory_space<vmem>>, vector<8x128xf32>,
    return
  }
  func.func @transform_0(%arg0: i32) -> (i32, i32) {
    %c0_i32 = arith.constant 0 : i32
    %c0_i32_0 = arith.constant 0 : i32
    return %arg0, %c0_i32 : i32, i32
  }
  func.func @transform_1(%arg0: i32) -> (i32, i32) {
    %c0_i32 = arith.constant 0 : i32
    %c0_i32_0 = arith.constant 0 : i32
    %c0_i32_1 = arith.constant 0 : i32
    return %c0_i32, %c0_i32_0 : i32, i32
  }
  func.func @transform_2(%arg0: i32) -> (i32, i32) {
    %c0_i32 = arith.constant 0 : i32
    %c0_i32_0 = arith.constant 0 : i32
    %c0_i32_1 = arith.constant 0 : i32
    return %c0_i32, %c0_i32_0 : i32, i32
  }
  func.func @transform_3(%arg0: i32) -> (i32, i32) {
    %c0_i32 = arith.constant 0 : i32
    %c0_i32_0 = arith.constant 0 : i32
    %c0_i32_1 = arith.constant 0 : i32
    return %c0_i32, %c0_i32_0 : i32, i32
  }
  func.func @transform_4(%arg0: i32) -> (i32, i32) {
    %c0_i32 = arith.constant 0 : i32
    %c0_i32_0 = arith.constant 0 : i32
    %c0_i32_1 = arith.constant 0 : i32
    return %c0_i32, %c0_i32_0 : i32, i32
  }
  func.func @transform_5(%arg0: i32) -> (i32, i32) {
    %c0_i32 = arith.constant 0 : i32
    %c0_i32_0 = arith.constant 0 : i32
    %c0_i32_1 = arith.constant 0 : i32
    return %c0_i32, %c0_i32_0 : i32, i32
  }
  func.func @transform_6(%arg0: i32) -> (i32, i32) {
    %c0_i32 = arith.constant 0 : i32
    %c0_i32_0 = arith.constant 0 : i32
    %c0_i32_1 = arith.constant 0 : i32
    return %c0_i32, %c0_i32_0 : i32, i32
  }
  func.func @transform_7(%arg0: i32) -> (i32, i32) {
    %c0_i32 = arith.constant 0 : i32
    %c0_i32_0 = arith.constant 0 : i32
    %c0_i32_1 = arith.constant 0 : i32
    return %c0_i32, %c0_i32_0 : i32, i32
  }
  func.func @transform_8(%arg0: i32) -> (i32, i32) {
    %c0_i32 = arith.constant 0 : i32
    %c0_i32_0 = arith.constant 0 : i32
    %c0_i32_1 = arith.constant 0 : i32
    return %c0_i32, %c0_i32_0 : i32, i32
  }
  func.func @transform_9(%arg0: i32) -> (i32, i32) {
    %c0_i32 = arith.constant 0 : i32
    %c0_i32_0 = arith.constant 0 : i32
    return %arg0, %c0_i32 : i32, i32
  }
}

</mosaic_0001>

<bundles_post_ra>
// kernel: tpu_custom_call.1
= control target key start
LH: loop header
LB: loop body
LE: loop exit
PB: predicated region body
PF: predicated region fallthrough
CT: control target
= control target key end

     0   :  { %14 = vsyncpa [#allocation3], 0  ;;  %s7585_s0 = inlined_call_operand.hbm [shape: bf16[8,16], index: 0, kind: input, shape index: {}]   ;;  %s7586_s1 = inlined_call_operand.hbm [shape: f32[1,5760], index: 1, kind: input, shape index: {}]   ;;  %s7587_s2 = inlined_call_operand.hbm [shape: bf16[16,128], index: 2, kind: input, shape index: {}]   ;;  %s7588_s3 = inlined_call_operand.hbm [shape: bf16[128,128], index: 3, kind: input, shape index: {}]   ;;  %s7589_s4 = inlined_call_operand.hbm [shape: bf16[128,2048], index: 4, kind: input, shape index: {}]   ;;  %s7590_s5 = inlined_call_operand.hbm [shape: bf16[2048,128], index: 5, kind: input, shape index: {}]   ;;  %s7591_s6 = inlined_call_operand.hbm [shape: bf16[128,128], index: 6, kind: input, shape index: {}]   ;;  %s7592_s7 = inlined_call_operand.hbm [shape: bf16[128,2048], index: 7, kind: input, shape index: {}]   ;;  %s7593_s8 = inlined_call_operand.hbm [shape: bf16[2048,128], index: 8, kind: input, shape index: {}]   ;;  %s7594_s9 = inlined_call_operand.hbm [shape: f32[8,128], index: 9, kind: output, shape index: {}]  }
   0x1   :  { %15 = vsyncpa [#allocation6], 0 }
   0x2   :  { %16 = vsyncpa [#allocation9], 0 }
   0x3   :  { %17 = vsyncpa [#allocation12], 0 }
   0x4   :  { %18 = vsyncpa [#allocation15], 0 }
   0x5   :  { %19 = vsyncpa [#allocation4], 0  ;;  %s7187_s30 = smov [#allocation5]   ;;  %s6955_s13 = scalar_lea.hbm %s7586_s1, 720 }
   0x6   :  { %s36_s10 = sshll.u32 %s7187_s30, 4  ;;  %p6956_p0 = scmp.ne.s32.totalorder %s7586_s1, %s6955_s13  ;;  %s37_s10 = int_to_ptr.vmem [resolvable:$true] %s36_s10 }
   0x7   :  { %p6959_p1 = scmp.lt.u32.totalorder %s6955_s13, %s7586_s1 }
   0x9   :  { %p6961_p2 = pnand %p6959_p1, %p6956_p0 }
   0xb   :  { %6964 = shalt.err (!%p6961_p2)
}
   0xc   :  { %s6965_s18 = scalar_lea.vmem %s37_s10, 720  ;;  %s6969_s19 = scalar_lea.vmem %s37_s10, 736 }
   0xd   :  { %p6966_p3 = scmp.ne.s32.totalorder %s37_s10, %s6965_s18  ;;  %p6970_p4 = scmp.lt.s32.totalorder %s37_s10, %s37_s10 }
   0xe   :  { %p6971_p5 = scmp.lt.s32.totalorder %s6969_s19, %s6965_s18 }
  0x10   :  { %p6972_p6 = por %p6971_p5, %p6970_p4 }
  0x12   :  { %p6973_p7 = pnand %p6972_p6, %p6966_p3 }
  0x14   :  { %6976 = shalt.err (!%p6973_p7)
}
  0x15   :  { %39 = dma.hbm_to_vmem [thread:$0]  %s7586_s1, 720, %s37_s10, [#allocation6]  }
  0x16   :  { %s7188_s22 = smov [#allocation8]   ;;  %s7189_s24 = smov [#allocation11]  }
  0x17   :  { %s57_s23 = sshll.u32 %s7188_s22, 4  ;;  %s81_s25 = sshll.u32 %s7189_s24, 4  ;;  %s58_s23 = int_to_ptr.vmem [resolvable:$true] %s57_s23  ;;  %s82_s25 = int_to_ptr.vmem [resolvable:$true] %s81_s25 }
  0x18   :  { %s6977_s28 = scalar_lea.hbm %s7588_s3, 1024 }
  0x19   :  { %p6978_p8 = scmp.ne.s32.totalorder %s7588_s3, %s6977_s28  ;;  %p6981_p9 = scmp.lt.u32.totalorder %s6977_s28, %s7588_s3 }
  0x1b   :  { %p6983_p10 = pnand %p6981_p9, %p6978_p8 }
  0x1d   :  { %6986 = shalt.err (!%p6983_p10)
}
  0x1e   :  { %s6987_s1 = scalar_lea.vmem %s58_s23, 1024  ;;  %p6992_p12 = scmp.lt.s32.totalorder %s58_s23, %s58_s23 }
  0x1f   :  { %p6988_p11 = scmp.ne.s32.totalorder %s58_s23, %s6987_s1  ;;  %p6993_p13 = scmp.lt.s32.totalorder %s6987_s1, %s6987_s1 }
  0x21   :  { %p6994_p0 = por %p6993_p13, %p6992_p12 }
  0x23   :  { %p6995_p1 = pnand %p6994_p0, %p6988_p11 }
  0x25   :  { %6998 = shalt.err (!%p6995_p1)
}
  0x26   :  { %s7190_s10 = smov 64   ;;  %s7191_s13 = smov 4  }
  0x27   :  { %63 = dma.hbm_to_vmem [thread:$0]  %s7588_s3, 1024, %s58_s23, [#allocation9], %s7190_s10, %s7190_s10, %s7191_s13  }
  0x28   :  { %s6999_s18 = scalar_lea.hbm %s7590_s5, 16384 }
  0x29   :  { %p7000_p2 = scmp.ne.s32.totalorder %s7590_s5, %s6999_s18  ;;  %p7003_p3 = scmp.lt.u32.totalorder %s6999_s18, %s7590_s5 }
  0x2b   :  { %p7005_p4 = pnand %p7003_p3, %p7000_p2 }
  0x2d   :  { %7008 = shalt.err (!%p7005_p4)
}
  0x2e   :  { %s7009_s24 = scalar_lea.vmem %s82_s25, 16384  ;;  %p7014_p6 = scmp.lt.s32.totalorder %s82_s25, %s82_s25 }
  0x2f   :  { %p7010_p5 = scmp.ne.s32.totalorder %s82_s25, %s7009_s24  ;;  %p7015_p7 = scmp.lt.s32.totalorder %s7009_s24, %s7009_s24 }
  0x31   :  { %p7016_p8 = por %p7015_p7, %p7014_p6 }
  0x33   :  { %p7017_p9 = pnand %p7016_p8, %p7010_p5 }
  0x35   :  { %7020 = shalt.err (!%p7017_p9)
}
  0x36   :  { %87 = dma.hbm_to_vmem [thread:$0]  %s7590_s5, 16384, %s82_s25, [#allocation12], %s7190_s10, %s7190_s10, %s7191_s13  }
  0x37   :  { %s7192_s26 = smov [#allocation14]   ;;  %s7193_s28 = smov [#allocation2]  }
  0x38   :  { %s105_s27 = sshll.u32 %s7192_s26, 4  ;;  %s26_s29 = sshll.u32 %s7193_s28, 4  ;;  %s106_s27 = int_to_ptr.vmem [resolvable:$true] %s105_s27  ;;  %s27_s29 = int_to_ptr.vmem [resolvable:$true] %s26_s29 }
  0x39   :  { %s7021_s12 = scalar_lea.hbm %s7592_s7, 16384 }
  0x3a   :  { %p7022_p10 = scmp.ne.s32.totalorder %s7592_s7, %s7021_s12  ;;  %p7025_p11 = scmp.lt.u32.totalorder %s7021_s12, %s7592_s7 }
  0x3c   :  { %p7027_p12 = pnand %p7025_p11, %p7022_p10 }
  0x3e   :  { %7030 = shalt.err (!%p7027_p12)
}
  0x3f   :  { %s7031_s5 = scalar_lea.vmem %s106_s27, 16384  ;;  %p7036_p0 = scmp.lt.s32.totalorder %s106_s27, %s106_s27 }
  0x40   :  { %p7032_p13 = scmp.ne.s32.totalorder %s106_s27, %s7031_s5  ;;  %p7037_p1 = scmp.lt.s32.totalorder %s7031_s5, %s7031_s5 }
  0x42   :  { %p7038_p2 = por %p7037_p1, %p7036_p0 }
  0x44   :  { %p7039_p3 = pnand %p7038_p2, %p7032_p13 }
  0x46   :  { %7042 = shalt.err (!%p7039_p3)
}
  0x47   :  { %s7194_s25 = smov 1024   ;;  %s7043_s21 = scalar_lea.hbm %s7585_s0, 64 }
  0x48   :  { %111 = dma.hbm_to_vmem [thread:$0]  %s7592_s7, 16384, %s106_s27, [#allocation15], %s7194_s25, %s7194_s25, %s7190_s10  }
  0x49   :  { %p7044_p4 = scmp.ne.s32.totalorder %s7585_s0, %s7043_s21  ;;  %p7047_p5 = scmp.lt.u32.totalorder %s7043_s21, %s7585_s0 }
  0x4b   :  { %p7049_p6 = pnand %p7047_p5, %p7044_p4 }
  0x4d   :  { %7052 = shalt.err (!%p7049_p6)
}
  0x4e   :  { %s7053_s26 = scalar_lea.vmem %s27_s29, 64  ;;  %p7058_p8 = scmp.lt.s32.totalorder %s27_s29, %s27_s29 }
  0x4f   :  { %p7054_p7 = scmp.ne.s32.totalorder %s27_s29, %s7053_s26  ;;  %p7059_p9 = scmp.lt.s32.totalorder %s7053_s26, %s7053_s26 }
  0x51   :  { %p7060_p10 = por %p7059_p9, %p7058_p8 }
  0x53   :  { %p7061_p11 = pnand %p7060_p10, %p7054_p7 }
  0x55   :  { %7064 = shalt.err (!%p7061_p11)
}
  0x56   :  { %29 = dma.hbm_to_vmem [thread:$0]  %s7585_s0, 64, %s27_s29, [#allocation3]  }
  0x57   :  { %s7195_s28 = smov [#allocation7]   ;;  %s7196_s11 = smov [#allocation10]  }
  0x58   :  { %s45_s30 = sshll.u32 %s7195_s28, 4  ;;  %s69_s12 = sshll.u32 %s7196_s11, 4  ;;  %s46_s30 = int_to_ptr.vmem [resolvable:$true] %s45_s30  ;;  %s7322_s12 = int_to_ptr.vmem [resolvable:$true] %s69_s12 }
  0x59   :  { %s7065_s15 = scalar_lea.hbm %s7587_s2, 128 }
  0x5a   :  { %p7066_p12 = scmp.ne.s32.totalorder %s7587_s2, %s7065_s15  ;;  %p7069_p13 = scmp.lt.u32.totalorder %s7065_s15, %s7587_s2 }
  0x5c   :  { %p7071_p0 = pnand %p7069_p13, %p7066_p12 }
  0x5e   :  { %7074 = shalt.err (!%p7071_p0)
}
  0x5f   :  { %s7075_s0 = scalar_lea.vmem %s46_s30, 128  ;;  %p7080_p2 = scmp.lt.s32.totalorder %s46_s30, %s46_s30 }
  0x60   :  { %p7076_p1 = scmp.ne.s32.totalorder %s46_s30, %s7075_s0  ;;  %p7081_p3 = scmp.lt.s32.totalorder %s7075_s0, %s7075_s0 }
  0x62   :  { %p7082_p4 = por %p7081_p3, %p7080_p2 }
  0x64   :  { %p7083_p5 = pnand %p7082_p4, %p7076_p1 }
  0x66   :  { %7086 = shalt.err (!%p7083_p5)
}
  0x67   :  { %51 = dma.hbm_to_vmem [thread:$0]  %s7587_s2, 128, %s46_s30, [#allocation6], %s7190_s10, %s7190_s10, %s7191_s13  }
  0x68   :  { %s7087_s22 = scalar_lea.hbm %s7589_s4, 16384 }
  0x69   :  { %p7088_p6 = scmp.ne.s32.totalorder %s7589_s4, %s7087_s22  ;;  %p7091_p7 = scmp.lt.u32.totalorder %s7087_s22, %s7589_s4 }
  0x6b   :  { %p7093_p8 = pnand %p7091_p7, %p7088_p6 }
  0x6d   :  { %7096 = shalt.err (!%p7093_p8)
}
  0x6e   :  { %s7097_s7 = scalar_lea.vmem %s7322_s12, 16384  ;;  %p7102_p10 = scmp.lt.s32.totalorder %s7322_s12, %s7322_s12 }
  0x6f   :  { %p7098_p9 = scmp.ne.s32.totalorder %s7322_s12, %s7097_s7  ;;  %p7103_p11 = scmp.lt.s32.totalorder %s7097_s7, %s7097_s7 }
  0x71   :  { %p7104_p12 = por %p7103_p11, %p7102_p10 }
  0x73   :  { %p7105_p13 = pnand %p7104_p12, %p7098_p9 }
  0x75   :  { %7108 = shalt.err (!%p7105_p13)
}
  0x76   :  { %75 = dma.hbm_to_vmem [thread:$0]  %s7589_s4, 16384, %s7322_s12, [#allocation9], %s7194_s25, %s7194_s25, %s7190_s10  }
  0x77   :  { %s7197_s28 = smov [#allocation13]   ;;  %s7198_s11 = smov [#allocation16]  }
  0x78   :  { %s93_s30 = sshll.u32 %s7197_s28, 4  ;;  %s117_s1 = sshll.u32 %s7198_s11, 4  ;;  %s94_s30 = int_to_ptr.vmem [resolvable:$true] %s93_s30  ;;  %s7359_s1 = int_to_ptr.vmem [resolvable:$true] %s117_s1 }
  0x79   :  { %s7109_s16 = scalar_lea.hbm %s7591_s6, 1024 }
  0x7a   :  { %p7110_p0 = scmp.ne.s32.totalorder %s7591_s6, %s7109_s16  ;;  %p7113_p1 = scmp.lt.u32.totalorder %s7109_s16, %s7591_s6 }
  0x7c   :  { %p7115_p2 = pnand %p7113_p1, %p7110_p0 }
  0x7e   :  { %7118 = shalt.err (!%p7115_p2)
}
  0x7f   :  { %s7119_s4 = scalar_lea.vmem %s94_s30, 1024  ;;  %p7124_p4 = scmp.lt.s32.totalorder %s94_s30, %s94_s30 }
  0x80   :  { %p7120_p3 = scmp.ne.s32.totalorder %s94_s30, %s7119_s4  ;;  %p7125_p5 = scmp.lt.s32.totalorder %s7119_s4, %s7119_s4 }
  0x82   :  { %p7126_p6 = por %p7125_p5, %p7124_p4 }
  0x84   :  { %p7127_p7 = pnand %p7126_p6, %p7120_p3 }
  0x86   :  { %7130 = shalt.err (!%p7127_p7)
}
  0x87   :  { %99 = dma.hbm_to_vmem [thread:$0]  %s7591_s6, 1024, %s94_s30, [#allocation12], %s7190_s10, %s7190_s10, %s7191_s13  }
  0x88   :  { %s7131_s20 = scalar_lea.hbm %s7593_s8, 16384 }
  0x89   :  { %p7132_p8 = scmp.ne.s32.totalorder %s7593_s8, %s7131_s20  ;;  %p7135_p9 = scmp.lt.u32.totalorder %s7131_s20, %s7593_s8 }
  0x8b   :  { %p7137_p10 = pnand %p7135_p9, %p7132_p8 }
  0x8d   :  { %7140 = shalt.err (!%p7137_p10)
}
  0x8e   :  { %s7141_s23 = scalar_lea.vmem %s7359_s1, 16384  ;;  %p7146_p12 = scmp.lt.s32.totalorder %s7359_s1, %s7359_s1 }
  0x8f   :  { %p7142_p11 = scmp.ne.s32.totalorder %s7359_s1, %s7141_s23  ;;  %p7147_p13 = scmp.lt.s32.totalorder %s7141_s23, %s7141_s23 }
  0x91   :  { %p7148_p0 = por %p7147_p13, %p7146_p12 }
  0x93   :  { %p7149_p1 = pnand %p7148_p0, %p7142_p11 }
  0x95   :  { %7152 = shalt.err (!%p7149_p1)
}
  0x96   :  { %123 = dma.hbm_to_vmem [thread:$0]  %s7593_s8, 16384, %s7359_s1, [#allocation15], %s7190_s10, %s7190_s10, %s7191_s13  }
  0x97   :  { %7175 = dma.done.wait [#allocation3], 64  }
  0x98   :  { %7176 = vsyncadd [#allocation3], 4294967232 }
  0x99   :  { %7177 = dma.done.wait [#allocation6], 848  }
  0x9a   :  { %7178 = vsyncadd [#allocation6], 4294966448 }
  0x9b   :  { %7179 = dma.done.wait [#allocation9], 17408  }
  0x9c   :  { %7180 = vsyncadd [#allocation9], 4294949888 }
  0x9d   :  { %7181 = dma.done.wait [#allocation12], 17408  }
  0x9e   :  { %7182 = vsyncadd [#allocation12], 4294949888 }
  0x9f   :  { %7183 = dma.done.wait [#allocation15], 32768  }
  0xa0   :  { %7184 = vsyncadd [#allocation15], 4294934528  ;;  %v7199_v0 = vmov 0.0   ;;  %vm7200_vm0 = vmmov 0   ;;  %v6674_v1 = vld [vmem:[#allocation7] sm:$0xff]   ;;  %vm168_vm1 = vcmask 130048  }
  0xa1   :  { %6612 = vmatprep.subr.bf16.mxu0 %v7199_v0  ;;  %6614 = vmatprep.mubr.msk.bf16.mxu0 %vm7200_vm0, %v7199_v0  ;;  %v152_v2 = vld [vmem:[#allocation2] sm:$0xf]  ;;  %v6677_v5 = vld [vmem:[#allocation8 + $0x10] sm:$0xff]   ;;  %v6678_v6 = vld [vmem:[#allocation8 + $0x18] sm:$0xff]   ;;  %s7202_s8 = smov [#allocation17]  }
  0xa2   :  { %6618 = vmatprep.subr.bf16.mxu1 %v7199_v0  ;;  %6634 = vmatprep.mubr.msk.bf16.mxu1 %vm7200_vm0, %v7199_v0  ;;  %v6675_v3 = vld [vmem:[#allocation8] sm:$0xff]   ;;  %v6676_v4 = vld [vmem:[#allocation8 + $0x8] sm:$0xff]   ;;  %v6681_v9 = vld [vmem:[#allocation8 + $0x30] sm:$0xff]   ;;  %s5684_s10 = sshll.u32 %s7202_s8, 4  ;;  %s5685_s10 = int_to_ptr.vmem [resolvable:$true] %s5684_s10 }
  0xa3   :  { %6613 = vmatpush3.bf16.msra.mxu0 %v6674_v1  ;;  %6619 = vmatpush3.bf16.msra.mxu1 %v6675_v3  ;;  %v6679_v7 = vld [vmem:[#allocation8 + $0x20] sm:$0xff]   ;;  %v6680_v8 = vld [vmem:[#allocation8 + $0x28] sm:$0xff]   ;;  %v6682_v10 = vld [vmem:[#allocation8 + $0x38] sm:$0xff]   ;;  %s7153_s13 = scalar_lea.vmem %s5685_s10, 128  ;;  %p7158_p3 = scmp.lt.s32.totalorder %s5685_s10, %s5685_s10 }
  0xa4   :  { %6620 = vmatprep.subr.bf16.mxu1 %v7199_v0  ;;  %v5697_v11 = vld [vmem:[#allocation5] ss:$0 sm:$0xff]  ;;  %v5700_v18 = vld [vmem:[#allocation5 + $0x1] ss:$0 sm:$0xff]  ;;  %v359_v25 = vld [vmem:[#allocation10] sm:$0xff]  ;;  %p7154_p2 = scmp.ne.s32.totalorder %s5685_s10, %s7153_s13  ;;  %p7159_p4 = scmp.lt.s32.totalorder %s7153_s13, %s7153_s13 }
  0xa5   :  { %v367_v26 = vld [vmem:[#allocation10 + $0x40] sm:$0xff]  ;;  %v360_v27 = vld [vmem:[#allocation10 + $0x8] sm:$0xff] }
  0xa6   :  { %6615 = vmatmul.mubr.msk.bf16.vlgmr.msra.gmra.mrb[0].mxu0 %vm168_vm1, %v152_v2  ;;  %v5711_v28 = vcombine.low %v359_v25, %v367_v26  ;;  %v5712_v29 = vcombine.high %v359_v25, %v367_v26  ;;  %v368_v30 = vld [vmem:[#allocation10 + $0x48] sm:$0xff]  ;;  %v375_v31 = vld [vmem:[#allocation10 + $0x80] sm:$0xff]  ;;  %p7160_p5 = por %p7159_p4, %p7158_p3 }
  0xa7   :  { %6621 = vmatpush3.bf16.msra.mxu1 %v6676_v4  ;;  %v383_v32 = vld [vmem:[#allocation10 + $0xc0] sm:$0xff]  ;;  %v5713_v33 = vcombine.low %v360_v27, %v368_v30  ;;  %v5714_v34 = vcombine.high %v360_v27, %v368_v30  ;;  %v376_v36 = vld [vmem:[#allocation10 + $0x88] sm:$0xff]  ;;  %v361_v30 = vld [vmem:[#allocation10 + $0x10] sm:$0xff] }
  0xa8   :  { %6622 = vmatprep.subr.bf16.mxu1 %v7199_v0  ;;  %v5728_v35 = vcombine.high %v375_v31, %v383_v32  ;;  %v384_v37 = vld [vmem:[#allocation10 + $0xc8] sm:$0xff]  ;;  %v391_v38 = vld [vmem:[#allocation10 + $0x100] sm:$0xff]  ;;  %1209 = vmatprep.subr.bf16.mxu0 %v5712_v29  ;;  %v5727_v43 = vcombine.low %v375_v31, %v383_v32  ;;  %v369_v31 = vld [vmem:[#allocation10 + $0x50] sm:$0xff]  ;;  %p7161_p6 = pnand %p7160_p5, %p7154_p2 }
  0xa9   :  { %v5730_v39 = vcombine.high %v376_v36, %v384_v37  ;;  %v399_v40 = vld [vmem:[#allocation10 + $0x140] sm:$0xff]  ;;  %v392_v41 = vld [vmem:[#allocation10 + $0x108] sm:$0xff]  ;;  %1210 = vmatpush1.bf16.msra.mxu0 %v5711_v28  ;;  %v5729_v44 = vcombine.low %v376_v36, %v384_v37  ;;  %v362_v32 = vld [vmem:[#allocation10 + $0x18] sm:$0xff] }
  0xaa   :  { %v400_v42 = vld [vmem:[#allocation10 + $0x148] sm:$0xff]  ;;  %1211 = vmatprep.subr.bf16.mxu0 %v5728_v35  ;;  %v5744_v45 = vcombine.high %v391_v38, %v399_v40  ;;  %v5743_v47 = vcombine.low %v391_v38, %v399_v40  ;;  %v407_v53 = vld [vmem:[#allocation10 + $0x180] sm:$0xff]  ;;  %v5715_v35 = vcombine.low %v361_v30, %v369_v31  ;;  %v7201_v38 = vmov 0  }
  0xab   :  { %6623 = vmatpush3.bf16.msra.mxu1 %v6677_v5  ;;  %v5746_v46 = vcombine.high %v392_v41, %v400_v42  ;;  %v5745_v48 = vcombine.low %v392_v41, %v400_v42  ;;  %v415_v54 = vld [vmem:[#allocation10 + $0x1c0] sm:$0xff]  ;;  %v408_v55 = vld [vmem:[#allocation10 + $0x188] sm:$0xff]  ;;  %1241 = vmatprep.mubr.bf16.mxu0 %v7201_v38 }
  0xac   :  { %6624 = vmatprep.subr.bf16.mxu1 %v7199_v0  ;;  %v5760_v56 = vcombine.high %v407_v53, %v415_v54  ;;  %v416_v57 = vld [vmem:[#allocation10 + $0x1c8] sm:$0xff]  ;;  %v5759_v58 = vcombine.low %v407_v53, %v415_v54  ;;  %v423_v61 = vld [vmem:[#allocation10 + $0x200] sm:$0xff] }
  0xad   :  { %1212 = vmatpush1.bf16.msra.mxu0 %v5727_v43  ;;  %v5761_v59 = vcombine.low %v408_v55, %v416_v57  ;;  %v5762_v60 = vcombine.high %v408_v55, %v416_v57  ;;  %v431_v62 = vld [vmem:[#allocation10 + $0x240] sm:$0xff]  ;;  %v424_v63 = vld [vmem:[#allocation10 + $0x208] sm:$0xff]  ;;  %v401_v57 = vld [vmem:[#allocation10 + $0x150] sm:$0xff] }
  0xae   :  { %1213 = vmatprep.subr.bf16.mxu0 %v5744_v45  ;;  %v5776_v1 = vcombine.high %v423_v61, %v431_v62  ;;  %v432_v2 = vld [vmem:[#allocation10 + $0x248] sm:$0xff]  ;;  %v5775_v3 = vcombine.low %v423_v61, %v431_v62 }
  0xaf   :  { %6625 = vmatpush3.bf16.msra.mxu1 %v6678_v6  ;;  %v5777_v4 = vcombine.low %v424_v63, %v432_v2  ;;  %v5778_v5 = vcombine.high %v424_v63, %v432_v2  ;;  %v439_v6 = vld [vmem:[#allocation10 + $0x280] sm:$0xff]  ;;  %v480_v26 = vld [vmem:[#allocation10 + $0x3c8] sm:$0xff]  ;;  %v409_v63 = vld [vmem:[#allocation10 + $0x190] sm:$0xff] }
  0xb0   :  { %6626 = vmatprep.subr.bf16.mxu1 %v7199_v0  ;;  %v5709_v43 = vld [vmem:[#allocation5 + $0x2] ss:$0 sm:$0xff]  ;;  %v5710_v45 = vld [vmem:[#allocation5 + $0x3] ss:$0 sm:$0xff]  ;;  %v410_v2 = vld [vmem:[#allocation10 + $0x198] sm:$0xff] }
  0xb1   :  { %1214 = vmatpush1.bf16.msra.mxu0 %v5743_v47  ;;  %v377_v47 = vld [vmem:[#allocation10 + $0x90] sm:$0xff] }
  0xb2   :  { %1215 = vmatprep.subr.bf16.mxu0 %v5760_v56  ;;  %v393_v56 = vld [vmem:[#allocation10 + $0x110] sm:$0xff] }
  0xb3   :  { %6627 = vmatpush3.bf16.msra.mxu1 %v6679_v7  ;;  %v447_v7 = vld [vmem:[#allocation10 + $0x2c0] sm:$0xff]  ;;  %v5748_v61 = vcombine.high %v393_v56, %v401_v57 }
  0xb4   :  { %6628 = vmatprep.subr.bf16.mxu1 %v7199_v0 }
  0xb5   :  { %1216 = vmatpush1.bf16.msra.mxu0 %v5759_v58  ;;  %v394_v58 = vld [vmem:[#allocation10 + $0x118] sm:$0xff] }
  0xb6   :  { %1217 = vmatprep.subr.bf16.mxu0 %v5776_v1  ;;  %v417_v1 = vld [vmem:[#allocation10 + $0x1d0] sm:$0xff] }
  0xb7   :  { %6629 = vmatpush3.bf16.msra.mxu1 %v6680_v8  ;;  %v440_v8 = vld [vmem:[#allocation10 + $0x288] sm:$0xff] }
  0xb8   :  { %6630 = vmatprep.subr.bf16.mxu1 %v7199_v0 }
  0xb9   :  { %1218 = vmatpush1.bf16.msra.mxu0 %v5775_v3  ;;  %v418_v3 = vld [vmem:[#allocation10 + $0x1d8] sm:$0xff] }
  0xbb   :  { %6631 = vmatpush3.bf16.msra.mxu1 %v6681_v9  ;;  %v5792_v9 = vcombine.high %v439_v6, %v447_v7 }
  0xbc   :  { %6632 = vmatprep.subr.bf16.mxu1 %v7199_v0 }
  0xbd   :  { %1219 = vmatprep.subr.bf16.mxu0 %v5792_v9  ;;  %v433_v9 = vld [vmem:[#allocation10 + $0x250] sm:$0xff] }
  0xbf   :  { %6633 = vmatpush3.bf16.msra.mxu1 %v6682_v10  ;;  %v448_v10 = vld [vmem:[#allocation10 + $0x2c8] sm:$0xff] }
  0xc0   :  { %1250 = vmatprep.subr.bf16.mxu1 %v5714_v34  ;;  %v370_v34 = vld [vmem:[#allocation10 + $0x58] sm:$0xff] }
  0xc1   :  { %v5717_v36 = vcombine.low %v362_v32, %v370_v34  ;;  %v5718_v37 = vcombine.high %v362_v32, %v370_v34  ;;  %v473_v32 = vld [vmem:[#allocation10 + $0x390] sm:$0xff]  ;;  %v474_v34 = vld [vmem:[#allocation10 + $0x398] sm:$0xff] }
 0x179   :  { %v206_v12 = vpop.f32.mrb[0].mxu0 }
 0x17a   :  { %v207_v13 = vadd.f32 %v5697_v11, %v206_v12  ;;  %v6616_v14 = vpop.f32.mrb[1].mxu0  ;;  %v5791_v11 = vcombine.low %v439_v6, %v447_v7  ;;  %v5793_v12 = vcombine.low %v440_v8, %v448_v10  ;;  %v5764_v6 = vcombine.high %v409_v63, %v417_v1 }
 0x17b   :  { %v209_v15 = vpop.f32.mrb[2].mxu0  ;;  %v455_v14 = vld [vmem:[#allocation10 + $0x300] sm:$0xff]  ;;  %v5766_v7 = vcombine.high %v410_v2, %v418_v3 }
 0x17c   :  { %v220_v16 = vpack.c.bf16 %v207_v13, %v207_v13  ;;  %v6617_v17 = vpop.f32.mrb[3].mxu0  ;;  %1220 = vmatpush1.bf16.msra.mxu0 %v5791_v11  ;;  %v463_v15 = vld [vmem:[#allocation10 + $0x340] sm:$0xff]  ;;  %v434_v11 = vld [vmem:[#allocation10 + $0x258] sm:$0xff] }
 0x17d   :  { %v5808_v17 = vcombine.high %v455_v14, %v463_v15 }
 0x17e   :  { %6635 = vmatmul.mubr.bf16.vlgmr.msra.gmra.mrb[0].mxu1 %v220_v16  ;;  %v456_v16 = vld [vmem:[#allocation10 + $0x308] sm:$0xff] }
 0x17f   :  { %1251 = vmatpush1.bf16.msra.mxu1 %v5713_v33  ;;  %1221 = vmatprep.subr.bf16.mxu0 %v5808_v17  ;;  %v5716_v33 = vcombine.high %v361_v30, %v369_v31  ;;  %v449_v17 = vld [vmem:[#allocation10 + $0x2d0] sm:$0xff] }
 0x180   :  { %1252 = vmatprep.subr.bf16.mxu1 %v5730_v39  ;;  %1282 = vmatprep.mubr.bf16.mxu1 %v7201_v38 }
 0x183   :  { %1253 = vmatpush1.bf16.msra.mxu1 %v5729_v44 }
 0x184   :  { %1254 = vmatprep.subr.bf16.mxu1 %v5746_v46 }
 0x187   :  { %1255 = vmatpush1.bf16.msra.mxu1 %v5745_v48  ;;  %v385_v48 = vld [vmem:[#allocation10 + $0xd0] sm:$0xff] }
 0x188   :  { %1256 = vmatprep.subr.bf16.mxu1 %v5762_v60  ;;  %v5732_v54 = vcombine.high %v377_v47, %v385_v48 }
 0x18b   :  { %1257 = vmatpush1.bf16.msra.mxu1 %v5761_v59  ;;  %v402_v59 = vld [vmem:[#allocation10 + $0x158] sm:$0xff] }
 0x18c   :  { %1258 = vmatprep.subr.bf16.mxu1 %v5778_v5  ;;  %v5750_v62 = vcombine.high %v394_v58, %v402_v59  ;;  %v5749_v5 = vcombine.low %v394_v58, %v402_v59 }
 0x18f   :  { %1259 = vmatpush1.bf16.msra.mxu1 %v5777_v4  ;;  %v5747_v4 = vcombine.low %v393_v56, %v401_v57 }
 0x251   :  { %v325_v19 = vpop.f32.mrb[0].mxu1 }
 0x252   :  { %v326_v20 = vadd.f32 %v5700_v18, %v325_v19  ;;  %v6636_v21 = vpop.f32.mrb[1].mxu1  ;;  %v464_v18 = vld [vmem:[#allocation10 + $0x348] sm:$0xff]  ;;  %v5807_v19 = vcombine.low %v455_v14, %v463_v15 }
 0x253   :  { %v328_v22 = vpop.f32.mrb[2].mxu1  ;;  %v5810_v21 = vcombine.high %v456_v16, %v464_v18 }
 0x254   :  { %v6637_v23 = vpop.f32.mrb[3].mxu1  ;;  %v331_v24 = vadd.f32 %v326_v20, %v207_v13  ;;  %v5794_v13 = vcombine.high %v440_v8, %v448_v10  ;;  %v5809_v20 = vcombine.low %v456_v16, %v464_v18  ;;  %1222 = vmatpush1.bf16.msra.mxu0 %v5807_v19  ;;  %v471_v22 = vld [vmem:[#allocation10 + $0x380] sm:$0xff]  ;;  %v425_v8 = vld [vmem:[#allocation10 + $0x210] sm:$0xff]  ;;  %v426_v10 = vld [vmem:[#allocation10 + $0x218] sm:$0xff] }
 0x255   :  { %v479_v23 = vld [vmem:[#allocation10 + $0x3c0] sm:$0xff]  ;;  %v5780_v14 = vcombine.high %v425_v8, %v433_v9  ;;  %v5782_v15 = vcombine.high %v426_v10, %v434_v11  ;;  %v441_v16 = vld [vmem:[#allocation10 + $0x290] sm:$0xff]  ;;  %v442_v18 = vld [vmem:[#allocation10 + $0x298] sm:$0xff] }
 0x256   :  { %332 = vadd.xlane.f32.xlu0 %v331_v24  ;;  %1260 = vmatprep.subr.bf16.mxu1 %v5794_v13  ;;  %v5824_v25 = vcombine.high %v471_v22, %v479_v23  ;;  %v5823_v27 = vcombine.low %v471_v22, %v479_v23  ;;  %v5765_v13 = vcombine.low %v410_v2, %v418_v3  ;;  %v450_v19 = vld [vmem:[#allocation10 + $0x2d8] sm:$0xff] }
 0x257   :  { %1261 = vmatpush1.bf16.msra.mxu1 %v5793_v12  ;;  %v5763_v12 = vcombine.low %v409_v63, %v417_v1  ;;  %v5796_v22 = vcombine.high %v441_v16, %v449_v17  ;;  %v5798_v23 = vcombine.high %v442_v18, %v450_v19 }
 0x258   :  { %1262 = vmatprep.subr.bf16.mxu1 %v5810_v21  ;;  %1223 = vmatprep.subr.bf16.mxu0 %v5824_v25  ;;  %v5781_v21 = vcombine.low %v426_v10, %v434_v11  ;;  %v465_v25 = vld [vmem:[#allocation10 + $0x350] sm:$0xff] }
 0x259   :  { %1224 = vmatpush1.bf16.msra.mxu0 %v5823_v27  ;;  %v466_v27 = vld [vmem:[#allocation10 + $0x358] sm:$0xff] }
 0x25a   :  { %1291 = vmatprep.subr.bf16.mxu0 %v5716_v33  ;;  %v481_v33 = vld [vmem:[#allocation10 + $0x3d0] sm:$0xff] }
 0x25b   :  { %1263 = vmatpush1.bf16.msra.mxu1 %v5809_v20  ;;  %v5779_v20 = vcombine.low %v425_v8, %v433_v9 }
 0x2e3   :  { %v333_v49 = vpop.xlane.xlu0 %332 }
 0x2e4   :  { %v335_v50 = vmul.f32 0.0078125, %v333_v49  ;;  %v378_v49 = vld [vmem:[#allocation10 + $0x98] sm:$0xff] }
 0x2e6   :  { %v7409_v51 = vsub.f32 %v331_v24, %v335_v50  ;;  %v472_v24 = vld [vmem:[#allocation10 + $0x388] sm:$0xff]  ;;  %v386_v50 = vld [vmem:[#allocation10 + $0xd8] sm:$0xff] }
 0x2e7   :  { %v5825_v28 = vcombine.low %v472_v24, %v480_v26  ;;  %v5826_v29 = vcombine.high %v472_v24, %v480_v26  ;;  %v5734_v55 = vcombine.high %v378_v49, %v386_v50  ;;  %v5733_v60 = vcombine.low %v378_v49, %v386_v50  ;;  %v457_v24 = vld [vmem:[#allocation10 + $0x310] sm:$0xff]  ;;  %v458_v26 = vld [vmem:[#allocation10 + $0x318] sm:$0xff]  ;;  %v379_v49 = vld [vmem:[#allocation10 + $0xa0] sm:$0xff] }
 0x2e8   :  { %v337_v52 = vmul.f32 %v7409_v51, %v7409_v51  ;;  %v5812_v30 = vcombine.high %v457_v24, %v465_v25  ;;  %v5814_v31 = vcombine.high %v458_v26, %v466_v27  ;;  %v387_v50 = vld [vmem:[#allocation10 + $0xe0] sm:$0xff] }
 0x2e9   :  { %1264 = vmatprep.subr.bf16.mxu1 %v5826_v29  ;;  %v5797_v29 = vcombine.low %v442_v18, %v450_v19  ;;  %v5736_v58 = vcombine.high %v379_v49, %v387_v50  ;;  %v5735_v63 = vcombine.low %v379_v49, %v387_v50 }
 0x2ea   :  { %338 = vadd.xlane.f32.xlu0 %v337_v52  ;;  %1265 = vmatpush1.bf16.msra.mxu1 %v5825_v28  ;;  %v5795_v28 = vcombine.low %v441_v16, %v449_v17 }
 0x2eb   :  { %1332 = vmatprep.subr.bf16.mxu1 %v5718_v37  ;;  %v5813_v37 = vcombine.low %v458_v26, %v466_v27 }
 0x377   :  { %v339_v39 = vpop.xlane.xlu0 %338 }
 0x378   :  { %v340_v40 = vmul.f32 0.0078125, %v339_v39  ;;  %v5828_v39 = vcombine.high %v473_v32, %v481_v33 }
 0x37a   :  { %v341_v41 = vadd.f32 1e-05, %v340_v40 }
 0x37c   :  { %6947 = vrsqrt.f32 %v341_v41  ;;  %v363_v41 = vld [vmem:[#allocation10 + $0x20] sm:$0xff] }
 0x386   :  { %v6948_v42 = vpop.eup %6947 }
 0x387   :  { %v343_v44 = vmul.f32 %v6948_v42, %v7409_v51  ;;  %v5731_v51 = vcombine.low %v377_v47, %v385_v48  ;;  %v371_v42 = vld [vmem:[#allocation10 + $0x60] sm:$0xff] }
 0x388   :  { %v5720_v47 = vcombine.high %v363_v41, %v371_v42  ;;  %v5719_v56 = vcombine.low %v363_v41, %v371_v42 }
 0x389   :  { %v350_v46 = vmul.f32 %v5709_v43, %v343_v44  ;;  %v364_v43 = vld [vmem:[#allocation10 + $0x28] sm:$0xff] }
 0x38a   :  { %v372_v44 = vld [vmem:[#allocation10 + $0x68] sm:$0xff] }
 0x38b   :  { %v7416_v52 = vadd.f32 %v5710_v45, %v350_v46  ;;  %v5827_v45 = vcombine.low %v473_v32, %v481_v33  ;;  %v5722_v48 = vcombine.high %v364_v43, %v372_v44  ;;  %v5721_v57 = vcombine.low %v364_v43, %v372_v44 }
 0x38d   :  { %v7420_v53 = vpack.c.bf16 %v7416_v52, %v7416_v52 }
 0x38f   :  { %1242 = vmatmul.mubr.bf16.vlgmr.msra.gmra.mrb[4].mxu0 %v7420_v53  ;;  %1283 = vmatmul.mubr.bf16.vlgmr.msra.gmra.mrb[4].mxu1 %v7420_v53 }
 0x390   :  { %1292 = vmatpush1.bf16.msra.mxu0 %v5715_v35  ;;  %1333 = vmatpush1.bf16.msra.mxu1 %v5717_v36  ;;  %v482_v35 = vld [vmem:[#allocation10 + $0x3d8] sm:$0xff]  ;;  %v5811_v36 = vcombine.low %v457_v24, %v465_v25 }
 0x391   :  { %1293 = vmatprep.subr.bf16.mxu0 %v5732_v54  ;;  %1334 = vmatprep.subr.bf16.mxu1 %v5734_v55  ;;  %v5830_v40 = vcombine.high %v474_v34, %v482_v35  ;;  %v5829_v46 = vcombine.low %v474_v34, %v482_v35  ;;  %v380_v54 = vld [vmem:[#allocation10 + $0xa8] sm:$0xff] }
 0x392   :  { %1323 = vmatprep.mubr.bf16.mxu0 %v7201_v38  ;;  %1364 = vmatprep.mubr.bf16.mxu1 %v7201_v38  ;;  %v388_v55 = vld [vmem:[#allocation10 + $0xe8] sm:$0xff] }
 0x393   :  { %v5738_v59 = vcombine.high %v380_v54, %v388_v55  ;;  %v5737_v1 = vcombine.low %v380_v54, %v388_v55 }
 0x394   :  { %1294 = vmatpush1.bf16.msra.mxu0 %v5731_v51  ;;  %1335 = vmatpush1.bf16.msra.mxu1 %v5733_v60  ;;  %v395_v51 = vld [vmem:[#allocation10 + $0x120] sm:$0xff] }
 0x395   :  { %1295 = vmatprep.subr.bf16.mxu0 %v5748_v61  ;;  %1336 = vmatprep.subr.bf16.mxu1 %v5750_v62  ;;  %v403_v60 = vld [vmem:[#allocation10 + $0x160] sm:$0xff]  ;;  %v396_v61 = vld [vmem:[#allocation10 + $0x128] sm:$0xff] }
 0x396   :  { %v404_v62 = vld [vmem:[#allocation10 + $0x168] sm:$0xff]  ;;  %v5752_v2 = vcombine.high %v395_v51, %v403_v60  ;;  %v5751_v8 = vcombine.low %v395_v51, %v403_v60 }
 0x397   :  { %v5754_v3 = vcombine.high %v396_v61, %v404_v62  ;;  %v5753_v9 = vcombine.low %v396_v61, %v404_v62 }
 0x398   :  { %1296 = vmatpush1.bf16.msra.mxu0 %v5747_v4  ;;  %1337 = vmatpush1.bf16.msra.mxu1 %v5749_v5  ;;  %v411_v4 = vld [vmem:[#allocation10 + $0x1a0] sm:$0xff] }
 0x399   :  { %1297 = vmatprep.subr.bf16.mxu0 %v5764_v6  ;;  %1338 = vmatprep.subr.bf16.mxu1 %v5766_v7  ;;  %v419_v5 = vld [vmem:[#allocation10 + $0x1e0] sm:$0xff]  ;;  %v412_v6 = vld [vmem:[#allocation10 + $0x1a8] sm:$0xff] }
 0x39a   :  { %v420_v7 = vld [vmem:[#allocation10 + $0x1e8] sm:$0xff]  ;;  %v5768_v10 = vcombine.high %v411_v4, %v419_v5  ;;  %v5767_v16 = vcombine.low %v411_v4, %v419_v5 }
 0x39b   :  { %v5770_v11 = vcombine.high %v412_v6, %v420_v7  ;;  %v5769_v17 = vcombine.low %v412_v6, %v420_v7 }
 0x39c   :  { %1298 = vmatpush1.bf16.msra.mxu0 %v5763_v12  ;;  %1339 = vmatpush1.bf16.msra.mxu1 %v5765_v13  ;;  %v427_v12 = vld [vmem:[#allocation10 + $0x220] sm:$0xff] }
 0x39d   :  { %1299 = vmatprep.subr.bf16.mxu0 %v5780_v14  ;;  %1340 = vmatprep.subr.bf16.mxu1 %v5782_v15  ;;  %v435_v13 = vld [vmem:[#allocation10 + $0x260] sm:$0xff]  ;;  %v428_v14 = vld [vmem:[#allocation10 + $0x228] sm:$0xff] }
 0x39e   :  { %v436_v15 = vld [vmem:[#allocation10 + $0x268] sm:$0xff]  ;;  %v5784_v18 = vcombine.high %v427_v12, %v435_v13  ;;  %v5783_v24 = vcombine.low %v427_v12, %v435_v13 }
 0x39f   :  { %v5786_v19 = vcombine.high %v428_v14, %v436_v15  ;;  %v5785_v25 = vcombine.low %v428_v14, %v436_v15 }
 0x3a0   :  { %1300 = vmatpush1.bf16.msra.mxu0 %v5779_v20  ;;  %1341 = vmatpush1.bf16.msra.mxu1 %v5781_v21  ;;  %v443_v20 = vld [vmem:[#allocation10 + $0x2a0] sm:$0xff] }
 0x3a1   :  { %1301 = vmatprep.subr.bf16.mxu0 %v5796_v22  ;;  %1342 = vmatprep.subr.bf16.mxu1 %v5798_v23  ;;  %v451_v21 = vld [vmem:[#allocation10 + $0x2e0] sm:$0xff]  ;;  %v444_v22 = vld [vmem:[#allocation10 + $0x2a8] sm:$0xff] }
 0x3a2   :  { %v452_v23 = vld [vmem:[#allocation10 + $0x2e8] sm:$0xff]  ;;  %v5800_v26 = vcombine.high %v443_v20, %v451_v21  ;;  %v5799_v32 = vcombine.low %v443_v20, %v451_v21 }
 0x3a3   :  { %v5802_v27 = vcombine.high %v444_v22, %v452_v23  ;;  %v5801_v33 = vcombine.low %v444_v22, %v452_v23 }
 0x3a4   :  { %1302 = vmatpush1.bf16.msra.mxu0 %v5795_v28  ;;  %1343 = vmatpush1.bf16.msra.mxu1 %v5797_v29  ;;  %v459_v28 = vld [vmem:[#allocation10 + $0x320] sm:$0xff] }
 0x3a5   :  { %1303 = vmatprep.subr.bf16.mxu0 %v5812_v30  ;;  %1344 = vmatprep.subr.bf16.mxu1 %v5814_v31  ;;  %v467_v29 = vld [vmem:[#allocation10 + $0x360] sm:$0xff]  ;;  %v460_v30 = vld [vmem:[#allocation10 + $0x328] sm:$0xff] }
 0x3a6   :  { %v468_v31 = vld [vmem:[#allocation10 + $0x368] sm:$0xff]  ;;  %v5816_v34 = vcombine.high %v459_v28, %v467_v29  ;;  %v5815_v41 = vcombine.low %v459_v28, %v467_v29 }
 0x3a7   :  { %v5818_v35 = vcombine.high %v460_v30, %v468_v31  ;;  %v5817_v42 = vcombine.low %v460_v30, %v468_v31 }
 0x3a8   :  { %1304 = vmatpush1.bf16.msra.mxu0 %v5811_v36  ;;  %1345 = vmatpush1.bf16.msra.mxu1 %v5813_v37  ;;  %v475_v36 = vld [vmem:[#allocation10 + $0x3a0] sm:$0xff] }
 0x3a9   :  { %1305 = vmatprep.subr.bf16.mxu0 %v5828_v39  ;;  %1346 = vmatprep.subr.bf16.mxu1 %v5830_v40  ;;  %v483_v37 = vld [vmem:[#allocation10 + $0x3e0] sm:$0xff]  ;;  %v476_v39 = vld [vmem:[#allocation10 + $0x3a8] sm:$0xff] }
 0x3aa   :  { %v484_v40 = vld [vmem:[#allocation10 + $0x3e8] sm:$0xff]  ;;  %v5832_v43 = vcombine.high %v475_v36, %v483_v37  ;;  %v5831_v49 = vcombine.low %v475_v36, %v483_v37 }
 0x3ab   :  { %v5834_v44 = vcombine.high %v476_v39, %v484_v40  ;;  %v5833_v50 = vcombine.low %v476_v39, %v484_v40 }
 0x3ac   :  { %1306 = vmatpush1.bf16.msra.mxu0 %v5827_v45  ;;  %1347 = vmatpush1.bf16.msra.mxu1 %v5829_v46  ;;  %v365_v45 = vld [vmem:[#allocation10 + $0x30] sm:$0xff] }
 0x3ad   :  { %1373 = vmatprep.subr.bf16.mxu0 %v5720_v47  ;;  %1414 = vmatprep.subr.bf16.mxu1 %v5722_v48  ;;  %v373_v46 = vld [vmem:[#allocation10 + $0x70] sm:$0xff]  ;;  %v366_v47 = vld [vmem:[#allocation10 + $0x38] sm:$0xff] }
 0x3ae   :  { %v374_v48 = vld [vmem:[#allocation10 + $0x78] sm:$0xff]  ;;  %v5724_v54 = vcombine.high %v365_v45, %v373_v46  ;;  %v5723_v51 = vcombine.low %v365_v45, %v373_v46 }
 0x3af   :  { %1324 = vmatmul.mubr.bf16.vlgmr.msra.gmra.mrb[8].mxu0 %v7420_v53  ;;  %1365 = vmatmul.mubr.bf16.vlgmr.msra.gmra.mrb[8].mxu1 %v7420_v53  ;;  %v5726_v55 = vcombine.high %v366_v47, %v374_v48  ;;  %v5725_v60 = vcombine.low %v366_v47, %v374_v48 }
 0x3b0   :  { %1374 = vmatpush1.bf16.msra.mxu0 %v5719_v56  ;;  %1415 = vmatpush1.bf16.msra.mxu1 %v5721_v57  ;;  %v381_v56 = vld [vmem:[#allocation10 + $0xb0] sm:$0xff] }
 0x3b1   :  { %1375 = vmatprep.subr.bf16.mxu0 %v5736_v58  ;;  %1416 = vmatprep.subr.bf16.mxu1 %v5738_v59  ;;  %v389_v57 = vld [vmem:[#allocation10 + $0xf0] sm:$0xff]  ;;  %v382_v58 = vld [vmem:[#allocation10 + $0xb8] sm:$0xff] }
 0x3b2   :  { %1405 = vmatprep.mubr.bf16.mxu0 %v7201_v38  ;;  %1446 = vmatprep.mubr.bf16.mxu1 %v7201_v38  ;;  %v390_v59 = vld [vmem:[#allocation10 + $0xf8] sm:$0xff]  ;;  %v5740_v61 = vcombine.high %v381_v56, %v389_v57  ;;  %v5739_v4 = vcombine.low %v381_v56, %v389_v57  ;;  %v6685_v56 = vld [vmem:[#allocation11] sm:$0xff]  }
 0x3b3   :  { %v5742_v62 = vcombine.high %v382_v58, %v390_v59  ;;  %v5741_v5 = vcombine.low %v382_v58, %v390_v59  ;;  %v6686_v57 = vld [vmem:[#allocation11 + $0x80] sm:$0xff]   ;;  %v6687_v58 = vld [vmem:[#allocation11 + $0x48] sm:$0xff]  }
 0x3b4   :  { %1376 = vmatpush1.bf16.msra.mxu0 %v5735_v63  ;;  %1417 = vmatpush1.bf16.msra.mxu1 %v5737_v1  ;;  %v397_v63 = vld [vmem:[#allocation10 + $0x130] sm:$0xff]  ;;  %v6688_v59 = vld [vmem:[#allocation11 + $0xc8] sm:$0xff]  }
 0x3b5   :  { %1377 = vmatprep.subr.bf16.mxu0 %v5752_v2  ;;  %1418 = vmatprep.subr.bf16.mxu1 %v5754_v3  ;;  %v405_v1 = vld [vmem:[#allocation10 + $0x170] sm:$0xff]  ;;  %v398_v2 = vld [vmem:[#allocation10 + $0x138] sm:$0xff] }
 0x3b6   :  { %v406_v3 = vld [vmem:[#allocation10 + $0x178] sm:$0xff]  ;;  %v5756_v6 = vcombine.high %v397_v63, %v405_v1  ;;  %v5755_v12 = vcombine.low %v397_v63, %v405_v1  ;;  %v6693_v63 = vld [vmem:[#allocation11 + $0x10] sm:$0xff]  }
 0x3b7   :  { %v5758_v7 = vcombine.high %v398_v2, %v406_v3  ;;  %v5757_v13 = vcombine.low %v398_v2, %v406_v3  ;;  %v6694_v1 = vld [vmem:[#allocation11 + $0x90] sm:$0xff]   ;;  %v6695_v2 = vld [vmem:[#allocation11 + $0x58] sm:$0xff]  }
 0x3b8   :  { %1378 = vmatpush1.bf16.msra.mxu0 %v5751_v8  ;;  %1419 = vmatpush1.bf16.msra.mxu1 %v5753_v9  ;;  %v413_v8 = vld [vmem:[#allocation10 + $0x1b0] sm:$0xff]  ;;  %v6696_v3 = vld [vmem:[#allocation11 + $0xd8] sm:$0xff]  }
 0x3b9   :  { %1379 = vmatprep.subr.bf16.mxu0 %v5768_v10  ;;  %1420 = vmatprep.subr.bf16.mxu1 %v5770_v11  ;;  %v421_v9 = vld [vmem:[#allocation10 + $0x1f0] sm:$0xff]  ;;  %v414_v10 = vld [vmem:[#allocation10 + $0x1b8] sm:$0xff] }
 0x3ba   :  { %v422_v11 = vld [vmem:[#allocation10 + $0x1f8] sm:$0xff]  ;;  %v5772_v14 = vcombine.high %v413_v8, %v421_v9  ;;  %v5771_v20 = vcombine.low %v413_v8, %v421_v9  ;;  %v6702_v8 = vld [vmem:[#allocation11 + $0xa0] sm:$0xff]   ;;  %v6703_v9 = vld [vmem:[#allocation11 + $0x68] sm:$0xff]  }
 0x3bb   :  { %v5774_v15 = vcombine.high %v414_v10, %v422_v11  ;;  %v5773_v21 = vcombine.low %v414_v10, %v422_v11  ;;  %v6704_v10 = vld [vmem:[#allocation11 + $0xe8] sm:$0xff]  }
 0x3bc   :  { %1380 = vmatpush1.bf16.msra.mxu0 %v5767_v16  ;;  %1421 = vmatpush1.bf16.msra.mxu1 %v5769_v17  ;;  %v429_v16 = vld [vmem:[#allocation10 + $0x230] sm:$0xff]  ;;  %v6705_v11 = vld [vmem:[#allocation11 + $0x28] sm:$0xff]  }
 0x3bd   :  { %1381 = vmatprep.subr.bf16.mxu0 %v5784_v18  ;;  %1422 = vmatprep.subr.bf16.mxu1 %v5786_v19  ;;  %v437_v17 = vld [vmem:[#allocation10 + $0x270] sm:$0xff]  ;;  %v430_v18 = vld [vmem:[#allocation10 + $0x238] sm:$0xff] }
 0x3be   :  { %v438_v19 = vld [vmem:[#allocation10 + $0x278] sm:$0xff]  ;;  %v5788_v22 = vcombine.high %v429_v16, %v437_v17  ;;  %v5787_v28 = vcombine.low %v429_v16, %v437_v17  ;;  %v6710_v16 = vld [vmem:[#allocation11 + $0xb0] sm:$0xff]  }
 0x3bf   :  { %v5790_v23 = vcombine.high %v430_v18, %v438_v19  ;;  %v5789_v29 = vcombine.low %v430_v18, %v438_v19  ;;  %v6711_v17 = vld [vmem:[#allocation11 + $0x78] sm:$0xff]  }
 0x3c0   :  { %1382 = vmatpush1.bf16.msra.mxu0 %v5783_v24  ;;  %1423 = vmatpush1.bf16.msra.mxu1 %v5785_v25  ;;  %v445_v24 = vld [vmem:[#allocation10 + $0x2b0] sm:$0xff]  ;;  %v6712_v18 = vld [vmem:[#allocation11 + $0xf8] sm:$0xff]  }
 0x3c1   :  { %1383 = vmatprep.subr.bf16.mxu0 %v5800_v26  ;;  %1424 = vmatprep.subr.bf16.mxu1 %v5802_v27  ;;  %v453_v25 = vld [vmem:[#allocation10 + $0x2f0] sm:$0xff]  ;;  %v446_v26 = vld [vmem:[#allocation10 + $0x2b8] sm:$0xff] }
 0x3c2   :  { %v454_v27 = vld [vmem:[#allocation10 + $0x2f8] sm:$0xff]  ;;  %v5804_v30 = vcombine.high %v445_v24, %v453_v25  ;;  %v5803_v36 = vcombine.low %v445_v24, %v453_v25 }
 0x3c3   :  { %v5806_v31 = vcombine.high %v446_v26, %v454_v27  ;;  %v5805_v37 = vcombine.low %v446_v26, %v454_v27  ;;  %v6713_v19 = vld [vmem:[#allocation11 + $0x38] sm:$0xff]  }
 0x3c4   :  { %1384 = vmatpush1.bf16.msra.mxu0 %v5799_v32  ;;  %1425 = vmatpush1.bf16.msra.mxu1 %v5801_v33  ;;  %v461_v32 = vld [vmem:[#allocation10 + $0x330] sm:$0xff] }
 0x3c5   :  { %1385 = vmatprep.subr.bf16.mxu0 %v5816_v34  ;;  %1426 = vmatprep.subr.bf16.mxu1 %v5818_v35  ;;  %v469_v33 = vld [vmem:[#allocation10 + $0x370] sm:$0xff]  ;;  %v462_v34 = vld [vmem:[#allocation10 + $0x338] sm:$0xff] }
 0x3c6   :  { %v470_v35 = vld [vmem:[#allocation10 + $0x378] sm:$0xff]  ;;  %v5820_v39 = vcombine.high %v461_v32, %v469_v33  ;;  %v5819_v45 = vcombine.low %v461_v32, %v469_v33 }
 0x3c7   :  { %v5822_v40 = vcombine.high %v462_v34, %v470_v35  ;;  %v5821_v46 = vcombine.low %v462_v34, %v470_v35  ;;  %v7444_v27 = vld [vmem:[#allocation5 + $0x7] sm:$0xff] }
 0x3c8   :  { %1386 = vmatpush1.bf16.msra.mxu0 %v5815_v41  ;;  %1427 = vmatpush1.bf16.msra.mxu1 %v5817_v42  ;;  %v477_v41 = vld [vmem:[#allocation10 + $0x3b0] sm:$0xff] }
 0x3c9   :  { %1387 = vmatprep.subr.bf16.mxu0 %v5832_v43  ;;  %1428 = vmatprep.subr.bf16.mxu1 %v5834_v44  ;;  %v485_v42 = vld [vmem:[#allocation10 + $0x3f0] sm:$0xff]  ;;  %v478_v43 = vld [vmem:[#allocation10 + $0x3b8] sm:$0xff] }
 0x3ca   :  { %v486_v44 = vld [vmem:[#allocation10 + $0x3f8] sm:$0xff]  ;;  %v5836_v47 = vcombine.high %v477_v41, %v485_v42 }
 0x3cb   :  { %v5838_v48 = vcombine.high %v478_v43, %v486_v44 }
 0x3cc   :  { %1388 = vmatpush1.bf16.msra.mxu0 %v5831_v49  ;;  %1429 = vmatpush1.bf16.msra.mxu1 %v5833_v50  ;;  %v5835_v49 = vcombine.low %v477_v41, %v485_v42  ;;  %v5837_v50 = vcombine.low %v478_v43, %v486_v44 }
 0x3cd   :  { %1455 = vmatprep.subr.bf16.mxu0 %v5724_v54  ;;  %1496 = vmatprep.subr.bf16.mxu1 %v5726_v55  ;;  %v6683_v54 = vld [vmem:[#allocation11 + $0x40] sm:$0xff]  }
 0x3ce   :  { %v6684_v55 = vld [vmem:[#allocation11 + $0xc0] sm:$0xff]  }
 0x3cf   :  { %1406 = vmatmul.mubr.bf16.vlgmr.msra.gmra.mrb[12].mxu0 %v7420_v53  ;;  %1447 = vmatmul.mubr.bf16.vlgmr.msra.gmra.mrb[12].mxu1 %v7420_v53 }
 0x3d0   :  { %1456 = vmatpush1.bf16.msra.mxu0 %v5723_v51  ;;  %1497 = vmatpush1.bf16.msra.mxu1 %v5725_v60  ;;  %v6689_v51 = vld [vmem:[#allocation11 + $0x8] sm:$0xff]  }
 0x3d1   :  { %1457 = vmatprep.subr.bf16.mxu0 %v5740_v61  ;;  %1498 = vmatprep.subr.bf16.mxu1 %v5742_v62  ;;  %v6690_v60 = vld [vmem:[#allocation11 + $0x88] sm:$0xff]   ;;  %v6691_v61 = vld [vmem:[#allocation11 + $0x50] sm:$0xff]  }
 0x3d2   :  { %1487 = vmatprep.mubr.bf16.mxu0 %v7201_v38  ;;  %1528 = vmatprep.mubr.bf16.mxu1 %v7201_v38  ;;  %v6692_v62 = vld [vmem:[#allocation11 + $0xd0] sm:$0xff]  }
 0x3d4   :  { %1458 = vmatpush1.bf16.msra.mxu0 %v5739_v4  ;;  %1499 = vmatpush1.bf16.msra.mxu1 %v5741_v5  ;;  %v6697_v4 = vld [vmem:[#allocation11 + $0x18] sm:$0xff]   ;;  %v6699_v5 = vld [vmem:[#allocation11 + $0x60] sm:$0xff]  }
 0x3d5   :  { %1459 = vmatprep.subr.bf16.mxu0 %v5756_v6  ;;  %1500 = vmatprep.subr.bf16.mxu1 %v5758_v7  ;;  %v6700_v6 = vld [vmem:[#allocation11 + $0xe0] sm:$0xff]  }
 0x3d6   :  { %v6701_v7 = vld [vmem:[#allocation11 + $0x20] sm:$0xff]  }
 0x3d8   :  { %1460 = vmatpush1.bf16.msra.mxu0 %v5755_v12  ;;  %1501 = vmatpush1.bf16.msra.mxu1 %v5757_v13  ;;  %v6706_v12 = vld [vmem:[#allocation11 + $0xa8] sm:$0xff]   ;;  %v6707_v13 = vld [vmem:[#allocation11 + $0x70] sm:$0xff]  }
 0x3d9   :  { %1461 = vmatprep.subr.bf16.mxu0 %v5772_v14  ;;  %1502 = vmatprep.subr.bf16.mxu1 %v5774_v15  ;;  %v6708_v14 = vld [vmem:[#allocation11 + $0xf0] sm:$0xff]  }
 0x3da   :  { %v6709_v15 = vld [vmem:[#allocation11 + $0x30] sm:$0xff]  }
 0x3dc   :  { %1462 = vmatpush1.bf16.msra.mxu0 %v5771_v20  ;;  %1503 = vmatpush1.bf16.msra.mxu1 %v5773_v21  ;;  %v6714_v20 = vld [vmem:[#allocation11 + $0xb8] sm:$0xff]   ;;  %v6715_v21 = vld [vmem:[#allocation11 + $0x140] sm:$0xff]  }
 0x3dd   :  { %1463 = vmatprep.subr.bf16.mxu0 %v5788_v22  ;;  %1504 = vmatprep.subr.bf16.mxu1 %v5790_v23  ;;  %v6716_v22 = vld [vmem:[#allocation11 + $0x1c0] sm:$0xff]   ;;  %v489_v23 = vlaneseq }
 0x3df   :  { %v7436_v24 = vshrl.u32 %v489_v23, 7 }
 0x3e0   :  { %1464 = vmatpush1.bf16.msra.mxu0 %v5787_v28  ;;  %1505 = vmatpush1.bf16.msra.mxu1 %v5789_v29 }
 0x3e1   :  { %1465 = vmatprep.subr.bf16.mxu0 %v5804_v30  ;;  %1506 = vmatprep.subr.bf16.mxu1 %v5806_v31  ;;  %v7439_v25 = vsub.s32 0, %v7436_v24  ;;  %v7442_v26 = vsub.s32 2, %v7436_v24  ;;  %v7447_v28 = vsub.s32 1, %v7436_v24  ;;  %v7450_v29 = vsub.s32 3, %v7436_v24 }
 0x3e3   :  { %v492_v30 = vrot.slane %v7444_v27, %v7439_v25  ;;  %v500_v31 = vrot.slane %v7444_v27, %v7442_v26  ;;  %v496_v32 = vrot.slane %v7444_v27, %v7447_v28  ;;  %v504_v33 = vrot.slane %v7444_v27, %v7450_v29 }
 0x3e4   :  { %1466 = vmatpush1.bf16.msra.mxu0 %v5803_v36  ;;  %1507 = vmatpush1.bf16.msra.mxu1 %v5805_v37 }
 0x3e5   :  { %1467 = vmatprep.subr.bf16.mxu0 %v5820_v39  ;;  %1508 = vmatprep.subr.bf16.mxu1 %v5822_v40 }
 0x3e8   :  { %1468 = vmatpush1.bf16.msra.mxu0 %v5819_v45  ;;  %1509 = vmatpush1.bf16.msra.mxu1 %v5821_v46 }
 0x3e9   :  { %1469 = vmatprep.subr.bf16.mxu0 %v5836_v47  ;;  %1510 = vmatprep.subr.bf16.mxu1 %v5838_v48 }
 0x3ec   :  { %1470 = vmatpush1.bf16.msra.mxu0 %v5835_v49  ;;  %1511 = vmatpush1.bf16.msra.mxu1 %v5837_v50 }
 0x3ed   :  { %6251 = vmatprep.subr.bf16.mxu0 %v6683_v54  ;;  %6273 = vmatprep.subr.bf16.mxu1 %v6684_v55 }
 0x3ef   :  { %1488 = vmatmul.mubr.bf16.vlgmr.msra.gmra.mrb[16].mxu0 %v7420_v53  ;;  %1529 = vmatmul.mubr.bf16.vlgmr.msra.gmra.mrb[16].mxu1 %v7420_v53  ;;  %v6698_v53 = vld [vmem:[#allocation11 + $0x98] sm:$0xff]  }
 0x3f0   :  { %6252 = vmatpush3.bf16.msra.mxu0 %v6685_v56  ;;  %6274 = vmatpush3.bf16.msra.mxu1 %v6686_v57  ;;  %v6717_v56 = vld [vmem:[#allocation11 + $0x100] sm:$0xff]  }
 0x3f1   :  { %6253 = vmatprep.subr.bf16.mxu0 %v6687_v58  ;;  %6275 = vmatprep.subr.bf16.mxu1 %v6688_v59  ;;  %v6718_v57 = vld [vmem:[#allocation11 + $0x180] sm:$0xff]  }
 0x3f4   :  { %6254 = vmatpush3.bf16.msra.mxu0 %v6689_v51  ;;  %6276 = vmatpush3.bf16.msra.mxu1 %v6690_v60  ;;  %v6719_v51 = vld [vmem:[#allocation11 + $0x148] sm:$0xff]  }
 0x3f5   :  { %6255 = vmatprep.subr.bf16.mxu0 %v6691_v61  ;;  %6277 = vmatprep.subr.bf16.mxu1 %v6692_v62  ;;  %v6720_v60 = vld [vmem:[#allocation11 + $0x1c8] sm:$0xff]  }
 0x3f6   :  { %v6721_v61 = vld [vmem:[#allocation11 + $0x108] sm:$0xff]  }
 0x3f7   :  { %v6722_v62 = vld [vmem:[#allocation11 + $0x188] sm:$0xff]  }
 0x3f8   :  { %6256 = vmatpush3.bf16.msra.mxu0 %v6693_v63  ;;  %6278 = vmatpush3.bf16.msra.mxu1 %v6694_v1  ;;  %v6723_v63 = vld [vmem:[#allocation11 + $0x150] sm:$0xff]  }
 0x3f9   :  { %6257 = vmatprep.subr.bf16.mxu0 %v6695_v2  ;;  %6279 = vmatprep.subr.bf16.mxu1 %v6696_v3  ;;  %v6724_v1 = vld [vmem:[#allocation11 + $0x1d0] sm:$0xff]  }
 0x3fa   :  { %v6725_v2 = vld [vmem:[#allocation11 + $0x110] sm:$0xff]  }
 0x3fb   :  { %v6726_v3 = vld [vmem:[#allocation11 + $0x190] sm:$0xff]  }
 0x3fc   :  { %6258 = vmatpush3.bf16.msra.mxu0 %v6697_v4  ;;  %6280 = vmatpush3.bf16.msra.mxu1 %v6698_v53  ;;  %v6727_v4 = vld [vmem:[#allocation11 + $0x158] sm:$0xff]  }
 0x3fd   :  { %6259 = vmatprep.subr.bf16.mxu0 %v6699_v5  ;;  %6281 = vmatprep.subr.bf16.mxu1 %v6700_v6  ;;  %v6728_v53 = vld [vmem:[#allocation11 + $0x1d8] sm:$0xff]  }
 0x3fe   :  { %v6729_v5 = vld [vmem:[#allocation11 + $0x118] sm:$0xff]  }
 0x3ff   :  { %v6730_v6 = vld [vmem:[#allocation11 + $0x198] sm:$0xff]  }
 0x400   :  { %6260 = vmatpush3.bf16.msra.mxu0 %v6701_v7  ;;  %6282 = vmatpush3.bf16.msra.mxu1 %v6702_v8  ;;  %v6731_v7 = vld [vmem:[#allocation11 + $0x160] sm:$0xff]  }
 0x401   :  { %6261 = vmatprep.subr.bf16.mxu0 %v6703_v9  ;;  %6283 = vmatprep.subr.bf16.mxu1 %v6704_v10  ;;  %v6732_v8 = vld [vmem:[#allocation11 + $0x1e0] sm:$0xff]  }
 0x402   :  { %v6733_v9 = vld [vmem:[#allocation11 + $0x120] sm:$0xff]  }
 0x403   :  { %v6734_v10 = vld [vmem:[#allocation11 + $0x1a0] sm:$0xff]  }
 0x404   :  { %6262 = vmatpush3.bf16.msra.mxu0 %v6705_v11  ;;  %6284 = vmatpush3.bf16.msra.mxu1 %v6706_v12  ;;  %v6735_v11 = vld [vmem:[#allocation11 + $0x168] sm:$0xff]  }
 0x405   :  { %6263 = vmatprep.subr.bf16.mxu0 %v6707_v13  ;;  %6285 = vmatprep.subr.bf16.mxu1 %v6708_v14  ;;  %v6736_v12 = vld [vmem:[#allocation11 + $0x1e8] sm:$0xff]   ;;  %v7461_v13 = vsub.s32 4, %v7436_v24  ;;  %v7464_v14 = vsub.s32 6, %v7436_v24 }
 0x408   :  { %6264 = vmatpush3.bf16.msra.mxu0 %v6709_v15  ;;  %6286 = vmatpush3.bf16.msra.mxu1 %v6710_v16  ;;  %v6737_v15 = vld [vmem:[#allocation11 + $0x128] sm:$0xff]  }
 0x409   :  { %6265 = vmatprep.subr.bf16.mxu0 %v6711_v17  ;;  %6287 = vmatprep.subr.bf16.mxu1 %v6712_v18  ;;  %v6738_v16 = vld [vmem:[#allocation11 + $0x1a8] sm:$0xff]   ;;  %v7467_v17 = vsub.s32 5, %v7436_v24  ;;  %v7470_v18 = vsub.s32 7, %v7436_v24  ;;  %v6741_v24 = vld [vmem:[#allocation11 + $0x130] sm:$0xff]  }
 0x40b   :  { %v512_v23 = vrot.slane %v7444_v27, %v7467_v17 }
 0x40c   :  { %6266 = vmatpush3.bf16.msra.mxu0 %v6713_v19  ;;  %6288 = vmatpush3.bf16.msra.mxu1 %v6714_v20  ;;  %v6739_v19 = vld [vmem:[#allocation11 + $0x170] sm:$0xff]  }
 0x40d   :  { %6295 = vmatprep.subr.bf16.mxu0 %v6715_v21  ;;  %6317 = vmatprep.subr.bf16.mxu1 %v6716_v22  ;;  %v6740_v20 = vld [vmem:[#allocation11 + $0x1f0] sm:$0xff]   ;;  %v508_v21 = vrot.slane %v7444_v27, %v7461_v13  ;;  %v516_v22 = vrot.slane %v7444_v27, %v7464_v14 }
 0x462   :  { %v1243_v34 = vpop.f32.mrb[4].mxu0  ;;  %v1284_v35 = vpop.f32.mrb[4].mxu1 }
 0x463   :  { %v1244_v36 = vadd.f32 %v1243_v34, %v492_v30  ;;  %v1285_v37 = vadd.f32 %v1284_v35, %v500_v31  ;;  %v1245_v39 = vpop.f32.mrb[5].mxu0  ;;  %v1286_v40 = vpop.f32.mrb[5].mxu1  ;;  %v520_v30 = vrot.slane %v7444_v27, %v7470_v18  ;;  %v6742_v31 = vld [vmem:[#allocation11 + $0x1b0] sm:$0xff]   ;;  %v6746_v27 = vld [vmem:[#allocation11 + $0x1b8] sm:$0xff]  }
 0x464   :  { %v1246_v41 = vadd.f32 %v1245_v39, %v496_v32  ;;  %v1287_v42 = vadd.f32 %v1286_v40, %v504_v33  ;;  %v1247_v43 = vpop.f32.mrb[6].mxu0  ;;  %v1288_v44 = vpop.f32.mrb[6].mxu1  ;;  %v6743_v32 = vld [vmem:[#allocation11 + $0x178] sm:$0xff]  }
 0x465   :  { %v1537_v45 = vmax.f32 %v1244_v36, 0.0  ;;  %v1539_v46 = vmax.f32 %v1285_v37, 0.0  ;;  %v1248_v47 = vpop.f32.mrb[7].mxu0  ;;  %v1289_v48 = vpop.f32.mrb[7].mxu1  ;;  %v6744_v33 = vld [vmem:[#allocation11 + $0x1f8] sm:$0xff]  }
 0x466   :  { %v1538_v49 = vmax.f32 %v1246_v41, 0.0  ;;  %v1540_v50 = vmax.f32 %v1287_v42, 0.0 }
 0x467   :  { %v1553_v58 = vpack.c.bf16 %v1537_v45, %v1537_v45  ;;  %v1555_v59 = vpack.c.bf16 %v1539_v46, %v1539_v46  ;;  %v6745_v45 = vld [vmem:[#allocation11 + $0x138] sm:$0xff]  }
 0x468   :  { %v1554_v54 = vpack.c.bf16 %v1538_v49, %v1538_v49  ;;  %v1556_v55 = vpack.c.bf16 %v1540_v50, %v1540_v50  ;;  %v6747_v50 = vld [vmem:[#allocation11 + $0x240] sm:$0xff]  }
 0x46a   :  { %2631 = vmatprep.mubr.bf16.mxu0 %v1554_v54  ;;  %2671 = vmatprep.mubr.bf16.mxu1 %v1556_v55  ;;  %v6748_v54 = vld [vmem:[#allocation11 + $0x2c0] sm:$0xff]  }
 0x46b   :  { %2632 = vmatmul.mubr.bf16.vlgmr.msra.gmra.mrb[20].mxu0 %v1553_v58  ;;  %2672 = vmatmul.mubr.bf16.vlgmr.msra.gmra.mrb[20].mxu1 %v1555_v59  ;;  %v6749_v59 = vld [vmem:[#allocation11 + $0x200] sm:$0xff]  }
 0x46c   :  { %6296 = vmatpush3.bf16.msra.mxu0 %v6717_v56  ;;  %6318 = vmatpush3.bf16.msra.mxu1 %v6718_v57 }
 0x46d   :  { %6297 = vmatprep.subr.bf16.mxu0 %v6719_v51  ;;  %6319 = vmatprep.subr.bf16.mxu1 %v6720_v60  ;;  %v6750_v51 = vld [vmem:[#allocation11 + $0x280] sm:$0xff]  }
 0x470   :  { %6298 = vmatpush3.bf16.msra.mxu0 %v6721_v61  ;;  %6320 = vmatpush3.bf16.msra.mxu1 %v6722_v62  ;;  %v6751_v62 = vld [vmem:[#allocation11 + $0x248] sm:$0xff]  }
 0x471   :  { %6299 = vmatprep.subr.bf16.mxu0 %v6723_v63  ;;  %6321 = vmatprep.subr.bf16.mxu1 %v6724_v1  ;;  %v6752_v63 = vld [vmem:[#allocation11 + $0x2c8] sm:$0xff]  }
 0x472   :  { %v6753_v1 = vld [vmem:[#allocation11 + $0x208] sm:$0xff]  }
 0x474   :  { %6300 = vmatpush3.bf16.msra.mxu0 %v6725_v2  ;;  %6322 = vmatpush3.bf16.msra.mxu1 %v6726_v3  ;;  %v6754_v2 = vld [vmem:[#allocation11 + $0x288] sm:$0xff]   ;;  %v6755_v3 = vld [vmem:[#allocation11 + $0x250] sm:$0xff]  }
 0x475   :  { %6301 = vmatprep.subr.bf16.mxu0 %v6727_v4  ;;  %6323 = vmatprep.subr.bf16.mxu1 %v6728_v53  ;;  %v6756_v4 = vld [vmem:[#allocation11 + $0x2d0] sm:$0xff]  }
 0x476   :  { %v6757_v53 = vld [vmem:[#allocation11 + $0x210] sm:$0xff]  }
 0x478   :  { %6302 = vmatpush3.bf16.msra.mxu0 %v6729_v5  ;;  %6324 = vmatpush3.bf16.msra.mxu1 %v6730_v6  ;;  %v6758_v5 = vld [vmem:[#allocation11 + $0x290] sm:$0xff]   ;;  %v6759_v6 = vld [vmem:[#allocation11 + $0x258] sm:$0xff]  }
 0x479   :  { %6303 = vmatprep.subr.bf16.mxu0 %v6731_v7  ;;  %6325 = vmatprep.subr.bf16.mxu1 %v6732_v8  ;;  %v6760_v7 = vld [vmem:[#allocation11 + $0x2d8] sm:$0xff]  }
 0x47a   :  { %v6761_v8 = vld [vmem:[#allocation11 + $0x218] sm:$0xff]  }
 0x47c   :  { %6304 = vmatpush3.bf16.msra.mxu0 %v6733_v9  ;;  %6326 = vmatpush3.bf16.msra.mxu1 %v6734_v10  ;;  %v6762_v9 = vld [vmem:[#allocation11 + $0x298] sm:$0xff]   ;;  %v6763_v10 = vld [vmem:[#allocation11 + $0x260] sm:$0xff]  }
 0x47d   :  { %6305 = vmatprep.subr.bf16.mxu0 %v6735_v11  ;;  %6327 = vmatprep.subr.bf16.mxu1 %v6736_v12  ;;  %v6764_v11 = vld [vmem:[#allocation11 + $0x2e0] sm:$0xff]  }
 0x47e   :  { %v6765_v12 = vld [vmem:[#allocation11 + $0x220] sm:$0xff]  }
 0x480   :  { %6306 = vmatpush3.bf16.msra.mxu0 %v6737_v15  ;;  %6328 = vmatpush3.bf16.msra.mxu1 %v6738_v16  ;;  %v6766_v15 = vld [vmem:[#allocation11 + $0x2a0] sm:$0xff]   ;;  %v6767_v16 = vld [vmem:[#allocation11 + $0x268] sm:$0xff]  }
 0x481   :  { %6307 = vmatprep.subr.bf16.mxu0 %v6739_v19  ;;  %6329 = vmatprep.subr.bf16.mxu1 %v6740_v20  ;;  %v6768_v19 = vld [vmem:[#allocation11 + $0x2e8] sm:$0xff]  }
 0x482   :  { %v1325_v34 = vpop.f32.mrb[8].mxu0  ;;  %v1366_v35 = vpop.f32.mrb[8].mxu1  ;;  %v6769_v20 = vld [vmem:[#allocation11 + $0x228] sm:$0xff]  }
 0x483   :  { %v1326_v36 = vadd.f32 %v1325_v34, %v508_v21  ;;  %v1367_v37 = vadd.f32 %v1366_v35, %v516_v22  ;;  %v1327_v39 = vpop.f32.mrb[9].mxu0  ;;  %v1368_v40 = vpop.f32.mrb[9].mxu1  ;;  %v6770_v21 = vld [vmem:[#allocation11 + $0x2a8] sm:$0xff]   ;;  %v7480_v22 = vld [vmem:[#allocation5 + $0xf] sm:$0xff]  ;;  %v6773_v34 = vld [vmem:[#allocation11 + $0x230] sm:$0xff]  }
 0x484   :  { %v1328_v41 = vadd.f32 %v1327_v39, %v512_v23  ;;  %v1369_v42 = vadd.f32 %v1368_v40, %v520_v30  ;;  %v1329_v43 = vpop.f32.mrb[10].mxu0  ;;  %v1370_v44 = vpop.f32.mrb[10].mxu1  ;;  %6308 = vmatpush3.bf16.msra.mxu0 %v6741_v24  ;;  %6330 = vmatpush3.bf16.msra.mxu1 %v6742_v31  ;;  %v6771_v23 = vld [vmem:[#allocation11 + $0x270] sm:$0xff]   ;;  %v524_v24 = vrot.slane %v7480_v22, %v7439_v25 }
 0x485   :  { %v1541_v46 = vmax.f32 %v1326_v36, 0.0  ;;  %v1543_v47 = vmax.f32 %v1367_v37, 0.0  ;;  %v1330_v48 = vpop.f32.mrb[11].mxu0  ;;  %v1371_v49 = vpop.f32.mrb[11].mxu1  ;;  %6309 = vmatprep.subr.bf16.mxu0 %v6743_v32  ;;  %6331 = vmatprep.subr.bf16.mxu1 %v6744_v33  ;;  %v6772_v30 = vld [vmem:[#allocation11 + $0x2f0] sm:$0xff]   ;;  %v532_v31 = vrot.slane %v7480_v22, %v7442_v26  ;;  %v528_v32 = vrot.slane %v7480_v22, %v7447_v28  ;;  %v6775_v36 = vld [vmem:[#allocation11 + $0x278] sm:$0xff]  }
 0x486   :  { %v1542_v55 = vmax.f32 %v1328_v41, 0.0  ;;  %v1544_v56 = vmax.f32 %v1369_v42, 0.0  ;;  %v536_v33 = vrot.slane %v7480_v22, %v7450_v29  ;;  %v6774_v35 = vld [vmem:[#allocation11 + $0x2b0] sm:$0xff]   ;;  %v6776_v37 = vld [vmem:[#allocation11 + $0x2f8] sm:$0xff]  }
 0x487   :  { %v1557_v60 = vpack.c.bf16 %v1541_v46, %v1541_v46  ;;  %v1559_v61 = vpack.c.bf16 %v1543_v47, %v1543_v47  ;;  %v6777_v48 = vld [vmem:[#allocation11 + $0x238] sm:$0xff]  }
 0x488   :  { %v1558_v57 = vpack.c.bf16 %v1542_v55, %v1542_v55  ;;  %v1560_v58 = vpack.c.bf16 %v1544_v56, %v1544_v56  ;;  %6310 = vmatpush3.bf16.msra.mxu0 %v6745_v45  ;;  %6332 = vmatpush3.bf16.msra.mxu1 %v6746_v27  ;;  %v6778_v49 = vld [vmem:[#allocation11 + $0x2b8] sm:$0xff]  }
 0x489   :  { %6339 = vmatprep.subr.bf16.mxu0 %v6747_v50  ;;  %6361 = vmatprep.subr.bf16.mxu1 %v6748_v54 }
 0x48a   :  { %2711 = vmatprep.mubr.bf16.mxu0 %v1558_v57  ;;  %2751 = vmatprep.mubr.bf16.mxu1 %v1560_v58  ;;  %v6779_v57 = vld [vmem:[#allocation11 + $0x340] sm:$0xff]  }
 0x48b   :  { %2712 = vmatmul.mubr.bf16.vlgmr.msra.gmra.mrb[24].mxu0 %v1557_v60  ;;  %2752 = vmatmul.mubr.bf16.vlgmr.msra.gmra.mrb[24].mxu1 %v1559_v61  ;;  %v6780_v58 = vld [vmem:[#allocation11 + $0x3c0] sm:$0xff]  }
 0x48c   :  { %6340 = vmatpush3.bf16.msra.mxu0 %v6749_v59  ;;  %6362 = vmatpush3.bf16.msra.mxu1 %v6750_v51 }
 0x48d   :  { %6341 = vmatprep.subr.bf16.mxu0 %v6751_v62  ;;  %6363 = vmatprep.subr.bf16.mxu1 %v6752_v63  ;;  %v6781_v62 = vld [vmem:[#allocation11 + $0x300] sm:$0xff]  }
 0x48e   :  { %v6782_v63 = vld [vmem:[#allocation11 + $0x380] sm:$0xff]  }
 0x490   :  { %6342 = vmatpush3.bf16.msra.mxu0 %v6753_v1  ;;  %6364 = vmatpush3.bf16.msra.mxu1 %v6754_v2 }
 0x491   :  { %6343 = vmatprep.subr.bf16.mxu0 %v6755_v3  ;;  %6365 = vmatprep.subr.bf16.mxu1 %v6756_v4  ;;  %v6783_v3 = vld [vmem:[#allocation11 + $0x348] sm:$0xff]  }
 0x492   :  { %v6784_v4 = vld [vmem:[#allocation11 + $0x3c8] sm:$0xff]  }
 0x494   :  { %6344 = vmatpush3.bf16.msra.mxu0 %v6757_v53  ;;  %6366 = vmatpush3.bf16.msra.mxu1 %v6758_v5  ;;  %v6785_v53 = vld [vmem:[#allocation11 + $0x308] sm:$0xff]  }
 0x495   :  { %6345 = vmatprep.subr.bf16.mxu0 %v6759_v6  ;;  %6367 = vmatprep.subr.bf16.mxu1 %v6760_v7  ;;  %v6786_v5 = vld [vmem:[#allocation11 + $0x388] sm:$0xff]   ;;  %v6787_v6 = vld [vmem:[#allocation11 + $0x350] sm:$0xff]  }
 0x496   :  { %v6788_v7 = vld [vmem:[#allocation11 + $0x3d0] sm:$0xff]  }
 0x498   :  { %6346 = vmatpush3.bf16.msra.mxu0 %v6761_v8  ;;  %6368 = vmatpush3.bf16.msra.mxu1 %v6762_v9  ;;  %v6789_v8 = vld [vmem:[#allocation11 + $0x310] sm:$0xff]  }
 0x499   :  { %6347 = vmatprep.subr.bf16.mxu0 %v6763_v10  ;;  %6369 = vmatprep.subr.bf16.mxu1 %v6764_v11  ;;  %v6790_v9 = vld [vmem:[#allocation11 + $0x390] sm:$0xff]   ;;  %v6791_v10 = vld [vmem:[#allocation11 + $0x358] sm:$0xff]  }
 0x49a   :  { %v6792_v11 = vld [vmem:[#allocation11 + $0x3d8] sm:$0xff]  }
 0x49c   :  { %6348 = vmatpush3.bf16.msra.mxu0 %v6765_v12  ;;  %6370 = vmatpush3.bf16.msra.mxu1 %v6766_v15  ;;  %v6793_v12 = vld [vmem:[#allocation11 + $0x318] sm:$0xff]  }
 0x49d   :  { %6349 = vmatprep.subr.bf16.mxu0 %v6767_v16  ;;  %6371 = vmatprep.subr.bf16.mxu1 %v6768_v19  ;;  %v6794_v15 = vld [vmem:[#allocation11 + $0x398] sm:$0xff]   ;;  %v6795_v16 = vld [vmem:[#allocation11 + $0x360] sm:$0xff]  }
 0x49e   :  { %v6796_v19 = vld [vmem:[#allocation11 + $0x3e0] sm:$0xff]  }
 0x4a0   :  { %6350 = vmatpush3.bf16.msra.mxu0 %v6769_v20  ;;  %6372 = vmatpush3.bf16.msra.mxu1 %v6770_v21  ;;  %v6797_v20 = vld [vmem:[#allocation11 + $0x320] sm:$0xff]  }
 0x4a1   :  { %6351 = vmatprep.subr.bf16.mxu0 %v6771_v23  ;;  %6373 = vmatprep.subr.bf16.mxu1 %v6772_v30  ;;  %v6798_v21 = vld [vmem:[#allocation11 + $0x3a0] sm:$0xff]   ;;  %v6799_v23 = vld [vmem:[#allocation11 + $0x368] sm:$0xff]  }
 0x4a2   :  { %v1407_v39 = vpop.f32.mrb[12].mxu0  ;;  %v1448_v40 = vpop.f32.mrb[12].mxu1  ;;  %v6800_v30 = vld [vmem:[#allocation11 + $0x3e8] sm:$0xff]  }
 0x4a3   :  { %v1408_v41 = vadd.f32 %v1407_v39, %v524_v24  ;;  %v1449_v42 = vadd.f32 %v1448_v40, %v532_v31  ;;  %v1409_v43 = vpop.f32.mrb[13].mxu0  ;;  %v1450_v44 = vpop.f32.mrb[13].mxu1  ;;  %v6801_v24 = vld [vmem:[#allocation11 + $0x328] sm:$0xff]   ;;  %v6805_v39 = vld [vmem:[#allocation11 + $0x330] sm:$0xff]  }
 0x4a4   :  { %v1410_v45 = vadd.f32 %v1409_v43, %v528_v32  ;;  %v1451_v27 = vadd.f32 %v1450_v44, %v536_v33  ;;  %v1411_v46 = vpop.f32.mrb[14].mxu0  ;;  %v1452_v47 = vpop.f32.mrb[14].mxu1  ;;  %6352 = vmatpush3.bf16.msra.mxu0 %v6773_v34  ;;  %6374 = vmatpush3.bf16.msra.mxu1 %v6774_v35  ;;  %v6802_v31 = vld [vmem:[#allocation11 + $0x3a8] sm:$0xff]   ;;  %v6803_v32 = vld [vmem:[#allocation11 + $0x370] sm:$0xff]   ;;  %v540_v34 = vrot.slane %v7480_v22, %v7461_v13 }
 0x4a5   :  { %v1545_v50 = vmax.f32 %v1408_v41, 0.0  ;;  %v1547_v54 = vmax.f32 %v1449_v42, 0.0  ;;  %v1412_v55 = vpop.f32.mrb[15].mxu0  ;;  %v1453_v56 = vpop.f32.mrb[15].mxu1  ;;  %6353 = vmatprep.subr.bf16.mxu0 %v6775_v36  ;;  %6375 = vmatprep.subr.bf16.mxu1 %v6776_v37  ;;  %v6804_v33 = vld [vmem:[#allocation11 + $0x3f0] sm:$0xff]   ;;  %v548_v35 = vrot.slane %v7480_v22, %v7464_v14  ;;  %v544_v36 = vrot.slane %v7480_v22, %v7467_v17  ;;  %v6807_v41 = vld [vmem:[#allocation11 + $0x378] sm:$0xff]  }
 0x4a6   :  { %v1546_v59 = vmax.f32 %v1410_v45, 0.0  ;;  %v1548_v51 = vmax.f32 %v1451_v27, 0.0  ;;  %v552_v37 = vrot.slane %v7480_v22, %v7470_v18  ;;  %v6806_v40 = vld [vmem:[#allocation11 + $0x3b0] sm:$0xff]   ;;  %v6808_v42 = vld [vmem:[#allocation11 + $0x3f8] sm:$0xff]  }
 0x4a7   :  { %v1561_v1 = vpack.c.bf16 %v1545_v50, %v1545_v50  ;;  %v1563_v2 = vpack.c.bf16 %v1547_v54, %v1547_v54  ;;  %v6809_v55 = vld [vmem:[#allocation11 + $0x338] sm:$0xff]  }
 0x4a8   :  { %v1562_v60 = vpack.c.bf16 %v1546_v59, %v1546_v59  ;;  %v1564_v61 = vpack.c.bf16 %v1548_v51, %v1548_v51  ;;  %6354 = vmatpush3.bf16.msra.mxu0 %v6777_v48  ;;  %6376 = vmatpush3.bf16.msra.mxu1 %v6778_v49  ;;  %v6810_v22 = vld [vmem:[#allocation11 + $0x3b8] sm:$0xff]  }
 0x4a9   :  { %6383 = vmatprep.subr.bf16.mxu0 %v6779_v57  ;;  %6405 = vmatprep.subr.bf16.mxu1 %v6780_v58 }
 0x4aa   :  { %2791 = vmatprep.mubr.bf16.mxu0 %v1562_v60  ;;  %2831 = vmatprep.mubr.bf16.mxu1 %v1564_v61 }
 0x4ab   :  { %2792 = vmatmul.mubr.bf16.vlgmr.msra.gmra.mrb[28].mxu0 %v1561_v1  ;;  %2832 = vmatmul.mubr.bf16.vlgmr.msra.gmra.mrb[28].mxu1 %v1563_v2 }
 0x4ac   :  { %6384 = vmatpush3.bf16.msra.mxu0 %v6781_v62  ;;  %6406 = vmatpush3.bf16.msra.mxu1 %v6782_v63 }
 0x4ad   :  { %6385 = vmatprep.subr.bf16.mxu0 %v6783_v3  ;;  %6407 = vmatprep.subr.bf16.mxu1 %v6784_v4  ;;  %v5839_v4 = vld [vmem:[#allocation5 + $0x6] ss:$0 sm:$0xff] }
 0x4b0   :  { %6386 = vmatpush3.bf16.msra.mxu0 %v6785_v53  ;;  %6408 = vmatpush3.bf16.msra.mxu1 %v6786_v5 }
 0x4b1   :  { %6387 = vmatprep.subr.bf16.mxu0 %v6787_v6  ;;  %6409 = vmatprep.subr.bf16.mxu1 %v6788_v7 }
 0x4b4   :  { %6388 = vmatpush3.bf16.msra.mxu0 %v6789_v8  ;;  %6410 = vmatpush3.bf16.msra.mxu1 %v6790_v9 }
 0x4b5   :  { %6389 = vmatprep.subr.bf16.mxu0 %v6791_v10  ;;  %6411 = vmatprep.subr.bf16.mxu1 %v6792_v11 }
 0x4b8   :  { %6390 = vmatpush3.bf16.msra.mxu0 %v6793_v12  ;;  %6412 = vmatpush3.bf16.msra.mxu1 %v6794_v15 }
 0x4b9   :  { %6391 = vmatprep.subr.bf16.mxu0 %v6795_v16  ;;  %6413 = vmatprep.subr.bf16.mxu1 %v6796_v19 }
 0x4bc   :  { %6392 = vmatpush3.bf16.msra.mxu0 %v6797_v20  ;;  %6414 = vmatpush3.bf16.msra.mxu1 %v6798_v21 }
 0x4bd   :  { %6393 = vmatprep.subr.bf16.mxu0 %v6799_v23  ;;  %6415 = vmatprep.subr.bf16.mxu1 %v6800_v30 }
 0x4c0   :  { %6394 = vmatpush3.bf16.msra.mxu0 %v6801_v24  ;;  %6416 = vmatpush3.bf16.msra.mxu1 %v6802_v31 }
 0x4c1   :  { %6395 = vmatprep.subr.bf16.mxu0 %v6803_v32  ;;  %6417 = vmatprep.subr.bf16.mxu1 %v6804_v33 }
 0x4c2   :  { %v1489_v43 = vpop.f32.mrb[16].mxu0  ;;  %v1530_v44 = vpop.f32.mrb[16].mxu1 }
 0x4c3   :  { %v1490_v45 = vadd.f32 %v1489_v43, %v540_v34  ;;  %v1531_v27 = vadd.f32 %v1530_v44, %v548_v35  ;;  %v1491_v46 = vpop.f32.mrb[17].mxu0  ;;  %v1532_v47 = vpop.f32.mrb[17].mxu1 }
 0x4c4   :  { %v1492_v48 = vadd.f32 %v1491_v46, %v544_v36  ;;  %v1533_v49 = vadd.f32 %v1532_v47, %v552_v37  ;;  %v1493_v50 = vpop.f32.mrb[18].mxu0  ;;  %v1534_v54 = vpop.f32.mrb[18].mxu1  ;;  %6396 = vmatpush3.bf16.msra.mxu0 %v6805_v39  ;;  %6418 = vmatpush3.bf16.msra.mxu1 %v6806_v40 }
 0x4c5   :  { %v1549_v56 = vmax.f32 %v1490_v45, 0.0  ;;  %v1551_v57 = vmax.f32 %v1531_v27, 0.0  ;;  %v1494_v58 = vpop.f32.mrb[19].mxu0  ;;  %v1535_v59 = vpop.f32.mrb[19].mxu1  ;;  %6397 = vmatprep.subr.bf16.mxu0 %v6807_v41  ;;  %6419 = vmatprep.subr.bf16.mxu1 %v6808_v42 }
 0x4c6   :  { %v1550_v51 = vmax.f32 %v1492_v48, 0.0  ;;  %v1552_v60 = vmax.f32 %v1533_v49, 0.0 }
 0x4c7   :  { %v1565_v63 = vpack.c.bf16 %v1549_v56, %v1549_v56  ;;  %v1567_v1 = vpack.c.bf16 %v1551_v57, %v1551_v57 }
 0x4c8   :  { %v1566_v61 = vpack.c.bf16 %v1550_v51, %v1550_v51  ;;  %v1568_v62 = vpack.c.bf16 %v1552_v60, %v1552_v60  ;;  %6398 = vmatpush3.bf16.msra.mxu0 %v6809_v55  ;;  %6420 = vmatpush3.bf16.msra.mxu1 %v6810_v22 }
 0x4c9   :  { %6638 = vmatprep.subr.bf16.mxu0 %v7199_v0 }
 0x4ca   :  { %2871 = vmatprep.mubr.bf16.mxu0 %v1566_v61  ;;  %2911 = vmatprep.mubr.bf16.mxu1 %v1568_v62  ;;  %v6811_v62 = vld [vmem:[#allocation13] sm:$0xff]  }
 0x4cb   :  { %2872 = vmatmul.mubr.bf16.vlgmr.msra.gmra.mrb[32].mxu0 %v1565_v63  ;;  %2912 = vmatmul.mubr.bf16.vlgmr.msra.gmra.mrb[32].mxu1 %v1567_v1  ;;  %v6812_v63 = vld [vmem:[#allocation13 + $0x8] sm:$0xff]  }
 0x4cc   :  { %6654 = vmatprep.mubr.msk.bf16.mxu0 %vm7200_vm0, %v7199_v0  ;;  %3973 = vmatprep.mubr.bf16.mxu1 %v7201_v38 }
 0x4cd   :  { %6639 = vmatpush3.bf16.msra.mxu0 %v6811_v62 }
 0x4ce   :  { %6640 = vmatprep.subr.bf16.mxu0 %v7199_v0 }
 0x4d1   :  { %6641 = vmatpush3.bf16.msra.mxu0 %v6812_v63 }
 0x4d2   :  { %6642 = vmatprep.subr.bf16.mxu0 %v7199_v0 }
 0x53e   :  { %v6267_v2 = vpop.f32.mrb[20].mxu0  ;;  %v6289_v3 = vpop.f32.mrb[20].mxu1 }
 0x53f   :  { %v6268_v53 = vpop.f32.mrb[21].mxu0  ;;  %v6290_v5 = vpop.f32.mrb[21].mxu1 }
 0x540   :  { %v6269_v6 = vadd.f32 %v6268_v53, %v6267_v2  ;;  %v6291_v7 = vadd.f32 %v6290_v5, %v6289_v3  ;;  %v6270_v8 = vpop.f32.mrb[22].mxu0  ;;  %v6292_v9 = vpop.f32.mrb[22].mxu1  ;;  %v6813_v53 = vld [vmem:[#allocation13 + $0x10] sm:$0xff]   ;;  %v6814_v5 = vld [vmem:[#allocation13 + $0x18] sm:$0xff]  }
 0x541   :  { %v6271_v10 = vpop.f32.mrb[23].mxu0  ;;  %v6293_v11 = vpop.f32.mrb[23].mxu1  ;;  %6643 = vmatpush3.bf16.msra.mxu0 %v6813_v53  ;;  %v6818_v8 = vld [vmem:[#allocation13 + $0x38] sm:$0xff]   ;;  %v3148_v53 = vld [vmem:[#allocation14 + $0x1c8] sm:$0xff] }
 0x542   :  { %v2634_v12 = vadd.f32 %v6269_v6, %v5839_v4  ;;  %6644 = vmatprep.subr.bf16.mxu0 %v7199_v0  ;;  %v6816_v6 = vld [vmem:[#allocation13 + $0x28] sm:$0xff]  }
 0x544   :  { %v2674_v15 = vadd.f32 %v6291_v7, %v2634_v12  ;;  %v6817_v7 = vld [vmem:[#allocation13 + $0x30] sm:$0xff]  }
 0x545   :  { %6645 = vmatpush3.bf16.msra.mxu0 %v6814_v5 }
 0x546   :  { %6646 = vmatprep.subr.bf16.mxu0 %v7199_v0 }
 0x55e   :  { %v6311_v16 = vpop.f32.mrb[24].mxu0  ;;  %v6333_v19 = vpop.f32.mrb[24].mxu1 }
 0x55f   :  { %v6312_v20 = vpop.f32.mrb[25].mxu0  ;;  %v6334_v21 = vpop.f32.mrb[25].mxu1 }
 0x560   :  { %v6313_v23 = vadd.f32 %v6312_v20, %v6311_v16  ;;  %v6335_v30 = vadd.f32 %v6334_v21, %v6333_v19  ;;  %v6314_v24 = vpop.f32.mrb[26].mxu0  ;;  %v6336_v31 = vpop.f32.mrb[26].mxu1  ;;  %v5969_v19 = vld [vmem:[#allocation5 + $0x5] ss:$0 sm:$0xff] }
 0x561   :  { %v6315_v32 = vpop.f32.mrb[27].mxu0  ;;  %v6337_v33 = vpop.f32.mrb[27].mxu1 }
 0x562   :  { %v2714_v34 = vadd.f32 %v6313_v23, %v2674_v15  ;;  %v5968_v15 = vld [vmem:[#allocation5 + $0x4] ss:$0 sm:$0xff] }
 0x564   :  { %v2754_v35 = vadd.f32 %v6335_v30, %v2714_v34  ;;  %v5970_v30 = vld [vmem:[#allocation5 + $0x17] ss:$0 sm:$0xff] }
 0x57e   :  { %v6355_v36 = vpop.f32.mrb[28].mxu0  ;;  %v6377_v37 = vpop.f32.mrb[28].mxu1 }
 0x57f   :  { %v6356_v39 = vpop.f32.mrb[29].mxu0  ;;  %v6378_v40 = vpop.f32.mrb[29].mxu1 }
 0x580   :  { %v6357_v41 = vadd.f32 %v6356_v39, %v6355_v36  ;;  %v6379_v42 = vadd.f32 %v6378_v40, %v6377_v37  ;;  %v6358_v43 = vpop.f32.mrb[30].mxu0  ;;  %v6380_v44 = vpop.f32.mrb[30].mxu1  ;;  %v3099_v36 = vld [vmem:[#allocation14 + $0x40] sm:$0xff]  ;;  %v3092_v37 = vld [vmem:[#allocation14 + $0x8] sm:$0xff] }
 0x581   :  { %v6359_v45 = vpop.f32.mrb[31].mxu0  ;;  %v6381_v27 = vpop.f32.mrb[31].mxu1  ;;  %v3115_v43 = vld [vmem:[#allocation14 + $0xc0] sm:$0xff] }
 0x582   :  { %v2794_v46 = vadd.f32 %v6357_v41, %v2754_v35  ;;  %v3091_v35 = vld [vmem:[#allocation14] sm:$0xff]  ;;  %v3100_v41 = vld [vmem:[#allocation14 + $0x48] sm:$0xff] }
 0x583   :  { %v5981_v39 = vcombine.low %v3091_v35, %v3099_v36  ;;  %v5982_v40 = vcombine.high %v3091_v35, %v3099_v36  ;;  %v5983_v44 = vcombine.low %v3092_v37, %v3100_v41  ;;  %v5984_v45 = vcombine.high %v3092_v37, %v3100_v41  ;;  %v3196_v36 = vld [vmem:[#allocation14 + $0x348] sm:$0xff]  ;;  %v3203_v41 = vld [vmem:[#allocation14 + $0x380] sm:$0xff] }
 0x584   :  { %v2834_v47 = vadd.f32 %v6379_v42, %v2794_v46  ;;  %v3107_v42 = vld [vmem:[#allocation14 + $0x80] sm:$0xff]  ;;  %v3108_v46 = vld [vmem:[#allocation14 + $0x88] sm:$0xff] }
 0x585   :  { %v5998_v27 = vcombine.high %v3107_v42, %v3115_v43  ;;  %3941 = vmatprep.subr.bf16.mxu1 %v5982_v40 }
 0x586   :  { %3942 = vmatpush1.bf16.msra.mxu1 %v5981_v39 }
 0x587   :  { %3943 = vmatprep.subr.bf16.mxu1 %v5998_v27 }
 0x59e   :  { %v6399_v48 = vpop.f32.mrb[32].mxu0  ;;  %v6421_v49 = vpop.f32.mrb[32].mxu1 }
 0x59f   :  { %v6400_v50 = vpop.f32.mrb[33].mxu0  ;;  %v6422_v54 = vpop.f32.mrb[33].mxu1 }
 0x5a0   :  { %v6401_v55 = vadd.f32 %v6400_v50, %v6399_v48  ;;  %v6423_v22 = vadd.f32 %v6422_v54, %v6421_v49  ;;  %v6402_v56 = vpop.f32.mrb[34].mxu0  ;;  %v6424_v57 = vpop.f32.mrb[34].mxu1  ;;  %v3123_v48 = vld [vmem:[#allocation14 + $0x100] sm:$0xff]  ;;  %v3124_v54 = vld [vmem:[#allocation14 + $0x108] sm:$0xff] }
 0x5a1   :  { %v6403_v58 = vpop.f32.mrb[35].mxu0  ;;  %v6425_v59 = vpop.f32.mrb[35].mxu1  ;;  %v3131_v50 = vld [vmem:[#allocation14 + $0x140] sm:$0xff] }
 0x5a2   :  { %v2874_v51 = vadd.f32 %v6401_v55, %v2834_v47  ;;  %v3116_v47 = vld [vmem:[#allocation14 + $0xc8] sm:$0xff]  ;;  %v6014_v57 = vcombine.high %v3123_v48, %v3131_v50  ;;  %v6013_v59 = vcombine.low %v3123_v48, %v3131_v50  ;;  %v3093_v48 = vld [vmem:[#allocation14 + $0x10] sm:$0xff]  ;;  %v3094_v50 = vld [vmem:[#allocation14 + $0x18] sm:$0xff] }
 0x5a3   :  { %v6000_v49 = vcombine.high %v3108_v46, %v3116_v47  ;;  %v3132_v55 = vld [vmem:[#allocation14 + $0x148] sm:$0xff]  ;;  %v5999_v56 = vcombine.low %v3108_v46, %v3116_v47 }
 0x5a4   :  { %v2914_v60 = vadd.f32 %v6423_v22, %v2874_v51  ;;  %v5997_v22 = vcombine.low %v3107_v42, %v3115_v43  ;;  %v6016_v58 = vcombine.high %v3124_v54, %v3132_v55  ;;  %v6015_v51 = vcombine.low %v3124_v54, %v3132_v55  ;;  %v3211_v42 = vld [vmem:[#allocation14 + $0x3c0] sm:$0xff]  ;;  %v3204_v43 = vld [vmem:[#allocation14 + $0x388] sm:$0xff]  ;;  %v3102_v55 = vld [vmem:[#allocation14 + $0x58] sm:$0xff] }
 0x5a5   :  { %v6093_v27 = vcombine.low %v3203_v41, %v3211_v42 }
 0x5a6   :  { %v2919_v61 = vadd.f32 %v2914_v60, %v7416_v52  ;;  %v6815_v52 = vld [vmem:[#allocation13 + $0x20] sm:$0xff]   ;;  %3944 = vmatpush1.bf16.msra.mxu1 %v5997_v22 }
 0x5a7   :  { %6647 = vmatpush3.bf16.msra.mxu0 %v6815_v52  ;;  %3945 = vmatprep.subr.bf16.mxu1 %v6014_v57  ;;  %v5988_v57 = vcombine.high %v3094_v50, %v3102_v55 }
 0x5a8   :  { %2920 = vadd.xlane.f32.xlu1 %v2919_v61  ;;  %6648 = vmatprep.subr.bf16.mxu0 %v7199_v0 }
 0x5aa   :  { %3946 = vmatpush1.bf16.msra.mxu1 %v6013_v59 }
 0x5ab   :  { %6649 = vmatpush3.bf16.msra.mxu0 %v6816_v6 }
 0x5ac   :  { %6650 = vmatprep.subr.bf16.mxu0 %v7199_v0 }
 0x5af   :  { %6651 = vmatpush3.bf16.msra.mxu0 %v6817_v7  ;;  %v3155_v7 = vld [vmem:[#allocation14 + $0x200] sm:$0xff] }
 0x5b0   :  { %6652 = vmatprep.subr.bf16.mxu0 %v7199_v0 }
 0x5b3   :  { %6653 = vmatpush3.bf16.msra.mxu0 %v6818_v8  ;;  %v3163_v8 = vld [vmem:[#allocation14 + $0x240] sm:$0xff] }
 0x5b4   :  { %3982 = vmatprep.subr.bf16.mxu0 %v5984_v45  ;;  %v3212_v45 = vld [vmem:[#allocation14 + $0x3c8] sm:$0xff] }
 0x5b5   :  { %v6095_v46 = vcombine.low %v3204_v43, %v3212_v45  ;;  %v6096_v47 = vcombine.high %v3204_v43, %v3212_v45  ;;  %v3181_v43 = vld [vmem:[#allocation14 + $0x2d0] sm:$0xff]  ;;  %v3182_v45 = vld [vmem:[#allocation14 + $0x2d8] sm:$0xff] }
 0x635   :  { %v2921_v1 = vpop.xlane.xlu1 %2920 }
 0x636   :  { %v2922_v2 = vmul.f32 0.0078125, %v2921_v1  ;;  %v3139_v1 = vld [vmem:[#allocation14 + $0x180] sm:$0xff] }
 0x638   :  { %v2923_v3 = vsub.f32 %v2919_v61, %v2922_v2  ;;  %v3147_v2 = vld [vmem:[#allocation14 + $0x1c0] sm:$0xff] }
 0x639   :  { %v6029_v5 = vcombine.low %v3139_v1, %v3147_v2 }
 0x63a   :  { %v2924_v4 = vmul.f32 %v2923_v3, %v2923_v3 }
 0x63c   :  { %2925 = vadd.xlane.f32.xlu1 %v2924_v4  ;;  %v6030_v4 = vcombine.high %v3139_v1, %v3147_v2  ;;  %v5980_v1 = vld [vmem:[#allocation5 + $0x19] ss:$0 sm:$0xff] }
 0x63e   :  { %3947 = vmatprep.subr.bf16.mxu1 %v6030_v4  ;;  %v3117_v4 = vld [vmem:[#allocation14 + $0xd0] sm:$0xff] }
 0x63f   :  { %3948 = vmatpush1.bf16.msra.mxu1 %v6029_v5  ;;  %v3118_v5 = vld [vmem:[#allocation14 + $0xd8] sm:$0xff] }
 0x6c9   :  { %v2926_v9 = vpop.xlane.xlu1 %2925 }
 0x6ca   :  { %v2927_v10 = vmul.f32 0.0078125, %v2926_v9  ;;  %v3156_v9 = vld [vmem:[#allocation14 + $0x208] sm:$0xff] }
 0x6cc   :  { %v2928_v11 = vadd.f32 1e-05, %v2927_v10  ;;  %v6046_v10 = vcombine.high %v3155_v7, %v3163_v8 }
 0x6ce   :  { %6949 = vrsqrt.f32 %v2928_v11  ;;  %v3164_v11 = vld [vmem:[#allocation14 + $0x248] sm:$0xff]  ;;  %3949 = vmatprep.subr.bf16.mxu1 %v6046_v10  ;;  %v3133_v10 = vld [vmem:[#allocation14 + $0x150] sm:$0xff] }
 0x6d8   :  { %v6950_v12 = vpop.eup %6949 }
 0x6d9   :  { %v2930_v16 = vmul.f32 %v6950_v12, %v2923_v3  ;;  %v3140_v3 = vld [vmem:[#allocation14 + $0x188] sm:$0xff]  ;;  %v6045_v12 = vcombine.low %v3155_v7, %v3163_v8 }
 0x6da   :  { %v6031_v52 = vcombine.low %v3140_v3, %v3148_v53  ;;  %v6032_v6 = vcombine.high %v3140_v3, %v3148_v53  ;;  %v3109_v3 = vld [vmem:[#allocation14 + $0x90] sm:$0xff]  ;;  %v3110_v53 = vld [vmem:[#allocation14 + $0x98] sm:$0xff] }
 0x6db   :  { %v2937_v20 = vmul.f32 %v5968_v15, %v2930_v16  ;;  %v6047_v15 = vcombine.low %v3156_v9, %v3164_v11  ;;  %v6048_v16 = vcombine.high %v3156_v9, %v3164_v11  ;;  %3950 = vmatpush1.bf16.msra.mxu1 %v6045_v12  ;;  %v6002_v7 = vcombine.high %v3109_v3, %v3117_v4  ;;  %v3125_v9 = vld [vmem:[#allocation14 + $0x110] sm:$0xff]  ;;  %v3126_v11 = vld [vmem:[#allocation14 + $0x118] sm:$0xff] }
 0x6dc   :  { %v6004_v8 = vcombine.high %v3110_v53, %v3118_v5  ;;  %v3134_v12 = vld [vmem:[#allocation14 + $0x158] sm:$0xff] }
 0x6dd   :  { %v2944_v21 = vadd.f32 %v5969_v19, %v2937_v20  ;;  %v3171_v19 = vld [vmem:[#allocation14 + $0x280] sm:$0xff] }
 0x6de   :  { %v3179_v20 = vld [vmem:[#allocation14 + $0x2c0] sm:$0xff] }
 0x6df   :  { %v2953_v23 = vpack.c.bf16 %v2944_v21, %v2944_v21 }
 0x6e1   :  { %6655 = vmatmul.mubr.bf16.vlgmr.msra.gmra.mrb[36].mxu0 %v2953_v23  ;;  %v6062_v23 = vcombine.high %v3171_v19, %v3179_v20 }
 0x6e2   :  { %4014 = vmatprep.mubr.bf16.mxu0 %v7201_v38  ;;  %3983 = vmatpush1.bf16.msra.mxu0 %v5983_v44  ;;  %v6094_v44 = vcombine.high %v3203_v41, %v3211_v42  ;;  %v3173_v42 = vld [vmem:[#allocation14 + $0x290] sm:$0xff] }
 0x6e3   :  { %3984 = vmatprep.subr.bf16.mxu0 %v6000_v49  ;;  %3951 = vmatprep.subr.bf16.mxu1 %v6062_v23  ;;  %v3101_v49 = vld [vmem:[#allocation14 + $0x50] sm:$0xff]  ;;  %v3142_v23 = vld [vmem:[#allocation14 + $0x198] sm:$0xff] }
 0x6e4   :  { %v5986_v54 = vcombine.high %v3093_v48, %v3101_v49  ;;  %v5985_v22 = vcombine.low %v3093_v48, %v3101_v49  ;;  %v3189_v49 = vld [vmem:[#allocation14 + $0x310] sm:$0xff] }
 0x6e6   :  { %3985 = vmatpush1.bf16.msra.mxu0 %v5999_v56  ;;  %v5987_v56 = vcombine.low %v3094_v50, %v3102_v55  ;;  %v3197_v50 = vld [vmem:[#allocation14 + $0x350] sm:$0xff]  ;;  %v3198_v55 = vld [vmem:[#allocation14 + $0x358] sm:$0xff] }
 0x6e7   :  { %3986 = vmatprep.subr.bf16.mxu0 %v6016_v58 }
 0x6ea   :  { %3987 = vmatpush1.bf16.msra.mxu0 %v6015_v51 }
 0x6eb   :  { %3988 = vmatprep.subr.bf16.mxu0 %v6032_v6 }
 0x6ee   :  { %3989 = vmatpush1.bf16.msra.mxu0 %v6031_v52 }
 0x6ef   :  { %3990 = vmatprep.subr.bf16.mxu0 %v6048_v16  ;;  %v6018_v16 = vcombine.high %v3125_v9, %v3133_v10 }
 0x6f2   :  { %3991 = vmatpush1.bf16.msra.mxu0 %v6047_v15  ;;  %v6003_v15 = vcombine.low %v3110_v53, %v3118_v5  ;;  %v3103_v53 = vld [vmem:[#allocation14 + $0x60] sm:$0xff]  ;;  %v3096_v5 = vld [vmem:[#allocation14 + $0x28] sm:$0xff] }
 0x7b4   :  { %v3058_v24 = vpop.f32.mrb[36].mxu0 }
 0x7b5   :  { %v3059_v31 = vadd.f32 %v5970_v30, %v3058_v24  ;;  %v6656_v32 = vpop.f32.mrb[37].mxu0  ;;  %v3180_v30 = vld [vmem:[#allocation14 + $0x2c8] sm:$0xff]  ;;  %v6061_v24 = vcombine.low %v3171_v19, %v3179_v20  ;;  %v6020_v19 = vcombine.high %v3126_v11, %v3134_v12  ;;  %v3141_v20 = vld [vmem:[#allocation14 + $0x190] sm:$0xff] }
 0x7b6   :  { %v3061_v0 = vpop.f32.mrb[38].mxu0 }
 0x7b7   :  { %v6657_v33 = vpop.f32.mrb[39].mxu0  ;;  %v3064_v34 = vadd.f32 %v3059_v31, %v2944_v21  ;;  %v3172_v21 = vld [vmem:[#allocation14 + $0x288] sm:$0xff]  ;;  %3952 = vmatpush1.bf16.msra.mxu1 %v6061_v24  ;;  %v3187_v0 = vld [vmem:[#allocation14 + $0x300] sm:$0xff]  ;;  %v6017_v24 = vcombine.low %v3125_v9, %v3133_v10 }
 0x7b8   :  { %v6063_v31 = vcombine.low %v3172_v21, %v3180_v30  ;;  %v6064_v32 = vcombine.high %v3172_v21, %v3180_v30  ;;  %v3195_v33 = vld [vmem:[#allocation14 + $0x340] sm:$0xff]  ;;  %v3149_v21 = vld [vmem:[#allocation14 + $0x1d0] sm:$0xff]  ;;  %v3150_v30 = vld [vmem:[#allocation14 + $0x1d8] sm:$0xff] }
 0x7b9   :  { %3065 = vadd.xlane.f32.xlu0 %v3064_v34  ;;  %v6078_v35 = vcombine.high %v3187_v0, %v3195_v33  ;;  %v6077_v37 = vcombine.low %v3187_v0, %v3195_v33  ;;  %v6036_v0 = vcombine.high %v3142_v23, %v3150_v30  ;;  %v3157_v33 = vld [vmem:[#allocation14 + $0x210] sm:$0xff] }
 0x7ba   :  { %3992 = vmatprep.subr.bf16.mxu0 %v6064_v32  ;;  %v6034_v32 = vcombine.high %v3141_v20, %v3149_v21 }
 0x7bb   :  { %3993 = vmatpush1.bf16.msra.mxu0 %v6063_v31  ;;  %3953 = vmatprep.subr.bf16.mxu1 %v6078_v35  ;;  %v6019_v31 = vcombine.low %v3126_v11, %v3134_v12  ;;  %v3158_v35 = vld [vmem:[#allocation14 + $0x218] sm:$0xff]  ;;  %v3111_v12 = vld [vmem:[#allocation14 + $0xa0] sm:$0xff] }
 0x7bc   :  { %3954 = vmatpush1.bf16.msra.mxu1 %v6077_v37  ;;  %v6033_v37 = vcombine.low %v3141_v20, %v3149_v21 }
 0x7bd   :  { %3955 = vmatprep.subr.bf16.mxu1 %v6094_v44  ;;  %v3174_v44 = vld [vmem:[#allocation14 + $0x298] sm:$0xff] }
 0x7be   :  { %v6068_v48 = vcombine.high %v3174_v44, %v3182_v45 }
 0x7c0   :  { %3956 = vmatpush1.bf16.msra.mxu1 %v6093_v27 }
 0x7c1   :  { %4023 = vmatprep.subr.bf16.mxu1 %v5986_v54  ;;  %v3190_v54 = vld [vmem:[#allocation14 + $0x318] sm:$0xff] }
 0x846   :  { %v3066_v60 = vpop.xlane.xlu0 %3065 }
 0x847   :  { %v3067_v61 = vmul.f32 0.0078125, %v3066_v60 }
 0x849   :  { %v7511_v62 = vsub.f32 %v3064_v34, %v3067_v61  ;;  %v3188_v34 = vld [vmem:[#allocation14 + $0x308] sm:$0xff]  ;;  %v5979_v61 = vld [vmem:[#allocation5 + $0x18] ss:$0 sm:$0xff] }
 0x84a   :  { %v6079_v39 = vcombine.low %v3188_v34, %v3196_v36  ;;  %v6080_v40 = vcombine.high %v3188_v34, %v3196_v36  ;;  %v3165_v34 = vld [vmem:[#allocation14 + $0x250] sm:$0xff]  ;;  %v3166_v36 = vld [vmem:[#allocation14 + $0x258] sm:$0xff] }
 0x84b   :  { %v3069_v63 = vmul.f32 %v7511_v62, %v7511_v62  ;;  %v6052_v41 = vcombine.high %v3158_v35, %v3166_v36  ;;  %v6049_v27 = vcombine.low %v3157_v33, %v3165_v34 }
 0x84c   :  { %3994 = vmatprep.subr.bf16.mxu0 %v6080_v40  ;;  %v6050_v40 = vcombine.high %v3157_v33, %v3165_v34 }
 0x84d   :  { %3070 = vadd.xlane.f32.xlu1 %v3069_v63  ;;  %3995 = vmatpush1.bf16.msra.mxu0 %v6079_v39  ;;  %v6035_v39 = vcombine.low %v3142_v23, %v3150_v30  ;;  %v3127_v30 = vld [vmem:[#allocation14 + $0x120] sm:$0xff] }
 0x84e   :  { %3996 = vmatprep.subr.bf16.mxu0 %v6096_v47  ;;  %v6066_v47 = vcombine.high %v3173_v42, %v3181_v43 }
 0x851   :  { %3997 = vmatpush1.bf16.msra.mxu0 %v6095_v46  ;;  %v6051_v46 = vcombine.low %v3158_v35, %v3166_v36  ;;  %v3143_v36 = vld [vmem:[#allocation14 + $0x1a0] sm:$0xff] }
 0x852   :  { %4064 = vmatprep.subr.bf16.mxu0 %v5988_v57  ;;  %v6082_v57 = vcombine.high %v3189_v49, %v3197_v50 }
 0x8da   :  { %v3071_v58 = vpop.xlane.xlu1 %3070 }
 0x8db   :  { %v3072_v59 = vmul.f32 0.0078125, %v3071_v58  ;;  %v6084_v58 = vcombine.high %v3190_v54, %v3198_v55 }
 0x8dd   :  { %v3073_v51 = vadd.f32 1e-05, %v3072_v59  ;;  %v3205_v59 = vld [vmem:[#allocation14 + $0x390] sm:$0xff] }
 0x8df   :  { %6951 = vrsqrt.f32 %v3073_v51  ;;  %v3213_v51 = vld [vmem:[#allocation14 + $0x3d0] sm:$0xff] }
 0x8e9   :  { %v6952_v60 = vpop.eup %6951 }
 0x8ea   :  { %v3075_v63 = vmul.f32 %v6952_v60, %v7511_v62  ;;  %v6001_v62 = vcombine.low %v3109_v3, %v3117_v4  ;;  %v3206_v60 = vld [vmem:[#allocation14 + $0x398] sm:$0xff]  ;;  %v3095_v4 = vld [vmem:[#allocation14 + $0x20] sm:$0xff] }
 0x8eb   :  { %v5990_v10 = vcombine.high %v3095_v4, %v3103_v53 }
 0x8ec   :  { %v3082_v2 = vmul.f32 %v5979_v61, %v3075_v63  ;;  %v3214_v61 = vld [vmem:[#allocation14 + $0x3d8] sm:$0xff]  ;;  %v6081_v63 = vcombine.low %v3189_v49, %v3197_v50 }
 0x8ed   :  { %v6100_v3 = vcombine.high %v3206_v60, %v3214_v61  ;;  %v6099_v9 = vcombine.low %v3206_v60, %v3214_v61  ;;  %v3191_v61 = vld [vmem:[#allocation14 + $0x320] sm:$0xff] }
 0x8ee   :  { %v7516_v52 = vadd.f32 %v5980_v1, %v3082_v2  ;;  %v6083_v1 = vcombine.low %v3190_v54, %v3198_v55  ;;  %v6098_v2 = vcombine.high %v3205_v59, %v3213_v51  ;;  %v3175_v55 = vld [vmem:[#allocation14 + $0x2a0] sm:$0xff] }
 0x8f0   :  { %v7520_v6 = vpack.c.bf16 %v7516_v52, %v7516_v52 }
 0x8f2   :  { %3974 = vmatmul.mubr.bf16.vlgmr.msra.gmra.mrb[36].mxu1 %v7520_v6  ;;  %4015 = vmatmul.mubr.bf16.vlgmr.msra.gmra.mrb[40].mxu0 %v7520_v6 }
 0x8f3   :  { %4024 = vmatpush1.bf16.msra.mxu1 %v5985_v22  ;;  %4065 = vmatpush1.bf16.msra.mxu0 %v5987_v56  ;;  %v6065_v22 = vcombine.low %v3173_v42, %v3181_v43  ;;  %v6067_v56 = vcombine.low %v3174_v44, %v3182_v45  ;;  %v3159_v45 = vld [vmem:[#allocation14 + $0x220] sm:$0xff] }
 0x8f4   :  { %4025 = vmatprep.subr.bf16.mxu1 %v6002_v7  ;;  %4066 = vmatprep.subr.bf16.mxu0 %v6004_v8  ;;  %v3104_v7 = vld [vmem:[#allocation14 + $0x68] sm:$0xff]  ;;  %v6097_v8 = vcombine.low %v3205_v59, %v3213_v51 }
 0x8f5   :  { %4055 = vmatprep.mubr.bf16.mxu1 %v7201_v38  ;;  %4096 = vmatprep.mubr.bf16.mxu0 %v7201_v38  ;;  %v5992_v11 = vcombine.high %v3096_v5, %v3104_v7  ;;  %v5991_v20 = vcombine.low %v3096_v5, %v3104_v7  ;;  %v3207_v7 = vld [vmem:[#allocation14 + $0x3a0] sm:$0xff] }
 0x8f7   :  { %4026 = vmatpush1.bf16.msra.mxu1 %v6001_v62  ;;  %4067 = vmatpush1.bf16.msra.mxu0 %v6003_v15  ;;  %v3119_v62 = vld [vmem:[#allocation14 + $0xe0] sm:$0xff]  ;;  %v3112_v15 = vld [vmem:[#allocation14 + $0xa8] sm:$0xff] }
 0x8f8   :  { %4027 = vmatprep.subr.bf16.mxu1 %v6018_v16  ;;  %4068 = vmatprep.subr.bf16.mxu0 %v6020_v19  ;;  %v3120_v16 = vld [vmem:[#allocation14 + $0xe8] sm:$0xff]  ;;  %v5989_v19 = vcombine.low %v3095_v4, %v3103_v53  ;;  %v6006_v21 = vcombine.high %v3111_v12, %v3119_v62 }
 0x8f9   :  { %v6008_v23 = vcombine.high %v3112_v15, %v3120_v16  ;;  %v6007_v33 = vcombine.low %v3112_v15, %v3120_v16  ;;  %v3097_v16 = vld [vmem:[#allocation14 + $0x30] sm:$0xff] }
 0x8fb   :  { %4028 = vmatpush1.bf16.msra.mxu1 %v6017_v24  ;;  %4069 = vmatpush1.bf16.msra.mxu0 %v6019_v31  ;;  %v3135_v24 = vld [vmem:[#allocation14 + $0x160] sm:$0xff]  ;;  %v3128_v31 = vld [vmem:[#allocation14 + $0x128] sm:$0xff] }
 0x8fc   :  { %4029 = vmatprep.subr.bf16.mxu1 %v6034_v32  ;;  %4070 = vmatprep.subr.bf16.mxu0 %v6036_v0  ;;  %v3136_v32 = vld [vmem:[#allocation14 + $0x168] sm:$0xff]  ;;  %v6005_v0 = vcombine.low %v3111_v12, %v3119_v62  ;;  %v6022_v34 = vcombine.high %v3127_v30, %v3135_v24 }
 0x8fd   :  { %v6024_v35 = vcombine.high %v3128_v31, %v3136_v32  ;;  %v6023_v42 = vcombine.low %v3128_v31, %v3136_v32  ;;  %v3113_v32 = vld [vmem:[#allocation14 + $0xb0] sm:$0xff] }
 0x8ff   :  { %4030 = vmatpush1.bf16.msra.mxu1 %v6033_v37  ;;  %4071 = vmatpush1.bf16.msra.mxu0 %v6035_v39  ;;  %v3151_v37 = vld [vmem:[#allocation14 + $0x1e0] sm:$0xff]  ;;  %v3144_v39 = vld [vmem:[#allocation14 + $0x1a8] sm:$0xff] }
 0x900   :  { %4031 = vmatprep.subr.bf16.mxu1 %v6050_v40  ;;  %4072 = vmatprep.subr.bf16.mxu0 %v6052_v41  ;;  %v3152_v40 = vld [vmem:[#allocation14 + $0x1e8] sm:$0xff]  ;;  %v6021_v41 = vcombine.low %v3127_v30, %v3135_v24  ;;  %v6038_v43 = vcombine.high %v3143_v36, %v3151_v37 }
 0x901   :  { %v6040_v44 = vcombine.high %v3144_v39, %v3152_v40  ;;  %v6039_v49 = vcombine.low %v3144_v39, %v3152_v40  ;;  %v3129_v40 = vld [vmem:[#allocation14 + $0x130] sm:$0xff] }
 0x903   :  { %4032 = vmatpush1.bf16.msra.mxu1 %v6049_v27  ;;  %4073 = vmatpush1.bf16.msra.mxu0 %v6051_v46  ;;  %v3167_v27 = vld [vmem:[#allocation14 + $0x260] sm:$0xff]  ;;  %v3160_v46 = vld [vmem:[#allocation14 + $0x228] sm:$0xff] }
 0x904   :  { %4033 = vmatprep.subr.bf16.mxu1 %v6066_v47  ;;  %4074 = vmatprep.subr.bf16.mxu0 %v6068_v48  ;;  %v3168_v47 = vld [vmem:[#allocation14 + $0x268] sm:$0xff]  ;;  %v6037_v48 = vcombine.low %v3143_v36, %v3151_v37  ;;  %v6054_v50 = vcombine.high %v3159_v45, %v3167_v27 }
 0x905   :  { %v6056_v54 = vcombine.high %v3160_v46, %v3168_v47  ;;  %v6055_v59 = vcombine.low %v3160_v46, %v3168_v47  ;;  %v3145_v47 = vld [vmem:[#allocation14 + $0x1b0] sm:$0xff] }
 0x907   :  { %4034 = vmatpush1.bf16.msra.mxu1 %v6065_v22  ;;  %4075 = vmatpush1.bf16.msra.mxu0 %v6067_v56  ;;  %v3183_v22 = vld [vmem:[#allocation14 + $0x2e0] sm:$0xff]  ;;  %v3176_v56 = vld [vmem:[#allocation14 + $0x2a8] sm:$0xff] }
 0x908   :  { %4035 = vmatprep.subr.bf16.mxu1 %v6082_v57  ;;  %4076 = vmatprep.subr.bf16.mxu0 %v6084_v58  ;;  %v3184_v57 = vld [vmem:[#allocation14 + $0x2e8] sm:$0xff]  ;;  %v6053_v58 = vcombine.low %v3159_v45, %v3167_v27  ;;  %v6070_v51 = vcombine.high %v3175_v55, %v3183_v22 }
 0x909   :  { %v6072_v60 = vcombine.high %v3176_v56, %v3184_v57  ;;  %v6071_v4 = vcombine.low %v3176_v56, %v3184_v57  ;;  %v3161_v57 = vld [vmem:[#allocation14 + $0x230] sm:$0xff] }
 0x90b   :  { %4036 = vmatpush1.bf16.msra.mxu1 %v6081_v63  ;;  %4077 = vmatpush1.bf16.msra.mxu0 %v6083_v1  ;;  %v3199_v63 = vld [vmem:[#allocation14 + $0x360] sm:$0xff]  ;;  %v3192_v1 = vld [vmem:[#allocation14 + $0x328] sm:$0xff] }
 0x90c   :  { %4037 = vmatprep.subr.bf16.mxu1 %v6098_v2  ;;  %4078 = vmatprep.subr.bf16.mxu0 %v6100_v3  ;;  %v3200_v2 = vld [vmem:[#allocation14 + $0x368] sm:$0xff]  ;;  %v6069_v3 = vcombine.low %v3175_v55, %v3183_v22  ;;  %v6086_v53 = vcombine.high %v3191_v61, %v3199_v63 }
 0x90d   :  { %v6088_v5 = vcombine.high %v3192_v1, %v3200_v2  ;;  %v6087_v12 = vcombine.low %v3192_v1, %v3200_v2  ;;  %v3177_v1 = vld [vmem:[#allocation14 + $0x2b0] sm:$0xff] }
 0x90e   :  { %v3185_v2 = vld [vmem:[#allocation14 + $0x2f0] sm:$0xff] }
 0x90f   :  { %4038 = vmatpush1.bf16.msra.mxu1 %v6097_v8  ;;  %4079 = vmatpush1.bf16.msra.mxu0 %v6099_v9  ;;  %v3215_v8 = vld [vmem:[#allocation14 + $0x3e0] sm:$0xff]  ;;  %v3208_v9 = vld [vmem:[#allocation14 + $0x3a8] sm:$0xff] }
 0x910   :  { %4105 = vmatprep.subr.bf16.mxu1 %v5990_v10  ;;  %4146 = vmatprep.subr.bf16.mxu0 %v5992_v11  ;;  %v3216_v10 = vld [vmem:[#allocation14 + $0x3e8] sm:$0xff]  ;;  %v6085_v11 = vcombine.low %v3191_v61, %v3199_v63  ;;  %v6102_v62 = vcombine.high %v3207_v7, %v3215_v8 }
 0x911   :  { %v6104_v15 = vcombine.high %v3208_v9, %v3216_v10  ;;  %v6103_v30 = vcombine.low %v3208_v9, %v3216_v10  ;;  %v3193_v9 = vld [vmem:[#allocation14 + $0x330] sm:$0xff] }
 0x912   :  { %4056 = vmatmul.mubr.bf16.vlgmr.msra.gmra.mrb[40].mxu1 %v7520_v6  ;;  %4097 = vmatmul.mubr.bf16.vlgmr.msra.gmra.mrb[44].mxu0 %v7520_v6  ;;  %v3201_v10 = vld [vmem:[#allocation14 + $0x370] sm:$0xff] }
 0x913   :  { %4106 = vmatpush1.bf16.msra.mxu1 %v5989_v19  ;;  %4147 = vmatpush1.bf16.msra.mxu0 %v5991_v20  ;;  %v3105_v19 = vld [vmem:[#allocation14 + $0x70] sm:$0xff]  ;;  %v3098_v20 = vld [vmem:[#allocation14 + $0x38] sm:$0xff] }
 0x914   :  { %4107 = vmatprep.subr.bf16.mxu1 %v6006_v21  ;;  %4148 = vmatprep.subr.bf16.mxu0 %v6008_v23  ;;  %v3106_v21 = vld [vmem:[#allocation14 + $0x78] sm:$0xff]  ;;  %v6101_v23 = vcombine.low %v3207_v7, %v3215_v8  ;;  %v5994_v24 = vcombine.high %v3097_v16, %v3105_v19  ;;  %v6074_v7 = vcombine.high %v3177_v1, %v3185_v2 }
 0x915   :  { %4137 = vmatprep.mubr.bf16.mxu1 %v7201_v38  ;;  %4178 = vmatprep.mubr.bf16.mxu0 %v7201_v38  ;;  %v5996_v31 = vcombine.high %v3098_v20, %v3106_v21  ;;  %v5995_v36 = vcombine.low %v3098_v20, %v3106_v21  ;;  %v3209_v20 = vld [vmem:[#allocation14 + $0x3b0] sm:$0xff] }
 0x916   :  { %v3217_v21 = vld [vmem:[#allocation14 + $0x3f0] sm:$0xff] }
 0x917   :  { %4108 = vmatpush1.bf16.msra.mxu1 %v6005_v0  ;;  %4149 = vmatpush1.bf16.msra.mxu0 %v6007_v33  ;;  %v3121_v0 = vld [vmem:[#allocation14 + $0xf0] sm:$0xff]  ;;  %v3114_v33 = vld [vmem:[#allocation14 + $0xb8] sm:$0xff] }
 0x918   :  { %4109 = vmatprep.subr.bf16.mxu1 %v6022_v34  ;;  %4150 = vmatprep.subr.bf16.mxu0 %v6024_v35  ;;  %v3122_v34 = vld [vmem:[#allocation14 + $0xf8] sm:$0xff]  ;;  %v5993_v35 = vcombine.low %v3097_v16, %v3105_v19  ;;  %v6010_v37 = vcombine.high %v3113_v32, %v3121_v0  ;;  %v6090_v16 = vcombine.high %v3193_v9, %v3201_v10 }
 0x919   :  { %v6012_v39 = vcombine.high %v3114_v33, %v3122_v34  ;;  %v6011_v45 = vcombine.low %v3114_v33, %v3122_v34  ;;  %v6105_v33 = vcombine.low %v3209_v20, %v3217_v21 }
 0x91b   :  { %4110 = vmatpush1.bf16.msra.mxu1 %v6021_v41  ;;  %4151 = vmatpush1.bf16.msra.mxu0 %v6023_v42  ;;  %v3137_v41 = vld [vmem:[#allocation14 + $0x170] sm:$0xff]  ;;  %v3130_v42 = vld [vmem:[#allocation14 + $0x138] sm:$0xff] }
 0x91c   :  { %4111 = vmatprep.subr.bf16.mxu1 %v6038_v43  ;;  %4152 = vmatprep.subr.bf16.mxu0 %v6040_v44  ;;  %v3138_v43 = vld [vmem:[#allocation14 + $0x178] sm:$0xff]  ;;  %v6009_v44 = vcombine.low %v3113_v32, %v3121_v0  ;;  %v6026_v27 = vcombine.high %v3129_v40, %v3137_v41  ;;  %v6106_v32 = vcombine.high %v3209_v20, %v3217_v21 }
 0x91d   :  { %v6028_v46 = vcombine.high %v3130_v42, %v3138_v43  ;;  %v6027_v55 = vcombine.low %v3130_v42, %v3138_v43  ;;  %v6825_v42 = vld [vmem:[#allocation16 + $0x8] sm:$0xff]  }
 0x91e   :  { %v6826_v43 = vld [vmem:[#allocation16 + $0x88] sm:$0xff]  }
 0x91f   :  { %4112 = vmatpush1.bf16.msra.mxu1 %v6037_v48  ;;  %4153 = vmatpush1.bf16.msra.mxu0 %v6039_v49  ;;  %v3153_v48 = vld [vmem:[#allocation14 + $0x1f0] sm:$0xff]  ;;  %v3146_v49 = vld [vmem:[#allocation14 + $0x1b8] sm:$0xff] }
 0x920   :  { %4113 = vmatprep.subr.bf16.mxu1 %v6054_v50  ;;  %4154 = vmatprep.subr.bf16.mxu0 %v6056_v54  ;;  %v3154_v50 = vld [vmem:[#allocation14 + $0x1f8] sm:$0xff]  ;;  %v6025_v54 = vcombine.low %v3129_v40, %v3137_v41  ;;  %v6042_v22 = vcombine.high %v3145_v47, %v3153_v48  ;;  %v6823_v40 = vld [vmem:[#allocation16 + $0x48] sm:$0xff]  }
 0x921   :  { %v6044_v56 = vcombine.high %v3146_v49, %v3154_v50  ;;  %v6043_v61 = vcombine.low %v3146_v49, %v3154_v50  ;;  %v6824_v41 = vld [vmem:[#allocation16 + $0xc8] sm:$0xff]   ;;  %v6833_v49 = vld [vmem:[#allocation16 + $0x18] sm:$0xff]   ;;  %v6835_v50 = vld [vmem:[#allocation16 + $0x60] sm:$0xff]  }
 0x923   :  { %4114 = vmatpush1.bf16.msra.mxu1 %v6053_v58  ;;  %4155 = vmatpush1.bf16.msra.mxu0 %v6055_v59  ;;  %v3169_v58 = vld [vmem:[#allocation14 + $0x270] sm:$0xff]  ;;  %v3162_v59 = vld [vmem:[#allocation14 + $0x238] sm:$0xff] }
 0x924   :  { %4115 = vmatprep.subr.bf16.mxu1 %v6070_v51  ;;  %4156 = vmatprep.subr.bf16.mxu0 %v6072_v60  ;;  %v3170_v51 = vld [vmem:[#allocation14 + $0x278] sm:$0xff]  ;;  %v6041_v60 = vcombine.low %v3145_v47, %v3153_v48  ;;  %v6058_v63 = vcombine.high %v3161_v57, %v3169_v58 }
 0x925   :  { %v6831_v47 = vld [vmem:[#allocation16 + $0x58] sm:$0xff]  }
 0x926   :  { %v6832_v48 = vld [vmem:[#allocation16 + $0xd8] sm:$0xff]  }
 0x927   :  { %4116 = vmatpush1.bf16.msra.mxu1 %v6069_v3  ;;  %4157 = vmatpush1.bf16.msra.mxu0 %v6071_v4  ;;  %v3178_v3 = vld [vmem:[#allocation14 + $0x2b8] sm:$0xff] }
 0x928   :  { %4117 = vmatprep.subr.bf16.mxu1 %v6086_v53  ;;  %4158 = vmatprep.subr.bf16.mxu0 %v6088_v5  ;;  %v3186_v4 = vld [vmem:[#allocation14 + $0x2f8] sm:$0xff]  ;;  %v6057_v53 = vcombine.low %v3161_v57, %v3169_v58  ;;  %v6059_v5 = vcombine.low %v3162_v59, %v3170_v51  ;;  %v6840_v57 = vld [vmem:[#allocation16 + $0xe8] sm:$0xff]  }
 0x929   :  { %v6076_v8 = vcombine.high %v3178_v3, %v3186_v4  ;;  %v6841_v58 = vld [vmem:[#allocation16 + $0x28] sm:$0xff]  }
 0x92b   :  { %4118 = vmatpush1.bf16.msra.mxu1 %v6085_v11  ;;  %4159 = vmatpush1.bf16.msra.mxu0 %v6087_v12  ;;  %v3194_v11 = vld [vmem:[#allocation14 + $0x338] sm:$0xff] }
 0x92c   :  { %4119 = vmatprep.subr.bf16.mxu1 %v6102_v62  ;;  %4160 = vmatprep.subr.bf16.mxu0 %v6104_v15  ;;  %v3202_v12 = vld [vmem:[#allocation14 + $0x378] sm:$0xff]  ;;  %v6073_v62 = vcombine.low %v3177_v1, %v3185_v2  ;;  %v6075_v15 = vcombine.low %v3178_v3, %v3186_v4  ;;  %v6851_v4 = vld [vmem:[#allocation16 + $0x140] sm:$0xff]  }
 0x92d   :  { %v6092_v19 = vcombine.high %v3194_v11, %v3202_v12  ;;  %v6848_v1 = vld [vmem:[#allocation16 + $0xf8] sm:$0xff]  }
 0x92e   :  { %v6849_v2 = vld [vmem:[#allocation16 + $0x38] sm:$0xff]  }
 0x92f   :  { %4120 = vmatpush1.bf16.msra.mxu1 %v6101_v23  ;;  %4161 = vmatpush1.bf16.msra.mxu0 %v6103_v30  ;;  %v3210_v23 = vld [vmem:[#allocation14 + $0x3b8] sm:$0xff] }
 0x930   :  { %4187 = vmatprep.subr.bf16.mxu1 %v5994_v24  ;;  %4228 = vmatprep.subr.bf16.mxu0 %v5996_v31  ;;  %v3218_v30 = vld [vmem:[#allocation14 + $0x3f8] sm:$0xff]  ;;  %v6089_v24 = vcombine.low %v3193_v9, %v3201_v10  ;;  %v6091_v31 = vcombine.low %v3194_v11, %v3202_v12 }
 0x931   :  { %v6108_v0 = vcombine.high %v3210_v23, %v3218_v30  ;;  %v6107_v34 = vcombine.low %v3210_v23, %v3218_v30  ;;  %v6850_v3 = vld [vmem:[#allocation16 + $0xb8] sm:$0xff]  }
 0x932   :  { %4138 = vmatmul.mubr.bf16.vlgmr.msra.gmra.mrb[44].mxu1 %v7520_v6  ;;  %4179 = vmatmul.mubr.bf16.vlgmr.msra.gmra.mrb[48].mxu0 %v7520_v6 }
 0x933   :  { %4188 = vmatpush1.bf16.msra.mxu1 %v5993_v35  ;;  %4229 = vmatpush1.bf16.msra.mxu0 %v5995_v36  ;;  %v6819_v35 = vld [vmem:[#allocation16 + $0x40] sm:$0xff]  }
 0x934   :  { %4189 = vmatprep.subr.bf16.mxu1 %v6010_v37  ;;  %4230 = vmatprep.subr.bf16.mxu0 %v6012_v39  ;;  %v6820_v36 = vld [vmem:[#allocation16 + $0xc0] sm:$0xff]  }
 0x935   :  { %4219 = vmatprep.mubr.bf16.mxu1 %v7201_v38  ;;  %4260 = vmatprep.mubr.bf16.mxu0 %v7201_v38  ;;  %v6060_v38 = vcombine.high %v3162_v59, %v3170_v51  ;;  %v6821_v37 = vld [vmem:[#allocation16] sm:$0xff]   ;;  %v6842_v59 = vld [vmem:[#allocation16 + $0xa8] sm:$0xff]   ;;  %v6843_v51 = vld [vmem:[#allocation16 + $0x70] sm:$0xff]  }
 0x936   :  { %v6822_v39 = vld [vmem:[#allocation16 + $0x80] sm:$0xff]  }
 0x937   :  { %4190 = vmatpush1.bf16.msra.mxu1 %v6009_v44  ;;  %4231 = vmatpush1.bf16.msra.mxu0 %v6011_v45  ;;  %v6827_v44 = vld [vmem:[#allocation16 + $0x50] sm:$0xff]  }
 0x938   :  { %4191 = vmatprep.subr.bf16.mxu1 %v6026_v27  ;;  %4232 = vmatprep.subr.bf16.mxu0 %v6028_v46  ;;  %v6828_v45 = vld [vmem:[#allocation16 + $0xd0] sm:$0xff]  }
 0x939   :  { %v6829_v27 = vld [vmem:[#allocation16 + $0x10] sm:$0xff]  }
 0x93a   :  { %v6830_v46 = vld [vmem:[#allocation16 + $0x90] sm:$0xff]  }
 0x93b   :  { %4192 = vmatpush1.bf16.msra.mxu1 %v6025_v54  ;;  %4233 = vmatpush1.bf16.msra.mxu0 %v6027_v55  ;;  %v6836_v54 = vld [vmem:[#allocation16 + $0xe0] sm:$0xff]  }
 0x93c   :  { %4193 = vmatprep.subr.bf16.mxu1 %v6042_v22  ;;  %4234 = vmatprep.subr.bf16.mxu0 %v6044_v56  ;;  %v6837_v55 = vld [vmem:[#allocation16 + $0x20] sm:$0xff]   ;;  %v6839_v56 = vld [vmem:[#allocation16 + $0x68] sm:$0xff]  }
 0x93d   :  { %v6838_v22 = vld [vmem:[#allocation16 + $0xa0] sm:$0xff]  }
 0x93f   :  { %4194 = vmatpush1.bf16.msra.mxu1 %v6041_v60  ;;  %4235 = vmatpush1.bf16.msra.mxu0 %v6043_v61  ;;  %v6844_v60 = vld [vmem:[#allocation16 + $0xf0] sm:$0xff]  }
 0x940   :  { %4195 = vmatprep.subr.bf16.mxu1 %v6058_v63  ;;  %4236 = vmatprep.subr.bf16.mxu0 %v6060_v38  ;;  %v6845_v61 = vld [vmem:[#allocation16 + $0x30] sm:$0xff]   ;;  %v6847_v38 = vld [vmem:[#allocation16 + $0x78] sm:$0xff]  }
 0x941   :  { %v6846_v63 = vld [vmem:[#allocation16 + $0xb0] sm:$0xff]  }
 0x943   :  { %4196 = vmatpush1.bf16.msra.mxu1 %v6057_v53  ;;  %4237 = vmatpush1.bf16.msra.mxu0 %v6059_v5  ;;  %v6852_v53 = vld [vmem:[#allocation16 + $0x1c0] sm:$0xff]  }
 0x944   :  { %4197 = vmatprep.subr.bf16.mxu1 %v6074_v7  ;;  %4238 = vmatprep.subr.bf16.mxu0 %v6076_v8  ;;  %v7536_v5 = vld [vmem:[#allocation5 + $0x1d] sm:$0xff] }
 0x945   :  { %v3224_v7 = vrot.slane %v7536_v5, %v7439_v25  ;;  %v3232_v8 = vrot.slane %v7536_v5, %v7442_v26  ;;  %v3228_v9 = vrot.slane %v7536_v5, %v7447_v28  ;;  %v3236_v10 = vrot.slane %v7536_v5, %v7450_v29 }
 0x947   :  { %4198 = vmatpush1.bf16.msra.mxu1 %v6073_v62  ;;  %4239 = vmatpush1.bf16.msra.mxu0 %v6075_v15 }
 0x948   :  { %4199 = vmatprep.subr.bf16.mxu1 %v6090_v16  ;;  %4240 = vmatprep.subr.bf16.mxu0 %v6092_v19 }
 0x94b   :  { %4200 = vmatpush1.bf16.msra.mxu1 %v6089_v24  ;;  %4241 = vmatpush1.bf16.msra.mxu0 %v6091_v31 }
 0x94c   :  { %4201 = vmatprep.subr.bf16.mxu1 %v6106_v32  ;;  %4242 = vmatprep.subr.bf16.mxu0 %v6108_v0 }
 0x94f   :  { %4202 = vmatpush1.bf16.msra.mxu1 %v6105_v33  ;;  %4243 = vmatpush1.bf16.msra.mxu0 %v6107_v34 }
 0x950   :  { %6436 = vmatprep.subr.bf16.mxu1 %v6819_v35  ;;  %6458 = vmatprep.subr.bf16.mxu0 %v6820_v36 }
 0x952   :  { %4220 = vmatmul.mubr.bf16.vlgmr.msra.gmra.mrb[48].mxu1 %v7520_v6  ;;  %4261 = vmatmul.mubr.bf16.vlgmr.msra.gmra.mrb[52].mxu0 %v7520_v6  ;;  %v6834_v6 = vld [vmem:[#allocation16 + $0x98] sm:$0xff]  }
 0x953   :  { %6437 = vmatpush3.bf16.msra.mxu1 %v6821_v37  ;;  %6459 = vmatpush3.bf16.msra.mxu0 %v6822_v39  ;;  %v6853_v37 = vld [vmem:[#allocation16 + $0x100] sm:$0xff]  }
 0x954   :  { %6438 = vmatprep.subr.bf16.mxu1 %v6823_v40  ;;  %6460 = vmatprep.subr.bf16.mxu0 %v6824_v41  ;;  %v6854_v39 = vld [vmem:[#allocation16 + $0x180] sm:$0xff]  }
 0x957   :  { %6439 = vmatpush3.bf16.msra.mxu1 %v6825_v42  ;;  %6461 = vmatpush3.bf16.msra.mxu0 %v6826_v43  ;;  %v6855_v42 = vld [vmem:[#allocation16 + $0x148] sm:$0xff]  }
 0x958   :  { %6440 = vmatprep.subr.bf16.mxu1 %v6827_v44  ;;  %6462 = vmatprep.subr.bf16.mxu0 %v6828_v45  ;;  %v6856_v43 = vld [vmem:[#allocation16 + $0x1c8] sm:$0xff]  }
 0x959   :  { %v6857_v44 = vld [vmem:[#allocation16 + $0x108] sm:$0xff]  }
 0x95a   :  { %v6858_v45 = vld [vmem:[#allocation16 + $0x188] sm:$0xff]  }
 0x95b   :  { %6441 = vmatpush3.bf16.msra.mxu1 %v6829_v27  ;;  %6463 = vmatpush3.bf16.msra.mxu0 %v6830_v46  ;;  %v6859_v27 = vld [vmem:[#allocation16 + $0x150] sm:$0xff]  }
 0x95c   :  { %6442 = vmatprep.subr.bf16.mxu1 %v6831_v47  ;;  %6464 = vmatprep.subr.bf16.mxu0 %v6832_v48  ;;  %v6860_v46 = vld [vmem:[#allocation16 + $0x1d0] sm:$0xff]  }
 0x95d   :  { %v6861_v47 = vld [vmem:[#allocation16 + $0x110] sm:$0xff]  }
 0x95e   :  { %v6862_v48 = vld [vmem:[#allocation16 + $0x190] sm:$0xff]  }
 0x95f   :  { %6443 = vmatpush3.bf16.msra.mxu1 %v6833_v49  ;;  %6465 = vmatpush3.bf16.msra.mxu0 %v6834_v6  ;;  %v6863_v49 = vld [vmem:[#allocation16 + $0x158] sm:$0xff]  }
 0x960   :  { %6444 = vmatprep.subr.bf16.mxu1 %v6835_v50  ;;  %6466 = vmatprep.subr.bf16.mxu0 %v6836_v54  ;;  %v6864_v6 = vld [vmem:[#allocation16 + $0x1d8] sm:$0xff]  }
 0x961   :  { %v6865_v50 = vld [vmem:[#allocation16 + $0x118] sm:$0xff]  }
 0x962   :  { %v6866_v54 = vld [vmem:[#allocation16 + $0x198] sm:$0xff]  }
 0x963   :  { %6445 = vmatpush3.bf16.msra.mxu1 %v6837_v55  ;;  %6467 = vmatpush3.bf16.msra.mxu0 %v6838_v22  ;;  %v6867_v55 = vld [vmem:[#allocation16 + $0x160] sm:$0xff]  }
 0x964   :  { %6446 = vmatprep.subr.bf16.mxu1 %v6839_v56  ;;  %6468 = vmatprep.subr.bf16.mxu0 %v6840_v57  ;;  %v6868_v22 = vld [vmem:[#allocation16 + $0x1e0] sm:$0xff]  }
 0x965   :  { %v6869_v56 = vld [vmem:[#allocation16 + $0x120] sm:$0xff]  }
 0x966   :  { %v6870_v57 = vld [vmem:[#allocation16 + $0x1a0] sm:$0xff]  }
 0x967   :  { %6447 = vmatpush3.bf16.msra.mxu1 %v6841_v58  ;;  %6469 = vmatpush3.bf16.msra.mxu0 %v6842_v59  ;;  %v6871_v58 = vld [vmem:[#allocation16 + $0x168] sm:$0xff]  }
 0x968   :  { %6448 = vmatprep.subr.bf16.mxu1 %v6843_v51  ;;  %6470 = vmatprep.subr.bf16.mxu0 %v6844_v60  ;;  %v6872_v59 = vld [vmem:[#allocation16 + $0x1e8] sm:$0xff]  }
 0x969   :  { %v6873_v51 = vld [vmem:[#allocation16 + $0x128] sm:$0xff]  }
 0x96a   :  { %v6874_v60 = vld [vmem:[#allocation16 + $0x1a8] sm:$0xff]  }
 0x96b   :  { %6449 = vmatpush3.bf16.msra.mxu1 %v6845_v61  ;;  %6471 = vmatpush3.bf16.msra.mxu0 %v6846_v63  ;;  %v6875_v61 = vld [vmem:[#allocation16 + $0x170] sm:$0xff]  }
 0x96c   :  { %6450 = vmatprep.subr.bf16.mxu1 %v6847_v38  ;;  %6472 = vmatprep.subr.bf16.mxu0 %v6848_v1  ;;  %v6876_v63 = vld [vmem:[#allocation16 + $0x1f0] sm:$0xff]   ;;  %v3240_v38 = vrot.slane %v7536_v5, %v7461_v13  ;;  %v3248_v1 = vrot.slane %v7536_v5, %v7464_v14 }
 0x96f   :  { %6451 = vmatpush3.bf16.msra.mxu1 %v6849_v2  ;;  %6473 = vmatpush3.bf16.msra.mxu0 %v6850_v3  ;;  %v3244_v2 = vrot.slane %v7536_v5, %v7467_v17  ;;  %v3252_v3 = vrot.slane %v7536_v5, %v7470_v18  ;;  %v6882_v5 = vld [vmem:[#allocation16 + $0x1b8] sm:$0xff]  }
 0x970   :  { %6480 = vmatprep.subr.bf16.mxu1 %v6851_v4  ;;  %6502 = vmatprep.subr.bf16.mxu0 %v6852_v53  ;;  %v6877_v4 = vld [vmem:[#allocation16 + $0x130] sm:$0xff]  }
 0x971   :  { %v6878_v53 = vld [vmem:[#allocation16 + $0x1b0] sm:$0xff]  }
 0x9c5   :  { %v3975_v11 = vpop.f32.mrb[36].mxu1  ;;  %v4016_v12 = vpop.f32.mrb[40].mxu0 }
 0x9c6   :  { %v3976_v62 = vadd.f32 %v3975_v11, %v3224_v7  ;;  %v4017_v15 = vadd.f32 %v4016_v12, %v3232_v8  ;;  %v3977_v16 = vpop.f32.mrb[37].mxu1  ;;  %v4018_v19 = vpop.f32.mrb[41].mxu0  ;;  %v6879_v7 = vld [vmem:[#allocation16 + $0x178] sm:$0xff]  }
 0x9c7   :  { %v3978_v20 = vadd.f32 %v3977_v16, %v3228_v9  ;;  %v4019_v21 = vadd.f32 %v4018_v19, %v3236_v10  ;;  %v3979_v23 = vpop.f32.mrb[38].mxu1  ;;  %v4020_v30 = vpop.f32.mrb[42].mxu0  ;;  %v6880_v8 = vld [vmem:[#allocation16 + $0x1f8] sm:$0xff]  }
 0x9c8   :  { %v4269_v24 = vmax.f32 %v3976_v62, 0.0  ;;  %v4271_v31 = vmax.f32 %v4017_v15, 0.0  ;;  %v3980_v32 = vpop.f32.mrb[39].mxu1  ;;  %v4021_v0 = vpop.f32.mrb[43].mxu0  ;;  %v6881_v23 = vld [vmem:[#allocation16 + $0x138] sm:$0xff]  }
 0x9c9   :  { %v4270_v33 = vmax.f32 %v3978_v20, 0.0  ;;  %v4272_v34 = vmax.f32 %v4019_v21, 0.0  ;;  %v6883_v0 = vld [vmem:[#allocation16 + $0x240] sm:$0xff]  }
 0x9ca   :  { %v4285_v40 = vpack.c.bf16 %v4269_v24, %v4269_v24  ;;  %v4287_v41 = vpack.c.bf16 %v4271_v31, %v4271_v31 }
 0x9cb   :  { %v4286_v35 = vpack.c.bf16 %v4270_v33, %v4270_v33  ;;  %v4288_v36 = vpack.c.bf16 %v4272_v34, %v4272_v34  ;;  %v6884_v33 = vld [vmem:[#allocation16 + $0x2c0] sm:$0xff]  }
 0x9cd   :  { %5363 = vmatprep.mubr.bf16.mxu1 %v4286_v35  ;;  %5403 = vmatprep.mubr.bf16.mxu0 %v4288_v36 }
 0x9ce   :  { %5364 = vmatmul.mubr.bf16.vlgmr.msra.gmra.mrb[52].mxu1 %v4285_v40  ;;  %5404 = vmatmul.mubr.bf16.vlgmr.msra.gmra.mrb[56].mxu0 %v4287_v41  ;;  %v6886_v40 = vld [vmem:[#allocation16 + $0x280] sm:$0xff]  }
 0x9cf   :  { %6481 = vmatpush3.bf16.msra.mxu1 %v6853_v37  ;;  %6503 = vmatpush3.bf16.msra.mxu0 %v6854_v39  ;;  %v6885_v39 = vld [vmem:[#allocation16 + $0x200] sm:$0xff]  }
 0x9d0   :  { %6482 = vmatprep.subr.bf16.mxu1 %v6855_v42  ;;  %6504 = vmatprep.subr.bf16.mxu0 %v6856_v43  ;;  %v6887_v43 = vld [vmem:[#allocation16 + $0x248] sm:$0xff]  }
 0x9d3   :  { %6483 = vmatpush3.bf16.msra.mxu1 %v6857_v44  ;;  %6505 = vmatpush3.bf16.msra.mxu0 %v6858_v45  ;;  %v6888_v44 = vld [vmem:[#allocation16 + $0x2c8] sm:$0xff]  }
 0x9d4   :  { %6484 = vmatprep.subr.bf16.mxu1 %v6859_v27  ;;  %6506 = vmatprep.subr.bf16.mxu0 %v6860_v46  ;;  %v6889_v45 = vld [vmem:[#allocation16 + $0x208] sm:$0xff]   ;;  %v6891_v46 = vld [vmem:[#allocation16 + $0x250] sm:$0xff]  }
 0x9d5   :  { %v6890_v27 = vld [vmem:[#allocation16 + $0x288] sm:$0xff]  }
 0x9d7   :  { %6485 = vmatpush3.bf16.msra.mxu1 %v6861_v47  ;;  %6507 = vmatpush3.bf16.msra.mxu0 %v6862_v48  ;;  %v6892_v47 = vld [vmem:[#allocation16 + $0x2d0] sm:$0xff]  }
 0x9d8   :  { %6486 = vmatprep.subr.bf16.mxu1 %v6863_v49  ;;  %6508 = vmatprep.subr.bf16.mxu0 %v6864_v6  ;;  %v6893_v48 = vld [vmem:[#allocation16 + $0x210] sm:$0xff]   ;;  %v6895_v6 = vld [vmem:[#allocation16 + $0x258] sm:$0xff]  }
 0x9d9   :  { %v6894_v49 = vld [vmem:[#allocation16 + $0x290] sm:$0xff]  }
 0x9db   :  { %6487 = vmatpush3.bf16.msra.mxu1 %v6865_v50  ;;  %6509 = vmatpush3.bf16.msra.mxu0 %v6866_v54  ;;  %v6896_v50 = vld [vmem:[#allocation16 + $0x2d8] sm:$0xff]  }
 0x9dc   :  { %6488 = vmatprep.subr.bf16.mxu1 %v6867_v55  ;;  %6510 = vmatprep.subr.bf16.mxu0 %v6868_v22  ;;  %v6897_v54 = vld [vmem:[#allocation16 + $0x218] sm:$0xff]   ;;  %v6899_v22 = vld [vmem:[#allocation16 + $0x260] sm:$0xff]  }
 0x9dd   :  { %v6898_v55 = vld [vmem:[#allocation16 + $0x298] sm:$0xff]  }
 0x9df   :  { %6489 = vmatpush3.bf16.msra.mxu1 %v6869_v56  ;;  %6511 = vmatpush3.bf16.msra.mxu0 %v6870_v57  ;;  %v6900_v56 = vld [vmem:[#allocation16 + $0x2e0] sm:$0xff]  }
 0x9e0   :  { %6490 = vmatprep.subr.bf16.mxu1 %v6871_v58  ;;  %6512 = vmatprep.subr.bf16.mxu0 %v6872_v59  ;;  %v6901_v57 = vld [vmem:[#allocation16 + $0x220] sm:$0xff]   ;;  %v6903_v59 = vld [vmem:[#allocation16 + $0x268] sm:$0xff]  }
 0x9e1   :  { %v6902_v58 = vld [vmem:[#allocation16 + $0x2a0] sm:$0xff]  }
 0x9e3   :  { %6491 = vmatpush3.bf16.msra.mxu1 %v6873_v51  ;;  %6513 = vmatpush3.bf16.msra.mxu0 %v6874_v60  ;;  %v6904_v51 = vld [vmem:[#allocation16 + $0x2e8] sm:$0xff]  }
 0x9e4   :  { %6492 = vmatprep.subr.bf16.mxu1 %v6875_v61  ;;  %6514 = vmatprep.subr.bf16.mxu0 %v6876_v63  ;;  %v6905_v60 = vld [vmem:[#allocation16 + $0x228] sm:$0xff]  }
 0x9e5   :  { %v4057_v9 = vpop.f32.mrb[40].mxu1  ;;  %v4098_v10 = vpop.f32.mrb[44].mxu0  ;;  %v6906_v61 = vld [vmem:[#allocation16 + $0x2a8] sm:$0xff]  }
 0x9e6   :  { %v4058_v11 = vadd.f32 %v4057_v9, %v3240_v38  ;;  %v4099_v12 = vadd.f32 %v4098_v10, %v3248_v1  ;;  %v4059_v62 = vpop.f32.mrb[41].mxu1  ;;  %v4100_v15 = vpop.f32.mrb[45].mxu0  ;;  %v7554_v63 = vld [vmem:[#allocation5 + $0x25] sm:$0xff]  ;;  %v6911_v9 = vld [vmem:[#allocation16 + $0x278] sm:$0xff]  }
 0x9e7   :  { %v4060_v16 = vadd.f32 %v4059_v62, %v3244_v2  ;;  %v4101_v19 = vadd.f32 %v4100_v15, %v3252_v3  ;;  %v4061_v20 = vpop.f32.mrb[42].mxu1  ;;  %v4102_v21 = vpop.f32.mrb[46].mxu0  ;;  %6493 = vmatpush3.bf16.msra.mxu1 %v6877_v4  ;;  %6515 = vmatpush3.bf16.msra.mxu0 %v6878_v53  ;;  %v6907_v38 = vld [vmem:[#allocation16 + $0x270] sm:$0xff]   ;;  %v3256_v2 = vrot.slane %v7554_v63, %v7439_v25  ;;  %v6912_v10 = vld [vmem:[#allocation16 + $0x2f8] sm:$0xff]  }
 0x9e8   :  { %v4273_v30 = vmax.f32 %v4058_v11, 0.0  ;;  %v4275_v24 = vmax.f32 %v4099_v12, 0.0  ;;  %v4062_v31 = vpop.f32.mrb[43].mxu1  ;;  %v4103_v32 = vpop.f32.mrb[47].mxu0  ;;  %6494 = vmatprep.subr.bf16.mxu1 %v6879_v7  ;;  %6516 = vmatprep.subr.bf16.mxu0 %v6880_v8  ;;  %v6908_v1 = vld [vmem:[#allocation16 + $0x2f0] sm:$0xff]   ;;  %v3264_v3 = vrot.slane %v7554_v63, %v7442_v26  ;;  %v3260_v4 = vrot.slane %v7554_v63, %v7447_v28  ;;  %v6913_v28 = vld [vmem:[#allocation16 + $0x238] sm:$0xff]  }
 0x9e9   :  { %v4274_v34 = vmax.f32 %v4060_v16, 0.0  ;;  %v4276_v35 = vmax.f32 %v4101_v19, 0.0  ;;  %v3268_v53 = vrot.slane %v7554_v63, %v7450_v29  ;;  %v6909_v7 = vld [vmem:[#allocation16 + $0x230] sm:$0xff]   ;;  %v6914_v29 = vld [vmem:[#allocation16 + $0x2b8] sm:$0xff]   ;;  %v6915_v31 = vld [vmem:[#allocation16 + $0x340] sm:$0xff]  }
 0x9ea   :  { %v4289_v41 = vpack.c.bf16 %v4273_v30, %v4273_v30  ;;  %v4291_v42 = vpack.c.bf16 %v4275_v24, %v4275_v24  ;;  %v6910_v8 = vld [vmem:[#allocation16 + $0x2b0] sm:$0xff]   ;;  %v6916_v32 = vld [vmem:[#allocation16 + $0x3c0] sm:$0xff]  }
 0x9eb   :  { %v4290_v36 = vpack.c.bf16 %v4274_v34, %v4274_v34  ;;  %v4292_v37 = vpack.c.bf16 %v4276_v35, %v4276_v35  ;;  %6495 = vmatpush3.bf16.msra.mxu1 %v6881_v23  ;;  %6517 = vmatpush3.bf16.msra.mxu0 %v6882_v5 }
 0x9ec   :  { %6524 = vmatprep.subr.bf16.mxu1 %v6883_v0  ;;  %6546 = vmatprep.subr.bf16.mxu0 %v6884_v33 }
 0x9ed   :  { %5443 = vmatprep.mubr.bf16.mxu1 %v4290_v36  ;;  %5483 = vmatprep.mubr.bf16.mxu0 %v4292_v37  ;;  %v6917_v36 = vld [vmem:[#allocation16 + $0x300] sm:$0xff]  }
 0x9ee   :  { %5444 = vmatmul.mubr.bf16.vlgmr.msra.gmra.mrb[56].mxu1 %v4289_v41  ;;  %5484 = vmatmul.mubr.bf16.vlgmr.msra.gmra.mrb[60].mxu0 %v4291_v42  ;;  %v6918_v37 = vld [vmem:[#allocation16 + $0x380] sm:$0xff]   ;;  %v6919_v41 = vld [vmem:[#allocation16 + $0x348] sm:$0xff]  }
 0x9ef   :  { %6525 = vmatpush3.bf16.msra.mxu1 %v6885_v39  ;;  %6547 = vmatpush3.bf16.msra.mxu0 %v6886_v40  ;;  %v6920_v42 = vld [vmem:[#allocation16 + $0x3c8] sm:$0xff]  }
 0x9f0   :  { %6526 = vmatprep.subr.bf16.mxu1 %v6887_v43  ;;  %6548 = vmatprep.subr.bf16.mxu0 %v6888_v44  ;;  %v6921_v43 = vld [vmem:[#allocation16 + $0x308] sm:$0xff]  }
 0x9f1   :  { %v6922_v44 = vld [vmem:[#allocation16 + $0x388] sm:$0xff]  }
 0x9f3   :  { %6527 = vmatpush3.bf16.msra.mxu1 %v6889_v45  ;;  %6549 = vmatpush3.bf16.msra.mxu0 %v6890_v27  ;;  %v6923_v45 = vld [vmem:[#allocation16 + $0x350] sm:$0xff]  }
 0x9f4   :  { %6528 = vmatprep.subr.bf16.mxu1 %v6891_v46  ;;  %6550 = vmatprep.subr.bf16.mxu0 %v6892_v47  ;;  %v6924_v27 = vld [vmem:[#allocation16 + $0x3d0] sm:$0xff]  }
 0x9f5   :  { %v6925_v46 = vld [vmem:[#allocation16 + $0x310] sm:$0xff]  }
 0x9f6   :  { %v6926_v47 = vld [vmem:[#allocation16 + $0x390] sm:$0xff]  }
 0x9f7   :  { %6529 = vmatpush3.bf16.msra.mxu1 %v6893_v48  ;;  %6551 = vmatpush3.bf16.msra.mxu0 %v6894_v49  ;;  %v6927_v48 = vld [vmem:[#allocation16 + $0x358] sm:$0xff]  }
 0x9f8   :  { %6530 = vmatprep.subr.bf16.mxu1 %v6895_v6  ;;  %6552 = vmatprep.subr.bf16.mxu0 %v6896_v50  ;;  %v6928_v49 = vld [vmem:[#allocation16 + $0x3d8] sm:$0xff]  }
 0x9f9   :  { %v6929_v6 = vld [vmem:[#allocation16 + $0x318] sm:$0xff]  }
 0x9fa   :  { %v6930_v50 = vld [vmem:[#allocation16 + $0x398] sm:$0xff]  }
 0x9fb   :  { %6531 = vmatpush3.bf16.msra.mxu1 %v6897_v54  ;;  %6553 = vmatpush3.bf16.msra.mxu0 %v6898_v55  ;;  %v6931_v54 = vld [vmem:[#allocation16 + $0x360] sm:$0xff]  }
 0x9fc   :  { %6532 = vmatprep.subr.bf16.mxu1 %v6899_v22  ;;  %6554 = vmatprep.subr.bf16.mxu0 %v6900_v56  ;;  %v6932_v55 = vld [vmem:[#allocation16 + $0x3e0] sm:$0xff]  }
 0x9fd   :  { %v6933_v22 = vld [vmem:[#allocation16 + $0x320] sm:$0xff]  }
 0x9fe   :  { %v6934_v56 = vld [vmem:[#allocation16 + $0x3a0] sm:$0xff]  }
 0x9ff   :  { %6533 = vmatpush3.bf16.msra.mxu1 %v6901_v57  ;;  %6555 = vmatpush3.bf16.msra.mxu0 %v6902_v58  ;;  %v6935_v57 = vld [vmem:[#allocation16 + $0x368] sm:$0xff]  }
 0xa00   :  { %6534 = vmatprep.subr.bf16.mxu1 %v6903_v59  ;;  %6556 = vmatprep.subr.bf16.mxu0 %v6904_v51  ;;  %v6936_v58 = vld [vmem:[#allocation16 + $0x3e8] sm:$0xff]  }
 0xa01   :  { %v6937_v59 = vld [vmem:[#allocation16 + $0x328] sm:$0xff]  }
 0xa02   :  { %v6938_v51 = vld [vmem:[#allocation16 + $0x3a8] sm:$0xff]  }
 0xa03   :  { %6535 = vmatpush3.bf16.msra.mxu1 %v6905_v60  ;;  %6557 = vmatpush3.bf16.msra.mxu0 %v6906_v61  ;;  %v6939_v60 = vld [vmem:[#allocation16 + $0x370] sm:$0xff]  }
 0xa04   :  { %6536 = vmatprep.subr.bf16.mxu1 %v6907_v38  ;;  %6558 = vmatprep.subr.bf16.mxu0 %v6908_v1  ;;  %v6940_v61 = vld [vmem:[#allocation16 + $0x3f0] sm:$0xff]   ;;  %v3272_v38 = vrot.slane %v7554_v63, %v7461_v13  ;;  %v3280_v1 = vrot.slane %v7554_v63, %v7464_v14 }
 0xa05   :  { %v4139_v11 = vpop.f32.mrb[44].mxu1  ;;  %v4180_v12 = vpop.f32.mrb[48].mxu0 }
 0xa06   :  { %v4140_v25 = vadd.f32 %v4139_v11, %v3256_v2  ;;  %v4181_v62 = vadd.f32 %v4180_v12, %v3264_v3  ;;  %v4141_v15 = vpop.f32.mrb[45].mxu1  ;;  %v4182_v26 = vpop.f32.mrb[49].mxu0  ;;  %v3276_v2 = vrot.slane %v7554_v63, %v7467_v17  ;;  %v3284_v3 = vrot.slane %v7554_v63, %v7470_v18  ;;  %v6945_v17 = vld [vmem:[#allocation16 + $0x338] sm:$0xff]  }
 0xa07   :  { %v4142_v16 = vadd.f32 %v4141_v15, %v3260_v4  ;;  %v4183_v19 = vadd.f32 %v4182_v26, %v3268_v53  ;;  %v4143_v20 = vpop.f32.mrb[46].mxu1  ;;  %v4184_v21 = vpop.f32.mrb[50].mxu0  ;;  %6537 = vmatpush3.bf16.msra.mxu1 %v6909_v7  ;;  %6559 = vmatpush3.bf16.msra.mxu0 %v6910_v8  ;;  %v6941_v4 = vld [vmem:[#allocation16 + $0x330] sm:$0xff]   ;;  %v6943_v7 = vld [vmem:[#allocation16 + $0x378] sm:$0xff]  }
 0xa08   :  { %v4277_v23 = vmax.f32 %v4140_v25, 0.0  ;;  %v4279_v5 = vmax.f32 %v4181_v62, 0.0  ;;  %v4144_v30 = vpop.f32.mrb[47].mxu1  ;;  %v4185_v24 = vpop.f32.mrb[51].mxu0  ;;  %6538 = vmatprep.subr.bf16.mxu1 %v6911_v9  ;;  %6560 = vmatprep.subr.bf16.mxu0 %v6912_v10  ;;  %v6942_v53 = vld [vmem:[#allocation16 + $0x3b0] sm:$0xff]   ;;  %v6944_v8 = vld [vmem:[#allocation16 + $0x3f8] sm:$0xff]  }
 0xa09   :  { %v4278_v0 = vmax.f32 %v4142_v16, 0.0  ;;  %v4280_v33 = vmax.f32 %v4183_v19, 0.0  ;;  %v6946_v18 = vld [vmem:[#allocation16 + $0x3b8] sm:$0xff]  }
 0xa0a   :  { %v4293_v39 = vpack.c.bf16 %v4277_v23, %v4277_v23  ;;  %v4295_v40 = vpack.c.bf16 %v4279_v5, %v4279_v5 }
 0xa0b   :  { %v4294_v34 = vpack.c.bf16 %v4278_v0, %v4278_v0  ;;  %v4296_v35 = vpack.c.bf16 %v4280_v33, %v4280_v33  ;;  %6539 = vmatpush3.bf16.msra.mxu1 %v6913_v28  ;;  %6561 = vmatpush3.bf16.msra.mxu0 %v6914_v29 }
 0xa0c   :  { %6568 = vmatprep.subr.bf16.mxu1 %v6915_v31  ;;  %6590 = vmatprep.subr.bf16.mxu0 %v6916_v32  ;;  %v6109_v32 = vld [vmem:[#allocation5 + $0x1c] ss:$0 sm:$0xff] }
 0xa0d   :  { %5523 = vmatprep.mubr.bf16.mxu1 %v4294_v34  ;;  %5563 = vmatprep.mubr.bf16.mxu0 %v4296_v35 }
 0xa0e   :  { %5524 = vmatmul.mubr.bf16.vlgmr.msra.gmra.mrb[60].mxu1 %v4293_v39  ;;  %5564 = vmatmul.mubr.bf16.vlgmr.msra.gmra.mrb[64].mxu0 %v4295_v40 }
 0xa0f   :  { %6569 = vmatpush3.bf16.msra.mxu1 %v6917_v36  ;;  %6591 = vmatpush3.bf16.msra.mxu0 %v6918_v37 }
 0xa10   :  { %6570 = vmatprep.subr.bf16.mxu1 %v6919_v41  ;;  %6592 = vmatprep.subr.bf16.mxu0 %v6920_v42 }
 0xa13   :  { %6571 = vmatpush3.bf16.msra.mxu1 %v6921_v43  ;;  %6593 = vmatpush3.bf16.msra.mxu0 %v6922_v44 }
 0xa14   :  { %6572 = vmatprep.subr.bf16.mxu1 %v6923_v45  ;;  %6594 = vmatprep.subr.bf16.mxu0 %v6924_v27 }
 0xa17   :  { %6573 = vmatpush3.bf16.msra.mxu1 %v6925_v46  ;;  %6595 = vmatpush3.bf16.msra.mxu0 %v6926_v47 }
 0xa18   :  { %6574 = vmatprep.subr.bf16.mxu1 %v6927_v48  ;;  %6596 = vmatprep.subr.bf16.mxu0 %v6928_v49 }
 0xa1b   :  { %6575 = vmatpush3.bf16.msra.mxu1 %v6929_v6  ;;  %6597 = vmatpush3.bf16.msra.mxu0 %v6930_v50 }
 0xa1c   :  { %6576 = vmatprep.subr.bf16.mxu1 %v6931_v54  ;;  %6598 = vmatprep.subr.bf16.mxu0 %v6932_v55 }
 0xa1f   :  { %6577 = vmatpush3.bf16.msra.mxu1 %v6933_v22  ;;  %6599 = vmatpush3.bf16.msra.mxu0 %v6934_v56 }
 0xa20   :  { %6578 = vmatprep.subr.bf16.mxu1 %v6935_v57  ;;  %6600 = vmatprep.subr.bf16.mxu0 %v6936_v58 }
 0xa23   :  { %6579 = vmatpush3.bf16.msra.mxu1 %v6937_v59  ;;  %6601 = vmatpush3.bf16.msra.mxu0 %v6938_v51 }
 0xa24   :  { %6580 = vmatprep.subr.bf16.mxu1 %v6939_v60  ;;  %6602 = vmatprep.subr.bf16.mxu0 %v6940_v61 }
 0xa25   :  { %v4221_v9 = vpop.f32.mrb[48].mxu1  ;;  %v4262_v10 = vpop.f32.mrb[52].mxu0 }
 0xa26   :  { %v4222_v13 = vadd.f32 %v4221_v9, %v3272_v38  ;;  %v4263_v11 = vadd.f32 %v4262_v10, %v3280_v1  ;;  %v4223_v12 = vpop.f32.mrb[49].mxu1  ;;  %v4264_v14 = vpop.f32.mrb[53].mxu0 }
 0xa27   :  { %v4224_v25 = vadd.f32 %v4223_v12, %v3276_v2  ;;  %v4265_v62 = vadd.f32 %v4264_v14, %v3284_v3  ;;  %v4225_v15 = vpop.f32.mrb[50].mxu1  ;;  %v4266_v26 = vpop.f32.mrb[54].mxu0  ;;  %6581 = vmatpush3.bf16.msra.mxu1 %v6941_v4  ;;  %6603 = vmatpush3.bf16.msra.mxu0 %v6942_v53 }
 0xa28   :  { %v4281_v63 = vmax.f32 %v4222_v13, 0.0  ;;  %v4283_v16 = vmax.f32 %v4263_v11, 0.0  ;;  %v4226_v19 = vpop.f32.mrb[51].mxu1  ;;  %v4267_v20 = vpop.f32.mrb[55].mxu0  ;;  %6582 = vmatprep.subr.bf16.mxu1 %v6943_v7  ;;  %6604 = vmatprep.subr.bf16.mxu0 %v6944_v8 }
 0xa29   :  { %v4282_v21 = vmax.f32 %v4224_v25, 0.0  ;;  %v4284_v28 = vmax.f32 %v4265_v62, 0.0 }
 0xa2a   :  { %v4297_v5 = vpack.c.bf16 %v4281_v63, %v4281_v63  ;;  %v4299_v30 = vpack.c.bf16 %v4283_v16, %v4283_v16 }
 0xa2b   :  { %v4298_v29 = vpack.c.bf16 %v4282_v21, %v4282_v21  ;;  %v4300_v23 = vpack.c.bf16 %v4284_v28, %v4284_v28  ;;  %6583 = vmatpush3.bf16.msra.mxu1 %v6945_v17  ;;  %6605 = vmatpush3.bf16.msra.mxu0 %v6946_v18  ;;  %v6238_v28 = vld [vmem:[#allocation5 + $0x1a] ss:$0 sm:$0xff] }
 0xa2d   :  { %5603 = vmatprep.mubr.bf16.mxu1 %v4298_v29  ;;  %5643 = vmatprep.mubr.bf16.mxu0 %v4300_v23  ;;  %v6239_v23 = vld [vmem:[#allocation5 + $0x1b] ss:$0 sm:$0xff] }
 0xa2e   :  { %5604 = vmatmul.mubr.bf16.vlgmr.msra.gmra.mrb[64].mxu1 %v4297_v5  ;;  %5644 = vmatmul.mubr.bf16.vlgmr.msra.gmra.mrb[68].mxu0 %v4299_v30 }
 0xaa1   :  { %v6452_v24 = vpop.f32.mrb[52].mxu1  ;;  %v6474_v31 = vpop.f32.mrb[56].mxu0 }
 0xaa2   :  { %v6453_v0 = vpop.f32.mrb[53].mxu1  ;;  %v6475_v33 = vpop.f32.mrb[57].mxu0 }
 0xaa3   :  { %v6454_v34 = vadd.f32 %v6453_v0, %v6452_v24  ;;  %v6476_v35 = vadd.f32 %v6475_v33, %v6474_v31  ;;  %v6455_v36 = vpop.f32.mrb[54].mxu1  ;;  %v6477_v37 = vpop.f32.mrb[58].mxu0 }
 0xaa4   :  { %v6456_v39 = vpop.f32.mrb[55].mxu1  ;;  %v6478_v40 = vpop.f32.mrb[59].mxu0 }
 0xaa5   :  { %v5366_v41 = vadd.f32 %v6454_v34, %v6109_v32 }
 0xaa7   :  { %v5406_v42 = vadd.f32 %v6476_v35, %v5366_v41 }
 0xac1   :  { %v6496_v43 = vpop.f32.mrb[56].mxu1  ;;  %v6518_v44 = vpop.f32.mrb[60].mxu0 }
 0xac2   :  { %v6497_v45 = vpop.f32.mrb[57].mxu1  ;;  %v6519_v27 = vpop.f32.mrb[61].mxu0 }
 0xac3   :  { %v6498_v46 = vadd.f32 %v6497_v45, %v6496_v43  ;;  %v6520_v47 = vadd.f32 %v6519_v27, %v6518_v44  ;;  %v6499_v48 = vpop.f32.mrb[58].mxu1  ;;  %v6521_v49 = vpop.f32.mrb[62].mxu0 }
 0xac4   :  { %v6500_v6 = vpop.f32.mrb[59].mxu1  ;;  %v6522_v50 = vpop.f32.mrb[63].mxu0 }
 0xac5   :  { %v5446_v54 = vadd.f32 %v6498_v46, %v5406_v42 }
 0xac7   :  { %v5486_v55 = vadd.f32 %v6520_v47, %v5446_v54 }
 0xae1   :  { %v6540_v22 = vpop.f32.mrb[60].mxu1  ;;  %v6562_v56 = vpop.f32.mrb[64].mxu0 }
 0xae2   :  { %v6541_v57 = vpop.f32.mrb[61].mxu1  ;;  %v6563_v58 = vpop.f32.mrb[65].mxu0 }
 0xae3   :  { %v6542_v59 = vadd.f32 %v6541_v57, %v6540_v22  ;;  %v6564_v51 = vadd.f32 %v6563_v58, %v6562_v56  ;;  %v6543_v60 = vpop.f32.mrb[62].mxu1  ;;  %v6565_v61 = vpop.f32.mrb[66].mxu0 }
 0xae4   :  { %v6544_v38 = vpop.f32.mrb[63].mxu1  ;;  %v6566_v1 = vpop.f32.mrb[67].mxu0 }
 0xae5   :  { %v5526_v2 = vadd.f32 %v6542_v59, %v5486_v55 }
 0xae7   :  { %v5566_v3 = vadd.f32 %v6564_v51, %v5526_v2 }
 0xb01   :  { %v6584_v4 = vpop.f32.mrb[64].mxu1  ;;  %v6606_v53 = vpop.f32.mrb[68].mxu0 }
 0xb02   :  { %v6585_v7 = vpop.f32.mrb[65].mxu1  ;;  %v6607_v8 = vpop.f32.mrb[69].mxu0 }
 0xb03   :  { %v6586_v9 = vadd.f32 %v6585_v7, %v6584_v4  ;;  %v6608_v10 = vadd.f32 %v6607_v8, %v6606_v53  ;;  %v6587_v13 = vpop.f32.mrb[66].mxu1  ;;  %v6609_v11 = vpop.f32.mrb[70].mxu0 }
 0xb04   :  { %v6588_v12 = vpop.f32.mrb[67].mxu1  ;;  %v6610_v14 = vpop.f32.mrb[71].mxu0 }
 0xb05   :  { %v5606_v25 = vadd.f32 %v6586_v9, %v5566_v3 }
 0xb07   :  { %v5646_v62 = vadd.f32 %v6608_v10, %v5606_v25 }
 0xb09   :  { %v5651_v15 = vadd.f32 %v5646_v62, %v7516_v52 }
 0xb0b   :  { %5652 = vadd.xlane.f32.xlu0 %v5651_v15 }
 0xb98   :  { %v5653_v26 = vpop.xlane.xlu0 %5652 }
 0xb99   :  { %v5654_v17 = vmul.f32 0.0078125, %v5653_v26 }
 0xb9b   :  { %v5655_v18 = vsub.f32 %v5651_v15, %v5654_v17 }
 0xb9d   :  { %v5656_v63 = vmul.f32 %v5655_v18, %v5655_v18 }
 0xb9f   :  { %5657 = vadd.xlane.f32.xlu1 %v5656_v63 }
 0xc2c   :  { %v5658_v16 = vpop.xlane.xlu1 %5657 }
 0xc2d   :  { %v5659_v19 = vmul.f32 0.0078125, %v5658_v16 }
 0xc2f   :  { %v5660_v20 = vadd.f32 1e-05, %v5659_v19 }
 0xc31   :  { %6953 = vrsqrt.f32 %v5660_v20 }
 0xc3b   :  { %v6954_v21 = vpop.eup %6953 }
 0xc3c   :  { %v5662_v29 = vmul.f32 %v6954_v21, %v5655_v18 }
 0xc3e   :  { %v5669_v5 = vmul.f32 %v6238_v28, %v5662_v29 }
 0xc40   :  { %v5676_v30 = vadd.f32 %v6239_v23, %v5669_v5 }
 0xc42   :  { %5677 = vst [vmem:[#allocation17] sm:$0xff] %v5676_v30 }
 0xc43   :  { %7164 = shalt.err (!%p7161_p6)
}
 0xc44   :  { %s7165_s27 = scalar_lea.hbm %s7594_s9, 128 }
 0xc45   :  { %p7166_p7 = scmp.ne.s32.totalorder %s7594_s9, %s7165_s27  ;;  %p7169_p8 = scmp.lt.u32.totalorder %s7165_s27, %s7594_s9 }
 0xc47   :  { %p7171_p9 = pnand %p7169_p8, %p7166_p7 }
 0xc49   :  { %7174 = shalt.err (!%p7171_p9)
}
 0xc4a   :  { %5687 = dma.vmem_to_hbm [thread:$0]  %s5685_s10, 128, %s7594_s9, [#allocation4]  }
 0xc4b   :  { %7185 = dma.done.wait [#allocation4], 128  }
 0xc4c   :  { %7186 = vsyncadd [#allocation4], 4294967168 }
 0xc4d   :  { %5691 = vsyncpa [#allocation3], 1 }
 0xc4e   :  { %5692 = vsyncpa [#allocation6], 1 }
 0xc4f   :  { %5693 = vsyncpa [#allocation9], 1 }
 0xc50   :  { %5694 = vsyncpa [#allocation12], 1 }
 0xc51   :  { %5695 = vsyncpa [#allocation15], 1 }
 0xc52   :  { %5696 = vsyncpa [#allocation4], 1 }

// kernel: tpu_custom_call.1
= control target key start
LH: loop header
LB: loop body
LE: loop exit
PB: predicated region body
PF: predicated region fallthrough
CT: control target
= control target key end

     0   :  { %14 = vsyncpa [#allocation3], 0  ;;  %s7585_s0 = inlined_call_operand.hbm [shape: bf16[8,16], index: 0, kind: input, shape index: {}]   ;;  %s7586_s1 = inlined_call_operand.hbm [shape: f32[1,5760], index: 1, kind: input, shape index: {}]   ;;  %s7587_s2 = inlined_call_operand.hbm [shape: bf16[16,128], index: 2, kind: input, shape index: {}]   ;;  %s7588_s3 = inlined_call_operand.hbm [shape: bf16[128,128], index: 3, kind: input, shape index: {}]   ;;  %s7589_s4 = inlined_call_operand.hbm [shape: bf16[128,2048], index: 4, kind: input, shape index: {}]   ;;  %s7590_s5 = inlined_call_operand.hbm [shape: bf16[2048,128], index: 5, kind: input, shape index: {}]   ;;  %s7591_s6 = inlined_call_operand.hbm [shape: bf16[128,128], index: 6, kind: input, shape index: {}]   ;;  %s7592_s7 = inlined_call_operand.hbm [shape: bf16[128,2048], index: 7, kind: input, shape index: {}]   ;;  %s7593_s8 = inlined_call_operand.hbm [shape: bf16[2048,128], index: 8, kind: input, shape index: {}]   ;;  %s7594_s9 = inlined_call_operand.hbm [shape: f32[8,128], index: 9, kind: output, shape index: {}]  }
   0x1   :  { %15 = vsyncpa [#allocation6], 0 }
   0x2   :  { %16 = vsyncpa [#allocation9], 0 }
   0x3   :  { %17 = vsyncpa [#allocation12], 0 }
   0x4   :  { %18 = vsyncpa [#allocation15], 0 }
   0x5   :  { %19 = vsyncpa [#allocation4], 0  ;;  %s7187_s30 = smov [#allocation5]   ;;  %s6955_s13 = scalar_lea.hbm %s7586_s1, 720 }
   0x6   :  { %s36_s10 = sshll.u32 %s7187_s30, 4  ;;  %p6956_p0 = scmp.ne.s32.totalorder %s7586_s1, %s6955_s13  ;;  %s37_s10 = int_to_ptr.vmem [resolvable:$true] %s36_s10 }
   0x7   :  { %p6959_p1 = scmp.lt.u32.totalorder %s6955_s13, %s7586_s1 }
   0x9   :  { %p6961_p2 = pnand %p6959_p1, %p6956_p0 }
   0xb   :  { %6964 = shalt.err (!%p6961_p2)
}
   0xc   :  { %s6965_s18 = scalar_lea.vmem %s37_s10, 720  ;;  %s6969_s19 = scalar_lea.vmem %s37_s10, 736 }
   0xd   :  { %p6966_p3 = scmp.ne.s32.totalorder %s37_s10, %s6965_s18  ;;  %p6970_p4 = scmp.lt.s32.totalorder %s37_s10, %s37_s10 }
   0xe   :  { %p6971_p5 = scmp.lt.s32.totalorder %s6969_s19, %s6965_s18 }
  0x10   :  { %p6972_p6 = por %p6971_p5, %p6970_p4 }
  0x12   :  { %p6973_p7 = pnand %p6972_p6, %p6966_p3 }
  0x14   :  { %6976 = shalt.err (!%p6973_p7)
}
  0x15   :  { %39 = dma.hbm_to_vmem [thread:$0]  %s7586_s1, 720, %s37_s10, [#allocation6]  }
  0x16   :  { %s7188_s22 = smov [#allocation8]   ;;  %s7189_s24 = smov [#allocation11]  }
  0x17   :  { %s57_s23 = sshll.u32 %s7188_s22, 4  ;;  %s81_s25 = sshll.u32 %s7189_s24, 4  ;;  %s58_s23 = int_to_ptr.vmem [resolvable:$true] %s57_s23  ;;  %s82_s25 = int_to_ptr.vmem [resolvable:$true] %s81_s25 }
  0x18   :  { %s6977_s28 = scalar_lea.hbm %s7588_s3, 1024 }
  0x19   :  { %p6978_p8 = scmp.ne.s32.totalorder %s7588_s3, %s6977_s28  ;;  %p6981_p9 = scmp.lt.u32.totalorder %s6977_s28, %s7588_s3 }
  0x1b   :  { %p6983_p10 = pnand %p6981_p9, %p6978_p8 }
  0x1d   :  { %6986 = shalt.err (!%p6983_p10)
}
  0x1e   :  { %s6987_s1 = scalar_lea.vmem %s58_s23, 1024  ;;  %p6992_p12 = scmp.lt.s32.totalorder %s58_s23, %s58_s23 }
  0x1f   :  { %p6988_p11 = scmp.ne.s32.totalorder %s58_s23, %s6987_s1  ;;  %p6993_p13 = scmp.lt.s32.totalorder %s6987_s1, %s6987_s1 }
  0x21   :  { %p6994_p0 = por %p6993_p13, %p6992_p12 }
  0x23   :  { %p6995_p1 = pnand %p6994_p0, %p6988_p11 }
  0x25   :  { %6998 = shalt.err (!%p6995_p1)
}
  0x26   :  { %s7190_s10 = smov 64   ;;  %s7191_s13 = smov 4  }
  0x27   :  { %63 = dma.hbm_to_vmem [thread:$0]  %s7588_s3, 1024, %s58_s23, [#allocation9], %s7190_s10, %s7190_s10, %s7191_s13  }
  0x28   :  { %s6999_s18 = scalar_lea.hbm %s7590_s5, 16384 }
  0x29   :  { %p7000_p2 = scmp.ne.s32.totalorder %s7590_s5, %s6999_s18  ;;  %p7003_p3 = scmp.lt.u32.totalorder %s6999_s18, %s7590_s5 }
  0x2b   :  { %p7005_p4 = pnand %p7003_p3, %p7000_p2 }
  0x2d   :  { %7008 = shalt.err (!%p7005_p4)
}
  0x2e   :  { %s7009_s24 = scalar_lea.vmem %s82_s25, 16384  ;;  %p7014_p6 = scmp.lt.s32.totalorder %s82_s25, %s82_s25 }
  0x2f   :  { %p7010_p5 = scmp.ne.s32.totalorder %s82_s25, %s7009_s24  ;;  %p7015_p7 = scmp.lt.s32.totalorder %s7009_s24, %s7009_s24 }
  0x31   :  { %p7016_p8 = por %p7015_p7, %p7014_p6 }
  0x33   :  { %p7017_p9 = pnand %p7016_p8, %p7010_p5 }
  0x35   :  { %7020 = shalt.err (!%p7017_p9)
}
  0x36   :  { %87 = dma.hbm_to_vmem [thread:$0]  %s7590_s5, 16384, %s82_s25, [#allocation12], %s7190_s10, %s7190_s10, %s7191_s13  }
  0x37   :  { %s7192_s26 = smov [#allocation14]   ;;  %s7193_s28 = smov [#allocation2]  }
  0x38   :  { %s105_s27 = sshll.u32 %s7192_s26, 4  ;;  %s26_s29 = sshll.u32 %s7193_s28, 4  ;;  %s106_s27 = int_to_ptr.vmem [resolvable:$true] %s105_s27  ;;  %s27_s29 = int_to_ptr.vmem [resolvable:$true] %s26_s29 }
  0x39   :  { %s7021_s12 = scalar_lea.hbm %s7592_s7, 16384 }
  0x3a   :  { %p7022_p10 = scmp.ne.s32.totalorder %s7592_s7, %s7021_s12  ;;  %p7025_p11 = scmp.lt.u32.totalorder %s7021_s12, %s7592_s7 }
  0x3c   :  { %p7027_p12 = pnand %p7025_p11, %p7022_p10 }
  0x3e   :  { %7030 = shalt.err (!%p7027_p12)
}
  0x3f   :  { %s7031_s5 = scalar_lea.vmem %s106_s27, 16384  ;;  %p7036_p0 = scmp.lt.s32.totalorder %s106_s27, %s106_s27 }
  0x40   :  { %p7032_p13 = scmp.ne.s32.totalorder %s106_s27, %s7031_s5  ;;  %p7037_p1 = scmp.lt.s32.totalorder %s7031_s5, %s7031_s5 }
  0x42   :  { %p7038_p2 = por %p7037_p1, %p7036_p0 }
  0x44   :  { %p7039_p3 = pnand %p7038_p2, %p7032_p13 }
  0x46   :  { %7042 = shalt.err (!%p7039_p3)
}
  0x47   :  { %s7194_s25 = smov 1024   ;;  %s7043_s21 = scalar_lea.hbm %s7585_s0, 64 }
  0x48   :  { %111 = dma.hbm_to_vmem [thread:$0]  %s7592_s7, 16384, %s106_s27, [#allocation15], %s7194_s25, %s7194_s25, %s7190_s10  }
  0x49   :  { %p7044_p4 = scmp.ne.s32.totalorder %s7585_s0, %s7043_s21  ;;  %p7047_p5 = scmp.lt.u32.totalorder %s7043_s21, %s7585_s0 }
  0x4b   :  { %p7049_p6 = pnand %p7047_p5, %p7044_p4 }
  0x4d   :  { %7052 = shalt.err (!%p7049_p6)
}
  0x4e   :  { %s7053_s26 = scalar_lea.vmem %s27_s29, 64  ;;  %p7058_p8 = scmp.lt.s32.totalorder %s27_s29, %s27_s29 }
  0x4f   :  { %p7054_p7 = scmp.ne.s32.totalorder %s27_s29, %s7053_s26  ;;  %p7059_p9 = scmp.lt.s32.totalorder %s7053_s26, %s7053_s26 }
  0x51   :  { %p7060_p10 = por %p7059_p9, %p7058_p8 }
  0x53   :  { %p7061_p11 = pnand %p7060_p10, %p7054_p7 }
  0x55   :  { %7064 = shalt.err (!%p7061_p11)
}
  0x56   :  { %29 = dma.hbm_to_vmem [thread:$0]  %s7585_s0, 64, %s27_s29, [#allocation3]  }
  0x57   :  { %s7195_s28 = smov [#allocation7]   ;;  %s7196_s11 = smov [#allocation10]  }
  0x58   :  { %s45_s30 = sshll.u32 %s7195_s28, 4  ;;  %s69_s12 = sshll.u32 %s7196_s11, 4  ;;  %s46_s30 = int_to_ptr.vmem [resolvable:$true] %s45_s30  ;;  %s7322_s12 = int_to_ptr.vmem [resolvable:$true] %s69_s12 }
  0x59   :  { %s7065_s15 = scalar_lea.hbm %s7587_s2, 128 }
  0x5a   :  { %p7066_p12 = scmp.ne.s32.totalorder %s7587_s2, %s7065_s15  ;;  %p7069_p13 = scmp.lt.u32.totalorder %s7065_s15, %s7587_s2 }
  0x5c   :  { %p7071_p0 = pnand %p7069_p13, %p7066_p12 }
  0x5e   :  { %7074 = shalt.err (!%p7071_p0)
}
  0x5f   :  { %s7075_s0 = scalar_lea.vmem %s46_s30, 128  ;;  %p7080_p2 = scmp.lt.s32.totalorder %s46_s30, %s46_s30 }
  0x60   :  { %p7076_p1 = scmp.ne.s32.totalorder %s46_s30, %s7075_s0  ;;  %p7081_p3 = scmp.lt.s32.totalorder %s7075_s0, %s7075_s0 }
  0x62   :  { %p7082_p4 = por %p7081_p3, %p7080_p2 }
  0x64   :  { %p7083_p5 = pnand %p7082_p4, %p7076_p1 }
  0x66   :  { %7086 = shalt.err (!%p7083_p5)
}
  0x67   :  { %51 = dma.hbm_to_vmem [thread:$0]  %s7587_s2, 128, %s46_s30, [#allocation6], %s7190_s10, %s7190_s10, %s7191_s13  }
  0x68   :  { %s7087_s22 = scalar_lea.hbm %s7589_s4, 16384 }
  0x69   :  { %p7088_p6 = scmp.ne.s32.totalorder %s7589_s4, %s7087_s22  ;;  %p7091_p7 = scmp.lt.u32.totalorder %s7087_s22, %s7589_s4 }
  0x6b   :  { %p7093_p8 = pnand %p7091_p7, %p7088_p6 }
  0x6d   :  { %7096 = shalt.err (!%p7093_p8)
}
  0x6e   :  { %s7097_s7 = scalar_lea.vmem %s7322_s12, 16384  ;;  %p7102_p10 = scmp.lt.s32.totalorder %s7322_s12, %s7322_s12 }
  0x6f   :  { %p7098_p9 = scmp.ne.s32.totalorder %s7322_s12, %s7097_s7  ;;  %p7103_p11 = scmp.lt.s32.totalorder %s7097_s7, %s7097_s7 }
  0x71   :  { %p7104_p12 = por %p7103_p11, %p7102_p10 }
  0x73   :  { %p7105_p13 = pnand %p7104_p12, %p7098_p9 }
  0x75   :  { %7108 = shalt.err (!%p7105_p13)
}
  0x76   :  { %75 = dma.hbm_to_vmem [thread:$0]  %s7589_s4, 16384, %s7322_s12, [#allocation9], %s7194_s25, %s7194_s25, %s7190_s10  }
  0x77   :  { %s7197_s28 = smov [#allocation13]   ;;  %s7198_s11 = smov [#allocation16]  }
  0x78   :  { %s93_s30 = sshll.u32 %s7197_s28, 4  ;;  %s117_s1 = sshll.u32 %s7198_s11, 4  ;;  %s94_s30 = int_to_ptr.vmem [resolvable:$true] %s93_s30  ;;  %s7359_s1 = int_to_ptr.vmem [resolvable:$true] %s117_s1 }
  0x79   :  { %s7109_s16 = scalar_lea.hbm %s7591_s6, 1024 }
  0x7a   :  { %p7110_p0 = scmp.ne.s32.totalorder %s7591_s6, %s7109_s16  ;;  %p7113_p1 = scmp.lt.u32.totalorder %s7109_s16, %s7591_s6 }
  0x7c   :  { %p7115_p2 = pnand %p7113_p1, %p7110_p0 }
  0x7e   :  { %7118 = shalt.err (!%p7115_p2)
}
  0x7f   :  { %s7119_s4 = scalar_lea.vmem %s94_s30, 1024  ;;  %p7124_p4 = scmp.lt.s32.totalorder %s94_s30, %s94_s30 }
  0x80   :  { %p7120_p3 = scmp.ne.s32.totalorder %s94_s30, %s7119_s4  ;;  %p7125_p5 = scmp.lt.s32.totalorder %s7119_s4, %s7119_s4 }
  0x82   :  { %p7126_p6 = por %p7125_p5, %p7124_p4 }
  0x84   :  { %p7127_p7 = pnand %p7126_p6, %p7120_p3 }
  0x86   :  { %7130 = shalt.err (!%p7127_p7)
}
  0x87   :  { %99 = dma.hbm_to_vmem [thread:$0]  %s7591_s6, 1024, %s94_s30, [#allocation12], %s7190_s10, %s7190_s10, %s7191_s13  }
  0x88   :  { %s7131_s20 = scalar_lea.hbm %s7593_s8, 16384 }
  0x89   :  { %p7132_p8 = scmp.ne.s32.totalorder %s7593_s8, %s7131_s20  ;;  %p7135_p9 = scmp.lt.u32.totalorder %s7131_s20, %s7593_s8 }
  0x8b   :  { %p7137_p10 = pnand %p7135_p9, %p7132_p8 }
  0x8d   :  { %7140 = shalt.err (!%p7137_p10)
}
  0x8e   :  { %s7141_s23 = scalar_lea.vmem %s7359_s1, 16384  ;;  %p7146_p12 = scmp.lt.s32.totalorder %s7359_s1, %s7359_s1 }
  0x8f   :  { %p7142_p11 = scmp.ne.s32.totalorder %s7359_s1, %s7141_s23  ;;  %p7147_p13 = scmp.lt.s32.totalorder %s7141_s23, %s7141_s23 }
  0x91   :  { %p7148_p0 = por %p7147_p13, %p7146_p12 }
  0x93   :  { %p7149_p1 = pnand %p7148_p0, %p7142_p11 }
  0x95   :  { %7152 = shalt.err (!%p7149_p1)
}
  0x96   :  { %123 = dma.hbm_to_vmem [thread:$0]  %s7593_s8, 16384, %s7359_s1, [#allocation15], %s7190_s10, %s7190_s10, %s7191_s13  }
  0x97   :  { %7175 = dma.done.wait [#allocation3], 64  }
  0x98   :  { %7176 = vsyncadd [#allocation3], 4294967232 }
  0x99   :  { %7177 = dma.done.wait [#allocation6], 848  }
  0x9a   :  { %7178 = vsyncadd [#allocation6], 4294966448 }
  0x9b   :  { %7179 = dma.done.wait [#allocation9], 17408  }
  0x9c   :  { %7180 = vsyncadd [#allocation9], 4294949888 }
  0x9d   :  { %7181 = dma.done.wait [#allocation12], 17408  }
  0x9e   :  { %7182 = vsyncadd [#allocation12], 4294949888 }
  0x9f   :  { %7183 = dma.done.wait [#allocation15], 32768  }
  0xa0   :  { %7184 = vsyncadd [#allocation15], 4294934528  ;;  %v7199_v0 = vmov 0.0   ;;  %vm7200_vm0 = vmmov 0   ;;  %v6674_v1 = vld [vmem:[#allocation7] sm:$0xff]   ;;  %vm168_vm1 = vcmask 130048  }
  0xa1   :  { %6612 = vmatprep.subr.bf16.mxu0 %v7199_v0  ;;  %6614 = vmatprep.mubr.msk.bf16.mxu0 %vm7200_vm0, %v7199_v0  ;;  %v152_v2 = vld [vmem:[#allocation2] sm:$0xf]  ;;  %v6677_v5 = vld [vmem:[#allocation8 + $0x10] sm:$0xff]   ;;  %v6678_v6 = vld [vmem:[#allocation8 + $0x18] sm:$0xff]   ;;  %s7202_s8 = smov [#allocation17]  }
  0xa2   :  { %6618 = vmatprep.subr.bf16.mxu1 %v7199_v0  ;;  %6634 = vmatprep.mubr.msk.bf16.mxu1 %vm7200_vm0, %v7199_v0  ;;  %v6675_v3 = vld [vmem:[#allocation8] sm:$0xff]   ;;  %v6676_v4 = vld [vmem:[#allocation8 + $0x8] sm:$0xff]   ;;  %v6681_v9 = vld [vmem:[#allocation8 + $0x30] sm:$0xff]   ;;  %s5684_s10 = sshll.u32 %s7202_s8, 4  ;;  %s5685_s10 = int_to_ptr.vmem [resolvable:$true] %s5684_s10 }
  0xa3   :  { %6613 = vmatpush3.bf16.msra.mxu0 %v6674_v1  ;;  %6619 = vmatpush3.bf16.msra.mxu1 %v6675_v3  ;;  %v6679_v7 = vld [vmem:[#allocation8 + $0x20] sm:$0xff]   ;;  %v6680_v8 = vld [vmem:[#allocation8 + $0x28] sm:$0xff]   ;;  %v6682_v10 = vld [vmem:[#allocation8 + $0x38] sm:$0xff]   ;;  %s7153_s13 = scalar_lea.vmem %s5685_s10, 128  ;;  %p7158_p3 = scmp.lt.s32.totalorder %s5685_s10, %s5685_s10 }
  0xa4   :  { %6620 = vmatprep.subr.bf16.mxu1 %v7199_v0  ;;  %v5697_v11 = vld [vmem:[#allocation5] ss:$0 sm:$0xff]  ;;  %v5700_v18 = vld [vmem:[#allocation5 + $0x1] ss:$0 sm:$0xff]  ;;  %v359_v25 = vld [vmem:[#allocation10] sm:$0xff]  ;;  %p7154_p2 = scmp.ne.s32.totalorder %s5685_s10, %s7153_s13  ;;  %p7159_p4 = scmp.lt.s32.totalorder %s7153_s13, %s7153_s13 }
  0xa5   :  { %v367_v26 = vld [vmem:[#allocation10 + $0x40] sm:$0xff]  ;;  %v360_v27 = vld [vmem:[#allocation10 + $0x8] sm:$0xff] }
  0xa6   :  { %6615 = vmatmul.mubr.msk.bf16.vlgmr.msra.gmra.mrb[0].mxu0 %vm168_vm1, %v152_v2  ;;  %v5711_v28 = vcombine.low %v359_v25, %v367_v26  ;;  %v5712_v29 = vcombine.high %v359_v25, %v367_v26  ;;  %v368_v30 = vld [vmem:[#allocation10 + $0x48] sm:$0xff]  ;;  %v375_v31 = vld [vmem:[#allocation10 + $0x80] sm:$0xff]  ;;  %p7160_p5 = por %p7159_p4, %p7158_p3 }
  0xa7   :  { %6621 = vmatpush3.bf16.msra.mxu1 %v6676_v4  ;;  %v383_v32 = vld [vmem:[#allocation10 + $0xc0] sm:$0xff]  ;;  %v5713_v33 = vcombine.low %v360_v27, %v368_v30  ;;  %v5714_v34 = vcombine.high %v360_v27, %v368_v30  ;;  %v376_v36 = vld [vmem:[#allocation10 + $0x88] sm:$0xff]  ;;  %v361_v30 = vld [vmem:[#allocation10 + $0x10] sm:$0xff] }
  0xa8   :  { %6622 = vmatprep.subr.bf16.mxu1 %v7199_v0  ;;  %v5728_v35 = vcombine.high %v375_v31, %v383_v32  ;;  %v384_v37 = vld [vmem:[#allocation10 + $0xc8] sm:$0xff]  ;;  %v391_v38 = vld [vmem:[#allocation10 + $0x100] sm:$0xff]  ;;  %1209 = vmatprep.subr.bf16.mxu0 %v5712_v29  ;;  %v5727_v43 = vcombine.low %v375_v31, %v383_v32  ;;  %v369_v31 = vld [vmem:[#allocation10 + $0x50] sm:$0xff]  ;;  %p7161_p6 = pnand %p7160_p5, %p7154_p2 }
  0xa9   :  { %v5730_v39 = vcombine.high %v376_v36, %v384_v37  ;;  %v399_v40 = vld [vmem:[#allocation10 + $0x140] sm:$0xff]  ;;  %v392_v41 = vld [vmem:[#allocation10 + $0x108] sm:$0xff]  ;;  %1210 = vmatpush1.bf16.msra.mxu0 %v5711_v28  ;;  %v5729_v44 = vcombine.low %v376_v36, %v384_v37  ;;  %v362_v32 = vld [vmem:[#allocation10 + $0x18] sm:$0xff] }
  0xaa   :  { %v400_v42 = vld [vmem:[#allocation10 + $0x148] sm:$0xff]  ;;  %1211 = vmatprep.subr.bf16.mxu0 %v5728_v35  ;;  %v5744_v45 = vcombine.high %v391_v38, %v399_v40  ;;  %v5743_v47 = vcombine.low %v391_v38, %v399_v40  ;;  %v407_v53 = vld [vmem:[#allocation10 + $0x180] sm:$0xff]  ;;  %v5715_v35 = vcombine.low %v361_v30, %v369_v31  ;;  %v7201_v38 = vmov 0  }
  0xab   :  { %6623 = vmatpush3.bf16.msra.mxu1 %v6677_v5  ;;  %v5746_v46 = vcombine.high %v392_v41, %v400_v42  ;;  %v5745_v48 = vcombine.low %v392_v41, %v400_v42  ;;  %v415_v54 = vld [vmem:[#allocation10 + $0x1c0] sm:$0xff]  ;;  %v408_v55 = vld [vmem:[#allocation10 + $0x188] sm:$0xff]  ;;  %1241 = vmatprep.mubr.bf16.mxu0 %v7201_v38 }
  0xac   :  { %6624 = vmatprep.subr.bf16.mxu1 %v7199_v0  ;;  %v5760_v56 = vcombine.high %v407_v53, %v415_v54  ;;  %v416_v57 = vld [vmem:[#allocation10 + $0x1c8] sm:$0xff]  ;;  %v5759_v58 = vcombine.low %v407_v53, %v415_v54  ;;  %v423_v61 = vld [vmem:[#allocation10 + $0x200] sm:$0xff] }
  0xad   :  { %1212 = vmatpush1.bf16.msra.mxu0 %v5727_v43  ;;  %v5761_v59 = vcombine.low %v408_v55, %v416_v57  ;;  %v5762_v60 = vcombine.high %v408_v55, %v416_v57  ;;  %v431_v62 = vld [vmem:[#allocation10 + $0x240] sm:$0xff]  ;;  %v424_v63 = vld [vmem:[#allocation10 + $0x208] sm:$0xff]  ;;  %v401_v57 = vld [vmem:[#allocation10 + $0x150] sm:$0xff] }
  0xae   :  { %1213 = vmatprep.subr.bf16.mxu0 %v5744_v45  ;;  %v5776_v1 = vcombine.high %v423_v61, %v431_v62  ;;  %v432_v2 = vld [vmem:[#allocation10 + $0x248] sm:$0xff]  ;;  %v5775_v3 = vcombine.low %v423_v61, %v431_v62 }
  0xaf   :  { %6625 = vmatpush3.bf16.msra.mxu1 %v6678_v6  ;;  %v5777_v4 = vcombine.low %v424_v63, %v432_v2  ;;  %v5778_v5 = vcombine.high %v424_v63, %v432_v2  ;;  %v439_v6 = vld [vmem:[#allocation10 + $0x280] sm:$0xff]  ;;  %v480_v26 = vld [vmem:[#allocation10 + $0x3c8] sm:$0xff]  ;;  %v409_v63 = vld [vmem:[#allocation10 + $0x190] sm:$0xff] }
  0xb0   :  { %6626 = vmatprep.subr.bf16.mxu1 %v7199_v0  ;;  %v5709_v43 = vld [vmem:[#allocation5 + $0x2] ss:$0 sm:$0xff]  ;;  %v5710_v45 = vld [vmem:[#allocation5 + $0x3] ss:$0 sm:$0xff]  ;;  %v410_v2 = vld [vmem:[#allocation10 + $0x198] sm:$0xff] }
  0xb1   :  { %1214 = vmatpush1.bf16.msra.mxu0 %v5743_v47  ;;  %v377_v47 = vld [vmem:[#allocation10 + $0x90] sm:$0xff] }
  0xb2   :  { %1215 = vmatprep.subr.bf16.mxu0 %v5760_v56  ;;  %v393_v56 = vld [vmem:[#allocation10 + $0x110] sm:$0xff] }
  0xb3   :  { %6627 = vmatpush3.bf16.msra.mxu1 %v6679_v7  ;;  %v447_v7 = vld [vmem:[#allocation10 + $0x2c0] sm:$0xff]  ;;  %v5748_v61 = vcombine.high %v393_v56, %v401_v57 }
  0xb4   :  { %6628 = vmatprep.subr.bf16.mxu1 %v7199_v0 }
  0xb5   :  { %1216 = vmatpush1.bf16.msra.mxu0 %v5759_v58  ;;  %v394_v58 = vld [vmem:[#allocation10 + $0x118] sm:$0xff] }
  0xb6   :  { %1217 = vmatprep.subr.bf16.mxu0 %v5776_v1  ;;  %v417_v1 = vld [vmem:[#allocation10 + $0x1d0] sm:$0xff] }
  0xb7   :  { %6629 = vmatpush3.bf16.msra.mxu1 %v6680_v8  ;;  %v440_v8 = vld [vmem:[#allocation10 + $0x288] sm:$0xff] }
  0xb8   :  { %6630 = vmatprep.subr.bf16.mxu1 %v7199_v0 }
  0xb9   :  { %1218 = vmatpush1.bf16.msra.mxu0 %v5775_v3  ;;  %v418_v3 = vld [vmem:[#allocation10 + $0x1d8] sm:$0xff] }
  0xbb   :  { %6631 = vmatpush3.bf16.msra.mxu1 %v6681_v9  ;;  %v5792_v9 = vcombine.high %v439_v6, %v447_v7 }
  0xbc   :  { %6632 = vmatprep.subr.bf16.mxu1 %v7199_v0 }
  0xbd   :  { %1219 = vmatprep.subr.bf16.mxu0 %v5792_v9  ;;  %v433_v9 = vld [vmem:[#allocation10 + $0x250] sm:$0xff] }
  0xbf   :  { %6633 = vmatpush3.bf16.msra.mxu1 %v6682_v10  ;;  %v448_v10 = vld [vmem:[#allocation10 + $0x2c8] sm:$0xff] }
  0xc0   :  { %1250 = vmatprep.subr.bf16.mxu1 %v5714_v34  ;;  %v370_v34 = vld [vmem:[#allocation10 + $0x58] sm:$0xff] }
  0xc1   :  { %v5717_v36 = vcombine.low %v362_v32, %v370_v34  ;;  %v5718_v37 = vcombine.high %v362_v32, %v370_v34  ;;  %v473_v32 = vld [vmem:[#allocation10 + $0x390] sm:$0xff]  ;;  %v474_v34 = vld [vmem:[#allocation10 + $0x398] sm:$0xff] }
 0x179   :  { %v206_v12 = vpop.f32.mrb[0].mxu0 }
 0x17a   :  { %v207_v13 = vadd.f32 %v5697_v11, %v206_v12  ;;  %v6616_v14 = vpop.f32.mrb[1].mxu0  ;;  %v5791_v11 = vcombine.low %v439_v6, %v447_v7  ;;  %v5793_v12 = vcombine.low %v440_v8, %v448_v10  ;;  %v5764_v6 = vcombine.high %v409_v63, %v417_v1 }
 0x17b   :  { %v209_v15 = vpop.f32.mrb[2].mxu0  ;;  %v455_v14 = vld [vmem:[#allocation10 + $0x300] sm:$0xff]  ;;  %v5766_v7 = vcombine.high %v410_v2, %v418_v3 }
 0x17c   :  { %v220_v16 = vpack.c.bf16 %v207_v13, %v207_v13  ;;  %v6617_v17 = vpop.f32.mrb[3].mxu0  ;;  %1220 = vmatpush1.bf16.msra.mxu0 %v5791_v11  ;;  %v463_v15 = vld [vmem:[#allocation10 + $0x340] sm:$0xff]  ;;  %v434_v11 = vld [vmem:[#allocation10 + $0x258] sm:$0xff] }
 0x17d   :  { %v5808_v17 = vcombine.high %v455_v14, %v463_v15 }
 0x17e   :  { %6635 = vmatmul.mubr.bf16.vlgmr.msra.gmra.mrb[0].mxu1 %v220_v16  ;;  %v456_v16 = vld [vmem:[#allocation10 + $0x308] sm:$0xff] }
 0x17f   :  { %1251 = vmatpush1.bf16.msra.mxu1 %v5713_v33  ;;  %1221 = vmatprep.subr.bf16.mxu0 %v5808_v17  ;;  %v5716_v33 = vcombine.high %v361_v30, %v369_v31  ;;  %v449_v17 = vld [vmem:[#allocation10 + $0x2d0] sm:$0xff] }
 0x180   :  { %1252 = vmatprep.subr.bf16.mxu1 %v5730_v39  ;;  %1282 = vmatprep.mubr.bf16.mxu1 %v7201_v38 }
 0x183   :  { %1253 = vmatpush1.bf16.msra.mxu1 %v5729_v44 }
 0x184   :  { %1254 = vmatprep.subr.bf16.mxu1 %v5746_v46 }
 0x187   :  { %1255 = vmatpush1.bf16.msra.mxu1 %v5745_v48  ;;  %v385_v48 = vld [vmem:[#allocation10 + $0xd0] sm:$0xff] }
 0x188   :  { %1256 = vmatprep.subr.bf16.mxu1 %v5762_v60  ;;  %v5732_v54 = vcombine.high %v377_v47, %v385_v48 }
 0x18b   :  { %1257 = vmatpush1.bf16.msra.mxu1 %v5761_v59  ;;  %v402_v59 = vld [vmem:[#allocation10 + $0x158] sm:$0xff] }
 0x18c   :  { %1258 = vmatprep.subr.bf16.mxu1 %v5778_v5  ;;  %v5750_v62 = vcombine.high %v394_v58, %v402_v59  ;;  %v5749_v5 = vcombine.low %v394_v58, %v402_v59 }
 0x18f   :  { %1259 = vmatpush1.bf16.msra.mxu1 %v5777_v4  ;;  %v5747_v4 = vcombine.low %v393_v56, %v401_v57 }
 0x251   :  { %v325_v19 = vpop.f32.mrb[0].mxu1 }
 0x252   :  { %v326_v20 = vadd.f32 %v5700_v18, %v325_v19  ;;  %v6636_v21 = vpop.f32.mrb[1].mxu1  ;;  %v464_v18 = vld [vmem:[#allocation10 + $0x348] sm:$0xff]  ;;  %v5807_v19 = vcombine.low %v455_v14, %v463_v15 }
 0x253   :  { %v328_v22 = vpop.f32.mrb[2].mxu1  ;;  %v5810_v21 = vcombine.high %v456_v16, %v464_v18 }
 0x254   :  { %v6637_v23 = vpop.f32.mrb[3].mxu1  ;;  %v331_v24 = vadd.f32 %v326_v20, %v207_v13  ;;  %v5794_v13 = vcombine.high %v440_v8, %v448_v10  ;;  %v5809_v20 = vcombine.low %v456_v16, %v464_v18  ;;  %1222 = vmatpush1.bf16.msra.mxu0 %v5807_v19  ;;  %v471_v22 = vld [vmem:[#allocation10 + $0x380] sm:$0xff]  ;;  %v425_v8 = vld [vmem:[#allocation10 + $0x210] sm:$0xff]  ;;  %v426_v10 = vld [vmem:[#allocation10 + $0x218] sm:$0xff] }
 0x255   :  { %v479_v23 = vld [vmem:[#allocation10 + $0x3c0] sm:$0xff]  ;;  %v5780_v14 = vcombine.high %v425_v8, %v433_v9  ;;  %v5782_v15 = vcombine.high %v426_v10, %v434_v11  ;;  %v441_v16 = vld [vmem:[#allocation10 + $0x290] sm:$0xff]  ;;  %v442_v18 = vld [vmem:[#allocation10 + $0x298] sm:$0xff] }
 0x256   :  { %332 = vadd.xlane.f32.xlu0 %v331_v24  ;;  %1260 = vmatprep.subr.bf16.mxu1 %v5794_v13  ;;  %v5824_v25 = vcombine.high %v471_v22, %v479_v23  ;;  %v5823_v27 = vcombine.low %v471_v22, %v479_v23  ;;  %v5765_v13 = vcombine.low %v410_v2, %v418_v3  ;;  %v450_v19 = vld [vmem:[#allocation10 + $0x2d8] sm:$0xff] }
 0x257   :  { %1261 = vmatpush1.bf16.msra.mxu1 %v5793_v12  ;;  %v5763_v12 = vcombine.low %v409_v63, %v417_v1  ;;  %v5796_v22 = vcombine.high %v441_v16, %v449_v17  ;;  %v5798_v23 = vcombine.high %v442_v18, %v450_v19 }
 0x258   :  { %1262 = vmatprep.subr.bf16.mxu1 %v5810_v21  ;;  %1223 = vmatprep.subr.bf16.mxu0 %v5824_v25  ;;  %v5781_v21 = vcombine.low %v426_v10, %v434_v11  ;;  %v465_v25 = vld [vmem:[#allocation10 + $0x350] sm:$0xff] }
 0x259   :  { %1224 = vmatpush1.bf16.msra.mxu0 %v5823_v27  ;;  %v466_v27 = vld [vmem:[#allocation10 + $0x358] sm:$0xff] }
 0x25a   :  { %1291 = vmatprep.subr.bf16.mxu0 %v5716_v33  ;;  %v481_v33 = vld [vmem:[#allocation10 + $0x3d0] sm:$0xff] }
 0x25b   :  { %1263 = vmatpush1.bf16.msra.mxu1 %v5809_v20  ;;  %v5779_v20 = vcombine.low %v425_v8, %v433_v9 }
 0x2e3   :  { %v333_v49 = vpop.xlane.xlu0 %332 }
 0x2e4   :  { %v335_v50 = vmul.f32 0.0078125, %v333_v49  ;;  %v378_v49 = vld [vmem:[#allocation10 + $0x98] sm:$0xff] }
 0x2e6   :  { %v7409_v51 = vsub.f32 %v331_v24, %v335_v50  ;;  %v472_v24 = vld [vmem:[#allocation10 + $0x388] sm:$0xff]  ;;  %v386_v50 = vld [vmem:[#allocation10 + $0xd8] sm:$0xff] }
 0x2e7   :  { %v5825_v28 = vcombine.low %v472_v24, %v480_v26  ;;  %v5826_v29 = vcombine.high %v472_v24, %v480_v26  ;;  %v5734_v55 = vcombine.high %v378_v49, %v386_v50  ;;  %v5733_v60 = vcombine.low %v378_v49, %v386_v50  ;;  %v457_v24 = vld [vmem:[#allocation10 + $0x310] sm:$0xff]  ;;  %v458_v26 = vld [vmem:[#allocation10 + $0x318] sm:$0xff]  ;;  %v379_v49 = vld [vmem:[#allocation10 + $0xa0] sm:$0xff] }
 0x2e8   :  { %v337_v52 = vmul.f32 %v7409_v51, %v7409_v51  ;;  %v5812_v30 = vcombine.high %v457_v24, %v465_v25  ;;  %v5814_v31 = vcombine.high %v458_v26, %v466_v27  ;;  %v387_v50 = vld [vmem:[#allocation10 + $0xe0] sm:$0xff] }
 0x2e9   :  { %1264 = vmatprep.subr.bf16.mxu1 %v5826_v29  ;;  %v5797_v29 = vcombine.low %v442_v18, %v450_v19  ;;  %v5736_v58 = vcombine.high %v379_v49, %v387_v50  ;;  %v5735_v63 = vcombine.low %v379_v49, %v387_v50 }
 0x2ea   :  { %338 = vadd.xlane.f32.xlu0 %v337_v52  ;;  %1265 = vmatpush1.bf16.msra.mxu1 %v5825_v28  ;;  %v5795_v28 = vcombine.low %v441_v16, %v449_v17 }
 0x2eb   :  { %1332 = vmatprep.subr.bf16.mxu1 %v5718_v37  ;;  %v5813_v37 = vcombine.low %v458_v26, %v466_v27 }
 0x377   :  { %v339_v39 = vpop.xlane.xlu0 %338 }
 0x378   :  { %v340_v40 = vmul.f32 0.0078125, %v339_v39  ;;  %v5828_v39 = vcombine.high %v473_v32, %v481_v33 }
 0x37a   :  { %v341_v41 = vadd.f32 1e-05, %v340_v40 }
 0x37c   :  { %6947 = vrsqrt.f32 %v341_v41  ;;  %v363_v41 = vld [vmem:[#allocation10 + $0x20] sm:$0xff] }
 0x386   :  { %v6948_v42 = vpop.eup %6947 }
 0x387   :  { %v343_v44 = vmul.f32 %v6948_v42, %v7409_v51  ;;  %v5731_v51 = vcombine.low %v377_v47, %v385_v48  ;;  %v371_v42 = vld [vmem:[#allocation10 + $0x60] sm:$0xff] }
 0x388   :  { %v5720_v47 = vcombine.high %v363_v41, %v371_v42  ;;  %v5719_v56 = vcombine.low %v363_v41, %v371_v42 }
 0x389   :  { %v350_v46 = vmul.f32 %v5709_v43, %v343_v44  ;;  %v364_v43 = vld [vmem:[#allocation10 + $0x28] sm:$0xff] }
 0x38a   :  { %v372_v44 = vld [vmem:[#allocation10 + $0x68] sm:$0xff] }
 0x38b   :  { %v7416_v52 = vadd.f32 %v5710_v45, %v350_v46  ;;  %v5827_v45 = vcombine.low %v473_v32, %v481_v33  ;;  %v5722_v48 = vcombine.high %v364_v43, %v372_v44  ;;  %v5721_v57 = vcombine.low %v364_v43, %v372_v44 }
 0x38d   :  { %v7420_v53 = vpack.c.bf16 %v7416_v52, %v7416_v52 }
 0x38f   :  { %1242 = vmatmul.mubr.bf16.vlgmr.msra.gmra.mrb[4].mxu0 %v7420_v53  ;;  %1283 = vmatmul.mubr.bf16.vlgmr.msra.gmra.mrb[4].mxu1 %v7420_v53 }
 0x390   :  { %1292 = vmatpush1.bf16.msra.mxu0 %v5715_v35  ;;  %1333 = vmatpush1.bf16.msra.mxu1 %v5717_v36  ;;  %v482_v35 = vld [vmem:[#allocation10 + $0x3d8] sm:$0xff]  ;;  %v5811_v36 = vcombine.low %v457_v24, %v465_v25 }
 0x391   :  { %1293 = vmatprep.subr.bf16.mxu0 %v5732_v54  ;;  %1334 = vmatprep.subr.bf16.mxu1 %v5734_v55  ;;  %v5830_v40 = vcombine.high %v474_v34, %v482_v35  ;;  %v5829_v46 = vcombine.low %v474_v34, %v482_v35  ;;  %v380_v54 = vld [vmem:[#allocation10 + $0xa8] sm:$0xff] }
 0x392   :  { %1323 = vmatprep.mubr.bf16.mxu0 %v7201_v38  ;;  %1364 = vmatprep.mubr.bf16.mxu1 %v7201_v38  ;;  %v388_v55 = vld [vmem:[#allocation10 + $0xe8] sm:$0xff] }
 0x393   :  { %v5738_v59 = vcombine.high %v380_v54, %v388_v55  ;;  %v5737_v1 = vcombine.low %v380_v54, %v388_v55 }
 0x394   :  { %1294 = vmatpush1.bf16.msra.mxu0 %v5731_v51  ;;  %1335 = vmatpush1.bf16.msra.mxu1 %v5733_v60  ;;  %v395_v51 = vld [vmem:[#allocation10 + $0x120] sm:$0xff] }
 0x395   :  { %1295 = vmatprep.subr.bf16.mxu0 %v5748_v61  ;;  %1336 = vmatprep.subr.bf16.mxu1 %v5750_v62  ;;  %v403_v60 = vld [vmem:[#allocation10 + $0x160] sm:$0xff]  ;;  %v396_v61 = vld [vmem:[#allocation10 + $0x128] sm:$0xff] }
 0x396   :  { %v404_v62 = vld [vmem:[#allocation10 + $0x168] sm:$0xff]  ;;  %v5752_v2 = vcombine.high %v395_v51, %v403_v60  ;;  %v5751_v8 = vcombine.low %v395_v51, %v403_v60 }
 0x397   :  { %v5754_v3 = vcombine.high %v396_v61, %v404_v62  ;;  %v5753_v9 = vcombine.low %v396_v61, %v404_v62 }
 0x398   :  { %1296 = vmatpush1.bf16.msra.mxu0 %v5747_v4  ;;  %1337 = vmatpush1.bf16.msra.mxu1 %v5749_v5  ;;  %v411_v4 = vld [vmem:[#allocation10 + $0x1a0] sm:$0xff] }
 0x399   :  { %1297 = vmatprep.subr.bf16.mxu0 %v5764_v6  ;;  %1338 = vmatprep.subr.bf16.mxu1 %v5766_v7  ;;  %v419_v5 = vld [vmem:[#allocation10 + $0x1e0] sm:$0xff]  ;;  %v412_v6 = vld [vmem:[#allocation10 + $0x1a8] sm:$0xff] }
 0x39a   :  { %v420_v7 = vld [vmem:[#allocation10 + $0x1e8] sm:$0xff]  ;;  %v5768_v10 = vcombine.high %v411_v4, %v419_v5  ;;  %v5767_v16 = vcombine.low %v411_v4, %v419_v5 }
 0x39b   :  { %v5770_v11 = vcombine.high %v412_v6, %v420_v7  ;;  %v5769_v17 = vcombine.low %v412_v6, %v420_v7 }
 0x39c   :  { %1298 = vmatpush1.bf16.msra.mxu0 %v5763_v12  ;;  %1339 = vmatpush1.bf16.msra.mxu1 %v5765_v13  ;;  %v427_v12 = vld [vmem:[#allocation10 + $0x220] sm:$0xff] }
 0x39d   :  { %1299 = vmatprep.subr.bf16.mxu0 %v5780_v14  ;;  %1340 = vmatprep.subr.bf16.mxu1 %v5782_v15  ;;  %v435_v13 = vld [vmem:[#allocation10 + $0x260] sm:$0xff]  ;;  %v428_v14 = vld [vmem:[#allocation10 + $0x228] sm:$0xff] }
 0x39e   :  { %v436_v15 = vld [vmem:[#allocation10 + $0x268] sm:$0xff]  ;;  %v5784_v18 = vcombine.high %v427_v12, %v435_v13  ;;  %v5783_v24 = vcombine.low %v427_v12, %v435_v13 }
 0x39f   :  { %v5786_v19 = vcombine.high %v428_v14, %v436_v15  ;;  %v5785_v25 = vcombine.low %v428_v14, %v436_v15 }
 0x3a0   :  { %1300 = vmatpush1.bf16.msra.mxu0 %v5779_v20  ;;  %1341 = vmatpush1.bf16.msra.mxu1 %v5781_v21  ;;  %v443_v20 = vld [vmem:[#allocation10 + $0x2a0] sm:$0xff] }
 0x3a1   :  { %1301 = vmatprep.subr.bf16.mxu0 %v5796_v22  ;;  %1342 = vmatprep.subr.bf16.mxu1 %v5798_v23  ;;  %v451_v21 = vld [vmem:[#allocation10 + $0x2e0] sm:$0xff]  ;;  %v444_v22 = vld [vmem:[#allocation10 + $0x2a8] sm:$0xff] }
 0x3a2   :  { %v452_v23 = vld [vmem:[#allocation10 + $0x2e8] sm:$0xff]  ;;  %v5800_v26 = vcombine.high %v443_v20, %v451_v21  ;;  %v5799_v32 = vcombine.low %v443_v20, %v451_v21 }
 0x3a3   :  { %v5802_v27 = vcombine.high %v444_v22, %v452_v23  ;;  %v5801_v33 = vcombine.low %v444_v22, %v452_v23 }
 0x3a4   :  { %1302 = vmatpush1.bf16.msra.mxu0 %v5795_v28  ;;  %1343 = vmatpush1.bf16.msra.mxu1 %v5797_v29  ;;  %v459_v28 = vld [vmem:[#allocation10 + $0x320] sm:$0xff] }
 0x3a5   :  { %1303 = vmatprep.subr.bf16.mxu0 %v5812_v30  ;;  %1344 = vmatprep.subr.bf16.mxu1 %v5814_v31  ;;  %v467_v29 = vld [vmem:[#allocation10 + $0x360] sm:$0xff]  ;;  %v460_v30 = vld [vmem:[#allocation10 + $0x328] sm:$0xff] }
 0x3a6   :  { %v468_v31 = vld [vmem:[#allocation10 + $0x368] sm:$0xff]  ;;  %v5816_v34 = vcombine.high %v459_v28, %v467_v29  ;;  %v5815_v41 = vcombine.low %v459_v28, %v467_v29 }
 0x3a7   :  { %v5818_v35 = vcombine.high %v460_v30, %v468_v31  ;;  %v5817_v42 = vcombine.low %v460_v30, %v468_v31 }
 0x3a8   :  { %1304 = vmatpush1.bf16.msra.mxu0 %v5811_v36  ;;  %1345 = vmatpush1.bf16.msra.mxu1 %v5813_v37  ;;  %v475_v36 = vld [vmem:[#allocation10 + $0x3a0] sm:$0xff] }
 0x3a9   :  { %1305 = vmatprep.subr.bf16.mxu0 %v5828_v39  ;;  %1346 = vmatprep.subr.bf16.mxu1 %v5830_v40  ;;  %v483_v37 = vld [vmem:[#allocation10 + $0x3e0] sm:$0xff]  ;;  %v476_v39 = vld [vmem:[#allocation10 + $0x3a8] sm:$0xff] }
 0x3aa   :  { %v484_v40 = vld [vmem:[#allocation10 + $0x3e8] sm:$0xff]  ;;  %v5832_v43 = vcombine.high %v475_v36, %v483_v37  ;;  %v5831_v49 = vcombine.low %v475_v36, %v483_v37 }
 0x3ab   :  { %v5834_v44 = vcombine.high %v476_v39, %v484_v40  ;;  %v5833_v50 = vcombine.low %v476_v39, %v484_v40 }
 0x3ac   :  { %1306 = vmatpush1.bf16.msra.mxu0 %v5827_v45  ;;  %1347 = vmatpush1.bf16.msra.mxu1 %v5829_v46  ;;  %v365_v45 = vld [vmem:[#allocation10 + $0x30] sm:$0xff] }
 0x3ad   :  { %1373 = vmatprep.subr.bf16.mxu0 %v5720_v47  ;;  %1414 = vmatprep.subr.bf16.mxu1 %v5722_v48  ;;  %v373_v46 = vld [vmem:[#allocation10 + $0x70] sm:$0xff]  ;;  %v366_v47 = vld [vmem:[#allocation10 + $0x38] sm:$0xff] }
 0x3ae   :  { %v374_v48 = vld [vmem:[#allocation10 + $0x78] sm:$0xff]  ;;  %v5724_v54 = vcombine.high %v365_v45, %v373_v46  ;;  %v5723_v51 = vcombine.low %v365_v45, %v373_v46 }
 0x3af   :  { %1324 = vmatmul.mubr.bf16.vlgmr.msra.gmra.mrb[8].mxu0 %v7420_v53  ;;  %1365 = vmatmul.mubr.bf16.vlgmr.msra.gmra.mrb[8].mxu1 %v7420_v53  ;;  %v5726_v55 = vcombine.high %v366_v47, %v374_v48  ;;  %v5725_v60 = vcombine.low %v366_v47, %v374_v48 }
 0x3b0   :  { %1374 = vmatpush1.bf16.msra.mxu0 %v5719_v56  ;;  %1415 = vmatpush1.bf16.msra.mxu1 %v5721_v57  ;;  %v381_v56 = vld [vmem:[#allocation10 + $0xb0] sm:$0xff] }
 0x3b1   :  { %1375 = vmatprep.subr.bf16.mxu0 %v5736_v58  ;;  %1416 = vmatprep.subr.bf16.mxu1 %v5738_v59  ;;  %v389_v57 = vld [vmem:[#allocation10 + $0xf0] sm:$0xff]  ;;  %v382_v58 = vld [vmem:[#allocation10 + $0xb8] sm:$0xff] }
 0x3b2   :  { %1405 = vmatprep.mubr.bf16.mxu0 %v7201_v38  ;;  %1446 = vmatprep.mubr.bf16.mxu1 %v7201_v38  ;;  %v390_v59 = vld [vmem:[#allocation10 + $0xf8] sm:$0xff]  ;;  %v5740_v61 = vcombine.high %v381_v56, %v389_v57  ;;  %v5739_v4 = vcombine.low %v381_v56, %v389_v57  ;;  %v6685_v56 = vld [vmem:[#allocation11] sm:$0xff]  }
 0x3b3   :  { %v5742_v62 = vcombine.high %v382_v58, %v390_v59  ;;  %v5741_v5 = vcombine.low %v382_v58, %v390_v59  ;;  %v6686_v57 = vld [vmem:[#allocation11 + $0x80] sm:$0xff]   ;;  %v6687_v58 = vld [vmem:[#allocation11 + $0x48] sm:$0xff]  }
 0x3b4   :  { %1376 = vmatpush1.bf16.msra.mxu0 %v5735_v63  ;;  %1417 = vmatpush1.bf16.msra.mxu1 %v5737_v1  ;;  %v397_v63 = vld [vmem:[#allocation10 + $0x130] sm:$0xff]  ;;  %v6688_v59 = vld [vmem:[#allocation11 + $0xc8] sm:$0xff]  }
 0x3b5   :  { %1377 = vmatprep.subr.bf16.mxu0 %v5752_v2  ;;  %1418 = vmatprep.subr.bf16.mxu1 %v5754_v3  ;;  %v405_v1 = vld [vmem:[#allocation10 + $0x170] sm:$0xff]  ;;  %v398_v2 = vld [vmem:[#allocation10 + $0x138] sm:$0xff] }
 0x3b6   :  { %v406_v3 = vld [vmem:[#allocation10 + $0x178] sm:$0xff]  ;;  %v5756_v6 = vcombine.high %v397_v63, %v405_v1  ;;  %v5755_v12 = vcombine.low %v397_v63, %v405_v1  ;;  %v6693_v63 = vld [vmem:[#allocation11 + $0x10] sm:$0xff]  }
 0x3b7   :  { %v5758_v7 = vcombine.high %v398_v2, %v406_v3  ;;  %v5757_v13 = vcombine.low %v398_v2, %v406_v3  ;;  %v6694_v1 = vld [vmem:[#allocation11 + $0x90] sm:$0xff]   ;;  %v6695_v2 = vld [vmem:[#allocation11 + $0x58] sm:$0xff]  }
 0x3b8   :  { %1378 = vmatpush1.bf16.msra.mxu0 %v5751_v8  ;;  %1419 = vmatpush1.bf16.msra.mxu1 %v5753_v9  ;;  %v413_v8 = vld [vmem:[#allocation10 + $0x1b0] sm:$0xff]  ;;  %v6696_v3 = vld [vmem:[#allocation11 + $0xd8] sm:$0xff]  }
 0x3b9   :  { %1379 = vmatprep.subr.bf16.mxu0 %v5768_v10  ;;  %1420 = vmatprep.subr.bf16.mxu1 %v5770_v11  ;;  %v421_v9 = vld [vmem:[#allocation10 + $0x1f0] sm:$0xff]  ;;  %v414_v10 = vld [vmem:[#allocation10 + $0x1b8] sm:$0xff] }
 0x3ba   :  { %v422_v11 = vld [vmem:[#allocation10 + $0x1f8] sm:$0xff]  ;;  %v5772_v14 = vcombine.high %v413_v8, %v421_v9  ;;  %v5771_v20 = vcombine.low %v413_v8, %v421_v9  ;;  %v6702_v8 = vld [vmem:[#allocation11 + $0xa0] sm:$0xff]   ;;  %v6703_v9 = vld [vmem:[#allocation11 + $0x68] sm:$0xff]  }
 0x3bb   :  { %v5774_v15 = vcombine.high %v414_v10, %v422_v11  ;;  %v5773_v21 = vcombine.low %v414_v10, %v422_v11  ;;  %v6704_v10 = vld [vmem:[#allocation11 + $0xe8] sm:$0xff]  }
 0x3bc   :  { %1380 = vmatpush1.bf16.msra.mxu0 %v5767_v16  ;;  %1421 = vmatpush1.bf16.msra.mxu1 %v5769_v17  ;;  %v429_v16 = vld [vmem:[#allocation10 + $0x230] sm:$0xff]  ;;  %v6705_v11 = vld [vmem:[#allocation11 + $0x28] sm:$0xff]  }
 0x3bd   :  { %1381 = vmatprep.subr.bf16.mxu0 %v5784_v18  ;;  %1422 = vmatprep.subr.bf16.mxu1 %v5786_v19  ;;  %v437_v17 = vld [vmem:[#allocation10 + $0x270] sm:$0xff]  ;;  %v430_v18 = vld [vmem:[#allocation10 + $0x238] sm:$0xff] }
 0x3be   :  { %v438_v19 = vld [vmem:[#allocation10 + $0x278] sm:$0xff]  ;;  %v5788_v22 = vcombine.high %v429_v16, %v437_v17  ;;  %v5787_v28 = vcombine.low %v429_v16, %v437_v17  ;;  %v6710_v16 = vld [vmem:[#allocation11 + $0xb0] sm:$0xff]  }
 0x3bf   :  { %v5790_v23 = vcombine.high %v430_v18, %v438_v19  ;;  %v5789_v29 = vcombine.low %v430_v18, %v438_v19  ;;  %v6711_v17 = vld [vmem:[#allocation11 + $0x78] sm:$0xff]  }
 0x3c0   :  { %1382 = vmatpush1.bf16.msra.mxu0 %v5783_v24  ;;  %1423 = vmatpush1.bf16.msra.mxu1 %v5785_v25  ;;  %v445_v24 = vld [vmem:[#allocation10 + $0x2b0] sm:$0xff]  ;;  %v6712_v18 = vld [vmem:[#allocation11 + $0xf8] sm:$0xff]  }
 0x3c1   :  { %1383 = vmatprep.subr.bf16.mxu0 %v5800_v26  ;;  %1424 = vmatprep.subr.bf16.mxu1 %v5802_v27  ;;  %v453_v25 = vld [vmem:[#allocation10 + $0x2f0] sm:$0xff]  ;;  %v446_v26 = vld [vmem:[#allocation10 + $0x2b8] sm:$0xff] }
 0x3c2   :  { %v454_v27 = vld [vmem:[#allocation10 + $0x2f8] sm:$0xff]  ;;  %v5804_v30 = vcombine.high %v445_v24, %v453_v25  ;;  %v5803_v36 = vcombine.low %v445_v24, %v453_v25 }
 0x3c3   :  { %v5806_v31 = vcombine.high %v446_v26, %v454_v27  ;;  %v5805_v37 = vcombine.low %v446_v26, %v454_v27  ;;  %v6713_v19 = vld [vmem:[#allocation11 + $0x38] sm:$0xff]  }
 0x3c4   :  { %1384 = vmatpush1.bf16.msra.mxu0 %v5799_v32  ;;  %1425 = vmatpush1.bf16.msra.mxu1 %v5801_v33  ;;  %v461_v32 = vld [vmem:[#allocation10 + $0x330] sm:$0xff] }
 0x3c5   :  { %1385 = vmatprep.subr.bf16.mxu0 %v5816_v34  ;;  %1426 = vmatprep.subr.bf16.mxu1 %v5818_v35  ;;  %v469_v33 = vld [vmem:[#allocation10 + $0x370] sm:$0xff]  ;;  %v462_v34 = vld [vmem:[#allocation10 + $0x338] sm:$0xff] }
 0x3c6   :  { %v470_v35 = vld [vmem:[#allocation10 + $0x378] sm:$0xff]  ;;  %v5820_v39 = vcombine.high %v461_v32, %v469_v33  ;;  %v5819_v45 = vcombine.low %v461_v32, %v469_v33 }
 0x3c7   :  { %v5822_v40 = vcombine.high %v462_v34, %v470_v35  ;;  %v5821_v46 = vcombine.low %v462_v34, %v470_v35  ;;  %v7444_v27 = vld [vmem:[#allocation5 + $0x7] sm:$0xff] }
 0x3c8   :  { %1386 = vmatpush1.bf16.msra.mxu0 %v5815_v41  ;;  %1427 = vmatpush1.bf16.msra.mxu1 %v5817_v42  ;;  %v477_v41 = vld [vmem:[#allocation10 + $0x3b0] sm:$0xff] }
 0x3c9   :  { %1387 = vmatprep.subr.bf16.mxu0 %v5832_v43  ;;  %1428 = vmatprep.subr.bf16.mxu1 %v5834_v44  ;;  %v485_v42 = vld [vmem:[#allocation10 + $0x3f0] sm:$0xff]  ;;  %v478_v43 = vld [vmem:[#allocation10 + $0x3b8] sm:$0xff] }
 0x3ca   :  { %v486_v44 = vld [vmem:[#allocation10 + $0x3f8] sm:$0xff]  ;;  %v5836_v47 = vcombine.high %v477_v41, %v485_v42 }
 0x3cb   :  { %v5838_v48 = vcombine.high %v478_v43, %v486_v44 }
 0x3cc   :  { %1388 = vmatpush1.bf16.msra.mxu0 %v5831_v49  ;;  %1429 = vmatpush1.bf16.msra.mxu1 %v5833_v50  ;;  %v5835_v49 = vcombine.low %v477_v41, %v485_v42  ;;  %v5837_v50 = vcombine.low %v478_v43, %v486_v44 }
 0x3cd   :  { %1455 = vmatprep.subr.bf16.mxu0 %v5724_v54  ;;  %1496 = vmatprep.subr.bf16.mxu1 %v5726_v55  ;;  %v6683_v54 = vld [vmem:[#allocation11 + $0x40] sm:$0xff]  }
 0x3ce   :  { %v6684_v55 = vld [vmem:[#allocation11 + $0xc0] sm:$0xff]  }
 0x3cf   :  { %1406 = vmatmul.mubr.bf16.vlgmr.msra.gmra.mrb[12].mxu0 %v7420_v53  ;;  %1447 = vmatmul.mubr.bf16.vlgmr.msra.gmra.mrb[12].mxu1 %v7420_v53 }
 0x3d0   :  { %1456 = vmatpush1.bf16.msra.mxu0 %v5723_v51  ;;  %1497 = vmatpush1.bf16.msra.mxu1 %v5725_v60  ;;  %v6689_v51 = vld [vmem:[#allocation11 + $0x8] sm:$0xff]  }
 0x3d1   :  { %1457 = vmatprep.subr.bf16.mxu0 %v5740_v61  ;;  %1498 = vmatprep.subr.bf16.mxu1 %v5742_v62  ;;  %v6690_v60 = vld [vmem:[#allocation11 + $0x88] sm:$0xff]   ;;  %v6691_v61 = vld [vmem:[#allocation11 + $0x50] sm:$0xff]  }
 0x3d2   :  { %1487 = vmatprep.mubr.bf16.mxu0 %v7201_v38  ;;  %1528 = vmatprep.mubr.bf16.mxu1 %v7201_v38  ;;  %v6692_v62 = vld [vmem:[#allocation11 + $0xd0] sm:$0xff]  }
 0x3d4   :  { %1458 = vmatpush1.bf16.msra.mxu0 %v5739_v4  ;;  %1499 = vmatpush1.bf16.msra.mxu1 %v5741_v5  ;;  %v6697_v4 = vld [vmem:[#allocation11 + $0x18] sm:$0xff]   ;;  %v6699_v5 = vld [vmem:[#allocation11 + $0x60] sm:$0xff]  }
 0x3d5   :  { %1459 = vmatprep.subr.bf16.mxu0 %v5756_v6  ;;  %1500 = vmatprep.subr.bf16.mxu1 %v5758_v7  ;;  %v6700_v6 = vld [vmem:[#allocation11 + $0xe0] sm:$0xff]  }
 0x3d6   :  { %v6701_v7 = vld [vmem:[#allocation11 + $0x20] sm:$0xff]  }
 0x3d8   :  { %1460 = vmatpush1.bf16.msra.mxu0 %v5755_v12  ;;  %1501 = vmatpush1.bf16.msra.mxu1 %v5757_v13  ;;  %v6706_v12 = vld [vmem:[#allocation11 + $0xa8] sm:$0xff]   ;;  %v6707_v13 = vld [vmem:[#allocation11 + $0x70] sm:$0xff]  }
 0x3d9   :  { %1461 = vmatprep.subr.bf16.mxu0 %v5772_v14  ;;  %1502 = vmatprep.subr.bf16.mxu1 %v5774_v15  ;;  %v6708_v14 = vld [vmem:[#allocation11 + $0xf0] sm:$0xff]  }
 0x3da   :  { %v6709_v15 = vld [vmem:[#allocation11 + $0x30] sm:$0xff]  }
 0x3dc   :  { %1462 = vmatpush1.bf16.msra.mxu0 %v5771_v20  ;;  %1503 = vmatpush1.bf16.msra.mxu1 %v5773_v21  ;;  %v6714_v20 = vld [vmem:[#allocation11 + $0xb8] sm:$0xff]   ;;  %v6715_v21 = vld [vmem:[#allocation11 + $0x140] sm:$0xff]  }
 0x3dd   :  { %1463 = vmatprep.subr.bf16.mxu0 %v5788_v22  ;;  %1504 = vmatprep.subr.bf16.mxu1 %v5790_v23  ;;  %v6716_v22 = vld [vmem:[#allocation11 + $0x1c0] sm:$0xff]   ;;  %v489_v23 = vlaneseq }
 0x3df   :  { %v7436_v24 = vshrl.u32 %v489_v23, 7 }
 0x3e0   :  { %1464 = vmatpush1.bf16.msra.mxu0 %v5787_v28  ;;  %1505 = vmatpush1.bf16.msra.mxu1 %v5789_v29 }
 0x3e1   :  { %1465 = vmatprep.subr.bf16.mxu0 %v5804_v30  ;;  %1506 = vmatprep.subr.bf16.mxu1 %v5806_v31  ;;  %v7439_v25 = vsub.s32 0, %v7436_v24  ;;  %v7442_v26 = vsub.s32 2, %v7436_v24  ;;  %v7447_v28 = vsub.s32 1, %v7436_v24  ;;  %v7450_v29 = vsub.s32 3, %v7436_v24 }
 0x3e3   :  { %v492_v30 = vrot.slane %v7444_v27, %v7439_v25  ;;  %v500_v31 = vrot.slane %v7444_v27, %v7442_v26  ;;  %v496_v32 = vrot.slane %v7444_v27, %v7447_v28  ;;  %v504_v33 = vrot.slane %v7444_v27, %v7450_v29 }
 0x3e4   :  { %1466 = vmatpush1.bf16.msra.mxu0 %v5803_v36  ;;  %1507 = vmatpush1.bf16.msra.mxu1 %v5805_v37 }
 0x3e5   :  { %1467 = vmatprep.subr.bf16.mxu0 %v5820_v39  ;;  %1508 = vmatprep.subr.bf16.mxu1 %v5822_v40 }
 0x3e8   :  { %1468 = vmatpush1.bf16.msra.mxu0 %v5819_v45  ;;  %1509 = vmatpush1.bf16.msra.mxu1 %v5821_v46 }
 0x3e9   :  { %1469 = vmatprep.subr.bf16.mxu0 %v5836_v47  ;;  %1510 = vmatprep.subr.bf16.mxu1 %v5838_v48 }
 0x3ec   :  { %1470 = vmatpush1.bf16.msra.mxu0 %v5835_v49  ;;  %1511 = vmatpush1.bf16.msra.mxu1 %v5837_v50 }
 0x3ed   :  { %6251 = vmatprep.subr.bf16.mxu0 %v6683_v54  ;;  %6273 = vmatprep.subr.bf16.mxu1 %v6684_v55 }
 0x3ef   :  { %1488 = vmatmul.mubr.bf16.vlgmr.msra.gmra.mrb[16].mxu0 %v7420_v53  ;;  %1529 = vmatmul.mubr.bf16.vlgmr.msra.gmra.mrb[16].mxu1 %v7420_v53  ;;  %v6698_v53 = vld [vmem:[#allocation11 + $0x98] sm:$0xff]  }
 0x3f0   :  { %6252 = vmatpush3.bf16.msra.mxu0 %v6685_v56  ;;  %6274 = vmatpush3.bf16.msra.mxu1 %v6686_v57  ;;  %v6717_v56 = vld [vmem:[#allocation11 + $0x100] sm:$0xff]  }
 0x3f1   :  { %6253 = vmatprep.subr.bf16.mxu0 %v6687_v58  ;;  %6275 = vmatprep.subr.bf16.mxu1 %v6688_v59  ;;  %v6718_v57 = vld [vmem:[#allocation11 + $0x180] sm:$0xff]  }
 0x3f4   :  { %6254 = vmatpush3.bf16.msra.mxu0 %v6689_v51  ;;  %6276 = vmatpush3.bf16.msra.mxu1 %v6690_v60  ;;  %v6719_v51 = vld [vmem:[#allocation11 + $0x148] sm:$0xff]  }
 0x3f5   :  { %6255 = vmatprep.subr.bf16.mxu0 %v6691_v61  ;;  %6277 = vmatprep.subr.bf16.mxu1 %v6692_v62  ;;  %v6720_v60 = vld [vmem:[#allocation11 + $0x1c8] sm:$0xff]  }
 0x3f6   :  { %v6721_v61 = vld [vmem:[#allocation11 + $0x108] sm:$0xff]  }
 0x3f7   :  { %v6722_v62 = vld [vmem:[#allocation11 + $0x188] sm:$0xff]  }
 0x3f8   :  { %6256 = vmatpush3.bf16.msra.mxu0 %v6693_v63  ;;  %6278 = vmatpush3.bf16.msra.mxu1 %v6694_v1  ;;  %v6723_v63 = vld [vmem:[#allocation11 + $0x150] sm:$0xff]  }
 0x3f9   :  { %6257 = vmatprep.subr.bf16.mxu0 %v6695_v2  ;;  %6279 = vmatprep.subr.bf16.mxu1 %v6696_v3  ;;  %v6724_v1 = vld [vmem:[#allocation11 + $0x1d0] sm:$0xff]  }
 0x3fa   :  { %v6725_v2 = vld [vmem:[#allocation11 + $0x110] sm:$0xff]  }
 0x3fb   :  { %v6726_v3 = vld [vmem:[#allocation11 + $0x190] sm:$0xff]  }
 0x3fc   :  { %6258 = vmatpush3.bf16.msra.mxu0 %v6697_v4  ;;  %6280 = vmatpush3.bf16.msra.mxu1 %v6698_v53  ;;  %v6727_v4 = vld [vmem:[#allocation11 + $0x158] sm:$0xff]  }
 0x3fd   :  { %6259 = vmatprep.subr.bf16.mxu0 %v6699_v5  ;;  %6281 = vmatprep.subr.bf16.mxu1 %v6700_v6  ;;  %v6728_v53 = vld [vmem:[#allocation11 + $0x1d8] sm:$0xff]  }
 0x3fe   :  { %v6729_v5 = vld [vmem:[#allocation11 + $0x118] sm:$0xff]  }
 0x3ff   :  { %v6730_v6 = vld [vmem:[#allocation11 + $0x198] sm:$0xff]  }
 0x400   :  { %6260 = vmatpush3.bf16.msra.mxu0 %v6701_v7  ;;  %6282 = vmatpush3.bf16.msra.mxu1 %v6702_v8  ;;  %v6731_v7 = vld [vmem:[#allocation11 + $0x160] sm:$0xff]  }
 0x401   :  { %6261 = vmatprep.subr.bf16.mxu0 %v6703_v9  ;;  %6283 = vmatprep.subr.bf16.mxu1 %v6704_v10  ;;  %v6732_v8 = vld [vmem:[#allocation11 + $0x1e0] sm:$0xff]  }
 0x402   :  { %v6733_v9 = vld [vmem:[#allocation11 + $0x120] sm:$0xff]  }
 0x403   :  { %v6734_v10 = vld [vmem:[#allocation11 + $0x1a0] sm:$0xff]  }
 0x404   :  { %6262 = vmatpush3.bf16.msra.mxu0 %v6705_v11  ;;  %6284 = vmatpush3.bf16.msra.mxu1 %v6706_v12  ;;  %v6735_v11 = vld [vmem:[#allocation11 + $0x168] sm:$0xff]  }
 0x405   :  { %6263 = vmatprep.subr.bf16.mxu0 %v6707_v13  ;;  %6285 = vmatprep.subr.bf16.mxu1 %v6708_v14  ;;  %v6736_v12 = vld [vmem:[#allocation11 + $0x1e8] sm:$0xff]   ;;  %v7461_v13 = vsub.s32 4, %v7436_v24  ;;  %v7464_v14 = vsub.s32 6, %v7436_v24 }
 0x408   :  { %6264 = vmatpush3.bf16.msra.mxu0 %v6709_v15  ;;  %6286 = vmatpush3.bf16.msra.mxu1 %v6710_v16  ;;  %v6737_v15 = vld [vmem:[#allocation11 + $0x128] sm:$0xff]  }
 0x409   :  { %6265 = vmatprep.subr.bf16.mxu0 %v6711_v17  ;;  %6287 = vmatprep.subr.bf16.mxu1 %v6712_v18  ;;  %v6738_v16 = vld [vmem:[#allocation11 + $0x1a8] sm:$0xff]   ;;  %v7467_v17 = vsub.s32 5, %v7436_v24  ;;  %v7470_v18 = vsub.s32 7, %v7436_v24  ;;  %v6741_v24 = vld [vmem:[#allocation11 + $0x130] sm:$0xff]  }
 0x40b   :  { %v512_v23 = vrot.slane %v7444_v27, %v7467_v17 }
 0x40c   :  { %6266 = vmatpush3.bf16.msra.mxu0 %v6713_v19  ;;  %6288 = vmatpush3.bf16.msra.mxu1 %v6714_v20  ;;  %v6739_v19 = vld [vmem:[#allocation11 + $0x170] sm:$0xff]  }
 0x40d   :  { %6295 = vmatprep.subr.bf16.mxu0 %v6715_v21  ;;  %6317 = vmatprep.subr.bf16.mxu1 %v6716_v22  ;;  %v6740_v20 = vld [vmem:[#allocation11 + $0x1f0] sm:$0xff]   ;;  %v508_v21 = vrot.slane %v7444_v27, %v7461_v13  ;;  %v516_v22 = vrot.slane %v7444_v27, %v7464_v14 }
 0x462   :  { %v1243_v34 = vpop.f32.mrb[4].mxu0  ;;  %v1284_v35 = vpop.f32.mrb[4].mxu1 }
 0x463   :  { %v1244_v36 = vadd.f32 %v1243_v34, %v492_v30  ;;  %v1285_v37 = vadd.f32 %v1284_v35, %v500_v31  ;;  %v1245_v39 = vpop.f32.mrb[5].mxu0  ;;  %v1286_v40 = vpop.f32.mrb[5].mxu1  ;;  %v520_v30 = vrot.slane %v7444_v27, %v7470_v18  ;;  %v6742_v31 = vld [vmem:[#allocation11 + $0x1b0] sm:$0xff]   ;;  %v6746_v27 = vld [vmem:[#allocation11 + $0x1b8] sm:$0xff]  }
 0x464   :  { %v1246_v41 = vadd.f32 %v1245_v39, %v496_v32  ;;  %v1287_v42 = vadd.f32 %v1286_v40, %v504_v33  ;;  %v1247_v43 = vpop.f32.mrb[6].mxu0  ;;  %v1288_v44 = vpop.f32.mrb[6].mxu1  ;;  %v6743_v32 = vld [vmem:[#allocation11 + $0x178] sm:$0xff]  }
 0x465   :  { %v1537_v45 = vmax.f32 %v1244_v36, 0.0  ;;  %v1539_v46 = vmax.f32 %v1285_v37, 0.0  ;;  %v1248_v47 = vpop.f32.mrb[7].mxu0  ;;  %v1289_v48 = vpop.f32.mrb[7].mxu1  ;;  %v6744_v33 = vld [vmem:[#allocation11 + $0x1f8] sm:$0xff]  }
 0x466   :  { %v1538_v49 = vmax.f32 %v1246_v41, 0.0  ;;  %v1540_v50 = vmax.f32 %v1287_v42, 0.0 }
 0x467   :  { %v1553_v58 = vpack.c.bf16 %v1537_v45, %v1537_v45  ;;  %v1555_v59 = vpack.c.bf16 %v1539_v46, %v1539_v46  ;;  %v6745_v45 = vld [vmem:[#allocation11 + $0x138] sm:$0xff]  }
 0x468   :  { %v1554_v54 = vpack.c.bf16 %v1538_v49, %v1538_v49  ;;  %v1556_v55 = vpack.c.bf16 %v1540_v50, %v1540_v50  ;;  %v6747_v50 = vld [vmem:[#allocation11 + $0x240] sm:$0xff]  }
 0x46a   :  { %2631 = vmatprep.mubr.bf16.mxu0 %v1554_v54  ;;  %2671 = vmatprep.mubr.bf16.mxu1 %v1556_v55  ;;  %v6748_v54 = vld [vmem:[#allocation11 + $0x2c0] sm:$0xff]  }
 0x46b   :  { %2632 = vmatmul.mubr.bf16.vlgmr.msra.gmra.mrb[20].mxu0 %v1553_v58  ;;  %2672 = vmatmul.mubr.bf16.vlgmr.msra.gmra.mrb[20].mxu1 %v1555_v59  ;;  %v6749_v59 = vld [vmem:[#allocation11 + $0x200] sm:$0xff]  }
 0x46c   :  { %6296 = vmatpush3.bf16.msra.mxu0 %v6717_v56  ;;  %6318 = vmatpush3.bf16.msra.mxu1 %v6718_v57 }
 0x46d   :  { %6297 = vmatprep.subr.bf16.mxu0 %v6719_v51  ;;  %6319 = vmatprep.subr.bf16.mxu1 %v6720_v60  ;;  %v6750_v51 = vld [vmem:[#allocation11 + $0x280] sm:$0xff]  }
 0x470   :  { %6298 = vmatpush3.bf16.msra.mxu0 %v6721_v61  ;;  %6320 = vmatpush3.bf16.msra.mxu1 %v6722_v62  ;;  %v6751_v62 = vld [vmem:[#allocation11 + $0x248] sm:$0xff]  }
 0x471   :  { %6299 = vmatprep.subr.bf16.mxu0 %v6723_v63  ;;  %6321 = vmatprep.subr.bf16.mxu1 %v6724_v1  ;;  %v6752_v63 = vld [vmem:[#allocation11 + $0x2c8] sm:$0xff]  }
 0x472   :  { %v6753_v1 = vld [vmem:[#allocation11 + $0x208] sm:$0xff]  }
 0x474   :  { %6300 = vmatpush3.bf16.msra.mxu0 %v6725_v2  ;;  %6322 = vmatpush3.bf16.msra.mxu1 %v6726_v3  ;;  %v6754_v2 = vld [vmem:[#allocation11 + $0x288] sm:$0xff]   ;;  %v6755_v3 = vld [vmem:[#allocation11 + $0x250] sm:$0xff]  }
 0x475   :  { %6301 = vmatprep.subr.bf16.mxu0 %v6727_v4  ;;  %6323 = vmatprep.subr.bf16.mxu1 %v6728_v53  ;;  %v6756_v4 = vld [vmem:[#allocation11 + $0x2d0] sm:$0xff]  }
 0x476   :  { %v6757_v53 = vld [vmem:[#allocation11 + $0x210] sm:$0xff]  }
 0x478   :  { %6302 = vmatpush3.bf16.msra.mxu0 %v6729_v5  ;;  %6324 = vmatpush3.bf16.msra.mxu1 %v6730_v6  ;;  %v6758_v5 = vld [vmem:[#allocation11 + $0x290] sm:$0xff]   ;;  %v6759_v6 = vld [vmem:[#allocation11 + $0x258] sm:$0xff]  }
 0x479   :  { %6303 = vmatprep.subr.bf16.mxu0 %v6731_v7  ;;  %6325 = vmatprep.subr.bf16.mxu1 %v6732_v8  ;;  %v6760_v7 = vld [vmem:[#allocation11 + $0x2d8] sm:$0xff]  }
 0x47a   :  { %v6761_v8 = vld [vmem:[#allocation11 + $0x218] sm:$0xff]  }
 0x47c   :  { %6304 = vmatpush3.bf16.msra.mxu0 %v6733_v9  ;;  %6326 = vmatpush3.bf16.msra.mxu1 %v6734_v10  ;;  %v6762_v9 = vld [vmem:[#allocation11 + $0x298] sm:$0xff]   ;;  %v6763_v10 = vld [vmem:[#allocation11 + $0x260] sm:$0xff]  }
 0x47d   :  { %6305 = vmatprep.subr.bf16.mxu0 %v6735_v11  ;;  %6327 = vmatprep.subr.bf16.mxu1 %v6736_v12  ;;  %v6764_v11 = vld [vmem:[#allocation11 + $0x2e0] sm:$0xff]  }
 0x47e   :  { %v6765_v12 = vld [vmem:[#allocation11 + $0x220] sm:$0xff]  }
 0x480   :  { %6306 = vmatpush3.bf16.msra.mxu0 %v6737_v15  ;;  %6328 = vmatpush3.bf16.msra.mxu1 %v6738_v16  ;;  %v6766_v15 = vld [vmem:[#allocation11 + $0x2a0] sm:$0xff]   ;;  %v6767_v16 = vld [vmem:[#allocation11 + $0x268] sm:$0xff]  }
 0x481   :  { %6307 = vmatprep.subr.bf16.mxu0 %v6739_v19  ;;  %6329 = vmatprep.subr.bf16.mxu1 %v6740_v20  ;;  %v6768_v19 = vld [vmem:[#allocation11 + $0x2e8] sm:$0xff]  }
 0x482   :  { %v1325_v34 = vpop.f32.mrb[8].mxu0  ;;  %v1366_v35 = vpop.f32.mrb[8].mxu1  ;;  %v6769_v20 = vld [vmem:[#allocation11 + $0x228] sm:$0xff]  }
 0x483   :  { %v1326_v36 = vadd.f32 %v1325_v34, %v508_v21  ;;  %v1367_v37 = vadd.f32 %v1366_v35, %v516_v22  ;;  %v1327_v39 = vpop.f32.mrb[9].mxu0  ;;  %v1368_v40 = vpop.f32.mrb[9].mxu1  ;;  %v6770_v21 = vld [vmem:[#allocation11 + $0x2a8] sm:$0xff]   ;;  %v7480_v22 = vld [vmem:[#allocation5 + $0xf] sm:$0xff]  ;;  %v6773_v34 = vld [vmem:[#allocation11 + $0x230] sm:$0xff]  }
 0x484   :  { %v1328_v41 = vadd.f32 %v1327_v39, %v512_v23  ;;  %v1369_v42 = vadd.f32 %v1368_v40, %v520_v30  ;;  %v1329_v43 = vpop.f32.mrb[10].mxu0  ;;  %v1370_v44 = vpop.f32.mrb[10].mxu1  ;;  %6308 = vmatpush3.bf16.msra.mxu0 %v6741_v24  ;;  %6330 = vmatpush3.bf16.msra.mxu1 %v6742_v31  ;;  %v6771_v23 = vld [vmem:[#allocation11 + $0x270] sm:$0xff]   ;;  %v524_v24 = vrot.slane %v7480_v22, %v7439_v25 }
 0x485   :  { %v1541_v46 = vmax.f32 %v1326_v36, 0.0  ;;  %v1543_v47 = vmax.f32 %v1367_v37, 0.0  ;;  %v1330_v48 = vpop.f32.mrb[11].mxu0  ;;  %v1371_v49 = vpop.f32.mrb[11].mxu1  ;;  %6309 = vmatprep.subr.bf16.mxu0 %v6743_v32  ;;  %6331 = vmatprep.subr.bf16.mxu1 %v6744_v33  ;;  %v6772_v30 = vld [vmem:[#allocation11 + $0x2f0] sm:$0xff]   ;;  %v532_v31 = vrot.slane %v7480_v22, %v7442_v26  ;;  %v528_v32 = vrot.slane %v7480_v22, %v7447_v28  ;;  %v6775_v36 = vld [vmem:[#allocation11 + $0x278] sm:$0xff]  }
 0x486   :  { %v1542_v55 = vmax.f32 %v1328_v41, 0.0  ;;  %v1544_v56 = vmax.f32 %v1369_v42, 0.0  ;;  %v536_v33 = vrot.slane %v7480_v22, %v7450_v29  ;;  %v6774_v35 = vld [vmem:[#allocation11 + $0x2b0] sm:$0xff]   ;;  %v6776_v37 = vld [vmem:[#allocation11 + $0x2f8] sm:$0xff]  }
 0x487   :  { %v1557_v60 = vpack.c.bf16 %v1541_v46, %v1541_v46  ;;  %v1559_v61 = vpack.c.bf16 %v1543_v47, %v1543_v47  ;;  %v6777_v48 = vld [vmem:[#allocation11 + $0x238] sm:$0xff]  }
 0x488   :  { %v1558_v57 = vpack.c.bf16 %v1542_v55, %v1542_v55  ;;  %v1560_v58 = vpack.c.bf16 %v1544_v56, %v1544_v56  ;;  %6310 = vmatpush3.bf16.msra.mxu0 %v6745_v45  ;;  %6332 = vmatpush3.bf16.msra.mxu1 %v6746_v27  ;;  %v6778_v49 = vld [vmem:[#allocation11 + $0x2b8] sm:$0xff]  }
 0x489   :  { %6339 = vmatprep.subr.bf16.mxu0 %v6747_v50  ;;  %6361 = vmatprep.subr.bf16.mxu1 %v6748_v54 }
 0x48a   :  { %2711 = vmatprep.mubr.bf16.mxu0 %v1558_v57  ;;  %2751 = vmatprep.mubr.bf16.mxu1 %v1560_v58  ;;  %v6779_v57 = vld [vmem:[#allocation11 + $0x340] sm:$0xff]  }
 0x48b   :  { %2712 = vmatmul.mubr.bf16.vlgmr.msra.gmra.mrb[24].mxu0 %v1557_v60  ;;  %2752 = vmatmul.mubr.bf16.vlgmr.msra.gmra.mrb[24].mxu1 %v1559_v61  ;;  %v6780_v58 = vld [vmem:[#allocation11 + $0x3c0] sm:$0xff]  }
 0x48c   :  { %6340 = vmatpush3.bf16.msra.mxu0 %v6749_v59  ;;  %6362 = vmatpush3.bf16.msra.mxu1 %v6750_v51 }
 0x48d   :  { %6341 = vmatprep.subr.bf16.mxu0 %v6751_v62  ;;  %6363 = vmatprep.subr.bf16.mxu1 %v6752_v63  ;;  %v6781_v62 = vld [vmem:[#allocation11 + $0x300] sm:$0xff]  }
 0x48e   :  { %v6782_v63 = vld [vmem:[#allocation11 + $0x380] sm:$0xff]  }
 0x490   :  { %6342 = vmatpush3.bf16.msra.mxu0 %v6753_v1  ;;  %6364 = vmatpush3.bf16.msra.mxu1 %v6754_v2 }
 0x491   :  { %6343 = vmatprep.subr.bf16.mxu0 %v6755_v3  ;;  %6365 = vmatprep.subr.bf16.mxu1 %v6756_v4  ;;  %v6783_v3 = vld [vmem:[#allocation11 + $0x348] sm:$0xff]  }
 0x492   :  { %v6784_v4 = vld [vmem:[#allocation11 + $0x3c8] sm:$0xff]  }
 0x494   :  { %6344 = vmatpush3.bf16.msra.mxu0 %v6757_v53  ;;  %6366 = vmatpush3.bf16.msra.mxu1 %v6758_v5  ;;  %v6785_v53 = vld [vmem:[#allocation11 + $0x308] sm:$0xff]  }
 0x495   :  { %6345 = vmatprep.subr.bf16.mxu0 %v6759_v6  ;;  %6367 = vmatprep.subr.bf16.mxu1 %v6760_v7  ;;  %v6786_v5 = vld [vmem:[#allocation11 + $0x388] sm:$0xff]   ;;  %v6787_v6 = vld [vmem:[#allocation11 + $0x350] sm:$0xff]  }
 0x496   :  { %v6788_v7 = vld [vmem:[#allocation11 + $0x3d0] sm:$0xff]  }
 0x498   :  { %6346 = vmatpush3.bf16.msra.mxu0 %v6761_v8  ;;  %6368 = vmatpush3.bf16.msra.mxu1 %v6762_v9  ;;  %v6789_v8 = vld [vmem:[#allocation11 + $0x310] sm:$0xff]  }
 0x499   :  { %6347 = vmatprep.subr.bf16.mxu0 %v6763_v10  ;;  %6369 = vmatprep.subr.bf16.mxu1 %v6764_v11  ;;  %v6790_v9 = vld [vmem:[#allocation11 + $0x390] sm:$0xff]   ;;  %v6791_v10 = vld [vmem:[#allocation11 + $0x358] sm:$0xff]  }
 0x49a   :  { %v6792_v11 = vld [vmem:[#allocation11 + $0x3d8] sm:$0xff]  }
 0x49c   :  { %6348 = vmatpush3.bf16.msra.mxu0 %v6765_v12  ;;  %6370 = vmatpush3.bf16.msra.mxu1 %v6766_v15  ;;  %v6793_v12 = vld [vmem:[#allocation11 + $0x318] sm:$0xff]  }
 0x49d   :  { %6349 = vmatprep.subr.bf16.mxu0 %v6767_v16  ;;  %6371 = vmatprep.subr.bf16.mxu1 %v6768_v19  ;;  %v6794_v15 = vld [vmem:[#allocation11 + $0x398] sm:$0xff]   ;;  %v6795_v16 = vld [vmem:[#allocation11 + $0x360] sm:$0xff]  }
 0x49e   :  { %v6796_v19 = vld [vmem:[#allocation11 + $0x3e0] sm:$0xff]  }
 0x4a0   :  { %6350 = vmatpush3.bf16.msra.mxu0 %v6769_v20  ;;  %6372 = vmatpush3.bf16.msra.mxu1 %v6770_v21  ;;  %v6797_v20 = vld [vmem:[#allocation11 + $0x320] sm:$0xff]  }
 0x4a1   :  { %6351 = vmatprep.subr.bf16.mxu0 %v6771_v23  ;;  %6373 = vmatprep.subr.bf16.mxu1 %v6772_v30  ;;  %v6798_v21 = vld [vmem:[#allocation11 + $0x3a0] sm:$0xff]   ;;  %v6799_v23 = vld [vmem:[#allocation11 + $0x368] sm:$0xff]  }
 0x4a2   :  { %v1407_v39 = vpop.f32.mrb[12].mxu0  ;;  %v1448_v40 = vpop.f32.mrb[12].mxu1  ;;  %v6800_v30 = vld [vmem:[#allocation11 + $0x3e8] sm:$0xff]  }
 0x4a3   :  { %v1408_v41 = vadd.f32 %v1407_v39, %v524_v24  ;;  %v1449_v42 = vadd.f32 %v1448_v40, %v532_v31  ;;  %v1409_v43 = vpop.f32.mrb[13].mxu0  ;;  %v1450_v44 = vpop.f32.mrb[13].mxu1  ;;  %v6801_v24 = vld [vmem:[#allocation11 + $0x328] sm:$0xff]   ;;  %v6805_v39 = vld [vmem:[#allocation11 + $0x330] sm:$0xff]  }
 0x4a4   :  { %v1410_v45 = vadd.f32 %v1409_v43, %v528_v32  ;;  %v1451_v27 = vadd.f32 %v1450_v44, %v536_v33  ;;  %v1411_v46 = vpop.f32.mrb[14].mxu0  ;;  %v1452_v47 = vpop.f32.mrb[14].mxu1  ;;  %6352 = vmatpush3.bf16.msra.mxu0 %v6773_v34  ;;  %6374 = vmatpush3.bf16.msra.mxu1 %v6774_v35  ;;  %v6802_v31 = vld [vmem:[#allocation11 + $0x3a8] sm:$0xff]   ;;  %v6803_v32 = vld [vmem:[#allocation11 + $0x370] sm:$0xff]   ;;  %v540_v34 = vrot.slane %v7480_v22, %v7461_v13 }
 0x4a5   :  { %v1545_v50 = vmax.f32 %v1408_v41, 0.0  ;;  %v1547_v54 = vmax.f32 %v1449_v42, 0.0  ;;  %v1412_v55 = vpop.f32.mrb[15].mxu0  ;;  %v1453_v56 = vpop.f32.mrb[15].mxu1  ;;  %6353 = vmatprep.subr.bf16.mxu0 %v6775_v36  ;;  %6375 = vmatprep.subr.bf16.mxu1 %v6776_v37  ;;  %v6804_v33 = vld [vmem:[#allocation11 + $0x3f0] sm:$0xff]   ;;  %v548_v35 = vrot.slane %v7480_v22, %v7464_v14  ;;  %v544_v36 = vrot.slane %v7480_v22, %v7467_v17  ;;  %v6807_v41 = vld [vmem:[#allocation11 + $0x378] sm:$0xff]  }
 0x4a6   :  { %v1546_v59 = vmax.f32 %v1410_v45, 0.0  ;;  %v1548_v51 = vmax.f32 %v1451_v27, 0.0  ;;  %v552_v37 = vrot.slane %v7480_v22, %v7470_v18  ;;  %v6806_v40 = vld [vmem:[#allocation11 + $0x3b0] sm:$0xff]   ;;  %v6808_v42 = vld [vmem:[#allocation11 + $0x3f8] sm:$0xff]  }
 0x4a7   :  { %v1561_v1 = vpack.c.bf16 %v1545_v50, %v1545_v50  ;;  %v1563_v2 = vpack.c.bf16 %v1547_v54, %v1547_v54  ;;  %v6809_v55 = vld [vmem:[#allocation11 + $0x338] sm:$0xff]  }
 0x4a8   :  { %v1562_v60 = vpack.c.bf16 %v1546_v59, %v1546_v59  ;;  %v1564_v61 = vpack.c.bf16 %v1548_v51, %v1548_v51  ;;  %6354 = vmatpush3.bf16.msra.mxu0 %v6777_v48  ;;  %6376 = vmatpush3.bf16.msra.mxu1 %v6778_v49  ;;  %v6810_v22 = vld [vmem:[#allocation11 + $0x3b8] sm:$0xff]  }
 0x4a9   :  { %6383 = vmatprep.subr.bf16.mxu0 %v6779_v57  ;;  %6405 = vmatprep.subr.bf16.mxu1 %v6780_v58 }
 0x4aa   :  { %2791 = vmatprep.mubr.bf16.mxu0 %v1562_v60  ;;  %2831 = vmatprep.mubr.bf16.mxu1 %v1564_v61 }
 0x4ab   :  { %2792 = vmatmul.mubr.bf16.vlgmr.msra.gmra.mrb[28].mxu0 %v1561_v1  ;;  %2832 = vmatmul.mubr.bf16.vlgmr.msra.gmra.mrb[28].mxu1 %v1563_v2 }
 0x4ac   :  { %6384 = vmatpush3.bf16.msra.mxu0 %v6781_v62  ;;  %6406 = vmatpush3.bf16.msra.mxu1 %v6782_v63 }
 0x4ad   :  { %6385 = vmatprep.subr.bf16.mxu0 %v6783_v3  ;;  %6407 = vmatprep.subr.bf16.mxu1 %v6784_v4  ;;  %v5839_v4 = vld [vmem:[#allocation5 + $0x6] ss:$0 sm:$0xff] }
 0x4b0   :  { %6386 = vmatpush3.bf16.msra.mxu0 %v6785_v53  ;;  %6408 = vmatpush3.bf16.msra.mxu1 %v6786_v5 }
 0x4b1   :  { %6387 = vmatprep.subr.bf16.mxu0 %v6787_v6  ;;  %6409 = vmatprep.subr.bf16.mxu1 %v6788_v7 }
 0x4b4   :  { %6388 = vmatpush3.bf16.msra.mxu0 %v6789_v8  ;;  %6410 = vmatpush3.bf16.msra.mxu1 %v6790_v9 }
 0x4b5   :  { %6389 = vmatprep.subr.bf16.mxu0 %v6791_v10  ;;  %6411 = vmatprep.subr.bf16.mxu1 %v6792_v11 }
 0x4b8   :  { %6390 = vmatpush3.bf16.msra.mxu0 %v6793_v12  ;;  %6412 = vmatpush3.bf16.msra.mxu1 %v6794_v15 }
 0x4b9   :  { %6391 = vmatprep.subr.bf16.mxu0 %v6795_v16  ;;  %6413 = vmatprep.subr.bf16.mxu1 %v6796_v19 }
 0x4bc   :  { %6392 = vmatpush3.bf16.msra.mxu0 %v6797_v20  ;;  %6414 = vmatpush3.bf16.msra.mxu1 %v6798_v21 }
 0x4bd   :  { %6393 = vmatprep.subr.bf16.mxu0 %v6799_v23  ;;  %6415 = vmatprep.subr.bf16.mxu1 %v6800_v30 }
 0x4c0   :  { %6394 = vmatpush3.bf16.msra.mxu0 %v6801_v24  ;;  %6416 = vmatpush3.bf16.msra.mxu1 %v6802_v31 }
 0x4c1   :  { %6395 = vmatprep.subr.bf16.mxu0 %v6803_v32  ;;  %6417 = vmatprep.subr.bf16.mxu1 %v6804_v33 }
 0x4c2   :  { %v1489_v43 = vpop.f32.mrb[16].mxu0  ;;  %v1530_v44 = vpop.f32.mrb[16].mxu1 }
 0x4c3   :  { %v1490_v45 = vadd.f32 %v1489_v43, %v540_v34  ;;  %v1531_v27 = vadd.f32 %v1530_v44, %v548_v35  ;;  %v1491_v46 = vpop.f32.mrb[17].mxu0  ;;  %v1532_v47 = vpop.f32.mrb[17].mxu1 }
 0x4c4   :  { %v1492_v48 = vadd.f32 %v1491_v46, %v544_v36  ;;  %v1533_v49 = vadd.f32 %v1532_v47, %v552_v37  ;;  %v1493_v50 = vpop.f32.mrb[18].mxu0  ;;  %v1534_v54 = vpop.f32.mrb[18].mxu1  ;;  %6396 = vmatpush3.bf16.msra.mxu0 %v6805_v39  ;;  %6418 = vmatpush3.bf16.msra.mxu1 %v6806_v40 }
 0x4c5   :  { %v1549_v56 = vmax.f32 %v1490_v45, 0.0  ;;  %v1551_v57 = vmax.f32 %v1531_v27, 0.0  ;;  %v1494_v58 = vpop.f32.mrb[19].mxu0  ;;  %v1535_v59 = vpop.f32.mrb[19].mxu1  ;;  %6397 = vmatprep.subr.bf16.mxu0 %v6807_v41  ;;  %6419 = vmatprep.subr.bf16.mxu1 %v6808_v42 }
 0x4c6   :  { %v1550_v51 = vmax.f32 %v1492_v48, 0.0  ;;  %v1552_v60 = vmax.f32 %v1533_v49, 0.0 }
 0x4c7   :  { %v1565_v63 = vpack.c.bf16 %v1549_v56, %v1549_v56  ;;  %v1567_v1 = vpack.c.bf16 %v1551_v57, %v1551_v57 }
 0x4c8   :  { %v1566_v61 = vpack.c.bf16 %v1550_v51, %v1550_v51  ;;  %v1568_v62 = vpack.c.bf16 %v1552_v60, %v1552_v60  ;;  %6398 = vmatpush3.bf16.msra.mxu0 %v6809_v55  ;;  %6420 = vmatpush3.bf16.msra.mxu1 %v6810_v22 }
 0x4c9   :  { %6638 = vmatprep.subr.bf16.mxu0 %v7199_v0 }
 0x4ca   :  { %2871 = vmatprep.mubr.bf16.mxu0 %v1566_v61  ;;  %2911 = vmatprep.mubr.bf16.mxu1 %v1568_v62  ;;  %v6811_v62 = vld [vmem:[#allocation13] sm:$0xff]  }
 0x4cb   :  { %2872 = vmatmul.mubr.bf16.vlgmr.msra.gmra.mrb[32].mxu0 %v1565_v63  ;;  %2912 = vmatmul.mubr.bf16.vlgmr.msra.gmra.mrb[32].mxu1 %v1567_v1  ;;  %v6812_v63 = vld [vmem:[#allocation13 + $0x8] sm:$0xff]  }
 0x4cc   :  { %6654 = vmatprep.mubr.msk.bf16.mxu0 %vm7200_vm0, %v7199_v0  ;;  %3973 = vmatprep.mubr.bf16.mxu1 %v7201_v38 }
 0x4cd   :  { %6639 = vmatpush3.bf16.msra.mxu0 %v6811_v62 }
 0x4ce   :  { %6640 = vmatprep.subr.bf16.mxu0 %v7199_v0 }
 0x4d1   :  { %6641 = vmatpush3.bf16.msra.mxu0 %v6812_v63 }
 0x4d2   :  { %6642 = vmatprep.subr.bf16.mxu0 %v7199_v0 }
 0x53e   :  { %v6267_v2 = vpop.f32.mrb[20].mxu0  ;;  %v6289_v3 = vpop.f32.mrb[20].mxu1 }
 0x53f   :  { %v6268_v53 = vpop.f32.mrb[21].mxu0  ;;  %v6290_v5 = vpop.f32.mrb[21].mxu1 }
 0x540   :  { %v6269_v6 = vadd.f32 %v6268_v53, %v6267_v2  ;;  %v6291_v7 = vadd.f32 %v6290_v5, %v6289_v3  ;;  %v6270_v8 = vpop.f32.mrb[22].mxu0  ;;  %v6292_v9 = vpop.f32.mrb[22].mxu1  ;;  %v6813_v53 = vld [vmem:[#allocation13 + $0x10] sm:$0xff]   ;;  %v6814_v5 = vld [vmem:[#allocation13 + $0x18] sm:$0xff]  }
 0x541   :  { %v6271_v10 = vpop.f32.mrb[23].mxu0  ;;  %v6293_v11 = vpop.f32.mrb[23].mxu1  ;;  %6643 = vmatpush3.bf16.msra.mxu0 %v6813_v53  ;;  %v6818_v8 = vld [vmem:[#allocation13 + $0x38] sm:$0xff]   ;;  %v3148_v53 = vld [vmem:[#allocation14 + $0x1c8] sm:$0xff] }
 0x542   :  { %v2634_v12 = vadd.f32 %v6269_v6, %v5839_v4  ;;  %6644 = vmatprep.subr.bf16.mxu0 %v7199_v0  ;;  %v6816_v6 = vld [vmem:[#allocation13 + $0x28] sm:$0xff]  }
 0x544   :  { %v2674_v15 = vadd.f32 %v6291_v7, %v2634_v12  ;;  %v6817_v7 = vld [vmem:[#allocation13 + $0x30] sm:$0xff]  }
 0x545   :  { %6645 = vmatpush3.bf16.msra.mxu0 %v6814_v5 }
 0x546   :  { %6646 = vmatprep.subr.bf16.mxu0 %v7199_v0 }
 0x55e   :  { %v6311_v16 = vpop.f32.mrb[24].mxu0  ;;  %v6333_v19 = vpop.f32.mrb[24].mxu1 }
 0x55f   :  { %v6312_v20 = vpop.f32.mrb[25].mxu0  ;;  %v6334_v21 = vpop.f32.mrb[25].mxu1 }
 0x560   :  { %v6313_v23 = vadd.f32 %v6312_v20, %v6311_v16  ;;  %v6335_v30 = vadd.f32 %v6334_v21, %v6333_v19  ;;  %v6314_v24 = vpop.f32.mrb[26].mxu0  ;;  %v6336_v31 = vpop.f32.mrb[26].mxu1  ;;  %v5969_v19 = vld [vmem:[#allocation5 + $0x5] ss:$0 sm:$0xff] }
 0x561   :  { %v6315_v32 = vpop.f32.mrb[27].mxu0  ;;  %v6337_v33 = vpop.f32.mrb[27].mxu1 }
 0x562   :  { %v2714_v34 = vadd.f32 %v6313_v23, %v2674_v15  ;;  %v5968_v15 = vld [vmem:[#allocation5 + $0x4] ss:$0 sm:$0xff] }
 0x564   :  { %v2754_v35 = vadd.f32 %v6335_v30, %v2714_v34  ;;  %v5970_v30 = vld [vmem:[#allocation5 + $0x17] ss:$0 sm:$0xff] }
 0x57e   :  { %v6355_v36 = vpop.f32.mrb[28].mxu0  ;;  %v6377_v37 = vpop.f32.mrb[28].mxu1 }
 0x57f   :  { %v6356_v39 = vpop.f32.mrb[29].mxu0  ;;  %v6378_v40 = vpop.f32.mrb[29].mxu1 }
 0x580   :  { %v6357_v41 = vadd.f32 %v6356_v39, %v6355_v36  ;;  %v6379_v42 = vadd.f32 %v6378_v40, %v6377_v37  ;;  %v6358_v43 = vpop.f32.mrb[30].mxu0  ;;  %v6380_v44 = vpop.f32.mrb[30].mxu1  ;;  %v3099_v36 = vld [vmem:[#allocation14 + $0x40] sm:$0xff]  ;;  %v3092_v37 = vld [vmem:[#allocation14 + $0x8] sm:$0xff] }
 0x581   :  { %v6359_v45 = vpop.f32.mrb[31].mxu0  ;;  %v6381_v27 = vpop.f32.mrb[31].mxu1  ;;  %v3115_v43 = vld [vmem:[#allocation14 + $0xc0] sm:$0xff] }
 0x582   :  { %v2794_v46 = vadd.f32 %v6357_v41, %v2754_v35  ;;  %v3091_v35 = vld [vmem:[#allocation14] sm:$0xff]  ;;  %v3100_v41 = vld [vmem:[#allocation14 + $0x48] sm:$0xff] }
 0x583   :  { %v5981_v39 = vcombine.low %v3091_v35, %v3099_v36  ;;  %v5982_v40 = vcombine.high %v3091_v35, %v3099_v36  ;;  %v5983_v44 = vcombine.low %v3092_v37, %v3100_v41  ;;  %v5984_v45 = vcombine.high %v3092_v37, %v3100_v41  ;;  %v3196_v36 = vld [vmem:[#allocation14 + $0x348] sm:$0xff]  ;;  %v3203_v41 = vld [vmem:[#allocation14 + $0x380] sm:$0xff] }
 0x584   :  { %v2834_v47 = vadd.f32 %v6379_v42, %v2794_v46  ;;  %v3107_v42 = vld [vmem:[#allocation14 + $0x80] sm:$0xff]  ;;  %v3108_v46 = vld [vmem:[#allocation14 + $0x88] sm:$0xff] }
 0x585   :  { %v5998_v27 = vcombine.high %v3107_v42, %v3115_v43  ;;  %3941 = vmatprep.subr.bf16.mxu1 %v5982_v40 }
 0x586   :  { %3942 = vmatpush1.bf16.msra.mxu1 %v5981_v39 }
 0x587   :  { %3943 = vmatprep.subr.bf16.mxu1 %v5998_v27 }
 0x59e   :  { %v6399_v48 = vpop.f32.mrb[32].mxu0  ;;  %v6421_v49 = vpop.f32.mrb[32].mxu1 }
 0x59f   :  { %v6400_v50 = vpop.f32.mrb[33].mxu0  ;;  %v6422_v54 = vpop.f32.mrb[33].mxu1 }
 0x5a0   :  { %v6401_v55 = vadd.f32 %v6400_v50, %v6399_v48  ;;  %v6423_v22 = vadd.f32 %v6422_v54, %v6421_v49  ;;  %v6402_v56 = vpop.f32.mrb[34].mxu0  ;;  %v6424_v57 = vpop.f32.mrb[34].mxu1  ;;  %v3123_v48 = vld [vmem:[#allocation14 + $0x100] sm:$0xff]  ;;  %v3124_v54 = vld [vmem:[#allocation14 + $0x108] sm:$0xff] }
 0x5a1   :  { %v6403_v58 = vpop.f32.mrb[35].mxu0  ;;  %v6425_v59 = vpop.f32.mrb[35].mxu1  ;;  %v3131_v50 = vld [vmem:[#allocation14 + $0x140] sm:$0xff] }
 0x5a2   :  { %v2874_v51 = vadd.f32 %v6401_v55, %v2834_v47  ;;  %v3116_v47 = vld [vmem:[#allocation14 + $0xc8] sm:$0xff]  ;;  %v6014_v57 = vcombine.high %v3123_v48, %v3131_v50  ;;  %v6013_v59 = vcombine.low %v3123_v48, %v3131_v50  ;;  %v3093_v48 = vld [vmem:[#allocation14 + $0x10] sm:$0xff]  ;;  %v3094_v50 = vld [vmem:[#allocation14 + $0x18] sm:$0xff] }
 0x5a3   :  { %v6000_v49 = vcombine.high %v3108_v46, %v3116_v47  ;;  %v3132_v55 = vld [vmem:[#allocation14 + $0x148] sm:$0xff]  ;;  %v5999_v56 = vcombine.low %v3108_v46, %v3116_v47 }
 0x5a4   :  { %v2914_v60 = vadd.f32 %v6423_v22, %v2874_v51  ;;  %v5997_v22 = vcombine.low %v3107_v42, %v3115_v43  ;;  %v6016_v58 = vcombine.high %v3124_v54, %v3132_v55  ;;  %v6015_v51 = vcombine.low %v3124_v54, %v3132_v55  ;;  %v3211_v42 = vld [vmem:[#allocation14 + $0x3c0] sm:$0xff]  ;;  %v3204_v43 = vld [vmem:[#allocation14 + $0x388] sm:$0xff]  ;;  %v3102_v55 = vld [vmem:[#allocation14 + $0x58] sm:$0xff] }
 0x5a5   :  { %v6093_v27 = vcombine.low %v3203_v41, %v3211_v42 }
 0x5a6   :  { %v2919_v61 = vadd.f32 %v2914_v60, %v7416_v52  ;;  %v6815_v52 = vld [vmem:[#allocation13 + $0x20] sm:$0xff]   ;;  %3944 = vmatpush1.bf16.msra.mxu1 %v5997_v22 }
 0x5a7   :  { %6647 = vmatpush3.bf16.msra.mxu0 %v6815_v52  ;;  %3945 = vmatprep.subr.bf16.mxu1 %v6014_v57  ;;  %v5988_v57 = vcombine.high %v3094_v50, %v3102_v55 }
 0x5a8   :  { %2920 = vadd.xlane.f32.xlu1 %v2919_v61  ;;  %6648 = vmatprep.subr.bf16.mxu0 %v7199_v0 }
 0x5aa   :  { %3946 = vmatpush1.bf16.msra.mxu1 %v6013_v59 }
 0x5ab   :  { %6649 = vmatpush3.bf16.msra.mxu0 %v6816_v6 }
 0x5ac   :  { %6650 = vmatprep.subr.bf16.mxu0 %v7199_v0 }
 0x5af   :  { %6651 = vmatpush3.bf16.msra.mxu0 %v6817_v7  ;;  %v3155_v7 = vld [vmem:[#allocation14 + $0x200] sm:$0xff] }
 0x5b0   :  { %6652 = vmatprep.subr.bf16.mxu0 %v7199_v0 }
 0x5b3   :  { %6653 = vmatpush3.bf16.msra.mxu0 %v6818_v8  ;;  %v3163_v8 = vld [vmem:[#allocation14 + $0x240] sm:$0xff] }
 0x5b4   :  { %3982 = vmatprep.subr.bf16.mxu0 %v5984_v45  ;;  %v3212_v45 = vld [vmem:[#allocation14 + $0x3c8] sm:$0xff] }
 0x5b5   :  { %v6095_v46 = vcombine.low %v3204_v43, %v3212_v45  ;;  %v6096_v47 = vcombine.high %v3204_v43, %v3212_v45  ;;  %v3181_v43 = vld [vmem:[#allocation14 + $0x2d0] sm:$0xff]  ;;  %v3182_v45 = vld [vmem:[#allocation14 + $0x2d8] sm:$0xff] }
 0x635   :  { %v2921_v1 = vpop.xlane.xlu1 %2920 }
 0x636   :  { %v2922_v2 = vmul.f32 0.0078125, %v2921_v1  ;;  %v3139_v1 = vld [vmem:[#allocation14 + $0x180] sm:$0xff] }
 0x638   :  { %v2923_v3 = vsub.f32 %v2919_v61, %v2922_v2  ;;  %v3147_v2 = vld [vmem:[#allocation14 + $0x1c0] sm:$0xff] }
 0x639   :  { %v6029_v5 = vcombine.low %v3139_v1, %v3147_v2 }
 0x63a   :  { %v2924_v4 = vmul.f32 %v2923_v3, %v2923_v3 }
 0x63c   :  { %2925 = vadd.xlane.f32.xlu1 %v2924_v4  ;;  %v6030_v4 = vcombine.high %v3139_v1, %v3147_v2  ;;  %v5980_v1 = vld [vmem:[#allocation5 + $0x19] ss:$0 sm:$0xff] }
 0x63e   :  { %3947 = vmatprep.subr.bf16.mxu1 %v6030_v4  ;;  %v3117_v4 = vld [vmem:[#allocation14 + $0xd0] sm:$0xff] }
 0x63f   :  { %3948 = vmatpush1.bf16.msra.mxu1 %v6029_v5  ;;  %v3118_v5 = vld [vmem:[#allocation14 + $0xd8] sm:$0xff] }
 0x6c9   :  { %v2926_v9 = vpop.xlane.xlu1 %2925 }
 0x6ca   :  { %v2927_v10 = vmul.f32 0.0078125, %v2926_v9  ;;  %v3156_v9 = vld [vmem:[#allocation14 + $0x208] sm:$0xff] }
 0x6cc   :  { %v2928_v11 = vadd.f32 1e-05, %v2927_v10  ;;  %v6046_v10 = vcombine.high %v3155_v7, %v3163_v8 }
 0x6ce   :  { %6949 = vrsqrt.f32 %v2928_v11  ;;  %v3164_v11 = vld [vmem:[#allocation14 + $0x248] sm:$0xff]  ;;  %3949 = vmatprep.subr.bf16.mxu1 %v6046_v10  ;;  %v3133_v10 = vld [vmem:[#allocation14 + $0x150] sm:$0xff] }
 0x6d8   :  { %v6950_v12 = vpop.eup %6949 }
 0x6d9   :  { %v2930_v16 = vmul.f32 %v6950_v12, %v2923_v3  ;;  %v3140_v3 = vld [vmem:[#allocation14 + $0x188] sm:$0xff]  ;;  %v6045_v12 = vcombine.low %v3155_v7, %v3163_v8 }
 0x6da   :  { %v6031_v52 = vcombine.low %v3140_v3, %v3148_v53  ;;  %v6032_v6 = vcombine.high %v3140_v3, %v3148_v53  ;;  %v3109_v3 = vld [vmem:[#allocation14 + $0x90] sm:$0xff]  ;;  %v3110_v53 = vld [vmem:[#allocation14 + $0x98] sm:$0xff] }
 0x6db   :  { %v2937_v20 = vmul.f32 %v5968_v15, %v2930_v16  ;;  %v6047_v15 = vcombine.low %v3156_v9, %v3164_v11  ;;  %v6048_v16 = vcombine.high %v3156_v9, %v3164_v11  ;;  %3950 = vmatpush1.bf16.msra.mxu1 %v6045_v12  ;;  %v6002_v7 = vcombine.high %v3109_v3, %v3117_v4  ;;  %v3125_v9 = vld [vmem:[#allocation14 + $0x110] sm:$0xff]  ;;  %v3126_v11 = vld [vmem:[#allocation14 + $0x118] sm:$0xff] }
 0x6dc   :  { %v6004_v8 = vcombine.high %v3110_v53, %v3118_v5  ;;  %v3134_v12 = vld [vmem:[#allocation14 + $0x158] sm:$0xff] }
 0x6dd   :  { %v2944_v21 = vadd.f32 %v5969_v19, %v2937_v20  ;;  %v3171_v19 = vld [vmem:[#allocation14 + $0x280] sm:$0xff] }
 0x6de   :  { %v3179_v20 = vld [vmem:[#allocation14 + $0x2c0] sm:$0xff] }
 0x6df   :  { %v2953_v23 = vpack.c.bf16 %v2944_v21, %v2944_v21 }
 0x6e1   :  { %6655 = vmatmul.mubr.bf16.vlgmr.msra.gmra.mrb[36].mxu0 %v2953_v23  ;;  %v6062_v23 = vcombine.high %v3171_v19, %v3179_v20 }
 0x6e2   :  { %4014 = vmatprep.mubr.bf16.mxu0 %v7201_v38  ;;  %3983 = vmatpush1.bf16.msra.mxu0 %v5983_v44  ;;  %v6094_v44 = vcombine.high %v3203_v41, %v3211_v42  ;;  %v3173_v42 = vld [vmem:[#allocation14 + $0x290] sm:$0xff] }
 0x6e3   :  { %3984 = vmatprep.subr.bf16.mxu0 %v6000_v49  ;;  %3951 = vmatprep.subr.bf16.mxu1 %v6062_v23  ;;  %v3101_v49 = vld [vmem:[#allocation14 + $0x50] sm:$0xff]  ;;  %v3142_v23 = vld [vmem:[#allocation14 + $0x198] sm:$0xff] }
 0x6e4   :  { %v5986_v54 = vcombine.high %v3093_v48, %v3101_v49  ;;  %v5985_v22 = vcombine.low %v3093_v48, %v3101_v49  ;;  %v3189_v49 = vld [vmem:[#allocation14 + $0x310] sm:$0xff] }
 0x6e6   :  { %3985 = vmatpush1.bf16.msra.mxu0 %v5999_v56  ;;  %v5987_v56 = vcombine.low %v3094_v50, %v3102_v55  ;;  %v3197_v50 = vld [vmem:[#allocation14 + $0x350] sm:$0xff]  ;;  %v3198_v55 = vld [vmem:[#allocation14 + $0x358] sm:$0xff] }
 0x6e7   :  { %3986 = vmatprep.subr.bf16.mxu0 %v6016_v58 }
 0x6ea   :  { %3987 = vmatpush1.bf16.msra.mxu0 %v6015_v51 }
 0x6eb   :  { %3988 = vmatprep.subr.bf16.mxu0 %v6032_v6 }
 0x6ee   :  { %3989 = vmatpush1.bf16.msra.mxu0 %v6031_v52 }
 0x6ef   :  { %3990 = vmatprep.subr.bf16.mxu0 %v6048_v16  ;;  %v6018_v16 = vcombine.high %v3125_v9, %v3133_v10 }
 0x6f2   :  { %3991 = vmatpush1.bf16.msra.mxu0 %v6047_v15  ;;  %v6003_v15 = vcombine.low %v3110_v53, %v3118_v5  ;;  %v3103_v53 = vld [vmem:[#allocation14 + $0x60] sm:$0xff]  ;;  %v3096_v5 = vld [vmem:[#allocation14 + $0x28] sm:$0xff] }
 0x7b4   :  { %v3058_v24 = vpop.f32.mrb[36].mxu0 }
 0x7b5   :  { %v3059_v31 = vadd.f32 %v5970_v30, %v3058_v24  ;;  %v6656_v32 = vpop.f32.mrb[37].mxu0  ;;  %v3180_v30 = vld [vmem:[#allocation14 + $0x2c8] sm:$0xff]  ;;  %v6061_v24 = vcombine.low %v3171_v19, %v3179_v20  ;;  %v6020_v19 = vcombine.high %v3126_v11, %v3134_v12  ;;  %v3141_v20 = vld [vmem:[#allocation14 + $0x190] sm:$0xff] }
 0x7b6   :  { %v3061_v0 = vpop.f32.mrb[38].mxu0 }
 0x7b7   :  { %v6657_v33 = vpop.f32.mrb[39].mxu0  ;;  %v3064_v34 = vadd.f32 %v3059_v31, %v2944_v21  ;;  %v3172_v21 = vld [vmem:[#allocation14 + $0x288] sm:$0xff]  ;;  %3952 = vmatpush1.bf16.msra.mxu1 %v6061_v24  ;;  %v3187_v0 = vld [vmem:[#allocation14 + $0x300] sm:$0xff]  ;;  %v6017_v24 = vcombine.low %v3125_v9, %v3133_v10 }
 0x7b8   :  { %v6063_v31 = vcombine.low %v3172_v21, %v3180_v30  ;;  %v6064_v32 = vcombine.high %v3172_v21, %v3180_v30  ;;  %v3195_v33 = vld [vmem:[#allocation14 + $0x340] sm:$0xff]  ;;  %v3149_v21 = vld [vmem:[#allocation14 + $0x1d0] sm:$0xff]  ;;  %v3150_v30 = vld [vmem:[#allocation14 + $0x1d8] sm:$0xff] }
 0x7b9   :  { %3065 = vadd.xlane.f32.xlu0 %v3064_v34  ;;  %v6078_v35 = vcombine.high %v3187_v0, %v3195_v33  ;;  %v6077_v37 = vcombine.low %v3187_v0, %v3195_v33  ;;  %v6036_v0 = vcombine.high %v3142_v23, %v3150_v30  ;;  %v3157_v33 = vld [vmem:[#allocation14 + $0x210] sm:$0xff] }
 0x7ba   :  { %3992 = vmatprep.subr.bf16.mxu0 %v6064_v32  ;;  %v6034_v32 = vcombine.high %v3141_v20, %v3149_v21 }
 0x7bb   :  { %3993 = vmatpush1.bf16.msra.mxu0 %v6063_v31  ;;  %3953 = vmatprep.subr.bf16.mxu1 %v6078_v35  ;;  %v6019_v31 = vcombine.low %v3126_v11, %v3134_v12  ;;  %v3158_v35 = vld [vmem:[#allocation14 + $0x218] sm:$0xff]  ;;  %v3111_v12 = vld [vmem:[#allocation14 + $0xa0] sm:$0xff] }
 0x7bc   :  { %3954 = vmatpush1.bf16.msra.mxu1 %v6077_v37  ;;  %v6033_v37 = vcombine.low %v3141_v20, %v3149_v21 }
 0x7bd   :  { %3955 = vmatprep.subr.bf16.mxu1 %v6094_v44  ;;  %v3174_v44 = vld [vmem:[#allocation14 + $0x298] sm:$0xff] }
 0x7be   :  { %v6068_v48 = vcombine.high %v3174_v44, %v3182_v45 }
 0x7c0   :  { %3956 = vmatpush1.bf16.msra.mxu1 %v6093_v27 }
 0x7c1   :  { %4023 = vmatprep.subr.bf16.mxu1 %v5986_v54  ;;  %v3190_v54 = vld [vmem:[#allocation14 + $0x318] sm:$0xff] }
 0x846   :  { %v3066_v60 = vpop.xlane.xlu0 %3065 }
 0x847   :  { %v3067_v61 = vmul.f32 0.0078125, %v3066_v60 }
 0x849   :  { %v7511_v62 = vsub.f32 %v3064_v34, %v3067_v61  ;;  %v3188_v34 = vld [vmem:[#allocation14 + $0x308] sm:$0xff]  ;;  %v5979_v61 = vld [vmem:[#allocation5 + $0x18] ss:$0 sm:$0xff] }
 0x84a   :  { %v6079_v39 = vcombine.low %v3188_v34, %v3196_v36  ;;  %v6080_v40 = vcombine.high %v3188_v34, %v3196_v36  ;;  %v3165_v34 = vld [vmem:[#allocation14 + $0x250] sm:$0xff]  ;;  %v3166_v36 = vld [vmem:[#allocation14 + $0x258] sm:$0xff] }
 0x84b   :  { %v3069_v63 = vmul.f32 %v7511_v62, %v7511_v62  ;;  %v6052_v41 = vcombine.high %v3158_v35, %v3166_v36  ;;  %v6049_v27 = vcombine.low %v3157_v33, %v3165_v34 }
 0x84c   :  { %3994 = vmatprep.subr.bf16.mxu0 %v6080_v40  ;;  %v6050_v40 = vcombine.high %v3157_v33, %v3165_v34 }
 0x84d   :  { %3070 = vadd.xlane.f32.xlu1 %v3069_v63  ;;  %3995 = vmatpush1.bf16.msra.mxu0 %v6079_v39  ;;  %v6035_v39 = vcombine.low %v3142_v23, %v3150_v30  ;;  %v3127_v30 = vld [vmem:[#allocation14 + $0x120] sm:$0xff] }
 0x84e   :  { %3996 = vmatprep.subr.bf16.mxu0 %v6096_v47  ;;  %v6066_v47 = vcombine.high %v3173_v42, %v3181_v43 }
 0x851   :  { %3997 = vmatpush1.bf16.msra.mxu0 %v6095_v46  ;;  %v6051_v46 = vcombine.low %v3158_v35, %v3166_v36  ;;  %v3143_v36 = vld [vmem:[#allocation14 + $0x1a0] sm:$0xff] }
 0x852   :  { %4064 = vmatprep.subr.bf16.mxu0 %v5988_v57  ;;  %v6082_v57 = vcombine.high %v3189_v49, %v3197_v50 }
 0x8da   :  { %v3071_v58 = vpop.xlane.xlu1 %3070 }
 0x8db   :  { %v3072_v59 = vmul.f32 0.0078125, %v3071_v58  ;;  %v6084_v58 = vcombine.high %v3190_v54, %v3198_v55 }
 0x8dd   :  { %v3073_v51 = vadd.f32 1e-05, %v3072_v59  ;;  %v3205_v59 = vld [vmem:[#allocation14 + $0x390] sm:$0xff] }
 0x8df   :  { %6951 = vrsqrt.f32 %v3073_v51  ;;  %v3213_v51 = vld [vmem:[#allocation14 + $0x3d0] sm:$0xff] }
 0x8e9   :  { %v6952_v60 = vpop.eup %6951 }
 0x8ea   :  { %v3075_v63 = vmul.f32 %v6952_v60, %v7511_v62  ;;  %v6001_v62 = vcombine.low %v3109_v3, %v3117_v4  ;;  %v3206_v60 = vld [vmem:[#allocation14 + $0x398] sm:$0xff]  ;;  %v3095_v4 = vld [vmem:[#allocation14 + $0x20] sm:$0xff] }
 0x8eb   :  { %v5990_v10 = vcombine.high %v3095_v4, %v3103_v53 }
 0x8ec   :  { %v3082_v2 = vmul.f32 %v5979_v61, %v3075_v63  ;;  %v3214_v61 = vld [vmem:[#allocation14 + $0x3d8] sm:$0xff]  ;;  %v6081_v63 = vcombine.low %v3189_v49, %v3197_v50 }
 0x8ed   :  { %v6100_v3 = vcombine.high %v3206_v60, %v3214_v61  ;;  %v6099_v9 = vcombine.low %v3206_v60, %v3214_v61  ;;  %v3191_v61 = vld [vmem:[#allocation14 + $0x320] sm:$0xff] }
 0x8ee   :  { %v7516_v52 = vadd.f32 %v5980_v1, %v3082_v2  ;;  %v6083_v1 = vcombine.low %v3190_v54, %v3198_v55  ;;  %v6098_v2 = vcombine.high %v3205_v59, %v3213_v51  ;;  %v3175_v55 = vld [vmem:[#allocation14 + $0x2a0] sm:$0xff] }
 0x8f0   :  { %v7520_v6 = vpack.c.bf16 %v7516_v52, %v7516_v52 }
 0x8f2   :  { %3974 = vmatmul.mubr.bf16.vlgmr.msra.gmra.mrb[36].mxu1 %v7520_v6  ;;  %4015 = vmatmul.mubr.bf16.vlgmr.msra.gmra.mrb[40].mxu0 %v7520_v6 }
 0x8f3   :  { %4024 = vmatpush1.bf16.msra.mxu1 %v5985_v22  ;;  %4065 = vmatpush1.bf16.msra.mxu0 %v5987_v56  ;;  %v6065_v22 = vcombine.low %v3173_v42, %v3181_v43  ;;  %v6067_v56 = vcombine.low %v3174_v44, %v3182_v45  ;;  %v3159_v45 = vld [vmem:[#allocation14 + $0x220] sm:$0xff] }
 0x8f4   :  { %4025 = vmatprep.subr.bf16.mxu1 %v6002_v7  ;;  %4066 = vmatprep.subr.bf16.mxu0 %v6004_v8  ;;  %v3104_v7 = vld [vmem:[#allocation14 + $0x68] sm:$0xff]  ;;  %v6097_v8 = vcombine.low %v3205_v59, %v3213_v51 }
 0x8f5   :  { %4055 = vmatprep.mubr.bf16.mxu1 %v7201_v38  ;;  %4096 = vmatprep.mubr.bf16.mxu0 %v7201_v38  ;;  %v5992_v11 = vcombine.high %v3096_v5, %v3104_v7  ;;  %v5991_v20 = vcombine.low %v3096_v5, %v3104_v7  ;;  %v3207_v7 = vld [vmem:[#allocation14 + $0x3a0] sm:$0xff] }
 0x8f7   :  { %4026 = vmatpush1.bf16.msra.mxu1 %v6001_v62  ;;  %4067 = vmatpush1.bf16.msra.mxu0 %v6003_v15  ;;  %v3119_v62 = vld [vmem:[#allocation14 + $0xe0] sm:$0xff]  ;;  %v3112_v15 = vld [vmem:[#allocation14 + $0xa8] sm:$0xff] }
 0x8f8   :  { %4027 = vmatprep.subr.bf16.mxu1 %v6018_v16  ;;  %4068 = vmatprep.subr.bf16.mxu0 %v6020_v19  ;;  %v3120_v16 = vld [vmem:[#allocation14 + $0xe8] sm:$0xff]  ;;  %v5989_v19 = vcombine.low %v3095_v4, %v3103_v53  ;;  %v6006_v21 = vcombine.high %v3111_v12, %v3119_v62 }
 0x8f9   :  { %v6008_v23 = vcombine.high %v3112_v15, %v3120_v16  ;;  %v6007_v33 = vcombine.low %v3112_v15, %v3120_v16  ;;  %v3097_v16 = vld [vmem:[#allocation14 + $0x30] sm:$0xff] }
 0x8fb   :  { %4028 = vmatpush1.bf16.msra.mxu1 %v6017_v24  ;;  %4069 = vmatpush1.bf16.msra.mxu0 %v6019_v31  ;;  %v3135_v24 = vld [vmem:[#allocation14 + $0x160] sm:$0xff]  ;;  %v3128_v31 = vld [vmem:[#allocation14 + $0x128] sm:$0xff] }
 0x8fc   :  { %4029 = vmatprep.subr.bf16.mxu1 %v6034_v32  ;;  %4070 = vmatprep.subr.bf16.mxu0 %v6036_v0  ;;  %v3136_v32 = vld [vmem:[#allocation14 + $0x168] sm:$0xff]  ;;  %v6005_v0 = vcombine.low %v3111_v12, %v3119_v62  ;;  %v6022_v34 = vcombine.high %v3127_v30, %v3135_v24 }
 0x8fd   :  { %v6024_v35 = vcombine.high %v3128_v31, %v3136_v32  ;;  %v6023_v42 = vcombine.low %v3128_v31, %v3136_v32  ;;  %v3113_v32 = vld [vmem:[#allocation14 + $0xb0] sm:$0xff] }
 0x8ff   :  { %4030 = vmatpush1.bf16.msra.mxu1 %v6033_v37  ;;  %4071 = vmatpush1.bf16.msra.mxu0 %v6035_v39  ;;  %v3151_v37 = vld [vmem:[#allocation14 + $0x1e0] sm:$0xff]  ;;  %v3144_v39 = vld [vmem:[#allocation14 + $0x1a8] sm:$0xff] }
 0x900   :  { %4031 = vmatprep.subr.bf16.mxu1 %v6050_v40  ;;  %4072 = vmatprep.subr.bf16.mxu0 %v6052_v41  ;;  %v3152_v40 = vld [vmem:[#allocation14 + $0x1e8] sm:$0xff]  ;;  %v6021_v41 = vcombine.low %v3127_v30, %v3135_v24  ;;  %v6038_v43 = vcombine.high %v3143_v36, %v3151_v37 }
 0x901   :  { %v6040_v44 = vcombine.high %v3144_v39, %v3152_v40  ;;  %v6039_v49 = vcombine.low %v3144_v39, %v3152_v40  ;;  %v3129_v40 = vld [vmem:[#allocation14 + $0x130] sm:$0xff] }
 0x903   :  { %4032 = vmatpush1.bf16.msra.mxu1 %v6049_v27  ;;  %4073 = vmatpush1.bf16.msra.mxu0 %v6051_v46  ;;  %v3167_v27 = vld [vmem:[#allocation14 + $0x260] sm:$0xff]  ;;  %v3160_v46 = vld [vmem:[#allocation14 + $0x228] sm:$0xff] }
 0x904   :  { %4033 = vmatprep.subr.bf16.mxu1 %v6066_v47  ;;  %4074 = vmatprep.subr.bf16.mxu0 %v6068_v48  ;;  %v3168_v47 = vld [vmem:[#allocation14 + $0x268] sm:$0xff]  ;;  %v6037_v48 = vcombine.low %v3143_v36, %v3151_v37  ;;  %v6054_v50 = vcombine.high %v3159_v45, %v3167_v27 }
 0x905   :  { %v6056_v54 = vcombine.high %v3160_v46, %v3168_v47  ;;  %v6055_v59 = vcombine.low %v3160_v46, %v3168_v47  ;;  %v3145_v47 = vld [vmem:[#allocation14 + $0x1b0] sm:$0xff] }
 0x907   :  { %4034 = vmatpush1.bf16.msra.mxu1 %v6065_v22  ;;  %4075 = vmatpush1.bf16.msra.mxu0 %v6067_v56  ;;  %v3183_v22 = vld [vmem:[#allocation14 + $0x2e0] sm:$0xff]  ;;  %v3176_v56 = vld [vmem:[#allocation14 + $0x2a8] sm:$0xff] }
 0x908   :  { %4035 = vmatprep.subr.bf16.mxu1 %v6082_v57  ;;  %4076 = vmatprep.subr.bf16.mxu0 %v6084_v58  ;;  %v3184_v57 = vld [vmem:[#allocation14 + $0x2e8] sm:$0xff]  ;;  %v6053_v58 = vcombine.low %v3159_v45, %v3167_v27  ;;  %v6070_v51 = vcombine.high %v3175_v55, %v3183_v22 }
 0x909   :  { %v6072_v60 = vcombine.high %v3176_v56, %v3184_v57  ;;  %v6071_v4 = vcombine.low %v3176_v56, %v3184_v57  ;;  %v3161_v57 = vld [vmem:[#allocation14 + $0x230] sm:$0xff] }
 0x90b   :  { %4036 = vmatpush1.bf16.msra.mxu1 %v6081_v63  ;;  %4077 = vmatpush1.bf16.msra.mxu0 %v6083_v1  ;;  %v3199_v63 = vld [vmem:[#allocation14 + $0x360] sm:$0xff]  ;;  %v3192_v1 = vld [vmem:[#allocation14 + $0x328] sm:$0xff] }
 0x90c   :  { %4037 = vmatprep.subr.bf16.mxu1 %v6098_v2  ;;  %4078 = vmatprep.subr.bf16.mxu0 %v6100_v3  ;;  %v3200_v2 = vld [vmem:[#allocation14 + $0x368] sm:$0xff]  ;;  %v6069_v3 = vcombine.low %v3175_v55, %v3183_v22  ;;  %v6086_v53 = vcombine.high %v3191_v61, %v3199_v63 }
 0x90d   :  { %v6088_v5 = vcombine.high %v3192_v1, %v3200_v2  ;;  %v6087_v12 = vcombine.low %v3192_v1, %v3200_v2  ;;  %v3177_v1 = vld [vmem:[#allocation14 + $0x2b0] sm:$0xff] }
 0x90e   :  { %v3185_v2 = vld [vmem:[#allocation14 + $0x2f0] sm:$0xff] }
 0x90f   :  { %4038 = vmatpush1.bf16.msra.mxu1 %v6097_v8  ;;  %4079 = vmatpush1.bf16.msra.mxu0 %v6099_v9  ;;  %v3215_v8 = vld [vmem:[#allocation14 + $0x3e0] sm:$0xff]  ;;  %v3208_v9 = vld [vmem:[#allocation14 + $0x3a8] sm:$0xff] }
 0x910   :  { %4105 = vmatprep.subr.bf16.mxu1 %v5990_v10  ;;  %4146 = vmatprep.subr.bf16.mxu0 %v5992_v11  ;;  %v3216_v10 = vld [vmem:[#allocation14 + $0x3e8] sm:$0xff]  ;;  %v6085_v11 = vcombine.low %v3191_v61, %v3199_v63  ;;  %v6102_v62 = vcombine.high %v3207_v7, %v3215_v8 }
 0x911   :  { %v6104_v15 = vcombine.high %v3208_v9, %v3216_v10  ;;  %v6103_v30 = vcombine.low %v3208_v9, %v3216_v10  ;;  %v3193_v9 = vld [vmem:[#allocation14 + $0x330] sm:$0xff] }
 0x912   :  { %4056 = vmatmul.mubr.bf16.vlgmr.msra.gmra.mrb[40].mxu1 %v7520_v6  ;;  %4097 = vmatmul.mubr.bf16.vlgmr.msra.gmra.mrb[44].mxu0 %v7520_v6  ;;  %v3201_v10 = vld [vmem:[#allocation14 + $0x370] sm:$0xff] }
 0x913   :  { %4106 = vmatpush1.bf16.msra.mxu1 %v5989_v19  ;;  %4147 = vmatpush1.bf16.msra.mxu0 %v5991_v20  ;;  %v3105_v19 = vld [vmem:[#allocation14 + $0x70] sm:$0xff]  ;;  %v3098_v20 = vld [vmem:[#allocation14 + $0x38] sm:$0xff] }
 0x914   :  { %4107 = vmatprep.subr.bf16.mxu1 %v6006_v21  ;;  %4148 = vmatprep.subr.bf16.mxu0 %v6008_v23  ;;  %v3106_v21 = vld [vmem:[#allocation14 + $0x78] sm:$0xff]  ;;  %v6101_v23 = vcombine.low %v3207_v7, %v3215_v8  ;;  %v5994_v24 = vcombine.high %v3097_v16, %v3105_v19  ;;  %v6074_v7 = vcombine.high %v3177_v1, %v3185_v2 }
 0x915   :  { %4137 = vmatprep.mubr.bf16.mxu1 %v7201_v38  ;;  %4178 = vmatprep.mubr.bf16.mxu0 %v7201_v38  ;;  %v5996_v31 = vcombine.high %v3098_v20, %v3106_v21  ;;  %v5995_v36 = vcombine.low %v3098_v20, %v3106_v21  ;;  %v3209_v20 = vld [vmem:[#allocation14 + $0x3b0] sm:$0xff] }
 0x916   :  { %v3217_v21 = vld [vmem:[#allocation14 + $0x3f0] sm:$0xff] }
 0x917   :  { %4108 = vmatpush1.bf16.msra.mxu1 %v6005_v0  ;;  %4149 = vmatpush1.bf16.msra.mxu0 %v6007_v33  ;;  %v3121_v0 = vld [vmem:[#allocation14 + $0xf0] sm:$0xff]  ;;  %v3114_v33 = vld [vmem:[#allocation14 + $0xb8] sm:$0xff] }
 0x918   :  { %4109 = vmatprep.subr.bf16.mxu1 %v6022_v34  ;;  %4150 = vmatprep.subr.bf16.mxu0 %v6024_v35  ;;  %v3122_v34 = vld [vmem:[#allocation14 + $0xf8] sm:$0xff]  ;;  %v5993_v35 = vcombine.low %v3097_v16, %v3105_v19  ;;  %v6010_v37 = vcombine.high %v3113_v32, %v3121_v0  ;;  %v6090_v16 = vcombine.high %v3193_v9, %v3201_v10 }
 0x919   :  { %v6012_v39 = vcombine.high %v3114_v33, %v3122_v34  ;;  %v6011_v45 = vcombine.low %v3114_v33, %v3122_v34  ;;  %v6105_v33 = vcombine.low %v3209_v20, %v3217_v21 }
 0x91b   :  { %4110 = vmatpush1.bf16.msra.mxu1 %v6021_v41  ;;  %4151 = vmatpush1.bf16.msra.mxu0 %v6023_v42  ;;  %v3137_v41 = vld [vmem:[#allocation14 + $0x170] sm:$0xff]  ;;  %v3130_v42 = vld [vmem:[#allocation14 + $0x138] sm:$0xff] }
 0x91c   :  { %4111 = vmatprep.subr.bf16.mxu1 %v6038_v43  ;;  %4152 = vmatprep.subr.bf16.mxu0 %v6040_v44  ;;  %v3138_v43 = vld [vmem:[#allocation14 + $0x178] sm:$0xff]  ;;  %v6009_v44 = vcombine.low %v3113_v32, %v3121_v0  ;;  %v6026_v27 = vcombine.high %v3129_v40, %v3137_v41  ;;  %v6106_v32 = vcombine.high %v3209_v20, %v3217_v21 }
 0x91d   :  { %v6028_v46 = vcombine.high %v3130_v42, %v3138_v43  ;;  %v6027_v55 = vcombine.low %v3130_v42, %v3138_v43  ;;  %v6825_v42 = vld [vmem:[#allocation16 + $0x8] sm:$0xff]  }
 0x91e   :  { %v6826_v43 = vld [vmem:[#allocation16 + $0x88] sm:$0xff]  }
 0x91f   :  { %4112 = vmatpush1.bf16.msra.mxu1 %v6037_v48  ;;  %4153 = vmatpush1.bf16.msra.mxu0 %v6039_v49  ;;  %v3153_v48 = vld [vmem:[#allocation14 + $0x1f0] sm:$0xff]  ;;  %v3146_v49 = vld [vmem:[#allocation14 + $0x1b8] sm:$0xff] }
 0x920   :  { %4113 = vmatprep.subr.bf16.mxu1 %v6054_v50  ;;  %4154 = vmatprep.subr.bf16.mxu0 %v6056_v54  ;;  %v3154_v50 = vld [vmem:[#allocation14 + $0x1f8] sm:$0xff]  ;;  %v6025_v54 = vcombine.low %v3129_v40, %v3137_v41  ;;  %v6042_v22 = vcombine.high %v3145_v47, %v3153_v48  ;;  %v6823_v40 = vld [vmem:[#allocation16 + $0x48] sm:$0xff]  }
 0x921   :  { %v6044_v56 = vcombine.high %v3146_v49, %v3154_v50  ;;  %v6043_v61 = vcombine.low %v3146_v49, %v3154_v50  ;;  %v6824_v41 = vld [vmem:[#allocation16 + $0xc8] sm:$0xff]   ;;  %v6833_v49 = vld [vmem:[#allocation16 + $0x18] sm:$0xff]   ;;  %v6835_v50 = vld [vmem:[#allocation16 + $0x60] sm:$0xff]  }
 0x923   :  { %4114 = vmatpush1.bf16.msra.mxu1 %v6053_v58  ;;  %4155 = vmatpush1.bf16.msra.mxu0 %v6055_v59  ;;  %v3169_v58 = vld [vmem:[#allocation14 + $0x270] sm:$0xff]  ;;  %v3162_v59 = vld [vmem:[#allocation14 + $0x238] sm:$0xff] }
 0x924   :  { %4115 = vmatprep.subr.bf16.mxu1 %v6070_v51  ;;  %4156 = vmatprep.subr.bf16.mxu0 %v6072_v60  ;;  %v3170_v51 = vld [vmem:[#allocation14 + $0x278] sm:$0xff]  ;;  %v6041_v60 = vcombine.low %v3145_v47, %v3153_v48  ;;  %v6058_v63 = vcombine.high %v3161_v57, %v3169_v58 }
 0x925   :  { %v6831_v47 = vld [vmem:[#allocation16 + $0x58] sm:$0xff]  }
 0x926   :  { %v6832_v48 = vld [vmem:[#allocation16 + $0xd8] sm:$0xff]  }
 0x927   :  { %4116 = vmatpush1.bf16.msra.mxu1 %v6069_v3  ;;  %4157 = vmatpush1.bf16.msra.mxu0 %v6071_v4  ;;  %v3178_v3 = vld [vmem:[#allocation14 + $0x2b8] sm:$0xff] }
 0x928   :  { %4117 = vmatprep.subr.bf16.mxu1 %v6086_v53  ;;  %4158 = vmatprep.subr.bf16.mxu0 %v6088_v5  ;;  %v3186_v4 = vld [vmem:[#allocation14 + $0x2f8] sm:$0xff]  ;;  %v6057_v53 = vcombine.low %v3161_v57, %v3169_v58  ;;  %v6059_v5 = vcombine.low %v3162_v59, %v3170_v51  ;;  %v6840_v57 = vld [vmem:[#allocation16 + $0xe8] sm:$0xff]  }
 0x929   :  { %v6076_v8 = vcombine.high %v3178_v3, %v3186_v4  ;;  %v6841_v58 = vld [vmem:[#allocation16 + $0x28] sm:$0xff]  }
 0x92b   :  { %4118 = vmatpush1.bf16.msra.mxu1 %v6085_v11  ;;  %4159 = vmatpush1.bf16.msra.mxu0 %v6087_v12  ;;  %v3194_v11 = vld [vmem:[#allocation14 + $0x338] sm:$0xff] }
 0x92c   :  { %4119 = vmatprep.subr.bf16.mxu1 %v6102_v62  ;;  %4160 = vmatprep.subr.bf16.mxu0 %v6104_v15  ;;  %v3202_v12 = vld [vmem:[#allocation14 + $0x378] sm:$0xff]  ;;  %v6073_v62 = vcombine.low %v3177_v1, %v3185_v2  ;;  %v6075_v15 = vcombine.low %v3178_v3, %v3186_v4  ;;  %v6851_v4 = vld [vmem:[#allocation16 + $0x140] sm:$0xff]  }
 0x92d   :  { %v6092_v19 = vcombine.high %v3194_v11, %v3202_v12  ;;  %v6848_v1 = vld [vmem:[#allocation16 + $0xf8] sm:$0xff]  }
 0x92e   :  { %v6849_v2 = vld [vmem:[#allocation16 + $0x38] sm:$0xff]  }
 0x92f   :  { %4120 = vmatpush1.bf16.msra.mxu1 %v6101_v23  ;;  %4161 = vmatpush1.bf16.msra.mxu0 %v6103_v30  ;;  %v3210_v23 = vld [vmem:[#allocation14 + $0x3b8] sm:$0xff] }
 0x930   :  { %4187 = vmatprep.subr.bf16.mxu1 %v5994_v24  ;;  %4228 = vmatprep.subr.bf16.mxu0 %v5996_v31  ;;  %v3218_v30 = vld [vmem:[#allocation14 + $0x3f8] sm:$0xff]  ;;  %v6089_v24 = vcombine.low %v3193_v9, %v3201_v10  ;;  %v6091_v31 = vcombine.low %v3194_v11, %v3202_v12 }
 0x931   :  { %v6108_v0 = vcombine.high %v3210_v23, %v3218_v30  ;;  %v6107_v34 = vcombine.low %v3210_v23, %v3218_v30  ;;  %v6850_v3 = vld [vmem:[#allocation16 + $0xb8] sm:$0xff]  }
 0x932   :  { %4138 = vmatmul.mubr.bf16.vlgmr.msra.gmra.mrb[44].mxu1 %v7520_v6  ;;  %4179 = vmatmul.mubr.bf16.vlgmr.msra.gmra.mrb[48].mxu0 %v7520_v6 }
 0x933   :  { %4188 = vmatpush1.bf16.msra.mxu1 %v5993_v35  ;;  %4229 = vmatpush1.bf16.msra.mxu0 %v5995_v36  ;;  %v6819_v35 = vld [vmem:[#allocation16 + $0x40] sm:$0xff]  }
 0x934   :  { %4189 = vmatprep.subr.bf16.mxu1 %v6010_v37  ;;  %4230 = vmatprep.subr.bf16.mxu0 %v6012_v39  ;;  %v6820_v36 = vld [vmem:[#allocation16 + $0xc0] sm:$0xff]  }
 0x935   :  { %4219 = vmatprep.mubr.bf16.mxu1 %v7201_v38  ;;  %4260 = vmatprep.mubr.bf16.mxu0 %v7201_v38  ;;  %v6060_v38 = vcombine.high %v3162_v59, %v3170_v51  ;;  %v6821_v37 = vld [vmem:[#allocation16] sm:$0xff]   ;;  %v6842_v59 = vld [vmem:[#allocation16 + $0xa8] sm:$0xff]   ;;  %v6843_v51 = vld [vmem:[#allocation16 + $0x70] sm:$0xff]  }
 0x936   :  { %v6822_v39 = vld [vmem:[#allocation16 + $0x80] sm:$0xff]  }
 0x937   :  { %4190 = vmatpush1.bf16.msra.mxu1 %v6009_v44  ;;  %4231 = vmatpush1.bf16.msra.mxu0 %v6011_v45  ;;  %v6827_v44 = vld [vmem:[#allocation16 + $0x50] sm:$0xff]  }
 0x938   :  { %4191 = vmatprep.subr.bf16.mxu1 %v6026_v27  ;;  %4232 = vmatprep.subr.bf16.mxu0 %v6028_v46  ;;  %v6828_v45 = vld [vmem:[#allocation16 + $0xd0] sm:$0xff]  }
 0x939   :  { %v6829_v27 = vld [vmem:[#allocation16 + $0x10] sm:$0xff]  }
 0x93a   :  { %v6830_v46 = vld [vmem:[#allocation16 + $0x90] sm:$0xff]  }
 0x93b   :  { %4192 = vmatpush1.bf16.msra.mxu1 %v6025_v54  ;;  %4233 = vmatpush1.bf16.msra.mxu0 %v6027_v55  ;;  %v6836_v54 = vld [vmem:[#allocation16 + $0xe0] sm:$0xff]  }
 0x93c   :  { %4193 = vmatprep.subr.bf16.mxu1 %v6042_v22  ;;  %4234 = vmatprep.subr.bf16.mxu0 %v6044_v56  ;;  %v6837_v55 = vld [vmem:[#allocation16 + $0x20] sm:$0xff]   ;;  %v6839_v56 = vld [vmem:[#allocation16 + $0x68] sm:$0xff]  }
 0x93d   :  { %v6838_v22 = vld [vmem:[#allocation16 + $0xa0] sm:$0xff]  }
 0x93f   :  { %4194 = vmatpush1.bf16.msra.mxu1 %v6041_v60  ;;  %4235 = vmatpush1.bf16.msra.mxu0 %v6043_v61  ;;  %v6844_v60 = vld [vmem:[#allocation16 + $0xf0] sm:$0xff]  }
 0x940   :  { %4195 = vmatprep.subr.bf16.mxu1 %v6058_v63  ;;  %4236 = vmatprep.subr.bf16.mxu0 %v6060_v38  ;;  %v6845_v61 = vld [vmem:[#allocation16 + $0x30] sm:$0xff]   ;;  %v6847_v38 = vld [vmem:[#allocation16 + $0x78] sm:$0xff]  }
 0x941   :  { %v6846_v63 = vld [vmem:[#allocation16 + $0xb0] sm:$0xff]  }
 0x943   :  { %4196 = vmatpush1.bf16.msra.mxu1 %v6057_v53  ;;  %4237 = vmatpush1.bf16.msra.mxu0 %v6059_v5  ;;  %v6852_v53 = vld [vmem:[#allocation16 + $0x1c0] sm:$0xff]  }
 0x944   :  { %4197 = vmatprep.subr.bf16.mxu1 %v6074_v7  ;;  %4238 = vmatprep.subr.bf16.mxu0 %v6076_v8  ;;  %v7536_v5 = vld [vmem:[#allocation5 + $0x1d] sm:$0xff] }
 0x945   :  { %v3224_v7 = vrot.slane %v7536_v5, %v7439_v25  ;;  %v3232_v8 = vrot.slane %v7536_v5, %v7442_v26  ;;  %v3228_v9 = vrot.slane %v7536_v5, %v7447_v28  ;;  %v3236_v10 = vrot.slane %v7536_v5, %v7450_v29 }
 0x947   :  { %4198 = vmatpush1.bf16.msra.mxu1 %v6073_v62  ;;  %4239 = vmatpush1.bf16.msra.mxu0 %v6075_v15 }
 0x948   :  { %4199 = vmatprep.subr.bf16.mxu1 %v6090_v16  ;;  %4240 = vmatprep.subr.bf16.mxu0 %v6092_v19 }
 0x94b   :  { %4200 = vmatpush1.bf16.msra.mxu1 %v6089_v24  ;;  %4241 = vmatpush1.bf16.msra.mxu0 %v6091_v31 }
 0x94c   :  { %4201 = vmatprep.subr.bf16.mxu1 %v6106_v32  ;;  %4242 = vmatprep.subr.bf16.mxu0 %v6108_v0 }
 0x94f   :  { %4202 = vmatpush1.bf16.msra.mxu1 %v6105_v33  ;;  %4243 = vmatpush1.bf16.msra.mxu0 %v6107_v34 }
 0x950   :  { %6436 = vmatprep.subr.bf16.mxu1 %v6819_v35  ;;  %6458 = vmatprep.subr.bf16.mxu0 %v6820_v36 }
 0x952   :  { %4220 = vmatmul.mubr.bf16.vlgmr.msra.gmra.mrb[48].mxu1 %v7520_v6  ;;  %4261 = vmatmul.mubr.bf16.vlgmr.msra.gmra.mrb[52].mxu0 %v7520_v6  ;;  %v6834_v6 = vld [vmem:[#allocation16 + $0x98] sm:$0xff]  }
 0x953   :  { %6437 = vmatpush3.bf16.msra.mxu1 %v6821_v37  ;;  %6459 = vmatpush3.bf16.msra.mxu0 %v6822_v39  ;;  %v6853_v37 = vld [vmem:[#allocation16 + $0x100] sm:$0xff]  }
 0x954   :  { %6438 = vmatprep.subr.bf16.mxu1 %v6823_v40  ;;  %6460 = vmatprep.subr.bf16.mxu0 %v6824_v41  ;;  %v6854_v39 = vld [vmem:[#allocation16 + $0x180] sm:$0xff]  }
 0x957   :  { %6439 = vmatpush3.bf16.msra.mxu1 %v6825_v42  ;;  %6461 = vmatpush3.bf16.msra.mxu0 %v6826_v43  ;;  %v6855_v42 = vld [vmem:[#allocation16 + $0x148] sm:$0xff]  }
 0x958   :  { %6440 = vmatprep.subr.bf16.mxu1 %v6827_v44  ;;  %6462 = vmatprep.subr.bf16.mxu0 %v6828_v45  ;;  %v6856_v43 = vld [vmem:[#allocation16 + $0x1c8] sm:$0xff]  }
 0x959   :  { %v6857_v44 = vld [vmem:[#allocation16 + $0x108] sm:$0xff]  }
 0x95a   :  { %v6858_v45 = vld [vmem:[#allocation16 + $0x188] sm:$0xff]  }
 0x95b   :  { %6441 = vmatpush3.bf16.msra.mxu1 %v6829_v27  ;;  %6463 = vmatpush3.bf16.msra.mxu0 %v6830_v46  ;;  %v6859_v27 = vld [vmem:[#allocation16 + $0x150] sm:$0xff]  }
 0x95c   :  { %6442 = vmatprep.subr.bf16.mxu1 %v6831_v47  ;;  %6464 = vmatprep.subr.bf16.mxu0 %v6832_v48  ;;  %v6860_v46 = vld [vmem:[#allocation16 + $0x1d0] sm:$0xff]  }
 0x95d   :  { %v6861_v47 = vld [vmem:[#allocation16 + $0x110] sm:$0xff]  }
 0x95e   :  { %v6862_v48 = vld [vmem:[#allocation16 + $0x190] sm:$0xff]  }
 0x95f   :  { %6443 = vmatpush3.bf16.msra.mxu1 %v6833_v49  ;;  %6465 = vmatpush3.bf16.msra.mxu0 %v6834_v6  ;;  %v6863_v49 = vld [vmem:[#allocation16 + $0x158] sm:$0xff]  }
 0x960   :  { %6444 = vmatprep.subr.bf16.mxu1 %v6835_v50  ;;  %6466 = vmatprep.subr.bf16.mxu0 %v6836_v54  ;;  %v6864_v6 = vld [vmem:[#allocation16 + $0x1d8] sm:$0xff]  }
 0x961   :  { %v6865_v50 = vld [vmem:[#allocation16 + $0x118] sm:$0xff]  }
 0x962   :  { %v6866_v54 = vld [vmem:[#allocation16 + $0x198] sm:$0xff]  }
 0x963   :  { %6445 = vmatpush3.bf16.msra.mxu1 %v6837_v55  ;;  %6467 = vmatpush3.bf16.msra.mxu0 %v6838_v22  ;;  %v6867_v55 = vld [vmem:[#allocation16 + $0x160] sm:$0xff]  }
 0x964   :  { %6446 = vmatprep.subr.bf16.mxu1 %v6839_v56  ;;  %6468 = vmatprep.subr.bf16.mxu0 %v6840_v57  ;;  %v6868_v22 = vld [vmem:[#allocation16 + $0x1e0] sm:$0xff]  }
 0x965   :  { %v6869_v56 = vld [vmem:[#allocation16 + $0x120] sm:$0xff]  }
 0x966   :  { %v6870_v57 = vld [vmem:[#allocation16 + $0x1a0] sm:$0xff]  }
 0x967   :  { %6447 = vmatpush3.bf16.msra.mxu1 %v6841_v58  ;;  %6469 = vmatpush3.bf16.msra.mxu0 %v6842_v59  ;;  %v6871_v58 = vld [vmem:[#allocation16 + $0x168] sm:$0xff]  }
 0x968   :  { %6448 = vmatprep.subr.bf16.mxu1 %v6843_v51  ;;  %6470 = vmatprep.subr.bf16.mxu0 %v6844_v60  ;;  %v6872_v59 = vld [vmem:[#allocation16 + $0x1e8] sm:$0xff]  }
 0x969   :  { %v6873_v51 = vld [vmem:[#allocation16 + $0x128] sm:$0xff]  }
 0x96a   :  { %v6874_v60 = vld [vmem:[#allocation16 + $0x1a8] sm:$0xff]  }
 0x96b   :  { %6449 = vmatpush3.bf16.msra.mxu1 %v6845_v61  ;;  %6471 = vmatpush3.bf16.msra.mxu0 %v6846_v63  ;;  %v6875_v61 = vld [vmem:[#allocation16 + $0x170] sm:$0xff]  }
 0x96c   :  { %6450 = vmatprep.subr.bf16.mxu1 %v6847_v38  ;;  %6472 = vmatprep.subr.bf16.mxu0 %v6848_v1  ;;  %v6876_v63 = vld [vmem:[#allocation16 + $0x1f0] sm:$0xff]   ;;  %v3240_v38 = vrot.slane %v7536_v5, %v7461_v13  ;;  %v3248_v1 = vrot.slane %v7536_v5, %v7464_v14 }
 0x96f   :  { %6451 = vmatpush3.bf16.msra.mxu1 %v6849_v2  ;;  %6473 = vmatpush3.bf16.msra.mxu0 %v6850_v3  ;;  %v3244_v2 = vrot.slane %v7536_v5, %v7467_v17  ;;  %v3252_v3 = vrot.slane %v7536_v5, %v7470_v18  ;;  %v6882_v5 = vld [vmem:[#allocation16 + $0x1b8] sm:$0xff]  }
 0x970   :  { %6480 = vmatprep.subr.bf16.mxu1 %v6851_v4  ;;  %6502 = vmatprep.subr.bf16.mxu0 %v6852_v53  ;;  %v6877_v4 = vld [vmem:[#allocation16 + $0x130] sm:$0xff]  }
 0x971   :  { %v6878_v53 = vld [vmem:[#allocation16 + $0x1b0] sm:$0xff]  }
 0x9c5   :  { %v3975_v11 = vpop.f32.mrb[36].mxu1  ;;  %v4016_v12 = vpop.f32.mrb[40].mxu0 }
 0x9c6   :  { %v3976_v62 = vadd.f32 %v3975_v11, %v3224_v7  ;;  %v4017_v15 = vadd.f32 %v4016_v12, %v3232_v8  ;;  %v3977_v16 = vpop.f32.mrb[37].mxu1  ;;  %v4018_v19 = vpop.f32.mrb[41].mxu0  ;;  %v6879_v7 = vld [vmem:[#allocation16 + $0x178] sm:$0xff]  }
 0x9c7   :  { %v3978_v20 = vadd.f32 %v3977_v16, %v3228_v9  ;;  %v4019_v21 = vadd.f32 %v4018_v19, %v3236_v10  ;;  %v3979_v23 = vpop.f32.mrb[38].mxu1  ;;  %v4020_v30 = vpop.f32.mrb[42].mxu0  ;;  %v6880_v8 = vld [vmem:[#allocation16 + $0x1f8] sm:$0xff]  }
 0x9c8   :  { %v4269_v24 = vmax.f32 %v3976_v62, 0.0  ;;  %v4271_v31 = vmax.f32 %v4017_v15, 0.0  ;;  %v3980_v32 = vpop.f32.mrb[39].mxu1  ;;  %v4021_v0 = vpop.f32.mrb[43].mxu0  ;;  %v6881_v23 = vld [vmem:[#allocation16 + $0x138] sm:$0xff]  }
 0x9c9   :  { %v4270_v33 = vmax.f32 %v3978_v20, 0.0  ;;  %v4272_v34 = vmax.f32 %v4019_v21, 0.0  ;;  %v6883_v0 = vld [vmem:[#allocation16 + $0x240] sm:$0xff]  }
 0x9ca   :  { %v4285_v40 = vpack.c.bf16 %v4269_v24, %v4269_v24  ;;  %v4287_v41 = vpack.c.bf16 %v4271_v31, %v4271_v31 }
 0x9cb   :  { %v4286_v35 = vpack.c.bf16 %v4270_v33, %v4270_v33  ;;  %v4288_v36 = vpack.c.bf16 %v4272_v34, %v4272_v34  ;;  %v6884_v33 = vld [vmem:[#allocation16 + $0x2c0] sm:$0xff]  }
 0x9cd   :  { %5363 = vmatprep.mubr.bf16.mxu1 %v4286_v35  ;;  %5403 = vmatprep.mubr.bf16.mxu0 %v4288_v36 }
 0x9ce   :  { %5364 = vmatmul.mubr.bf16.vlgmr.msra.gmra.mrb[52].mxu1 %v4285_v40  ;;  %5404 = vmatmul.mubr.bf16.vlgmr.msra.gmra.mrb[56].mxu0 %v4287_v41  ;;  %v6886_v40 = vld [vmem:[#allocation16 + $0x280] sm:$0xff]  }
 0x9cf   :  { %6481 = vmatpush3.bf16.msra.mxu1 %v6853_v37  ;;  %6503 = vmatpush3.bf16.msra.mxu0 %v6854_v39  ;;  %v6885_v39 = vld [vmem:[#allocation16 + $0x200] sm:$0xff]  }
 0x9d0   :  { %6482 = vmatprep.subr.bf16.mxu1 %v6855_v42  ;;  %6504 = vmatprep.subr.bf16.mxu0 %v6856_v43  ;;  %v6887_v43 = vld [vmem:[#allocation16 + $0x248] sm:$0xff]  }
 0x9d3   :  { %6483 = vmatpush3.bf16.msra.mxu1 %v6857_v44  ;;  %6505 = vmatpush3.bf16.msra.mxu0 %v6858_v45  ;;  %v6888_v44 = vld [vmem:[#allocation16 + $0x2c8] sm:$0xff]  }
 0x9d4   :  { %6484 = vmatprep.subr.bf16.mxu1 %v6859_v27  ;;  %6506 = vmatprep.subr.bf16.mxu0 %v6860_v46  ;;  %v6889_v45 = vld [vmem:[#allocation16 + $0x208] sm:$0xff]   ;;  %v6891_v46 = vld [vmem:[#allocation16 + $0x250] sm:$0xff]  }
 0x9d5   :  { %v6890_v27 = vld [vmem:[#allocation16 + $0x288] sm:$0xff]  }
 0x9d7   :  { %6485 = vmatpush3.bf16.msra.mxu1 %v6861_v47  ;;  %6507 = vmatpush3.bf16.msra.mxu0 %v6862_v48  ;;  %v6892_v47 = vld [vmem:[#allocation16 + $0x2d0] sm:$0xff]  }
 0x9d8   :  { %6486 = vmatprep.subr.bf16.mxu1 %v6863_v49  ;;  %6508 = vmatprep.subr.bf16.mxu0 %v6864_v6  ;;  %v6893_v48 = vld [vmem:[#allocation16 + $0x210] sm:$0xff]   ;;  %v6895_v6 = vld [vmem:[#allocation16 + $0x258] sm:$0xff]  }
 0x9d9   :  { %v6894_v49 = vld [vmem:[#allocation16 + $0x290] sm:$0xff]  }
 0x9db   :  { %6487 = vmatpush3.bf16.msra.mxu1 %v6865_v50  ;;  %6509 = vmatpush3.bf16.msra.mxu0 %v6866_v54  ;;  %v6896_v50 = vld [vmem:[#allocation16 + $0x2d8] sm:$0xff]  }
 0x9dc   :  { %6488 = vmatprep.subr.bf16.mxu1 %v6867_v55  ;;  %6510 = vmatprep.subr.bf16.mxu0 %v6868_v22  ;;  %v6897_v54 = vld [vmem:[#allocation16 + $0x218] sm:$0xff]   ;;  %v6899_v22 = vld [vmem:[#allocation16 + $0x260] sm:$0xff]  }
 0x9dd   :  { %v6898_v55 = vld [vmem:[#allocation16 + $0x298] sm:$0xff]  }
 0x9df   :  { %6489 = vmatpush3.bf16.msra.mxu1 %v6869_v56  ;;  %6511 = vmatpush3.bf16.msra.mxu0 %v6870_v57  ;;  %v6900_v56 = vld [vmem:[#allocation16 + $0x2e0] sm:$0xff]  }
 0x9e0   :  { %6490 = vmatprep.subr.bf16.mxu1 %v6871_v58  ;;  %6512 = vmatprep.subr.bf16.mxu0 %v6872_v59  ;;  %v6901_v57 = vld [vmem:[#allocation16 + $0x220] sm:$0xff]   ;;  %v6903_v59 = vld [vmem:[#allocation16 + $0x268] sm:$0xff]  }
 0x9e1   :  { %v6902_v58 = vld [vmem:[#allocation16 + $0x2a0] sm:$0xff]  }
 0x9e3   :  { %6491 = vmatpush3.bf16.msra.mxu1 %v6873_v51  ;;  %6513 = vmatpush3.bf16.msra.mxu0 %v6874_v60  ;;  %v6904_v51 = vld [vmem:[#allocation16 + $0x2e8] sm:$0xff]  }
 0x9e4   :  { %6492 = vmatprep.subr.bf16.mxu1 %v6875_v61  ;;  %6514 = vmatprep.subr.bf16.mxu0 %v6876_v63  ;;  %v6905_v60 = vld [vmem:[#allocation16 + $0x228] sm:$0xff]  }
 0x9e5   :  { %v4057_v9 = vpop.f32.mrb[40].mxu1  ;;  %v4098_v10 = vpop.f32.mrb[44].mxu0  ;;  %v6906_v61 = vld [vmem:[#allocation16 + $0x2a8] sm:$0xff]  }
 0x9e6   :  { %v4058_v11 = vadd.f32 %v4057_v9, %v3240_v38  ;;  %v4099_v12 = vadd.f32 %v4098_v10, %v3248_v1  ;;  %v4059_v62 = vpop.f32.mrb[41].mxu1  ;;  %v4100_v15 = vpop.f32.mrb[45].mxu0  ;;  %v7554_v63 = vld [vmem:[#allocation5 + $0x25] sm:$0xff]  ;;  %v6911_v9 = vld [vmem:[#allocation16 + $0x278] sm:$0xff]  }
 0x9e7   :  { %v4060_v16 = vadd.f32 %v4059_v62, %v3244_v2  ;;  %v4101_v19 = vadd.f32 %v4100_v15, %v3252_v3  ;;  %v4061_v20 = vpop.f32.mrb[42].mxu1  ;;  %v4102_v21 = vpop.f32.mrb[46].mxu0  ;;  %6493 = vmatpush3.bf16.msra.mxu1 %v6877_v4  ;;  %6515 = vmatpush3.bf16.msra.mxu0 %v6878_v53  ;;  %v6907_v38 = vld [vmem:[#allocation16 + $0x270] sm:$0xff]   ;;  %v3256_v2 = vrot.slane %v7554_v63, %v7439_v25  ;;  %v6912_v10 = vld [vmem:[#allocation16 + $0x2f8] sm:$0xff]  }
 0x9e8   :  { %v4273_v30 = vmax.f32 %v4058_v11, 0.0  ;;  %v4275_v24 = vmax.f32 %v4099_v12, 0.0  ;;  %v4062_v31 = vpop.f32.mrb[43].mxu1  ;;  %v4103_v32 = vpop.f32.mrb[47].mxu0  ;;  %6494 = vmatprep.subr.bf16.mxu1 %v6879_v7  ;;  %6516 = vmatprep.subr.bf16.mxu0 %v6880_v8  ;;  %v6908_v1 = vld [vmem:[#allocation16 + $0x2f0] sm:$0xff]   ;;  %v3264_v3 = vrot.slane %v7554_v63, %v7442_v26  ;;  %v3260_v4 = vrot.slane %v7554_v63, %v7447_v28  ;;  %v6913_v28 = vld [vmem:[#allocation16 + $0x238] sm:$0xff]  }
 0x9e9   :  { %v4274_v34 = vmax.f32 %v4060_v16, 0.0  ;;  %v4276_v35 = vmax.f32 %v4101_v19, 0.0  ;;  %v3268_v53 = vrot.slane %v7554_v63, %v7450_v29  ;;  %v6909_v7 = vld [vmem:[#allocation16 + $0x230] sm:$0xff]   ;;  %v6914_v29 = vld [vmem:[#allocation16 + $0x2b8] sm:$0xff]   ;;  %v6915_v31 = vld [vmem:[#allocation16 + $0x340] sm:$0xff]  }
 0x9ea   :  { %v4289_v41 = vpack.c.bf16 %v4273_v30, %v4273_v30  ;;  %v4291_v42 = vpack.c.bf16 %v4275_v24, %v4275_v24  ;;  %v6910_v8 = vld [vmem:[#allocation16 + $0x2b0] sm:$0xff]   ;;  %v6916_v32 = vld [vmem:[#allocation16 + $0x3c0] sm:$0xff]  }
 0x9eb   :  { %v4290_v36 = vpack.c.bf16 %v4274_v34, %v4274_v34  ;;  %v4292_v37 = vpack.c.bf16 %v4276_v35, %v4276_v35  ;;  %6495 = vmatpush3.bf16.msra.mxu1 %v6881_v23  ;;  %6517 = vmatpush3.bf16.msra.mxu0 %v6882_v5 }
 0x9ec   :  { %6524 = vmatprep.subr.bf16.mxu1 %v6883_v0  ;;  %6546 = vmatprep.subr.bf16.mxu0 %v6884_v33 }
 0x9ed   :  { %5443 = vmatprep.mubr.bf16.mxu1 %v4290_v36  ;;  %5483 = vmatprep.mubr.bf16.mxu0 %v4292_v37  ;;  %v6917_v36 = vld [vmem:[#allocation16 + $0x300] sm:$0xff]  }
 0x9ee   :  { %5444 = vmatmul.mubr.bf16.vlgmr.msra.gmra.mrb[56].mxu1 %v4289_v41  ;;  %5484 = vmatmul.mubr.bf16.vlgmr.msra.gmra.mrb[60].mxu0 %v4291_v42  ;;  %v6918_v37 = vld [vmem:[#allocation16 + $0x380] sm:$0xff]   ;;  %v6919_v41 = vld [vmem:[#allocation16 + $0x348] sm:$0xff]  }
 0x9ef   :  { %6525 = vmatpush3.bf16.msra.mxu1 %v6885_v39  ;;  %6547 = vmatpush3.bf16.msra.mxu0 %v6886_v40  ;;  %v6920_v42 = vld [vmem:[#allocation16 + $0x3c8] sm:$0xff]  }
 0x9f0   :  { %6526 = vmatprep.subr.bf16.mxu1 %v6887_v43  ;;  %6548 = vmatprep.subr.bf16.mxu0 %v6888_v44  ;;  %v6921_v43 = vld [vmem:[#allocation16 + $0x308] sm:$0xff]  }
 0x9f1   :  { %v6922_v44 = vld [vmem:[#allocation16 + $0x388] sm:$0xff]  }
 0x9f3   :  { %6527 = vmatpush3.bf16.msra.mxu1 %v6889_v45  ;;  %6549 = vmatpush3.bf16.msra.mxu0 %v6890_v27  ;;  %v6923_v45 = vld [vmem:[#allocation16 + $0x350] sm:$0xff]  }
 0x9f4   :  { %6528 = vmatprep.subr.bf16.mxu1 %v6891_v46  ;;  %6550 = vmatprep.subr.bf16.mxu0 %v6892_v47  ;;  %v6924_v27 = vld [vmem:[#allocation16 + $0x3d0] sm:$0xff]  }
 0x9f5   :  { %v6925_v46 = vld [vmem:[#allocation16 + $0x310] sm:$0xff]  }
 0x9f6   :  { %v6926_v47 = vld [vmem:[#allocation16 + $0x390] sm:$0xff]  }
 0x9f7   :  { %6529 = vmatpush3.bf16.msra.mxu1 %v6893_v48  ;;  %6551 = vmatpush3.bf16.msra.mxu0 %v6894_v49  ;;  %v6927_v48 = vld [vmem:[#allocation16 + $0x358] sm:$0xff]  }
 0x9f8   :  { %6530 = vmatprep.subr.bf16.mxu1 %v6895_v6  ;;  %6552 = vmatprep.subr.bf16.mxu0 %v6896_v50  ;;  %v6928_v49 = vld [vmem:[#allocation16 + $0x3d8] sm:$0xff]  }
 0x9f9   :  { %v6929_v6 = vld [vmem:[#allocation16 + $0x318] sm:$0xff]  }
 0x9fa   :  { %v6930_v50 = vld [vmem:[#allocation16 + $0x398] sm:$0xff]  }
 0x9fb   :  { %6531 = vmatpush3.bf16.msra.mxu1 %v6897_v54  ;;  %6553 = vmatpush3.bf16.msra.mxu0 %v6898_v55  ;;  %v6931_v54 = vld [vmem:[#allocation16 + $0x360] sm:$0xff]  }
 0x9fc   :  { %6532 = vmatprep.subr.bf16.mxu1 %v6899_v22  ;;  %6554 = vmatprep.subr.bf16.mxu0 %v6900_v56  ;;  %v6932_v55 = vld [vmem:[#allocation16 + $0x3e0] sm:$0xff]  }
 0x9fd   :  { %v6933_v22 = vld [vmem:[#allocation16 + $0x320] sm:$0xff]  }
 0x9fe   :  { %v6934_v56 = vld [vmem:[#allocation16 + $0x3a0] sm:$0xff]  }
 0x9ff   :  { %6533 = vmatpush3.bf16.msra.mxu1 %v6901_v57  ;;  %6555 = vmatpush3.bf16.msra.mxu0 %v6902_v58  ;;  %v6935_v57 = vld [vmem:[#allocation16 + $0x368] sm:$0xff]  }
 0xa00   :  { %6534 = vmatprep.subr.bf16.mxu1 %v6903_v59  ;;  %6556 = vmatprep.subr.bf16.mxu0 %v6904_v51  ;;  %v6936_v58 = vld [vmem:[#allocation16 + $0x3e8] sm:$0xff]  }
 0xa01   :  { %v6937_v59 = vld [vmem:[#allocation16 + $0x328] sm:$0xff]  }
 0xa02   :  { %v6938_v51 = vld [vmem:[#allocation16 + $0x3a8] sm:$0xff]  }
 0xa03   :  { %6535 = vmatpush3.bf16.msra.mxu1 %v6905_v60  ;;  %6557 = vmatpush3.bf16.msra.mxu0 %v6906_v61  ;;  %v6939_v60 = vld [vmem:[#allocation16 + $0x370] sm:$0xff]  }
 0xa04   :  { %6536 = vmatprep.subr.bf16.mxu1 %v6907_v38  ;;  %6558 = vmatprep.subr.bf16.mxu0 %v6908_v1  ;;  %v6940_v61 = vld [vmem:[#allocation16 + $0x3f0] sm:$0xff]   ;;  %v3272_v38 = vrot.slane %v7554_v63, %v7461_v13  ;;  %v3280_v1 = vrot.slane %v7554_v63, %v7464_v14 }
 0xa05   :  { %v4139_v11 = vpop.f32.mrb[44].mxu1  ;;  %v4180_v12 = vpop.f32.mrb[48].mxu0 }
 0xa06   :  { %v4140_v25 = vadd.f32 %v4139_v11, %v3256_v2  ;;  %v4181_v62 = vadd.f32 %v4180_v12, %v3264_v3  ;;  %v4141_v15 = vpop.f32.mrb[45].mxu1  ;;  %v4182_v26 = vpop.f32.mrb[49].mxu0  ;;  %v3276_v2 = vrot.slane %v7554_v63, %v7467_v17  ;;  %v3284_v3 = vrot.slane %v7554_v63, %v7470_v18  ;;  %v6945_v17 = vld [vmem:[#allocation16 + $0x338] sm:$0xff]  }
 0xa07   :  { %v4142_v16 = vadd.f32 %v4141_v15, %v3260_v4  ;;  %v4183_v19 = vadd.f32 %v4182_v26, %v3268_v53  ;;  %v4143_v20 = vpop.f32.mrb[46].mxu1  ;;  %v4184_v21 = vpop.f32.mrb[50].mxu0  ;;  %6537 = vmatpush3.bf16.msra.mxu1 %v6909_v7  ;;  %6559 = vmatpush3.bf16.msra.mxu0 %v6910_v8  ;;  %v6941_v4 = vld [vmem:[#allocation16 + $0x330] sm:$0xff]   ;;  %v6943_v7 = vld [vmem:[#allocation16 + $0x378] sm:$0xff]  }
 0xa08   :  { %v4277_v23 = vmax.f32 %v4140_v25, 0.0  ;;  %v4279_v5 = vmax.f32 %v4181_v62, 0.0  ;;  %v4144_v30 = vpop.f32.mrb[47].mxu1  ;;  %v4185_v24 = vpop.f32.mrb[51].mxu0  ;;  %6538 = vmatprep.subr.bf16.mxu1 %v6911_v9  ;;  %6560 = vmatprep.subr.bf16.mxu0 %v6912_v10  ;;  %v6942_v53 = vld [vmem:[#allocation16 + $0x3b0] sm:$0xff]   ;;  %v6944_v8 = vld [vmem:[#allocation16 + $0x3f8] sm:$0xff]  }
 0xa09   :  { %v4278_v0 = vmax.f32 %v4142_v16, 0.0  ;;  %v4280_v33 = vmax.f32 %v4183_v19, 0.0  ;;  %v6946_v18 = vld [vmem:[#allocation16 + $0x3b8] sm:$0xff]  }
 0xa0a   :  { %v4293_v39 = vpack.c.bf16 %v4277_v23, %v4277_v23  ;;  %v4295_v40 = vpack.c.bf16 %v4279_v5, %v4279_v5 }
 0xa0b   :  { %v4294_v34 = vpack.c.bf16 %v4278_v0, %v4278_v0  ;;  %v4296_v35 = vpack.c.bf16 %v4280_v33, %v4280_v33  ;;  %6539 = vmatpush3.bf16.msra.mxu1 %v6913_v28  ;;  %6561 = vmatpush3.bf16.msra.mxu0 %v6914_v29 }
 0xa0c   :  { %6568 = vmatprep.subr.bf16.mxu1 %v6915_v31  ;;  %6590 = vmatprep.subr.bf16.mxu0 %v6916_v32  ;;  %v6109_v32 = vld [vmem:[#allocation5 + $0x1c] ss:$0 sm:$0xff] }
 0xa0d   :  { %5523 = vmatprep.mubr.bf16.mxu1 %v4294_v34  ;;  %5563 = vmatprep.mubr.bf16.mxu0 %v4296_v35 }
 0xa0e   :  { %5524 = vmatmul.mubr.bf16.vlgmr.msra.gmra.mrb[60].mxu1 %v4293_v39  ;;  %5564 = vmatmul.mubr.bf16.vlgmr.msra.gmra.mrb[64].mxu0 %v4295_v40 }
 0xa0f   :  { %6569 = vmatpush3.bf16.msra.mxu1 %v6917_v36  ;;  %6591 = vmatpush3.bf16.msra.mxu0 %v6918_v37 }
 0xa10   :  { %6570 = vmatprep.subr.bf16.mxu1 %v6919_v41  ;;  %6592 = vmatprep.subr.bf16.mxu0 %v6920_v42 }
 0xa13   :  { %6571 = vmatpush3.bf16.msra.mxu1 %v6921_v43  ;;  %6593 = vmatpush3.bf16.msra.mxu0 %v6922_v44 }
 0xa14   :  { %6572 = vmatprep.subr.bf16.mxu1 %v6923_v45  ;;  %6594 = vmatprep.subr.bf16.mxu0 %v6924_v27 }
 0xa17   :  { %6573 = vmatpush3.bf16.msra.mxu1 %v6925_v46  ;;  %6595 = vmatpush3.bf16.msra.mxu0 %v6926_v47 }
 0xa18   :  { %6574 = vmatprep.subr.bf16.mxu1 %v6927_v48  ;;  %6596 = vmatprep.subr.bf16.mxu0 %v6928_v49 }
 0xa1b   :  { %6575 = vmatpush3.bf16.msra.mxu1 %v6929_v6  ;;  %6597 = vmatpush3.bf16.msra.mxu0 %v6930_v50 }
 0xa1c   :  { %6576 = vmatprep.subr.bf16.mxu1 %v6931_v54  ;;  %6598 = vmatprep.subr.bf16.mxu0 %v6932_v55 }
 0xa1f   :  { %6577 = vmatpush3.bf16.msra.mxu1 %v6933_v22  ;;  %6599 = vmatpush3.bf16.msra.mxu0 %v6934_v56 }
 0xa20   :  { %6578 = vmatprep.subr.bf16.mxu1 %v6935_v57  ;;  %6600 = vmatprep.subr.bf16.mxu0 %v6936_v58 }
 0xa23   :  { %6579 = vmatpush3.bf16.msra.mxu1 %v6937_v59  ;;  %6601 = vmatpush3.bf16.msra.mxu0 %v6938_v51 }
 0xa24   :  { %6580 = vmatprep.subr.bf16.mxu1 %v6939_v60  ;;  %6602 = vmatprep.subr.bf16.mxu0 %v6940_v61 }
 0xa25   :  { %v4221_v9 = vpop.f32.mrb[48].mxu1  ;;  %v4262_v10 = vpop.f32.mrb[52].mxu0 }
 0xa26   :  { %v4222_v13 = vadd.f32 %v4221_v9, %v3272_v38  ;;  %v4263_v11 = vadd.f32 %v4262_v10, %v3280_v1  ;;  %v4223_v12 = vpop.f32.mrb[49].mxu1  ;;  %v4264_v14 = vpop.f32.mrb[53].mxu0 }
 0xa27   :  { %v4224_v25 = vadd.f32 %v4223_v12, %v3276_v2  ;;  %v4265_v62 = vadd.f32 %v4264_v14, %v3284_v3  ;;  %v4225_v15 = vpop.f32.mrb[50].mxu1  ;;  %v4266_v26 = vpop.f32.mrb[54].mxu0  ;;  %6581 = vmatpush3.bf16.msra.mxu1 %v6941_v4  ;;  %6603 = vmatpush3.bf16.msra.mxu0 %v6942_v53 }
 0xa28   :  { %v4281_v63 = vmax.f32 %v4222_v13, 0.0  ;;  %v4283_v16 = vmax.f32 %v4263_v11, 0.0  ;;  %v4226_v19 = vpop.f32.mrb[51].mxu1  ;;  %v4267_v20 = vpop.f32.mrb[55].mxu0  ;;  %6582 = vmatprep.subr.bf16.mxu1 %v6943_v7  ;;  %6604 = vmatprep.subr.bf16.mxu0 %v6944_v8 }
 0xa29   :  { %v4282_v21 = vmax.f32 %v4224_v25, 0.0  ;;  %v4284_v28 = vmax.f32 %v4265_v62, 0.0 }
 0xa2a   :  { %v4297_v5 = vpack.c.bf16 %v4281_v63, %v4281_v63  ;;  %v4299_v30 = vpack.c.bf16 %v4283_v16, %v4283_v16 }
 0xa2b   :  { %v4298_v29 = vpack.c.bf16 %v4282_v21, %v4282_v21  ;;  %v4300_v23 = vpack.c.bf16 %v4284_v28, %v4284_v28  ;;  %6583 = vmatpush3.bf16.msra.mxu1 %v6945_v17  ;;  %6605 = vmatpush3.bf16.msra.mxu0 %v6946_v18  ;;  %v6238_v28 = vld [vmem:[#allocation5 + $0x1a] ss:$0 sm:$0xff] }
 0xa2d   :  { %5603 = vmatprep.mubr.bf16.mxu1 %v4298_v29  ;;  %5643 = vmatprep.mubr.bf16.mxu0 %v4300_v23  ;;  %v6239_v23 = vld [vmem:[#allocation5 + $0x1b] ss:$0 sm:$0xff] }
 0xa2e   :  { %5604 = vmatmul.mubr.bf16.vlgmr.msra.gmra.mrb[64].mxu1 %v4297_v5  ;;  %5644 = vmatmul.mubr.bf16.vlgmr.msra.gmra.mrb[68].mxu0 %v4299_v30 }
 0xaa1   :  { %v6452_v24 = vpop.f32.mrb[52].mxu1  ;;  %v6474_v31 = vpop.f32.mrb[56].mxu0 }
 0xaa2   :  { %v6453_v0 = vpop.f32.mrb[53].mxu1  ;;  %v6475_v33 = vpop.f32.mrb[57].mxu0 }
 0xaa3   :  { %v6454_v34 = vadd.f32 %v6453_v0, %v6452_v24  ;;  %v6476_v35 = vadd.f32 %v6475_v33, %v6474_v31  ;;  %v6455_v36 = vpop.f32.mrb[54].mxu1  ;;  %v6477_v37 = vpop.f32.mrb[58].mxu0 }
 0xaa4   :  { %v6456_v39 = vpop.f32.mrb[55].mxu1  ;;  %v6478_v40 = vpop.f32.mrb[59].mxu0 }
 0xaa5   :  { %v5366_v41 = vadd.f32 %v6454_v34, %v6109_v32 }
 0xaa7   :  { %v5406_v42 = vadd.f32 %v6476_v35, %v5366_v41 }
 0xac1   :  { %v6496_v43 = vpop.f32.mrb[56].mxu1  ;;  %v6518_v44 = vpop.f32.mrb[60].mxu0 }
 0xac2   :  { %v6497_v45 = vpop.f32.mrb[57].mxu1  ;;  %v6519_v27 = vpop.f32.mrb[61].mxu0 }
 0xac3   :  { %v6498_v46 = vadd.f32 %v6497_v45, %v6496_v43  ;;  %v6520_v47 = vadd.f32 %v6519_v27, %v6518_v44  ;;  %v6499_v48 = vpop.f32.mrb[58].mxu1  ;;  %v6521_v49 = vpop.f32.mrb[62].mxu0 }
 0xac4   :  { %v6500_v6 = vpop.f32.mrb[59].mxu1  ;;  %v6522_v50 = vpop.f32.mrb[63].mxu0 }
 0xac5   :  { %v5446_v54 = vadd.f32 %v6498_v46, %v5406_v42 }
 0xac7   :  { %v5486_v55 = vadd.f32 %v6520_v47, %v5446_v54 }
 0xae1   :  { %v6540_v22 = vpop.f32.mrb[60].mxu1  ;;  %v6562_v56 = vpop.f32.mrb[64].mxu0 }
 0xae2   :  { %v6541_v57 = vpop.f32.mrb[61].mxu1  ;;  %v6563_v58 = vpop.f32.mrb[65].mxu0 }
 0xae3   :  { %v6542_v59 = vadd.f32 %v6541_v57, %v6540_v22  ;;  %v6564_v51 = vadd.f32 %v6563_v58, %v6562_v56  ;;  %v6543_v60 = vpop.f32.mrb[62].mxu1  ;;  %v6565_v61 = vpop.f32.mrb[66].mxu0 }
 0xae4   :  { %v6544_v38 = vpop.f32.mrb[63].mxu1  ;;  %v6566_v1 = vpop.f32.mrb[67].mxu0 }
 0xae5   :  { %v5526_v2 = vadd.f32 %v6542_v59, %v5486_v55 }
 0xae7   :  { %v5566_v3 = vadd.f32 %v6564_v51, %v5526_v2 }
 0xb01   :  { %v6584_v4 = vpop.f32.mrb[64].mxu1  ;;  %v6606_v53 = vpop.f32.mrb[68].mxu0 }
 0xb02   :  { %v6585_v7 = vpop.f32.mrb[65].mxu1  ;;  %v6607_v8 = vpop.f32.mrb[69].mxu0 }
 0xb03   :  { %v6586_v9 = vadd.f32 %v6585_v7, %v6584_v4  ;;  %v6608_v10 = vadd.f32 %v6607_v8, %v6606_v53  ;;  %v6587_v13 = vpop.f32.mrb[66].mxu1  ;;  %v6609_v11 = vpop.f32.mrb[70].mxu0 }
 0xb04   :  { %v6588_v12 = vpop.f32.mrb[67].mxu1  ;;  %v6610_v14 = vpop.f32.mrb[71].mxu0 }
 0xb05   :  { %v5606_v25 = vadd.f32 %v6586_v9, %v5566_v3 }
 0xb07   :  { %v5646_v62 = vadd.f32 %v6608_v10, %v5606_v25 }
 0xb09   :  { %v5651_v15 = vadd.f32 %v5646_v62, %v7516_v52 }
 0xb0b   :  { %5652 = vadd.xlane.f32.xlu0 %v5651_v15 }
 0xb98   :  { %v5653_v26 = vpop.xlane.xlu0 %5652 }
 0xb99   :  { %v5654_v17 = vmul.f32 0.0078125, %v5653_v26 }
 0xb9b   :  { %v5655_v18 = vsub.f32 %v5651_v15, %v5654_v17 }
 0xb9d   :  { %v5656_v63 = vmul.f32 %v5655_v18, %v5655_v18 }
 0xb9f   :  { %5657 = vadd.xlane.f32.xlu1 %v5656_v63 }
 0xc2c   :  { %v5658_v16 = vpop.xlane.xlu1 %5657 }
 0xc2d   :  { %v5659_v19 = vmul.f32 0.0078125, %v5658_v16 }
 0xc2f   :  { %v5660_v20 = vadd.f32 1e-05, %v5659_v19 }
 0xc31   :  { %6953 = vrsqrt.f32 %v5660_v20 }
 0xc3b   :  { %v6954_v21 = vpop.eup %6953 }
 0xc3c   :  { %v5662_v29 = vmul.f32 %v6954_v21, %v5655_v18 }
 0xc3e   :  { %v5669_v5 = vmul.f32 %v6238_v28, %v5662_v29 }
 0xc40   :  { %v5676_v30 = vadd.f32 %v6239_v23, %v5669_v5 }
 0xc42   :  { %5677 = vst [vmem:[#allocation17] sm:$0xff] %v5676_v30 }
 0xc43   :  { %7164 = shalt.err (!%p7161_p6)
}
 0xc44   :  { %s7165_s27 = scalar_lea.hbm %s7594_s9, 128 }
 0xc45   :  { %p7166_p7 = scmp.ne.s32.totalorder %s7594_s9, %s7165_s27  ;;  %p7169_p8 = scmp.lt.u32.totalorder %s7165_s27, %s7594_s9 }
 0xc47   :  { %p7171_p9 = pnand %p7169_p8, %p7166_p7 }
 0xc49   :  { %7174 = shalt.err (!%p7171_p9)
}
 0xc4a   :  { %5687 = dma.vmem_to_hbm [thread:$0]  %s5685_s10, 128, %s7594_s9, [#allocation4]  }
 0xc4b   :  { %7185 = dma.done.wait [#allocation4], 128  }
 0xc4c   :  { %7186 = vsyncadd [#allocation4], 4294967168 }
 0xc4d   :  { %5691 = vsyncpa [#allocation3], 1 }
 0xc4e   :  { %5692 = vsyncpa [#allocation6], 1 }
 0xc4f   :  { %5693 = vsyncpa [#allocation9], 1 }
 0xc50   :  { %5694 = vsyncpa [#allocation12], 1 }
 0xc51   :  { %5695 = vsyncpa [#allocation15], 1 }
 0xc52   :  { %5696 = vsyncpa [#allocation4], 1 }

</bundles_post_ra>
